<compile_context>
chip_gen: v6e
topology: v6e:2x2x1
jax: 0.10.0
libtpu: 0.0.40
codegen_flags: <defaults>
</compile_context>

<pallas_src>
import jax
import jax.numpy as jnp
from jax.experimental import pallas as pl
from jax.experimental.pallas import tpu as pltpu

LEAKY_SLOPE = 0.01  # PyTorch nn.LeakyReLU default

# Logical dims
D_HID = 400
D_200 = 200
D_OUT = 6
N_BODY = 3      # layers in maps_enc / maps_au
N_DEC400 = 7    # 400->400 layers in maps_dec

# Padded (lane/sublane friendly) dims
KP = 128        # padded head input width (latent_dim and 6 both -> 128)
DP = 512        # padded hidden width (400 -> 512)
D200P = 256     # padded 200 -> 256
DOUTP = 128     # padded output 6 -> 128 (unmasked lane-dense stores)


def _leaky(y):
    # valid for 0 <= slope <= 1
    return jnp.maximum(y, LEAKY_SLOPE * y)


def _mm(h_f32, w_bf16_ref_val):
    """bf16 x bf16 matmul on the MXU with f32 accumulation."""
    return jnp.dot(h_f32.astype(jnp.bfloat16), w_bf16_ref_val,
                   preferred_element_type=jnp.float32)


# ---------------------------------------------------------------------------
# Single fused kernel: both branch heads + 3-layer bodies, then the shared
# decoder on the concatenated batch.  Everything resident in VMEM, no grid.
# ---------------------------------------------------------------------------
def generator_kernel(x_ref, head_w_ref, head_b_ref, body_w_ref, body_b_ref,
                     dec7_w_ref, dec7_b_ref, w200_ref, b200_ref,
                     wout_ref, bout_ref, lat_ref, out_ref):
    # ---- branches: idx 0 = photons path (map1_au/maps_au),
    #                idx 1 = noise path   (map1_en/maps_enc)
    def branch(idx):
        x = x_ref[idx].astype(jnp.float32)                           # (B, KP)
        h = _leaky(_mm(x, head_w_ref[idx]) + head_b_ref[idx])        # (B, DP) f32
        for i in range(N_BODY):                                      # static unroll
            h = _leaky(_mm(h, body_w_ref[idx * N_BODY + i])
                       + body_b_ref[idx * N_BODY + i])
        return h

    h_ph = branch(0)
    h_nz = branch(1)
    lat_ref[0] = h_ph
    lat_ref[1] = h_nz

    # ---- shared decoder on the concatenated (2B, DP) batch
    h = jnp.concatenate([h_ph, h_nz], axis=0)                        # (2B, DP) f32
    for i in range(N_DEC400):                                        # static unroll
        h = _leaky(_mm(h, dec7_w_ref[i]) + dec7_b_ref[i])
    h = _leaky(_mm(h, w200_ref[...]) + b200_ref[...])
    y = _mm(h, wout_ref[...]) + bout_ref[...]
    out_ref[...] = y


def _fused_forward(x_stacked, p):
    B = x_stacked.shape[1]
    M = 2 * B
    flops = int(2 * 2 * B * (KP * DP + N_BODY * DP * DP)
                + 2 * M * (N_DEC400 * DP * DP + DP * D200P + D200P * DOUTP))
    w_bytes = 2 * int(p["head_w"].size + p["body_w"].size + p["dec7_w"].size
                      + p["w200"].size + p["wout"].size)
    b_bytes = 4 * int(p["head_b"].size + p["body_b"].size + p["dec7_b"].size
                      + p["b200"].size + p["bout"].size)
    bytes_accessed = int(w_bytes + b_bytes + x_stacked.size * 4
                         + 2 * B * DP * 4 + M * DOUTP * 4)
    return pl.pallas_call(
        generator_kernel,
        out_shape=(jax.ShapeDtypeStruct((2, B, DP), jnp.float32),
                   jax.ShapeDtypeStruct((M, DOUTP), jnp.float32)),
        compiler_params=pltpu.CompilerParams(vmem_limit_bytes=32 * 1024 * 1024),
        cost_estimate=pl.CostEstimate(flops=flops, transcendentals=0,
                                      bytes_accessed=bytes_accessed),
    )(x_stacked, p["head_w"], p["head_b"], p["body_w"], p["body_b"],
      p["dec7_w"], p["dec7_b"], p["w200"], p["b200"], p["wout"], p["bout"])


# ---------------------------------------------------------------------------
# Parameter construction: kaiming_normal_-style weights, padded; weights bf16,
# biases f32 (tiny; avoids in-kernel casts on the bias-add path).
# ---------------------------------------------------------------------------
def _init_linear(key, in_dim, out_dim):
    kw, kb = jax.random.split(key)
    std = (2.0 / in_dim) ** 0.5      # kaiming_normal_, fan_in, a=0 -> gain sqrt(2)
    w = std * jax.random.normal(kw, (in_dim, out_dim), jnp.float32)
    bound = 1.0 / (in_dim ** 0.5)    # PyTorch Linear default bias init
    b = jax.random.uniform(kb, (out_dim,), jnp.float32, -bound, bound)
    return w, b


def _pad_wb(w, b, pin, pout):
    wp = jnp.zeros((pin, pout), jnp.float32).at[: w.shape[0], : w.shape[1]].set(w)
    bp = jnp.zeros((pout,), jnp.float32).at[: b.shape[0]].set(b)
    return wp.astype(jnp.bfloat16), bp                 # weights bf16, bias f32


def init_generator_params(key, latent_dim):
    keys = iter(jax.random.split(key, 32))

    def lin(in_dim, out_dim, pin, pout):
        w, b = _init_linear(next(keys), in_dim, out_dim)
        return _pad_wb(w, b, pin, pout)

    # branch 0 = photons path (map1_au, 6->400); branch 1 = noise path (map1_en)
    w_au, b_au = lin(6, D_HID, KP, DP)
    w_en, b_en = lin(latent_dim, D_HID, KP, DP)
    head_w = jnp.stack([w_au, w_en])                          # (2, KP, DP) bf16
    head_b = jnp.stack([b_au, b_en]).reshape(2, 1, DP)        # (2, 1, DP) f32

    def body_stack():
        ws, bs = [], []
        for _ in range(N_BODY):
            w, b = lin(D_HID, D_HID, DP, DP)
            ws.append(w)
            bs.append(b)
        return ws, bs

    au_w, au_b = body_stack()        # maps_au   (branch 0)
    en_w, en_b = body_stack()        # maps_enc  (branch 1)
    body_w = jnp.stack(au_w + en_w)                           # (6, DP, DP) bf16
    body_b = jnp.stack(au_b + en_b).reshape(2 * N_BODY, 1, DP)

    dec_ws, dec_bs = [], []
    for _ in range(N_DEC400):
        w, b = lin(D_HID, D_HID, DP, DP)
        dec_ws.append(w)
        dec_bs.append(b)
    dec7_w = jnp.stack(dec_ws)                                # (7, DP, DP) bf16
    dec7_b = jnp.stack(dec_bs).reshape(N_DEC400, 1, DP)
    w200, b200 = lin(D_HID, D_200, DP, D200P)
    wout, bout = lin(D_200, D_OUT, D200P, DOUTP)

    return dict(head_w=head_w, head_b=head_b, body_w=body_w, body_b=body_b,
                dec7_w=dec7_w, dec7_b=dec7_b,
                w200=w200, b200=b200.reshape(1, D200P),
                wout=wout, bout=bout.reshape(1, DOUTP))


# ---------------------------------------------------------------------------
# Generator forward (matches RoGAN.Generator.forward)
# ---------------------------------------------------------------------------
def generator_forward(params, noise, photons_batch):
    B = noise.shape[0]
    B_pad = -(-B // 8) * 8  # sublane-friendly batch

    def pad_input(x):
        return (jnp.zeros((B_pad, KP), jnp.float32)
                .at[: x.shape[0], : x.shape[1]].set(x.astype(jnp.float32)))

    # branch 0 = photons (au path), branch 1 = noise (enc path)
    x_stacked = jnp.stack([pad_input(photons_batch), pad_input(noise)])  # (2,B_pad,KP)

    lat, dec_out = _fused_forward(x_stacked, params)
    # lat: (2, B_pad, DP) f32 ; dec_out: (2*B_pad, DOUTP) f32

    latent_decoded_photons = lat[0, :B, :D_HID]
    latent_generated_photons = lat[1, :B, :D_HID]
    decoded_photons = dec_out[:B, :D_OUT]                    # photons branch
    generated_photons = dec_out[B_pad:B_pad + B, :D_OUT]     # noise branch

    return (generated_photons, decoded_photons,
            latent_generated_photons, latent_decoded_photons)


# ---------------------------------------------------------------------------
# Pure-JAX reference (same padded bf16 weights, same bf16-activation matmuls).
# ---------------------------------------------------------------------------
def _reference_forward(params, noise, photons_batch):
    def pad_in(x):
        return (jnp.zeros((x.shape[0], KP), jnp.float32)
                .at[:, : x.shape[1]].set(x.astype(jnp.float32)))

    def lin(h, w, b):
        return jnp.dot(h.astype(jnp.bfloat16), w,
                       preferred_element_type=jnp.float32) + b

    def branch(x, idx):
        h = _leaky(lin(x, params["head_w"][idx], params["head_b"][idx]))
        for i in range(N_BODY):
            h = _leaky(lin(h, params["body_w"][idx * N_BODY + i],
                           params["body_b"][idx * N_BODY + i]))
        return h

    ph = branch(pad_in(photons_batch), 0)
    nz = branch(pad_in(noise), 1)

    def dec(h):
        for i in range(N_DEC400):
            h = _leaky(lin(h, params["dec7_w"][i], params["dec7_b"][i]))
        h = _leaky(lin(h, params["w200"], params["b200"]))
        return lin(h, params["wout"], params["bout"])

    return (dec(nz)[:, :D_OUT], dec(ph)[:, :D_OUT],
            nz[:, :D_HID], ph[:, :D_HID])


# ---------------------------------------------------------------------------
if __name__ == "__main__":
    latent_dim = 32
    batch = 8

    key = jax.random.PRNGKey(0)
    k_params, k_noise, k_photons = jax.random.split(key, 3)

    params = init_generator_params(k_params, latent_dim)
    noise = jax.random.normal(k_noise, (batch, latent_dim), jnp.float32)
    photons_batch = jax.random.normal(k_photons, (batch, 6), jnp.float32)

    fwd = jax.jit(generator_forward)
    outs = jax.block_until_ready(fwd(params, noise, photons_batch))

    gen, dec, lat_gen, lat_dec = outs
    assert gen.shape == (batch, 6)
    assert dec.shape == (batch, 6)
    assert lat_gen.shape == (batch, 400)
    assert lat_dec.shape == (batch, 400)
    assert all(bool(jnp.all(jnp.isfinite(o))) for o in outs)

    # sanity check against a pure-JAX reference using identical bf16 weights
    # and identical bf16-activation / f32-accumulate matmuls.
    refs = _reference_forward(params, noise, photons_batch)
    for a, b in zip(outs, refs):
        assert bool(jnp.allclose(a, b, rtol=1e-2, atol=1e-2)), "mismatch vs reference"

    print("KERNEL_OK")
</pallas_src>

<mosaic_0001>
module attributes {stable_mosaic.version = 11 : i64} {
  func.func @generator_kernel(%arg0: memref<2x8x128xf32, #tpu.memory_space<vmem>>, %arg1: memref<2x128x512xbf16, #tpu.memory_space<vmem>>, %arg2: memref<2x1x512xf32, #tpu.memory_space<vmem>>, %arg3: memref<6x512x512xbf16, #tpu.memory_space<vmem>>, %arg4: memref<6x1x512xf32, #tpu.memory_space<vmem>>, %arg5: memref<7x512x512xbf16, #tpu.memory_space<vmem>>, %arg6: memref<7x1x512xf32, #tpu.memory_space<vmem>>, %arg7: memref<512x256xbf16, #tpu.memory_space<vmem>>, %arg8: memref<1x256xf32, #tpu.memory_space<vmem>>, %arg9: memref<256x128xbf16, #tpu.memory_space<vmem>>, %arg10: memref<1x128xf32, #tpu.memory_space<vmem>>, %arg11: memref<2x8x512xf32, #tpu.memory_space<vmem>>, %arg12: memref<16x128xf32, #tpu.memory_space<vmem>>) attributes {dimension_semantics = [], scalar_prefetch = 0 : i64, scratch_operands = 0 : i64, tpu.core_type = #tpu.core_type<tc>} {
    %c0 = arith.constant 0 : index
    %c0_0 = arith.constant 0 : index
    %c0_1 = arith.constant 0 : index
    %0 = vector.load %arg0[%c0, %c0_0, %c0_1] : memref<2x8x128xf32, #tpu.memory_space<vmem>>, vector<1x8x128xf32>
    %1 = vector.shape_cast %0 : vector<1x8x128xf32> to vector<8x128xf32>
    %c0_2 = arith.constant 0 : index
    %c0_3 = arith.constant 0 : index
    %c0_4 = arith.constant 0 : index
    %2 = vector.load %arg1[%c0_2, %c0_3, %c0_4] : memref<2x128x512xbf16, #tpu.memory_space<vmem>>, vector<1x128x512xbf16>
    %3 = vector.shape_cast %2 : vector<1x128x512xbf16> to vector<128x512xbf16>
    %4 = arith.truncf %1 : vector<8x128xf32> to vector<8x128xbf16>
    %cst = arith.constant dense<0.000000e+00> : vector<8x512xf32>
    %5 = tpu.matmul %4, %3, %cst {dimension_numbers = #tpu.dot_dimension_numbers<[1], [0], [0], [1], [0, 0, 1, 1], [], []>} : vector<8x128xbf16>, vector<128x512xbf16>, vector<8x512xf32> -> vector<8x512xf32>
    %c0_5 = arith.constant 0 : index
    %c0_6 = arith.constant 0 : index
    %c0_7 = arith.constant 0 : index
    %6 = vector.load %arg2[%c0_5, %c0_6, %c0_7] : memref<2x1x512xf32, #tpu.memory_space<vmem>>, vector<1x1x512xf32>
    %7 = vector.shape_cast %6 : vector<1x1x512xf32> to vector<1x512xf32>
    %8 = vector.broadcast %7 : vector<1x512xf32> to vector<8x512xf32>
    %9 = arith.addf %5, %8 : vector<8x512xf32>
    %cst_8 = arith.constant 0.00999999977 : f32
    %10 = vector.broadcast %cst_8 : f32 to vector<8x512xf32>
    %11 = arith.mulf %10, %9 : vector<8x512xf32>
    %12 = arith.maximumf %9, %11 : vector<8x512xf32>
    %c0_9 = arith.constant 0 : index
    %c0_10 = arith.constant 0 : index
    %c0_11 = arith.constant 0 : index
    %13 = vector.load %arg3[%c0_9, %c0_10, %c0_11] : memref<6x512x512xbf16, #tpu.memory_space<vmem>>, vector<1x512x512xbf16>
    %14 = vector.shape_cast %13 : vector<1x512x512xbf16> to vector<512x512xbf16>
    %15 = arith.truncf %12 : vector<8x512xf32> to vector<8x512xbf16>
    %cst_12 = arith.constant dense<0.000000e+00> : vector<8x512xf32>
    %16 = tpu.matmul %15, %14, %cst_12 {dimension_numbers = #tpu.dot_dimension_numbers<[1], [0], [0], [1], [0, 0, 1, 1], [], []>} : vector<8x512xbf16>, vector<512x512xbf16>, vector<8x512xf32> -> vector<8x512xf32>
    %c0_13 = arith.constant 0 : index
    %c0_14 = arith.constant 0 : index
    %c0_15 = arith.constant 0 : index
    %17 = vector.load %arg4[%c0_13, %c0_14, %c0_15] : memref<6x1x512xf32, #tpu.memory_space<vmem>>, vector<1x1x512xf32>
    %18 = vector.shape_cast %17 : vector<1x1x512xf32> to vector<1x512xf32>
    %19 = vector.broadcast %18 : vector<1x512xf32> to vector<8x512xf32>
    %20 = arith.addf %16, %19 : vector<8x512xf32>
    %cst_16 = arith.constant 0.00999999977 : f32
    %21 = vector.broadcast %cst_16 : f32 to vector<8x512xf32>
    %22 = arith.mulf %21, %20 : vector<8x512xf32>
    %23 = arith.maximumf %20, %22 : vector<8x512xf32>
    %c1 = arith.constant 1 : index
    %c0_17 = arith.constant 0 : index
    %c0_18 = arith.constant 0 : index
    %24 = vector.load %arg3[%c1, %c0_17, %c0_18] : memref<6x512x512xbf16, #tpu.memory_space<vmem>>, vector<1x512x512xbf16>
    %25 = vector.shape_cast %24 : vector<1x512x512xbf16> to vector<512x512xbf16>
    %26 = arith.truncf %23 : vector<8x512xf32> to vector<8x512xbf16>
    %cst_19 = arith.constant dense<0.000000e+00> : vector<8x512xf32>
    %27 = tpu.matmul %26, %25, %cst_19 {dimension_numbers = #tpu.dot_dimension_numbers<[1], [0], [0], [1], [0, 0, 1, 1], [], []>} : vector<8x512xbf16>, vector<512x512xbf16>, vector<8x512xf32> -> vector<8x512xf32>
    %c1_20 = arith.constant 1 : index
    %c0_21 = arith.constant 0 : index
    %c0_22 = arith.constant 0 : index
    %28 = vector.load %arg4[%c1_20, %c0_21, %c0_22] : memref<6x1x512xf32, #tpu.memory_space<vmem>>, vector<1x1x512xf32>
    %29 = vector.shape_cast %28 : vector<1x1x512xf32> to vector<1x512xf32>
    %30 = vector.broadcast %29 : vector<1x512xf32> to vector<8x512xf32>
    %31 = arith.addf %27, %30 : vector<8x512xf32>
    %cst_23 = arith.constant 0.00999999977 : f32
    %32 = vector.broadcast %cst_23 : f32 to vector<8x512xf32>
    %33 = arith.mulf %32, %31 : vector<8x512xf32>
    %34 = arith.maximumf %31, %33 : vector<8x512xf32>
    %c2 = arith.constant 2 : index
    %c0_24 = arith.constant 0 : index
    %c0_25 = arith.constant 0 : index
    %35 = vector.load %arg3[%c2, %c0_24, %c0_25] : memref<6x512x512xbf16, #tpu.memory_space<vmem>>, vector<1x512x512xbf16>
    %36 = vector.shape_cast %35 : vector<1x512x512xbf16> to vector<512x512xbf16>
    %37 = arith.truncf %34 : vector<8x512xf32> to vector<8x512xbf16>
    %cst_26 = arith.constant dense<0.000000e+00> : vector<8x512xf32>
    %38 = tpu.matmul %37, %36, %cst_26 {dimension_numbers = #tpu.dot_dimension_numbers<[1], [0], [0], [1], [0, 0, 1, 1], [], []>} : vector<8x512xbf16>, vector<512x512xbf16>, vector<8x512xf32> -> vector<8x512xf32>
    %c2_27 = arith.constant 2 : index
    %c0_28 = arith.constant 0 : index
    %c0_29 = arith.constant 0 : index
    %39 = vector.load %arg4[%c2_27, %c0_28, %c0_29] : memref<6x1x512xf32, #tpu.memory_space<vmem>>, vector<1x1x512xf32>
    %40 = vector.shape_cast %39 : vector<1x1x512xf32> to vector<1x512xf32>
    %41 = vector.broadcast %40 : vector<1x512xf32> to vector<8x512xf32>
    %42 = arith.addf %38, %41 : vector<8x512xf32>
    %cst_30 = arith.constant 0.00999999977 : f32
    %43 = vector.broadcast %cst_30 : f32 to vector<8x512xf32>
    %44 = arith.mulf %43, %42 : vector<8x512xf32>
    %45 = arith.maximumf %42, %44 : vector<8x512xf32>
    %c1_31 = arith.constant 1 : index
    %c0_32 = arith.constant 0 : index
    %c0_33 = arith.constant 0 : index
    %46 = vector.load %arg0[%c1_31, %c0_32, %c0_33] : memref<2x8x128xf32, #tpu.memory_space<vmem>>, vector<1x8x128xf32>
    %47 = vector.shape_cast %46 : vector<1x8x128xf32> to vector<8x128xf32>
    %c1_34 = arith.constant 1 : index
    %c0_35 = arith.constant 0 : index
    %c0_36 = arith.constant 0 : index
    %48 = vector.load %arg1[%c1_34, %c0_35, %c0_36] : memref<2x128x512xbf16, #tpu.memory_space<vmem>>, vector<1x128x512xbf16>
    %49 = vector.shape_cast %48 : vector<1x128x512xbf16> to vector<128x512xbf16>
    %50 = arith.truncf %47 : vector<8x128xf32> to vector<8x128xbf16>
    %cst_37 = arith.constant dense<0.000000e+00> : vector<8x512xf32>
    %51 = tpu.matmul %50, %49, %cst_37 {dimension_numbers = #tpu.dot_dimension_numbers<[1], [0], [0], [1], [0, 0, 1, 1], [], []>} : vector<8x128xbf16>, vector<128x512xbf16>, vector<8x512xf32> -> vector<8x512xf32>
    %c1_38 = arith.constant 1 : index
    %c0_39 = arith.constant 0 : index
    %c0_40 = arith.constant 0 : index
    %52 = vector.load %arg2[%c1_38, %c0_39, %c0_40] : memref<2x1x512xf32, #tpu.memory_space<vmem>>, vector<1x1x512xf32>
    %53 = vector.shape_cast %52 : vector<1x1x512xf32> to vector<1x512xf32>
    %54 = vector.broadcast %53 : vector<1x512xf32> to vector<8x512xf32>
    %55 = arith.addf %51, %54 : vector<8x512xf32>
    %cst_41 = arith.constant 0.00999999977 : f32
    %56 = vector.broadcast %cst_41 : f32 to vector<8x512xf32>
    %57 = arith.mulf %56, %55 : vector<8x512xf32>
    %58 = arith.maximumf %55, %57 : vector<8x512xf32>
    %c3 = arith.constant 3 : index
    %c0_42 = arith.constant 0 : index
    %c0_43 = arith.constant 0 : index
    %59 = vector.load %arg3[%c3, %c0_42, %c0_43] : memref<6x512x512xbf16, #tpu.memory_space<vmem>>, vector<1x512x512xbf16>
    %60 = vector.shape_cast %59 : vector<1x512x512xbf16> to vector<512x512xbf16>
    %61 = arith.truncf %58 : vector<8x512xf32> to vector<8x512xbf16>
    %cst_44 = arith.constant dense<0.000000e+00> : vector<8x512xf32>
    %62 = tpu.matmul %61, %60, %cst_44 {dimension_numbers = #tpu.dot_dimension_numbers<[1], [0], [0], [1], [0, 0, 1, 1], [], []>} : vector<8x512xbf16>, vector<512x512xbf16>, vector<8x512xf32> -> vector<8x512xf32>
    %c3_45 = arith.constant 3 : index
    %c0_46 = arith.constant 0 : index
    %c0_47 = arith.constant 0 : index
    %63 = vector.load %arg4[%c3_45, %c0_46, %c0_47] : memref<6x1x512xf32, #tpu.memory_space<vmem>>, vector<1x1x512xf32>
    %64 = vector.shape_cast %63 : vector<1x1x512xf32> to vector<1x512xf32>
    %65 = vector.broadcast %64 : vector<1x512xf32> to vector<8x512xf32>
    %66 = arith.addf %62, %65 : vector<8x512xf32>
    %cst_48 = arith.constant 0.00999999977 : f32
    %67 = vector.broadcast %cst_48 : f32 to vector<8x512xf32>
    %68 = arith.mulf %67, %66 : vector<8x512xf32>
    %69 = arith.maximumf %66, %68 : vector<8x512xf32>
    %c4 = arith.constant 4 : index
    %c0_49 = arith.constant 0 : index
    %c0_50 = arith.constant 0 : index
    %70 = vector.load %arg3[%c4, %c0_49, %c0_50] : memref<6x512x512xbf16, #tpu.memory_space<vmem>>, vector<1x512x512xbf16>
    %71 = vector.shape_cast %70 : vector<1x512x512xbf16> to vector<512x512xbf16>
    %72 = arith.truncf %69 : vector<8x512xf32> to vector<8x512xbf16>
    %cst_51 = arith.constant dense<0.000000e+00> : vector<8x512xf32>
    %73 = tpu.matmul %72, %71, %cst_51 {dimension_numbers = #tpu.dot_dimension_numbers<[1], [0], [0], [1], [0, 0, 1, 1], [], []>} : vector<8x512xbf16>, vector<512x512xbf16>, vector<8x512xf32> -> vector<8x512xf32>
    %c4_52 = arith.constant 4 : index
    %c0_53 = arith.constant 0 : index
    %c0_54 = arith.constant 0 : index
    %74 = vector.load %arg4[%c4_52, %c0_53, %c0_54] : memref<6x1x512xf32, #tpu.memory_space<vmem>>, vector<1x1x512xf32>
    %75 = vector.shape_cast %74 : vector<1x1x512xf32> to vector<1x512xf32>
    %76 = vector.broadcast %75 : vector<1x512xf32> to vector<8x512xf32>
    %77 = arith.addf %73, %76 : vector<8x512xf32>
    %cst_55 = arith.constant 0.00999999977 : f32
    %78 = vector.broadcast %cst_55 : f32 to vector<8x512xf32>
    %79 = arith.mulf %78, %77 : vector<8x512xf32>
    %80 = arith.maximumf %77, %79 : vector<8x512xf32>
    %c5 = arith.constant 5 : index
    %c0_56 = arith.constant 0 : index
    %c0_57 = arith.constant 0 : index
    %81 = vector.load %arg3[%c5, %c0_56, %c0_57] : memref<6x512x512xbf16, #tpu.memory_space<vmem>>, vector<1x512x512xbf16>
    %82 = vector.shape_cast %81 : vector<1x512x512xbf16> to vector<512x512xbf16>
    %83 = arith.truncf %80 : vector<8x512xf32> to vector<8x512xbf16>
    %cst_58 = arith.constant dense<0.000000e+00> : vector<8x512xf32>
    %84 = tpu.matmul %83, %82, %cst_58 {dimension_numbers = #tpu.dot_dimension_numbers<[1], [0], [0], [1], [0, 0, 1, 1], [], []>} : vector<8x512xbf16>, vector<512x512xbf16>, vector<8x512xf32> -> vector<8x512xf32>
    %c5_59 = arith.constant 5 : index
    %c0_60 = arith.constant 0 : index
    %c0_61 = arith.constant 0 : index
    %85 = vector.load %arg4[%c5_59, %c0_60, %c0_61] : memref<6x1x512xf32, #tpu.memory_space<vmem>>, vector<1x1x512xf32>
    %86 = vector.shape_cast %85 : vector<1x1x512xf32> to vector<1x512xf32>
    %87 = vector.broadcast %86 : vector<1x512xf32> to vector<8x512xf32>
    %88 = arith.addf %84, %87 : vector<8x512xf32>
    %cst_62 = arith.constant 0.00999999977 : f32
    %89 = vector.broadcast %cst_62 : f32 to vector<8x512xf32>
    %90 = arith.mulf %89, %88 : vector<8x512xf32>
    %91 = arith.maximumf %88, %90 : vector<8x512xf32>
    %c0_63 = arith.constant 0 : index
    %c0_64 = arith.constant 0 : index
    %c0_65 = arith.constant 0 : index
    %92 = vector.load %arg11[%c0_63, %c0_64, %c0_65] : memref<2x8x512xf32, #tpu.memory_space<vmem>>, vector<1x8x512xf32>
    %93 = vector.shape_cast %92 : vector<1x8x512xf32> to vector<8x512xf32>
    %94 = vector.shape_cast %45 : vector<8x512xf32> to vector<1x8x512xf32>
    tpu.vector_store %arg11[%c0_63, %c0_64, %c0_65], %94 {strides = array<i32>} : memref<2x8x512xf32, #tpu.memory_space<vmem>>, vector<1x8x512xf32>,
    %c1_66 = arith.constant 1 : index
    %c0_67 = arith.constant 0 : index
    %c0_68 = arith.constant 0 : index
    %95 = vector.load %arg11[%c1_66, %c0_67, %c0_68] : memref<2x8x512xf32, #tpu.memory_space<vmem>>, vector<1x8x512xf32>
    %96 = vector.shape_cast %95 : vector<1x8x512xf32> to vector<8x512xf32>
    %97 = vector.shape_cast %91 : vector<8x512xf32> to vector<1x8x512xf32>
    tpu.vector_store %arg11[%c1_66, %c0_67, %c0_68], %97 {strides = array<i32>} : memref<2x8x512xf32, #tpu.memory_space<vmem>>, vector<1x8x512xf32>,
    %98 = tpu.concatenate %45, %91 in 0 : vector<8x512xf32>, vector<8x512xf32> -> vector<16x512xf32>
    %c0_69 = arith.constant 0 : index
    %c0_70 = arith.constant 0 : index
    %c0_71 = arith.constant 0 : index
    %99 = vector.load %arg5[%c0_69, %c0_70, %c0_71] : memref<7x512x512xbf16, #tpu.memory_space<vmem>>, vector<1x512x512xbf16>
    %100 = vector.shape_cast %99 : vector<1x512x512xbf16> to vector<512x512xbf16>
    %101 = arith.truncf %98 : vector<16x512xf32> to vector<16x512xbf16>
    %cst_72 = arith.constant dense<0.000000e+00> : vector<16x512xf32>
    %102 = tpu.matmul %101, %100, %cst_72 {dimension_numbers = #tpu.dot_dimension_numbers<[1], [0], [0], [1], [0, 0, 1, 1], [], []>} : vector<16x512xbf16>, vector<512x512xbf16>, vector<16x512xf32> -> vector<16x512xf32>
    %c0_73 = arith.constant 0 : index
    %c0_74 = arith.constant 0 : index
    %c0_75 = arith.constant 0 : index
    %103 = vector.load %arg6[%c0_73, %c0_74, %c0_75] : memref<7x1x512xf32, #tpu.memory_space<vmem>>, vector<1x1x512xf32>
    %104 = vector.shape_cast %103 : vector<1x1x512xf32> to vector<1x512xf32>
    %105 = vector.broadcast %104 : vector<1x512xf32> to vector<16x512xf32>
    %106 = arith.addf %102, %105 : vector<16x512xf32>
    %cst_76 = arith.constant 0.00999999977 : f32
    %107 = vector.broadcast %cst_76 : f32 to vector<16x512xf32>
    %108 = arith.mulf %107, %106 : vector<16x512xf32>
    %109 = arith.maximumf %106, %108 : vector<16x512xf32>
    %c1_77 = arith.constant 1 : index
    %c0_78 = arith.constant 0 : index
    %c0_79 = arith.constant 0 : index
    %110 = vector.load %arg5[%c1_77, %c0_78, %c0_79] : memref<7x512x512xbf16, #tpu.memory_space<vmem>>, vector<1x512x512xbf16>
    %111 = vector.shape_cast %110 : vector<1x512x512xbf16> to vector<512x512xbf16>
    %112 = arith.truncf %109 : vector<16x512xf32> to vector<16x512xbf16>
    %cst_80 = arith.constant dense<0.000000e+00> : vector<16x512xf32>
    %113 = tpu.matmul %112, %111, %cst_80 {dimension_numbers = #tpu.dot_dimension_numbers<[1], [0], [0], [1], [0, 0, 1, 1], [], []>} : vector<16x512xbf16>, vector<512x512xbf16>, vector<16x512xf32> -> vector<16x512xf32>
    %c1_81 = arith.constant 1 : index
    %c0_82 = arith.constant 0 : index
    %c0_83 = arith.constant 0 : index
    %114 = vector.load %arg6[%c1_81, %c0_82, %c0_83] : memref<7x1x512xf32, #tpu.memory_space<vmem>>, vector<1x1x512xf32>
    %115 = vector.shape_cast %114 : vector<1x1x512xf32> to vector<1x512xf32>
    %116 = vector.broadcast %115 : vector<1x512xf32> to vector<16x512xf32>
    %117 = arith.addf %113, %116 : vector<16x512xf32>
    %cst_84 = arith.constant 0.00999999977 : f32
    %118 = vector.broadcast %cst_84 : f32 to vector<16x512xf32>
    %119 = arith.mulf %118, %117 : vector<16x512xf32>
    %120 = arith.maximumf %117, %119 : vector<16x512xf32>
    %c2_85 = arith.constant 2 : index
    %c0_86 = arith.constant 0 : index
    %c0_87 = arith.constant 0 : index
    %121 = vector.load %arg5[%c2_85, %c0_86, %c0_87] : memref<7x512x512xbf16, #tpu.memory_space<vmem>>, vector<1x512x512xbf16>
    %122 = vector.shape_cast %121 : vector<1x512x512xbf16> to vector<512x512xbf16>
    %123 = arith.truncf %120 : vector<16x512xf32> to vector<16x512xbf16>
    %cst_88 = arith.constant dense<0.000000e+00> : vector<16x512xf32>
    %124 = tpu.matmul %123, %122, %cst_88 {dimension_numbers = #tpu.dot_dimension_numbers<[1], [0], [0], [1], [0, 0, 1, 1], [], []>} : vector<16x512xbf16>, vector<512x512xbf16>, vector<16x512xf32> -> vector<16x512xf32>
    %c2_89 = arith.constant 2 : index
    %c0_90 = arith.constant 0 : index
    %c0_91 = arith.constant 0 : index
    %125 = vector.load %arg6[%c2_89, %c0_90, %c0_91] : memref<7x1x512xf32, #tpu.memory_space<vmem>>, vector<1x1x512xf32>
    %126 = vector.shape_cast %125 : vector<1x1x512xf32> to vector<1x512xf32>
    %127 = vector.broadcast %126 : vector<1x512xf32> to vector<16x512xf32>
    %128 = arith.addf %124, %127 : vector<16x512xf32>
    %cst_92 = arith.constant 0.00999999977 : f32
    %129 = vector.broadcast %cst_92 : f32 to vector<16x512xf32>
    %130 = arith.mulf %129, %128 : vector<16x512xf32>
    %131 = arith.maximumf %128, %130 : vector<16x512xf32>
    %c3_93 = arith.constant 3 : index
    %c0_94 = arith.constant 0 : index
    %c0_95 = arith.constant 0 : index
    %132 = vector.load %arg5[%c3_93, %c0_94, %c0_95] : memref<7x512x512xbf16, #tpu.memory_space<vmem>>, vector<1x512x512xbf16>
    %133 = vector.shape_cast %132 : vector<1x512x512xbf16> to vector<512x512xbf16>
    %134 = arith.truncf %131 : vector<16x512xf32> to vector<16x512xbf16>
    %cst_96 = arith.constant dense<0.000000e+00> : vector<16x512xf32>
    %135 = tpu.matmul %134, %133, %cst_96 {dimension_numbers = #tpu.dot_dimension_numbers<[1], [0], [0], [1], [0, 0, 1, 1], [], []>} : vector<16x512xbf16>, vector<512x512xbf16>, vector<16x512xf32> -> vector<16x512xf32>
    %c3_97 = arith.constant 3 : index
    %c0_98 = arith.constant 0 : index
    %c0_99 = arith.constant 0 : index
    %136 = vector.load %arg6[%c3_97, %c0_98, %c0_99] : memref<7x1x512xf32, #tpu.memory_space<vmem>>, vector<1x1x512xf32>
    %137 = vector.shape_cast %136 : vector<1x1x512xf32> to vector<1x512xf32>
    %138 = vector.broadcast %137 : vector<1x512xf32> to vector<16x512xf32>
    %139 = arith.addf %135, %138 : vector<16x512xf32>
    %cst_100 = arith.constant 0.00999999977 : f32
    %140 = vector.broadcast %cst_100 : f32 to vector<16x512xf32>
    %141 = arith.mulf %140, %139 : vector<16x512xf32>
    %142 = arith.maximumf %139, %141 : vector<16x512xf32>
    %c4_101 = arith.constant 4 : index
    %c0_102 = arith.constant 0 : index
    %c0_103 = arith.constant 0 : index
    %143 = vector.load %arg5[%c4_101, %c0_102, %c0_103] : memref<7x512x512xbf16, #tpu.memory_space<vmem>>, vector<1x512x512xbf16>
    %144 = vector.shape_cast %143 : vector<1x512x512xbf16> to vector<512x512xbf16>
    %145 = arith.truncf %142 : vector<16x512xf32> to vector<16x512xbf16>
    %cst_104 = arith.constant dense<0.000000e+00> : vector<16x512xf32>
    %146 = tpu.matmul %145, %144, %cst_104 {dimension_numbers = #tpu.dot_dimension_numbers<[1], [0], [0], [1], [0, 0, 1, 1], [], []>} : vector<16x512xbf16>, vector<512x512xbf16>, vector<16x512xf32> -> vector<16x512xf32>
    %c4_105 = arith.constant 4 : index
    %c0_106 = arith.constant 0 : index
    %c0_107 = arith.constant 0 : index
    %147 = vector.load %arg6[%c4_105, %c0_106, %c0_107] : memref<7x1x512xf32, #tpu.memory_space<vmem>>, vector<1x1x512xf32>
    %148 = vector.shape_cast %147 : vector<1x1x512xf32> to vector<1x512xf32>
    %149 = vector.broadcast %148 : vector<1x512xf32> to vector<16x512xf32>
    %150 = arith.addf %146, %149 : vector<16x512xf32>
    %cst_108 = arith.constant 0.00999999977 : f32
    %151 = vector.broadcast %cst_108 : f32 to vector<16x512xf32>
    %152 = arith.mulf %151, %150 : vector<16x512xf32>
    %153 = arith.maximumf %150, %152 : vector<16x512xf32>
    %c5_109 = arith.constant 5 : index
    %c0_110 = arith.constant 0 : index
    %c0_111 = arith.constant 0 : index
    %154 = vector.load %arg5[%c5_109, %c0_110, %c0_111] : memref<7x512x512xbf16, #tpu.memory_space<vmem>>, vector<1x512x512xbf16>
    %155 = vector.shape_cast %154 : vector<1x512x512xbf16> to vector<512x512xbf16>
    %156 = arith.truncf %153 : vector<16x512xf32> to vector<16x512xbf16>
    %cst_112 = arith.constant dense<0.000000e+00> : vector<16x512xf32>
    %157 = tpu.matmul %156, %155, %cst_112 {dimension_numbers = #tpu.dot_dimension_numbers<[1], [0], [0], [1], [0, 0, 1, 1], [], []>} : vector<16x512xbf16>, vector<512x512xbf16>, vector<16x512xf32> -> vector<16x512xf32>
    %c5_113 = arith.constant 5 : index
    %c0_114 = arith.constant 0 : index
    %c0_115 = arith.constant 0 : index
    %158 = vector.load %arg6[%c5_113, %c0_114, %c0_115] : memref<7x1x512xf32, #tpu.memory_space<vmem>>, vector<1x1x512xf32>
    %159 = vector.shape_cast %158 : vector<1x1x512xf32> to vector<1x512xf32>
    %160 = vector.broadcast %159 : vector<1x512xf32> to vector<16x512xf32>
    %161 = arith.addf %157, %160 : vector<16x512xf32>
    %cst_116 = arith.constant 0.00999999977 : f32
    %162 = vector.broadcast %cst_116 : f32 to vector<16x512xf32>
    %163 = arith.mulf %162, %161 : vector<16x512xf32>
    %164 = arith.maximumf %161, %163 : vector<16x512xf32>
    %c6 = arith.constant 6 : index
    %c0_117 = arith.constant 0 : index
    %c0_118 = arith.constant 0 : index
    %165 = vector.load %arg5[%c6, %c0_117, %c0_118] : memref<7x512x512xbf16, #tpu.memory_space<vmem>>, vector<1x512x512xbf16>
    %166 = vector.shape_cast %165 : vector<1x512x512xbf16> to vector<512x512xbf16>
    %167 = arith.truncf %164 : vector<16x512xf32> to vector<16x512xbf16>
    %cst_119 = arith.constant dense<0.000000e+00> : vector<16x512xf32>
    %168 = tpu.matmul %167, %166, %cst_119 {dimension_numbers = #tpu.dot_dimension_numbers<[1], [0], [0], [1], [0, 0, 1, 1], [], []>} : vector<16x512xbf16>, vector<512x512xbf16>, vector<16x512xf32> -> vector<16x512xf32>
    %c6_120 = arith.constant 6 : index
    %c0_121 = arith.constant 0 : index
    %c0_122 = arith.constant 0 : index
    %169 = vector.load %arg6[%c6_120, %c0_121, %c0_122] : memref<7x1x512xf32, #tpu.memory_space<vmem>>, vector<1x1x512xf32>
    %170 = vector.shape_cast %169 : vector<1x1x512xf32> to vector<1x512xf32>
    %171 = vector.broadcast %170 : vector<1x512xf32> to vector<16x512xf32>
    %172 = arith.addf %168, %171 : vector<16x512xf32>
    %cst_123 = arith.constant 0.00999999977 : f32
    %173 = vector.broadcast %cst_123 : f32 to vector<16x512xf32>
    %174 = arith.mulf %173, %172 : vector<16x512xf32>
    %175 = arith.maximumf %172, %174 : vector<16x512xf32>
    %c0_124 = arith.constant 0 : index
    %c0_125 = arith.constant 0 : index
    %176 = vector.load %arg7[%c0_124, %c0_125] : memref<512x256xbf16, #tpu.memory_space<vmem>>, vector<512x256xbf16>
    %177 = arith.truncf %175 : vector<16x512xf32> to vector<16x512xbf16>
    %cst_126 = arith.constant dense<0.000000e+00> : vector<16x256xf32>
    %178 = tpu.matmul %177, %176, %cst_126 {dimension_numbers = #tpu.dot_dimension_numbers<[1], [0], [0], [1], [0, 0, 1, 1], [], []>} : vector<16x512xbf16>, vector<512x256xbf16>, vector<16x256xf32> -> vector<16x256xf32>
    %c0_127 = arith.constant 0 : index
    %c0_128 = arith.constant 0 : index
    %179 = vector.load %arg8[%c0_127, %c0_128] : memref<1x256xf32, #tpu.memory_space<vmem>>, vector<1x256xf32>
    %180 = vector.broadcast %179 : vector<1x256xf32> to vector<16x256xf32>
    %181 = arith.addf %178, %180 : vector<16x256xf32>
    %cst_129 = arith.constant 0.00999999977 : f32
    %182 = vector.broadcast %cst_129 : f32 to vector<16x256xf32>
    %183 = arith.mulf %182, %181 : vector<16x256xf32>
    %184 = arith.maximumf %181, %183 : vector<16x256xf32>
    %c0_130 = arith.constant 0 : index
    %c0_131 = arith.constant 0 : index
    %185 = vector.load %arg9[%c0_130, %c0_131] : memref<256x128xbf16, #tpu.memory_space<vmem>>, vector<256x128xbf16>
    %186 = arith.truncf %184 : vector<16x256xf32> to vector<16x256xbf16>
    %cst_132 = arith.constant dense<0.000000e+00> : vector<16x128xf32>
    %187 = tpu.matmul %186, %185, %cst_132 {dimension_numbers = #tpu.dot_dimension_numbers<[1], [0], [0], [1], [0, 0, 1, 1], [], []>} : vector<16x256xbf16>, vector<256x128xbf16>, vector<16x128xf32> -> vector<16x128xf32>
    %c0_133 = arith.constant 0 : index
    %c0_134 = arith.constant 0 : index
    %188 = vector.load %arg10[%c0_133, %c0_134] : memref<1x128xf32, #tpu.memory_space<vmem>>, vector<1x128xf32>
    %189 = vector.broadcast %188 : vector<1x128xf32> to vector<16x128xf32>
    %190 = arith.addf %187, %189 : vector<16x128xf32>
    %c0_135 = arith.constant 0 : index
    %c0_136 = arith.constant 0 : index
    %191 = vector.load %arg12[%c0_135, %c0_136] : memref<16x128xf32, #tpu.memory_space<vmem>>, vector<16x128xf32>
    tpu.vector_store %arg12[%c0_135, %c0_136], %190 {strides = array<i32>} : memref<16x128xf32, #tpu.memory_space<vmem>>, vector<16x128xf32>,
    return
  }
}

</mosaic_0001>

<bundles_post_ra>
// kernel: generator_forward.1
= control target key start
LH: loop header
LB: loop body
LE: loop exit
PB: predicated region body
PF: predicated region fallthrough
CT: control target
= control target key end

     0   :  { %18 = vsyncpa [#allocation3], 0  ;;  %s19406_s0 = inlined_call_operand.vmem [shape: f32[2,8,128], index: 0, kind: input, shape index: {}]   ;;  %s19407_s1 = inlined_call_operand.hbm [shape: bf16[2,128,512], index: 1, kind: input, shape index: {}]   ;;  %s19408_s2 = inlined_call_operand.hbm [shape: f32[2,1,512], index: 2, kind: input, shape index: {}]   ;;  %s19409_s3 = inlined_call_operand.hbm [shape: bf16[6,512,512], index: 3, kind: input, shape index: {}]   ;;  %s19410_s4 = inlined_call_operand.hbm [shape: f32[6,1,512], index: 4, kind: input, shape index: {}]   ;;  %s19411_s5 = inlined_call_operand.hbm [shape: bf16[7,512,512], index: 5, kind: input, shape index: {}]   ;;  %s19412_s6 = inlined_call_operand.hbm [shape: f32[7,1,512], index: 6, kind: input, shape index: {}]   ;;  %s19413_s7 = inlined_call_operand.hbm [shape: bf16[512,256], index: 7, kind: input, shape index: {}]   ;;  %s19414_s8 = inlined_call_operand.hbm [shape: f32[1,256], index: 8, kind: input, shape index: {}]   ;;  %s19415_s9 = inlined_call_operand.hbm [shape: bf16[256,128], index: 9, kind: input, shape index: {}]   ;;  %s19416_s10 = inlined_call_operand.hbm [shape: f32[1,128], index: 10, kind: input, shape index: {}]   ;;  %s19417_s11 = inlined_call_operand.vmem [shape: f32[2,8,512], index: 11, kind: output, shape index: {0}]   ;;  %s19418_s12 = inlined_call_operand.vmem [shape: f32[16,128], index: 12, kind: output, shape index: {1}]  }
   0x1   :  { %19 = vsyncpa [#allocation5], 0 }
   0x2   :  { %20 = vsyncpa [#allocation8], 0 }
   0x3   :  { %21 = vsyncpa [#allocation11], 0 }
   0x4   :  { %22 = vsyncpa [#allocation14], 0 }
   0x5   :  { %23 = vsyncpa [#allocation17], 0  ;;  %s18950_s21 = smov [#allocation4]  }
   0x6   :  { %s43_s22 = sshll.u32 %s18950_s21, 4  ;;  %s44_s22 = int_to_ptr.vmem [resolvable:$true] %s43_s22 }
   0x7   :  { %s18746_s23 = scalar_lea.vmem %s44_s22, 128  ;;  %p18751_p1 = scmp.lt.s32.totalorder %s44_s22, %s44_s22 }
   0x8   :  { %p18747_p0 = scmp.ne.s32.totalorder %s44_s22, %s18746_s23  ;;  %p18752_p2 = scmp.lt.s32.totalorder %s18746_s23, %s18746_s23 }
   0xa   :  { %p18753_p3 = por %p18752_p2, %p18751_p1 }
   0xc   :  { %p18754_p4 = pnand %p18753_p3, %p18747_p0 }
   0xe   :  { %18757 = shalt.err (!%p18754_p4)
}
   0xf   :  { %s18951_s24 = smov 64   ;;  %s18952_s25 = smov 4  }
  0x10   :  { %49 = dma.hbm_to_vmem [thread:$0]  %s19408_s2, 128, %s44_s22, [#allocation5], %s18951_s24, %s18951_s24, %s18952_s25  }
  0x11   :  { %s18953_s28 = smov [#allocation7]   ;;  %s18954_s30 = smov [#allocation10]  }
  0x12   :  { %s67_s29 = sshll.u32 %s18953_s28, 4  ;;  %s91_s13 = sshll.u32 %s18954_s30, 4  ;;  %s68_s29 = int_to_ptr.vmem [resolvable:$true] %s67_s29  ;;  %s92_s13 = int_to_ptr.vmem [resolvable:$true] %s91_s13 }
  0x13   :  { %s18766_s14 = scalar_lea.vmem %s68_s29, 384  ;;  %p18771_p6 = scmp.lt.s32.totalorder %s68_s29, %s68_s29 }
  0x14   :  { %p18767_p5 = scmp.ne.s32.totalorder %s68_s29, %s18766_s14  ;;  %p18772_p7 = scmp.lt.s32.totalorder %s18766_s14, %s18766_s14 }
  0x16   :  { %p18773_p8 = por %p18772_p7, %p18771_p6 }
  0x18   :  { %p18774_p9 = pnand %p18773_p8, %p18767_p5 }
  0x1a   :  { %18777 = shalt.err (!%p18774_p9)
}
  0x1b   :  { %73 = dma.hbm_to_vmem [thread:$0]  %s19410_s4, 384, %s68_s29, [#allocation8], %s18951_s24, %s18951_s24, %s18952_s25  }
  0x1c   :  { %s18786_s2 = scalar_lea.vmem %s92_s13, 448  ;;  %p18791_p11 = scmp.lt.s32.totalorder %s92_s13, %s92_s13 }
  0x1d   :  { %p18787_p10 = scmp.ne.s32.totalorder %s92_s13, %s18786_s2  ;;  %p18792_p12 = scmp.lt.s32.totalorder %s18786_s2, %s18786_s2 }
  0x1f   :  { %p18793_p13 = por %p18792_p12, %p18791_p11 }
  0x21   :  { %p18794_p0 = pnand %p18793_p13, %p18787_p10 }
  0x23   :  { %18797 = shalt.err (!%p18794_p0)
}
  0x24   :  { %97 = dma.hbm_to_vmem [thread:$0]  %s19412_s6, 448, %s92_s13, [#allocation11], %s18951_s24, %s18951_s24, %s18952_s25  }
  0x25   :  { %s18955_s19 = smov [#allocation13]   ;;  %s18956_s21 = smov [#allocation2]  }
  0x26   :  { %s116_s20 = sshll.u32 %s18955_s19, 4  ;;  %s31_s4 = sshll.u32 %s18956_s21, 4  ;;  %s117_s20 = int_to_ptr.vmem [resolvable:$true] %s116_s20  ;;  %s32_s4 = int_to_ptr.vmem [resolvable:$true] %s31_s4 }
  0x27   :  { %s18806_s22 = scalar_lea.vmem %s117_s20, 32  ;;  %p18811_p2 = scmp.lt.s32.totalorder %s117_s20, %s117_s20 }
  0x28   :  { %p18807_p1 = scmp.ne.s32.totalorder %s117_s20, %s18806_s22  ;;  %p18812_p3 = scmp.lt.s32.totalorder %s18806_s22, %s18806_s22 }
  0x2a   :  { %p18813_p4 = por %p18812_p3, %p18811_p2 }
  0x2c   :  { %p18814_p5 = pnand %p18813_p4, %p18807_p1 }
  0x2e   :  { %18817 = shalt.err (!%p18814_p5)
}
  0x2f   :  { %119 = dma.hbm_to_vmem [thread:$0]  %s19414_s8, 32, %s117_s20, [#allocation14]  }
  0x30   :  { %s18826_s27 = scalar_lea.vmem %s32_s4, 8192  ;;  %p18831_p7 = scmp.lt.s32.totalorder %s32_s4, %s32_s4 }
  0x31   :  { %p18827_p6 = scmp.ne.s32.totalorder %s32_s4, %s18826_s27  ;;  %p18832_p8 = scmp.lt.s32.totalorder %s18826_s27, %s18826_s27 }
  0x33   :  { %p18833_p9 = por %p18832_p8, %p18831_p7 }
  0x35   :  { %p18834_p10 = pnand %p18833_p9, %p18827_p6 }
  0x37   :  { %18837 = shalt.err (!%p18834_p10)
}
  0x38   :  { %s18957_s6 = smov 256   ;;  %s18958_s28 = smov 16  }
  0x39   :  { %37 = dma.hbm_to_vmem [thread:$0]  %s19407_s1, 8192, %s32_s4, [#allocation3], %s18957_s6, %s18957_s6, %s18958_s28  }
  0x3a   :  { %s18959_s13 = smov [#allocation6]   ;;  %s18960_s15 = smov [#allocation9]  }
  0x3b   :  { %s55_s14 = sshll.u32 %s18959_s13, 4  ;;  %s79_s16 = sshll.u32 %s18960_s15, 4  ;;  %s56_s14 = int_to_ptr.vmem [resolvable:$true] %s55_s14  ;;  %s80_s16 = int_to_ptr.vmem [resolvable:$true] %s79_s16 }
  0x3c   :  { %s18846_s8 = scalar_lea.vmem %s56_s14, 98304  ;;  %p18851_p12 = scmp.lt.s32.totalorder %s56_s14, %s56_s14 }
  0x3d   :  { %p18847_p11 = scmp.ne.s32.totalorder %s56_s14, %s18846_s8  ;;  %p18852_p13 = scmp.lt.s32.totalorder %s18846_s8, %s18846_s8 }
  0x3f   :  { %p18853_p0 = por %p18852_p13, %p18851_p12 }
  0x41   :  { %p18854_p1 = pnand %p18853_p0, %p18847_p11 }
  0x43   :  { %18857 = shalt.err (!%p18854_p1)
}
  0x44   :  { %61 = dma.hbm_to_vmem [thread:$0]  %s19409_s3, 98304, %s56_s14, [#allocation5], %s18957_s6, %s18957_s6, %s18958_s28  }
  0x45   :  { %s18866_s18 = scalar_lea.vmem %s80_s16, 114688  ;;  %p18871_p3 = scmp.lt.s32.totalorder %s80_s16, %s80_s16 }
  0x46   :  { %p18867_p2 = scmp.ne.s32.totalorder %s80_s16, %s18866_s18  ;;  %p18872_p4 = scmp.lt.s32.totalorder %s18866_s18, %s18866_s18 }
  0x48   :  { %p18873_p5 = por %p18872_p4, %p18871_p3 }
  0x4a   :  { %p18874_p6 = pnand %p18873_p5, %p18867_p2 }
  0x4c   :  { %18877 = shalt.err (!%p18874_p6)
}
  0x4d   :  { %85 = dma.hbm_to_vmem [thread:$0]  %s19411_s5, 114688, %s80_s16, [#allocation8], %s18957_s6, %s18957_s6, %s18958_s28  }
  0x4e   :  { %s18961_s20 = smov [#allocation12]  }
  0x4f   :  { %s103_s21 = sshll.u32 %s18961_s20, 4  ;;  %s104_s21 = int_to_ptr.vmem [resolvable:$true] %s103_s21 }
  0x50   :  { %s18886_s4 = scalar_lea.vmem %s104_s21, 8192  ;;  %p18891_p8 = scmp.lt.s32.totalorder %s104_s21, %s104_s21 }
  0x51   :  { %p18887_p7 = scmp.ne.s32.totalorder %s104_s21, %s18886_s4  ;;  %p18892_p9 = scmp.lt.s32.totalorder %s18886_s4, %s18886_s4 }
  0x53   :  { %p18893_p10 = por %p18892_p9, %p18891_p8 }
  0x55   :  { %p18894_p11 = pnand %p18893_p10, %p18887_p7 }
  0x57   :  { %18897 = shalt.err (!%p18894_p11)
}
  0x58   :  { %s18962_s3 = smov 128   ;;  %s18963_s22 = smov 8  }
  0x59   :  { %109 = dma.hbm_to_vmem [thread:$0]  %s19413_s7, 8192, %s104_s21, [#allocation11], %s18962_s3, %s18962_s3, %s18963_s22  }
  0x5a   :  { %s18964_s27 = smov [#allocation15]   ;;  %s18965_s30 = smov [#allocation16]  }
  0x5b   :  { %s125_s29 = sshll.u32 %s18964_s27, 4  ;;  %s138_s5 = sshll.u32 %s18965_s30, 4  ;;  %s126_s29 = int_to_ptr.vmem [resolvable:$true] %s125_s29  ;;  %s139_s5 = int_to_ptr.vmem [resolvable:$true] %s138_s5 }
  0x5c   :  { %s18906_s6 = scalar_lea.vmem %s126_s29, 2048  ;;  %p18911_p13 = scmp.lt.s32.totalorder %s126_s29, %s126_s29 }
  0x5d   :  { %p18907_p12 = scmp.ne.s32.totalorder %s126_s29, %s18906_s6  ;;  %p18912_p0 = scmp.lt.s32.totalorder %s18906_s6, %s18906_s6 }
  0x5f   :  { %p18913_p1 = por %p18912_p0, %p18911_p13 }
  0x61   :  { %p18914_p2 = pnand %p18913_p1, %p18907_p12 }
  0x63   :  { %18917 = shalt.err (!%p18914_p2)
}
  0x64   :  { %131 = dma.hbm_to_vmem [thread:$0]  %s19415_s9, 2048, %s126_s29, [#allocation14], %s18951_s24, %s18951_s24, %s18952_s25  }
  0x65   :  { %s18926_s7 = scalar_lea.vmem %s139_s5, 16  ;;  %s18930_s14 = scalar_lea.vmem %s139_s5, 32 }
  0x66   :  { %p18927_p3 = scmp.ne.s32.totalorder %s139_s5, %s18926_s7  ;;  %p18931_p4 = scmp.lt.s32.totalorder %s139_s5, %s139_s5 }
  0x67   :  { %p18932_p5 = scmp.lt.s32.totalorder %s18930_s14, %s18926_s7 }
  0x69   :  { %p18933_p6 = por %p18932_p5, %p18931_p4 }
  0x6b   :  { %p18934_p7 = pnand %p18933_p6, %p18927_p3 }
  0x6d   :  { %18937 = shalt.err (!%p18934_p7)
}
  0x6e   :  { %141 = dma.hbm_to_vmem [thread:$0]  %s19416_s10, 16, %s139_s5, [#allocation17]  }
  0x6f   :  { %18938 = dma.done.wait [#allocation3], 8192  }
  0x70   :  { %18939 = vsyncadd [#allocation3], 4294959104 }
  0x71   :  { %18940 = dma.done.wait [#allocation5], 98432  }
  0x72   :  { %18941 = vsyncadd [#allocation5], 4294868864 }
  0x73   :  { %18942 = dma.done.wait [#allocation8], 115072  }
  0x74   :  { %18943 = vsyncadd [#allocation8], 4294852224 }
  0x75   :  { %18944 = dma.done.wait [#allocation11], 8640  }
  0x76   :  { %18945 = vsyncadd [#allocation11], 4294958656 }
  0x77   :  { %18946 = dma.done.wait [#allocation14], 2080  }
  0x78   :  { %18947 = vsyncadd [#allocation14], 4294965216 }
  0x79   :  { %18948 = dma.done.wait [#allocation17], 16  }
  0x7a   :  { %18949 = vsyncadd [#allocation17], 4294967280  ;;  %v18966_v0 = vmov 0   ;;  %v16030_v1 = vld [vmem:[#allocation2 + $0xe4] ss:$16 sps:$4 sm:$0xff]  }
  0x7b   :  { %421 = vmatprep.mubr.bf16.mxu0 %v18966_v0  ;;  %462 = vmatprep.mubr.bf16.mxu1 %v18966_v0  ;;  %v16032_v2 = vld [vmem:[#allocation2 + $0xec] ss:$16 sps:$4 sm:$0xff]   ;;  %v16034_v3 = vld [vmem:[#allocation2 + $0xe0] ss:$16 sps:$4 sm:$0xff]   ;;  %v16035_v4 = vld [vmem:[#allocation2 + $0xe8] ss:$16 sps:$4 sm:$0xff]  }
  0x7c   :  { %389 = vmatprep.subr.bf16.mxu0 %v16030_v1  ;;  %430 = vmatprep.subr.bf16.mxu1 %v16032_v2  ;;  %v16036_v5 = vld [vmem:[#allocation2 + $0xc4] ss:$16 sps:$4 sm:$0xff]   ;;  %v16038_v6 = vld [vmem:[#allocation2 + $0xcc] ss:$16 sps:$4 sm:$0xff]   ;;  %v16040_v7 = vld [vmem:[#allocation2 + $0xc0] ss:$16 sps:$4 sm:$0xff]  }
  0x7d   :  { %390 = vmatpush1.bf16.msra.mxu0 %v16034_v3  ;;  %431 = vmatpush1.bf16.msra.mxu1 %v16035_v4  ;;  %v16041_v8 = vld [vmem:[#allocation2 + $0xc8] ss:$16 sps:$4 sm:$0xff]   ;;  %v16042_v9 = vld [vmem:[#allocation2 + $0xa4] ss:$16 sps:$4 sm:$0xff]   ;;  %v16044_v10 = vld [vmem:[#allocation2 + $0xac] ss:$16 sps:$4 sm:$0xff]  }
  0x7e   :  { %391 = vmatprep.subr.bf16.mxu0 %v16036_v5  ;;  %432 = vmatprep.subr.bf16.mxu1 %v16038_v6  ;;  %v16046_v11 = vld [vmem:[#allocation2 + $0xa0] ss:$16 sps:$4 sm:$0xff]   ;;  %v16047_v12 = vld [vmem:[#allocation2 + $0xa8] ss:$16 sps:$4 sm:$0xff]   ;;  %v16048_v13 = vld [vmem:[#allocation2 + $0x84] ss:$16 sps:$4 sm:$0xff]  }
  0x7f   :  { %v16050_v14 = vld [vmem:[#allocation2 + $0x8c] ss:$16 sps:$4 sm:$0xff]   ;;  %v16052_v15 = vld [vmem:[#allocation2 + $0x80] ss:$16 sps:$4 sm:$0xff]   ;;  %v16053_v16 = vld [vmem:[#allocation2 + $0x88] ss:$16 sps:$4 sm:$0xff]  }
  0x80   :  { %v16054_v17 = vld [vmem:[#allocation2 + $0x64] ss:$16 sps:$4 sm:$0xff]   ;;  %v16056_v18 = vld [vmem:[#allocation2 + $0x6c] ss:$16 sps:$4 sm:$0xff]   ;;  %v16058_v19 = vld [vmem:[#allocation2 + $0x60] ss:$16 sps:$4 sm:$0xff]  }
  0x81   :  { %392 = vmatpush1.bf16.msra.mxu0 %v16040_v7  ;;  %433 = vmatpush1.bf16.msra.mxu1 %v16041_v8  ;;  %v16059_v20 = vld [vmem:[#allocation2 + $0x68] ss:$16 sps:$4 sm:$0xff]   ;;  %v16060_v21 = vld [vmem:[#allocation2 + $0x44] ss:$16 sps:$4 sm:$0xff]   ;;  %v16062_v22 = vld [vmem:[#allocation2 + $0x4c] ss:$16 sps:$4 sm:$0xff]  }
  0x82   :  { %393 = vmatprep.subr.bf16.mxu0 %v16042_v9  ;;  %434 = vmatprep.subr.bf16.mxu1 %v16044_v10  ;;  %v16064_v23 = vld [vmem:[#allocation2 + $0x40] ss:$16 sps:$4 sm:$0xff]   ;;  %v16065_v24 = vld [vmem:[#allocation2 + $0x48] ss:$16 sps:$4 sm:$0xff]   ;;  %v16066_v25 = vld [vmem:[#allocation2 + $0x24] ss:$16 sps:$4 sm:$0xff]  }
  0x83   :  { %v16068_v26 = vld [vmem:[#allocation2 + $0x2c] ss:$16 sps:$4 sm:$0xff]   ;;  %v16070_v27 = vld [vmem:[#allocation2 + $0x20] ss:$16 sps:$4 sm:$0xff]   ;;  %v16071_v28 = vld [vmem:[#allocation2 + $0x28] ss:$16 sps:$4 sm:$0xff]  }
  0x84   :  { %v16072_v29 = vld [vmem:[#allocation2 + $0x4] ss:$16 sps:$4 sm:$0xff]   ;;  %v16074_v30 = vld [vmem:[#allocation2 + $0xc] ss:$16 sps:$4 sm:$0xff]   ;;  %v16076_v31 = vld [vmem:[#allocation2] ss:$16 sps:$4 sm:$0xff]  }
  0x85   :  { %394 = vmatpush1.bf16.msra.mxu0 %v16046_v11  ;;  %435 = vmatpush1.bf16.msra.mxu1 %v16047_v12  ;;  %v16077_v32 = vld [vmem:[#allocation2 + $0x8] ss:$16 sps:$4 sm:$0xff]   ;;  %v173_v33 = vld [vmem:[%s19406_s0] sm:$0xff]  ;;  %v16080_v34 = vld [vmem:[#allocation6 + $0xe4] ss:$16 sps:$4 sm:$0xff]  }
  0x86   :  { %395 = vmatprep.subr.bf16.mxu0 %v16048_v13  ;;  %436 = vmatprep.subr.bf16.mxu1 %v16050_v14  ;;  %v16083_v35 = vld [vmem:[#allocation6 + $0x2e4] ss:$16 sps:$4 sm:$0xff]   ;;  %v206_v36 = vpack.c.bf16 %v173_v33, %v173_v33  ;;  %v16078_v37 = vld [vmem:[#allocation6 + $0xe0] ss:$16 sps:$4 sm:$0xff]  }
  0x87   :  { %v16081_v38 = vld [vmem:[#allocation6 + $0x2e0] ss:$16 sps:$4 sm:$0xff]   ;;  %v16086_v39 = vld [vmem:[#allocation6 + $0xc4] ss:$16 sps:$4 sm:$0xff]  }
  0x88   :  { %v16089_v40 = vld [vmem:[#allocation6 + $0x2c4] ss:$16 sps:$4 sm:$0xff]   ;;  %v16084_v41 = vld [vmem:[#allocation6 + $0xc0] ss:$16 sps:$4 sm:$0xff]  }
  0x89   :  { %396 = vmatpush1.bf16.msra.mxu0 %v16052_v15  ;;  %437 = vmatpush1.bf16.msra.mxu1 %v16053_v16  ;;  %v16087_v42 = vld [vmem:[#allocation6 + $0x2c0] ss:$16 sps:$4 sm:$0xff]   ;;  %v16092_v43 = vld [vmem:[#allocation6 + $0xa4] ss:$16 sps:$4 sm:$0xff]  }
  0x8a   :  { %397 = vmatprep.subr.bf16.mxu0 %v16054_v17  ;;  %438 = vmatprep.subr.bf16.mxu1 %v16056_v18  ;;  %v16095_v44 = vld [vmem:[#allocation6 + $0x2a4] ss:$16 sps:$4 sm:$0xff]   ;;  %v16090_v45 = vld [vmem:[#allocation6 + $0xa0] ss:$16 sps:$4 sm:$0xff]  }
  0x8b   :  { %v16093_v46 = vld [vmem:[#allocation6 + $0x2a0] ss:$16 sps:$4 sm:$0xff]   ;;  %v16098_v47 = vld [vmem:[#allocation6 + $0x84] ss:$16 sps:$4 sm:$0xff]  }
  0x8c   :  { %v16101_v48 = vld [vmem:[#allocation6 + $0x284] ss:$16 sps:$4 sm:$0xff]   ;;  %v16096_v49 = vld [vmem:[#allocation6 + $0x80] ss:$16 sps:$4 sm:$0xff]  }
  0x8d   :  { %398 = vmatpush1.bf16.msra.mxu0 %v16058_v19  ;;  %439 = vmatpush1.bf16.msra.mxu1 %v16059_v20  ;;  %v16099_v50 = vld [vmem:[#allocation6 + $0x280] ss:$16 sps:$4 sm:$0xff]   ;;  %v16104_v51 = vld [vmem:[#allocation6 + $0x64] ss:$16 sps:$4 sm:$0xff]  }
  0x8e   :  { %399 = vmatprep.subr.bf16.mxu0 %v16060_v21  ;;  %440 = vmatprep.subr.bf16.mxu1 %v16062_v22  ;;  %v16107_v52 = vld [vmem:[#allocation6 + $0x264] ss:$16 sps:$4 sm:$0xff]   ;;  %v16102_v53 = vld [vmem:[#allocation6 + $0x60] ss:$16 sps:$4 sm:$0xff]  }
  0x8f   :  { %v16105_v54 = vld [vmem:[#allocation6 + $0x260] ss:$16 sps:$4 sm:$0xff]   ;;  %v16110_v55 = vld [vmem:[#allocation6 + $0x44] ss:$16 sps:$4 sm:$0xff]  }
  0x90   :  { %v16113_v56 = vld [vmem:[#allocation6 + $0x244] ss:$16 sps:$4 sm:$0xff]   ;;  %v16108_v57 = vld [vmem:[#allocation6 + $0x40] ss:$16 sps:$4 sm:$0xff]  }
  0x91   :  { %400 = vmatpush1.bf16.msra.mxu0 %v16064_v23  ;;  %441 = vmatpush1.bf16.msra.mxu1 %v16065_v24  ;;  %v16111_v58 = vld [vmem:[#allocation6 + $0x240] ss:$16 sps:$4 sm:$0xff]   ;;  %v16116_v59 = vld [vmem:[#allocation6 + $0x24] ss:$16 sps:$4 sm:$0xff]  }
  0x92   :  { %401 = vmatprep.subr.bf16.mxu0 %v16066_v25  ;;  %442 = vmatprep.subr.bf16.mxu1 %v16068_v26  ;;  %v16119_v60 = vld [vmem:[#allocation6 + $0x224] ss:$16 sps:$4 sm:$0xff]   ;;  %v16114_v61 = vld [vmem:[#allocation6 + $0x20] ss:$16 sps:$4 sm:$0xff]  }
  0x93   :  { %v16117_v62 = vld [vmem:[#allocation6 + $0x220] ss:$16 sps:$4 sm:$0xff]   ;;  %v16122_v63 = vld [vmem:[#allocation6 + $0x4] ss:$16 sps:$4 sm:$0xff]  }
  0x94   :  { %v16125_v1 = vld [vmem:[#allocation6 + $0x204] ss:$16 sps:$4 sm:$0xff]   ;;  %v16120_v2 = vld [vmem:[#allocation6] ss:$16 sps:$4 sm:$0xff]  }
  0x95   :  { %402 = vmatpush1.bf16.msra.mxu0 %v16070_v27  ;;  %443 = vmatpush1.bf16.msra.mxu1 %v16071_v28  ;;  %v16123_v3 = vld [vmem:[#allocation6 + $0x200] ss:$16 sps:$4 sm:$0xff]   ;;  %v16128_v4 = vld [vmem:[#allocation6 + $0x1e4] ss:$16 sps:$4 sm:$0xff]  }
  0x96   :  { %403 = vmatprep.subr.bf16.mxu0 %v16072_v29  ;;  %444 = vmatprep.subr.bf16.mxu1 %v16074_v30  ;;  %v16131_v5 = vld [vmem:[#allocation6 + $0x3e4] ss:$16 sps:$4 sm:$0xff]   ;;  %v16126_v6 = vld [vmem:[#allocation6 + $0x1e0] ss:$16 sps:$4 sm:$0xff]  }
  0x97   :  { %v16129_v7 = vld [vmem:[#allocation6 + $0x3e0] ss:$16 sps:$4 sm:$0xff]   ;;  %v16134_v8 = vld [vmem:[#allocation6 + $0x1c4] ss:$16 sps:$4 sm:$0xff]  }
  0x98   :  { %v16137_v9 = vld [vmem:[#allocation6 + $0x3c4] ss:$16 sps:$4 sm:$0xff]   ;;  %v16132_v10 = vld [vmem:[#allocation6 + $0x1c0] ss:$16 sps:$4 sm:$0xff]  }
  0x99   :  { %404 = vmatpush1.bf16.msra.mxu0 %v16076_v31  ;;  %445 = vmatpush1.bf16.msra.mxu1 %v16077_v32  ;;  %v16135_v11 = vld [vmem:[#allocation6 + $0x3c0] ss:$16 sps:$4 sm:$0xff]   ;;  %v16140_v12 = vld [vmem:[#allocation6 + $0x1a4] ss:$16 sps:$4 sm:$0xff]  }
  0x9a   :  { %1273 = vmatprep.subr.bf16.mxu0 %v16080_v34  ;;  %1314 = vmatprep.subr.bf16.mxu1 %v16083_v35  ;;  %v16143_v13 = vld [vmem:[#allocation6 + $0x3a4] ss:$16 sps:$4 sm:$0xff]   ;;  %v16138_v14 = vld [vmem:[#allocation6 + $0x1a0] ss:$16 sps:$4 sm:$0xff]  }
  0x9b   :  { %v16141_v15 = vld [vmem:[#allocation6 + $0x3a0] ss:$16 sps:$4 sm:$0xff]   ;;  %v16146_v16 = vld [vmem:[#allocation6 + $0x184] ss:$16 sps:$4 sm:$0xff]  }
  0x9c   :  { %422 = vmatmul.mubr.bf16.vlgmr.msra.gmra.mxu0 %v206_v36  ;;  %463 = vmatmul.mubr.bf16.vlgmr.msra.gmra.mxu1 %v206_v36  ;;  %v16149_v17 = vld [vmem:[#allocation6 + $0x384] ss:$16 sps:$4 sm:$0xff]   ;;  %v16144_v18 = vld [vmem:[#allocation6 + $0x180] ss:$16 sps:$4 sm:$0xff]   ;;  %v16176_v36 = vld [vmem:[#allocation6 + $0xec] ss:$16 sps:$4 sm:$0xff]  }
  0x9d   :  { %1274 = vmatpush1.bf16.msra.mxu0 %v16078_v37  ;;  %1315 = vmatpush1.bf16.msra.mxu1 %v16081_v38  ;;  %v16147_v19 = vld [vmem:[#allocation6 + $0x380] ss:$16 sps:$4 sm:$0xff]   ;;  %v16152_v20 = vld [vmem:[#allocation6 + $0x164] ss:$16 sps:$4 sm:$0xff]   ;;  %v16179_v37 = vld [vmem:[#allocation6 + $0x2ec] ss:$16 sps:$4 sm:$0xff]   ;;  %v209_v38 = vlaneseq }
  0x9e   :  { %1275 = vmatprep.subr.bf16.mxu0 %v16086_v39  ;;  %1316 = vmatprep.subr.bf16.mxu1 %v16089_v40  ;;  %v16155_v21 = vld [vmem:[#allocation6 + $0x364] ss:$16 sps:$4 sm:$0xff]   ;;  %v16150_v22 = vld [vmem:[#allocation6 + $0x160] ss:$16 sps:$4 sm:$0xff]   ;;  %v207_v40 = vld [vmem:[#allocation4] sm:$0xf] }
  0x9f   :  { %v16153_v23 = vld [vmem:[#allocation6 + $0x360] ss:$16 sps:$4 sm:$0xff]   ;;  %v16158_v24 = vld [vmem:[#allocation6 + $0x144] ss:$16 sps:$4 sm:$0xff]   ;;  %v210_v39 = vshrl.u32 %v209_v38, 7 }
  0xa0   :  { %v16161_v25 = vld [vmem:[#allocation6 + $0x344] ss:$16 sps:$4 sm:$0xff]   ;;  %v16156_v26 = vld [vmem:[#allocation6 + $0x140] ss:$16 sps:$4 sm:$0xff]   ;;  %v16216_v38 = vld [vmem:[#allocation6 + $0x8] ss:$16 sps:$4 sm:$0xff]  }
  0xa1   :  { %1276 = vmatpush1.bf16.msra.mxu0 %v16084_v41  ;;  %1317 = vmatpush1.bf16.msra.mxu1 %v16087_v42  ;;  %v16159_v27 = vld [vmem:[#allocation6 + $0x340] ss:$16 sps:$4 sm:$0xff]   ;;  %v16164_v28 = vld [vmem:[#allocation6 + $0x124] ss:$16 sps:$4 sm:$0xff]   ;;  %v19079_v41 = vsub.s32 0, %v210_v39  ;;  %v19081_v42 = vsub.s32 2, %v210_v39 }
  0xa2   :  { %1277 = vmatprep.subr.bf16.mxu0 %v16092_v43  ;;  %1318 = vmatprep.subr.bf16.mxu1 %v16095_v44  ;;  %v16167_v29 = vld [vmem:[#allocation6 + $0x324] ss:$16 sps:$4 sm:$0xff]   ;;  %v16162_v30 = vld [vmem:[#allocation6 + $0x120] ss:$16 sps:$4 sm:$0xff]   ;;  %v19083_v43 = vsub.s32 1, %v210_v39  ;;  %v19085_v44 = vsub.s32 3, %v210_v39 }
  0xa3   :  { %v16165_v31 = vld [vmem:[#allocation6 + $0x320] ss:$16 sps:$4 sm:$0xff]   ;;  %v16170_v32 = vld [vmem:[#allocation6 + $0x104] ss:$16 sps:$4 sm:$0xff]   ;;  %v16219_v39 = vld [vmem:[#allocation6 + $0x208] ss:$16 sps:$4 sm:$0xff]  }
  0xa4   :  { %v16173_v33 = vld [vmem:[#allocation6 + $0x304] ss:$16 sps:$4 sm:$0xff]   ;;  %v16168_v34 = vld [vmem:[#allocation6 + $0x100] ss:$16 sps:$4 sm:$0xff]  }
  0xa5   :  { %1278 = vmatpush1.bf16.msra.mxu0 %v16090_v45  ;;  %1319 = vmatpush1.bf16.msra.mxu1 %v16093_v46  ;;  %v16171_v35 = vld [vmem:[#allocation6 + $0x300] ss:$16 sps:$4 sm:$0xff]   ;;  %v212_v45 = vrot.slane %v207_v40, %v19079_v41  ;;  %v220_v46 = vrot.slane %v207_v40, %v19081_v42 }
  0xa6   :  { %1279 = vmatprep.subr.bf16.mxu0 %v16098_v47  ;;  %1320 = vmatprep.subr.bf16.mxu1 %v16101_v48  ;;  %v216_v47 = vrot.slane %v207_v40, %v19083_v43  ;;  %v224_v48 = vrot.slane %v207_v40, %v19085_v44  ;;  %v16224_v40 = vld [vmem:[#allocation6 + $0x1ec] ss:$16 sps:$4 sm:$0xff]  }
  0xa9   :  { %1280 = vmatpush1.bf16.msra.mxu0 %v16096_v49  ;;  %1321 = vmatpush1.bf16.msra.mxu1 %v16099_v50 }
  0xaa   :  { %1281 = vmatprep.subr.bf16.mxu0 %v16104_v51  ;;  %1322 = vmatprep.subr.bf16.mxu1 %v16107_v52 }
  0xad   :  { %1282 = vmatpush1.bf16.msra.mxu0 %v16102_v53  ;;  %1323 = vmatpush1.bf16.msra.mxu1 %v16105_v54 }
  0xae   :  { %1283 = vmatprep.subr.bf16.mxu0 %v16110_v55  ;;  %1324 = vmatprep.subr.bf16.mxu1 %v16113_v56 }
  0xb1   :  { %1284 = vmatpush1.bf16.msra.mxu0 %v16108_v57  ;;  %1325 = vmatpush1.bf16.msra.mxu1 %v16111_v58 }
  0xb2   :  { %1285 = vmatprep.subr.bf16.mxu0 %v16116_v59  ;;  %1326 = vmatprep.subr.bf16.mxu1 %v16119_v60 }
  0xb5   :  { %1286 = vmatpush1.bf16.msra.mxu0 %v16114_v61  ;;  %1327 = vmatpush1.bf16.msra.mxu1 %v16117_v62 }
  0xb6   :  { %1287 = vmatprep.subr.bf16.mxu0 %v16122_v63  ;;  %1328 = vmatprep.subr.bf16.mxu1 %v16125_v1 }
  0xb9   :  { %1288 = vmatpush1.bf16.msra.mxu0 %v16120_v2  ;;  %1329 = vmatpush1.bf16.msra.mxu1 %v16123_v3 }
  0xba   :  { %1289 = vmatprep.subr.bf16.mxu0 %v16128_v4  ;;  %1330 = vmatprep.subr.bf16.mxu1 %v16131_v5 }
  0xbd   :  { %1290 = vmatpush2.bf16.msra.mxu0 %v16126_v6  ;;  %1331 = vmatpush2.bf16.msra.mxu1 %v16129_v7  ;;  %v16174_v6 = vld [vmem:[#allocation6 + $0xe8] ss:$16 sps:$4 sm:$0xff]  }
  0xbe   :  { %1291 = vmatprep.subr.bf16.mxu0 %v16134_v8  ;;  %1332 = vmatprep.subr.bf16.mxu1 %v16137_v9  ;;  %v16177_v7 = vld [vmem:[#allocation6 + $0x2e8] ss:$16 sps:$4 sm:$0xff]  }
  0xc1   :  { %1292 = vmatpush2.bf16.msra.mxu0 %v16132_v10  ;;  %1333 = vmatpush2.bf16.msra.mxu1 %v16135_v11  ;;  %v16182_v10 = vld [vmem:[#allocation6 + $0xcc] ss:$16 sps:$4 sm:$0xff]  }
  0xc2   :  { %1293 = vmatprep.subr.bf16.mxu0 %v16140_v12  ;;  %1334 = vmatprep.subr.bf16.mxu1 %v16143_v13  ;;  %v16185_v11 = vld [vmem:[#allocation6 + $0x2cc] ss:$16 sps:$4 sm:$0xff]  }
  0xc5   :  { %1294 = vmatpush2.bf16.msra.mxu0 %v16138_v14  ;;  %1335 = vmatpush2.bf16.msra.mxu1 %v16141_v15  ;;  %v16180_v14 = vld [vmem:[#allocation6 + $0xc8] ss:$16 sps:$4 sm:$0xff]  }
  0xc6   :  { %1295 = vmatprep.subr.bf16.mxu0 %v16146_v16  ;;  %1336 = vmatprep.subr.bf16.mxu1 %v16149_v17  ;;  %v16183_v15 = vld [vmem:[#allocation6 + $0x2c8] ss:$16 sps:$4 sm:$0xff]   ;;  %v16188_v16 = vld [vmem:[#allocation6 + $0xac] ss:$16 sps:$4 sm:$0xff]  }
  0xc7   :  { %v16191_v17 = vld [vmem:[#allocation6 + $0x2ac] ss:$16 sps:$4 sm:$0xff]  }
  0xc9   :  { %1296 = vmatpush2.bf16.msra.mxu0 %v16144_v18  ;;  %1337 = vmatpush2.bf16.msra.mxu1 %v16147_v19  ;;  %v16186_v18 = vld [vmem:[#allocation6 + $0xa8] ss:$16 sps:$4 sm:$0xff]  }
  0xca   :  { %1297 = vmatprep.subr.bf16.mxu0 %v16152_v20  ;;  %1338 = vmatprep.subr.bf16.mxu1 %v16155_v21  ;;  %v16189_v19 = vld [vmem:[#allocation6 + $0x2a8] ss:$16 sps:$4 sm:$0xff]   ;;  %v16194_v20 = vld [vmem:[#allocation6 + $0x8c] ss:$16 sps:$4 sm:$0xff]  }
  0xcb   :  { %v16197_v21 = vld [vmem:[#allocation6 + $0x28c] ss:$16 sps:$4 sm:$0xff]  }
  0xcd   :  { %1298 = vmatpush2.bf16.msra.mxu0 %v16150_v22  ;;  %1339 = vmatpush2.bf16.msra.mxu1 %v16153_v23  ;;  %v16192_v22 = vld [vmem:[#allocation6 + $0x88] ss:$16 sps:$4 sm:$0xff]  }
  0xce   :  { %1299 = vmatprep.subr.bf16.mxu0 %v16158_v24  ;;  %1340 = vmatprep.subr.bf16.mxu1 %v16161_v25  ;;  %v16195_v23 = vld [vmem:[#allocation6 + $0x288] ss:$16 sps:$4 sm:$0xff]   ;;  %v16200_v24 = vld [vmem:[#allocation6 + $0x6c] ss:$16 sps:$4 sm:$0xff]  }
  0xcf   :  { %v16203_v25 = vld [vmem:[#allocation6 + $0x26c] ss:$16 sps:$4 sm:$0xff]  }
  0xd1   :  { %1300 = vmatpush2.bf16.msra.mxu0 %v16156_v26  ;;  %1341 = vmatpush2.bf16.msra.mxu1 %v16159_v27  ;;  %v16198_v26 = vld [vmem:[#allocation6 + $0x68] ss:$16 sps:$4 sm:$0xff]  }
  0xd2   :  { %1301 = vmatprep.subr.bf16.mxu0 %v16164_v28  ;;  %1342 = vmatprep.subr.bf16.mxu1 %v16167_v29  ;;  %v16201_v27 = vld [vmem:[#allocation6 + $0x268] ss:$16 sps:$4 sm:$0xff]   ;;  %v16206_v28 = vld [vmem:[#allocation6 + $0x4c] ss:$16 sps:$4 sm:$0xff]  }
  0xd3   :  { %v16209_v29 = vld [vmem:[#allocation6 + $0x24c] ss:$16 sps:$4 sm:$0xff]  }
  0xd5   :  { %1302 = vmatpush2.bf16.msra.mxu0 %v16162_v30  ;;  %1343 = vmatpush2.bf16.msra.mxu1 %v16165_v31  ;;  %v16204_v30 = vld [vmem:[#allocation6 + $0x48] ss:$16 sps:$4 sm:$0xff]  }
  0xd6   :  { %1303 = vmatprep.subr.bf16.mxu0 %v16170_v32  ;;  %1344 = vmatprep.subr.bf16.mxu1 %v16173_v33  ;;  %v16207_v31 = vld [vmem:[#allocation6 + $0x248] ss:$16 sps:$4 sm:$0xff]   ;;  %v16212_v32 = vld [vmem:[#allocation6 + $0x2c] ss:$16 sps:$4 sm:$0xff]  }
  0xd7   :  { %v16215_v33 = vld [vmem:[#allocation6 + $0x22c] ss:$16 sps:$4 sm:$0xff]  }
  0xd9   :  { %1304 = vmatpush2.bf16.msra.mxu0 %v16168_v34  ;;  %1345 = vmatpush2.bf16.msra.mxu1 %v16171_v35  ;;  %v16210_v34 = vld [vmem:[#allocation6 + $0x28] ss:$16 sps:$4 sm:$0xff]  }
  0xda   :  { %1355 = vmatprep.subr.bf16.mxu0 %v16176_v36  ;;  %1396 = vmatprep.subr.bf16.mxu1 %v16179_v37  ;;  %v16213_v35 = vld [vmem:[#allocation6 + $0x228] ss:$16 sps:$4 sm:$0xff]   ;;  %v16218_v36 = vld [vmem:[#allocation6 + $0xc] ss:$16 sps:$4 sm:$0xff]  }
  0xdb   :  { %v16221_v37 = vld [vmem:[#allocation6 + $0x20c] ss:$16 sps:$4 sm:$0xff]  }
 0x15c   :  { %v423_v49 = vpop.f32.mrf.mxu0  ;;  %v464_v50 = vpop.f32.mrf.mxu1 }
 0x15d   :  { %v424_v51 = vadd.f32 %v423_v49, %v212_v45  ;;  %v465_v52 = vadd.f32 %v464_v50, %v220_v46  ;;  %v16227_v45 = vld [vmem:[#allocation6 + $0x3ec] ss:$16 sps:$4 sm:$0xff]   ;;  %v16222_v46 = vld [vmem:[#allocation6 + $0x1e8] ss:$16 sps:$4 sm:$0xff]  }
 0x15e   :  { %v425_v53 = vpop.f32.mrf.mxu0  ;;  %v466_v54 = vpop.f32.mrf.mxu1  ;;  %v16233_v49 = vld [vmem:[#allocation6 + $0x3cc] ss:$16 sps:$4 sm:$0xff]   ;;  %v16228_v50 = vld [vmem:[#allocation6 + $0x1c8] ss:$16 sps:$4 sm:$0xff]  }
 0x15f   :  { %v471_v55 = vmul.f32 0.01, %v424_v51  ;;  %v473_v56 = vmul.f32 0.01, %v465_v52  ;;  %v426_v57 = vadd.f32 %v425_v53, %v216_v47  ;;  %v467_v58 = vadd.f32 %v466_v54, %v224_v48  ;;  %v16225_v47 = vld [vmem:[#allocation6 + $0x3e8] ss:$16 sps:$4 sm:$0xff]  }
 0x160   :  { %v427_v59 = vpop.f32.mrf.mxu0  ;;  %v468_v60 = vpop.f32.mrf.mxu1  ;;  %v16230_v48 = vld [vmem:[#allocation6 + $0x1cc] ss:$16 sps:$4 sm:$0xff]   ;;  %v16234_v54 = vld [vmem:[#allocation6 + $0x1a8] ss:$16 sps:$4 sm:$0xff]  }
 0x161   :  { %v472_v61 = vmul.f32 0.01, %v426_v57  ;;  %v474_v62 = vmul.f32 0.01, %v467_v58  ;;  %v475_v63 = vmax.f32 %v424_v51, %v471_v55  ;;  %v477_v1 = vmax.f32 %v465_v52, %v473_v56  ;;  %v16231_v51 = vld [vmem:[#allocation6 + $0x3c8] ss:$16 sps:$4 sm:$0xff]  }
 0x162   :  { %v428_v2 = vpop.f32.mrf.mxu0  ;;  %v469_v3 = vpop.f32.mrf.mxu1  ;;  %v16236_v52 = vld [vmem:[#allocation6 + $0x1ac] ss:$16 sps:$4 sm:$0xff]   ;;  %v16237_v55 = vld [vmem:[#allocation6 + $0x3a8] ss:$16 sps:$4 sm:$0xff]  }
 0x163   :  { %v476_v4 = vmax.f32 %v426_v57, %v472_v61  ;;  %v478_v5 = vmax.f32 %v467_v58, %v474_v62  ;;  %v19091_v12 = vpack.c.bf16 %v475_v63, %v475_v63  ;;  %v19093_v13 = vpack.c.bf16 %v477_v1, %v477_v1  ;;  %v16239_v53 = vld [vmem:[#allocation6 + $0x3ac] ss:$16 sps:$4 sm:$0xff]   ;;  %v16240_v58 = vld [vmem:[#allocation6 + $0x188] ss:$16 sps:$4 sm:$0xff]  }
 0x164   :  { %v16242_v56 = vld [vmem:[#allocation6 + $0x18c] ss:$16 sps:$4 sm:$0xff]   ;;  %v16243_v59 = vld [vmem:[#allocation6 + $0x388] ss:$16 sps:$4 sm:$0xff]  }
 0x165   :  { %v608_v8 = vpack.c.bf16 %v476_v4, %v476_v4  ;;  %v610_v9 = vpack.c.bf16 %v478_v5, %v478_v5  ;;  %v16245_v57 = vld [vmem:[#allocation6 + $0x38c] ss:$16 sps:$4 sm:$0xff]   ;;  %v16246_v62 = vld [vmem:[#allocation6 + $0x168] ss:$16 sps:$4 sm:$0xff]  }
 0x166   :  { %v16248_v60 = vld [vmem:[#allocation6 + $0x16c] ss:$16 sps:$4 sm:$0xff]   ;;  %v16249_v63 = vld [vmem:[#allocation6 + $0x368] ss:$16 sps:$4 sm:$0xff]  }
 0x167   :  { %1305 = vmatprep.mubr.bf16.mxu0 %v608_v8  ;;  %1346 = vmatprep.mubr.bf16.mxu1 %v610_v9  ;;  %v16251_v61 = vld [vmem:[#allocation6 + $0x36c] ss:$16 sps:$4 sm:$0xff]   ;;  %v16252_v3 = vld [vmem:[#allocation6 + $0x148] ss:$16 sps:$4 sm:$0xff]  }
 0x168   :  { %1306 = vmatmul.mubr.bf16.vlgmr.msra.gmra.mxu0 %v19091_v12  ;;  %1347 = vmatmul.mubr.bf16.vlgmr.msra.gmra.mxu1 %v19093_v13  ;;  %v16254_v1 = vld [vmem:[#allocation6 + $0x14c] ss:$16 sps:$4 sm:$0xff]   ;;  %v16255_v4 = vld [vmem:[#allocation6 + $0x348] ss:$16 sps:$4 sm:$0xff]  }
 0x169   :  { %1356 = vmatpush1.bf16.msra.mxu0 %v16174_v6  ;;  %1397 = vmatpush1.bf16.msra.mxu1 %v16177_v7  ;;  %v16257_v2 = vld [vmem:[#allocation6 + $0x34c] ss:$16 sps:$4 sm:$0xff]   ;;  %v16258_v7 = vld [vmem:[#allocation6 + $0x128] ss:$16 sps:$4 sm:$0xff]  }
 0x16a   :  { %1387 = vmatprep.mubr.bf16.mxu0 %v608_v8  ;;  %1428 = vmatprep.mubr.bf16.mxu1 %v610_v9  ;;  %v16260_v5 = vld [vmem:[#allocation6 + $0x12c] ss:$16 sps:$4 sm:$0xff]   ;;  %v16261_v8 = vld [vmem:[#allocation6 + $0x328] ss:$16 sps:$4 sm:$0xff]  }
 0x16b   :  { %1357 = vmatprep.subr.bf16.mxu0 %v16182_v10  ;;  %1398 = vmatprep.subr.bf16.mxu1 %v16185_v11  ;;  %v16263_v6 = vld [vmem:[#allocation6 + $0x32c] ss:$16 sps:$4 sm:$0xff]   ;;  %v16264_v11 = vld [vmem:[#allocation6 + $0x108] ss:$16 sps:$4 sm:$0xff]  }
 0x16c   :  { %v16266_v9 = vld [vmem:[#allocation6 + $0x10c] ss:$16 sps:$4 sm:$0xff]  }
 0x16d   :  { %1358 = vmatpush1.bf16.msra.mxu0 %v16180_v14  ;;  %1399 = vmatpush1.bf16.msra.mxu1 %v16183_v15  ;;  %v16269_v10 = vld [vmem:[#allocation6 + $0x30c] ss:$16 sps:$4 sm:$0xff]   ;;  %v16267_v14 = vld [vmem:[#allocation6 + $0x308] ss:$16 sps:$4 sm:$0xff]   ;;  %v16272_v15 = vld [vmem:[#allocation6 + $0x4e4] ss:$16 sps:$4 sm:$0xff]  }
 0x16e   :  { %1359 = vmatprep.subr.bf16.mxu0 %v16188_v16  ;;  %1400 = vmatprep.subr.bf16.mxu1 %v16191_v17  ;;  %v16270_v16 = vld [vmem:[#allocation6 + $0x4e0] ss:$16 sps:$4 sm:$0xff]   ;;  %v16275_v17 = vld [vmem:[#allocation6 + $0x4c4] ss:$16 sps:$4 sm:$0xff]  }
 0x171   :  { %1360 = vmatpush1.bf16.msra.mxu0 %v16186_v18  ;;  %1401 = vmatpush1.bf16.msra.mxu1 %v16189_v19  ;;  %v16273_v18 = vld [vmem:[#allocation6 + $0x4c0] ss:$16 sps:$4 sm:$0xff]   ;;  %v16278_v19 = vld [vmem:[#allocation6 + $0x4a4] ss:$16 sps:$4 sm:$0xff]  }
 0x172   :  { %1361 = vmatprep.subr.bf16.mxu0 %v16194_v20  ;;  %1402 = vmatprep.subr.bf16.mxu1 %v16197_v21  ;;  %v16276_v20 = vld [vmem:[#allocation6 + $0x4a0] ss:$16 sps:$4 sm:$0xff]   ;;  %v16281_v21 = vld [vmem:[#allocation6 + $0x484] ss:$16 sps:$4 sm:$0xff]  }
 0x175   :  { %1362 = vmatpush1.bf16.msra.mxu0 %v16192_v22  ;;  %1403 = vmatpush1.bf16.msra.mxu1 %v16195_v23  ;;  %v16279_v22 = vld [vmem:[#allocation6 + $0x480] ss:$16 sps:$4 sm:$0xff]   ;;  %v16284_v23 = vld [vmem:[#allocation6 + $0x464] ss:$16 sps:$4 sm:$0xff]  }
 0x176   :  { %1363 = vmatprep.subr.bf16.mxu0 %v16200_v24  ;;  %1404 = vmatprep.subr.bf16.mxu1 %v16203_v25  ;;  %v16318_v24 = vld [vmem:[#allocation6 + $0x6e0] ss:$16 sps:$4 sm:$0xff]   ;;  %v16320_v25 = vld [vmem:[#allocation6 + $0x6e4] ss:$16 sps:$4 sm:$0xff]  }
 0x179   :  { %1364 = vmatpush1.bf16.msra.mxu0 %v16198_v26  ;;  %1405 = vmatpush1.bf16.msra.mxu1 %v16201_v27  ;;  %v16282_v26 = vld [vmem:[#allocation6 + $0x460] ss:$16 sps:$4 sm:$0xff]   ;;  %v16287_v27 = vld [vmem:[#allocation6 + $0x444] ss:$16 sps:$4 sm:$0xff]  }
 0x17a   :  { %1365 = vmatprep.subr.bf16.mxu0 %v16206_v28  ;;  %1406 = vmatprep.subr.bf16.mxu1 %v16209_v29  ;;  %v16326_v28 = vld [vmem:[#allocation6 + $0x6c4] ss:$16 sps:$4 sm:$0xff]  }
 0x17b   :  { %v16290_v29 = vld [vmem:[#allocation6 + $0x424] ss:$16 sps:$4 sm:$0xff]  }
 0x17d   :  { %1366 = vmatpush1.bf16.msra.mxu0 %v16204_v30  ;;  %1407 = vmatpush1.bf16.msra.mxu1 %v16207_v31  ;;  %v16288_v30 = vld [vmem:[#allocation6 + $0x420] ss:$16 sps:$4 sm:$0xff]  }
 0x17e   :  { %1367 = vmatprep.subr.bf16.mxu0 %v16212_v32  ;;  %1408 = vmatprep.subr.bf16.mxu1 %v16215_v33  ;;  %v16330_v31 = vld [vmem:[#allocation6 + $0x6a0] ss:$16 sps:$4 sm:$0xff]   ;;  %v16332_v32 = vld [vmem:[#allocation6 + $0x6a4] ss:$16 sps:$4 sm:$0xff]  }
 0x17f   :  { %v16293_v33 = vld [vmem:[#allocation6 + $0x404] ss:$16 sps:$4 sm:$0xff]  }
 0x181   :  { %1368 = vmatpush1.bf16.msra.mxu0 %v16210_v34  ;;  %1409 = vmatpush1.bf16.msra.mxu1 %v16213_v35  ;;  %v16291_v34 = vld [vmem:[#allocation6 + $0x400] ss:$16 sps:$4 sm:$0xff]  }
 0x182   :  { %1369 = vmatprep.subr.bf16.mxu0 %v16218_v36  ;;  %1410 = vmatprep.subr.bf16.mxu1 %v16221_v37  ;;  %v16336_v35 = vld [vmem:[#allocation6 + $0x680] ss:$16 sps:$4 sm:$0xff]   ;;  %v16338_v36 = vld [vmem:[#allocation6 + $0x684] ss:$16 sps:$4 sm:$0xff]  }
 0x183   :  { %v16296_v37 = vld [vmem:[#allocation6 + $0x5e4] ss:$16 sps:$4 sm:$0xff]  }
 0x185   :  { %1370 = vmatpush1.bf16.msra.mxu0 %v16216_v38  ;;  %1411 = vmatpush1.bf16.msra.mxu1 %v16219_v39  ;;  %v16294_v38 = vld [vmem:[#allocation6 + $0x5e0] ss:$16 sps:$4 sm:$0xff]  }
 0x186   :  { %1371 = vmatprep.subr.bf16.mxu0 %v16224_v40  ;;  %1412 = vmatprep.subr.bf16.mxu1 %v16227_v45  ;;  %v16342_v39 = vld [vmem:[#allocation6 + $0x660] ss:$16 sps:$4 sm:$0xff]   ;;  %v16344_v40 = vld [vmem:[#allocation6 + $0x664] ss:$16 sps:$4 sm:$0xff]  }
 0x187   :  { %v16299_v45 = vld [vmem:[#allocation6 + $0x5c4] ss:$16 sps:$4 sm:$0xff]  }
 0x189   :  { %1372 = vmatpush2.bf16.msra.mxu0 %v16222_v46  ;;  %1413 = vmatpush2.bf16.msra.mxu1 %v16225_v47  ;;  %v16297_v46 = vld [vmem:[#allocation6 + $0x5c0] ss:$16 sps:$4 sm:$0xff]  }
 0x18a   :  { %1373 = vmatprep.subr.bf16.mxu0 %v16230_v48  ;;  %1414 = vmatprep.subr.bf16.mxu1 %v16233_v49  ;;  %v16348_v47 = vld [vmem:[#allocation6 + $0x640] ss:$16 sps:$4 sm:$0xff]   ;;  %v16350_v48 = vld [vmem:[#allocation6 + $0x644] ss:$16 sps:$4 sm:$0xff]  }
 0x18b   :  { %v16302_v49 = vld [vmem:[#allocation6 + $0x5a4] ss:$16 sps:$4 sm:$0xff]  }
 0x18d   :  { %1374 = vmatpush2.bf16.msra.mxu0 %v16228_v50  ;;  %1415 = vmatpush2.bf16.msra.mxu1 %v16231_v51  ;;  %v16300_v50 = vld [vmem:[#allocation6 + $0x5a0] ss:$16 sps:$4 sm:$0xff]  }
 0x18e   :  { %1375 = vmatprep.subr.bf16.mxu0 %v16236_v52  ;;  %1416 = vmatprep.subr.bf16.mxu1 %v16239_v53  ;;  %v16354_v51 = vld [vmem:[#allocation6 + $0x620] ss:$16 sps:$4 sm:$0xff]   ;;  %v16356_v52 = vld [vmem:[#allocation6 + $0x624] ss:$16 sps:$4 sm:$0xff]  }
 0x18f   :  { %v16305_v53 = vld [vmem:[#allocation6 + $0x584] ss:$16 sps:$4 sm:$0xff]  }
 0x191   :  { %1376 = vmatpush2.bf16.msra.mxu0 %v16234_v54  ;;  %1417 = vmatpush2.bf16.msra.mxu1 %v16237_v55  ;;  %v16303_v54 = vld [vmem:[#allocation6 + $0x580] ss:$16 sps:$4 sm:$0xff]  }
 0x192   :  { %1377 = vmatprep.subr.bf16.mxu0 %v16242_v56  ;;  %1418 = vmatprep.subr.bf16.mxu1 %v16245_v57  ;;  %v16360_v55 = vld [vmem:[#allocation6 + $0x600] ss:$16 sps:$4 sm:$0xff]   ;;  %v16362_v56 = vld [vmem:[#allocation6 + $0x604] ss:$16 sps:$4 sm:$0xff]  }
 0x193   :  { %v16308_v57 = vld [vmem:[#allocation6 + $0x564] ss:$16 sps:$4 sm:$0xff]  }
 0x195   :  { %1378 = vmatpush2.bf16.msra.mxu0 %v16240_v58  ;;  %1419 = vmatpush2.bf16.msra.mxu1 %v16243_v59  ;;  %v16306_v58 = vld [vmem:[#allocation6 + $0x560] ss:$16 sps:$4 sm:$0xff]  }
 0x196   :  { %1379 = vmatprep.subr.bf16.mxu0 %v16248_v60  ;;  %1420 = vmatprep.subr.bf16.mxu1 %v16251_v61  ;;  %v16366_v59 = vld [vmem:[#allocation6 + $0x7e0] ss:$16 sps:$4 sm:$0xff]   ;;  %v16368_v60 = vld [vmem:[#allocation6 + $0x7e4] ss:$16 sps:$4 sm:$0xff]  }
 0x197   :  { %v16311_v61 = vld [vmem:[#allocation6 + $0x544] ss:$16 sps:$4 sm:$0xff]  }
 0x199   :  { %1380 = vmatpush2.bf16.msra.mxu0 %v16246_v62  ;;  %1421 = vmatpush2.bf16.msra.mxu1 %v16249_v63  ;;  %v16309_v62 = vld [vmem:[#allocation6 + $0x540] ss:$16 sps:$4 sm:$0xff]  }
 0x19a   :  { %1381 = vmatprep.subr.bf16.mxu0 %v16254_v1  ;;  %1422 = vmatprep.subr.bf16.mxu1 %v16257_v2  ;;  %v16372_v63 = vld [vmem:[#allocation6 + $0x7c0] ss:$16 sps:$4 sm:$0xff]   ;;  %v16374_v1 = vld [vmem:[#allocation6 + $0x7c4] ss:$16 sps:$4 sm:$0xff]  }
 0x19b   :  { %v16314_v2 = vld [vmem:[#allocation6 + $0x524] ss:$16 sps:$4 sm:$0xff]  }
 0x19d   :  { %1382 = vmatpush2.bf16.msra.mxu0 %v16252_v3  ;;  %1423 = vmatpush2.bf16.msra.mxu1 %v16255_v4  ;;  %v16312_v3 = vld [vmem:[#allocation6 + $0x520] ss:$16 sps:$4 sm:$0xff]  }
 0x19e   :  { %1383 = vmatprep.subr.bf16.mxu0 %v16260_v5  ;;  %1424 = vmatprep.subr.bf16.mxu1 %v16263_v6  ;;  %v16378_v4 = vld [vmem:[#allocation6 + $0x7a0] ss:$16 sps:$4 sm:$0xff]   ;;  %v16380_v5 = vld [vmem:[#allocation6 + $0x7a4] ss:$16 sps:$4 sm:$0xff]  }
 0x19f   :  { %v16317_v6 = vld [vmem:[#allocation6 + $0x504] ss:$16 sps:$4 sm:$0xff]  }
 0x1a1   :  { %1384 = vmatpush2.bf16.msra.mxu0 %v16258_v7  ;;  %1425 = vmatpush2.bf16.msra.mxu1 %v16261_v8  ;;  %v16315_v7 = vld [vmem:[#allocation6 + $0x500] ss:$16 sps:$4 sm:$0xff]  }
 0x1a2   :  { %1385 = vmatprep.subr.bf16.mxu0 %v16266_v9  ;;  %1426 = vmatprep.subr.bf16.mxu1 %v16269_v10  ;;  %v16384_v8 = vld [vmem:[#allocation6 + $0x780] ss:$16 sps:$4 sm:$0xff]   ;;  %v16386_v9 = vld [vmem:[#allocation6 + $0x784] ss:$16 sps:$4 sm:$0xff]   ;;  %v16323_v10 = vld [vmem:[#allocation6 + $0x4ec] ss:$16 sps:$4 sm:$0xff]  }
 0x1a5   :  { %1386 = vmatpush2.bf16.msra.mxu0 %v16264_v11  ;;  %1427 = vmatpush2.bf16.msra.mxu1 %v16267_v14  ;;  %v16390_v11 = vld [vmem:[#allocation6 + $0x760] ss:$16 sps:$4 sm:$0xff]   ;;  %v16392_v14 = vld [vmem:[#allocation6 + $0x764] ss:$16 sps:$4 sm:$0xff]  }
 0x1a6   :  { %2241 = vmatprep.subr.bf16.mxu0 %v16272_v15  ;;  %2282 = vmatprep.subr.bf16.mxu1 %v16320_v25  ;;  %v16398_v15 = vld [vmem:[#allocation6 + $0x744] ss:$16 sps:$4 sm:$0xff]  }
 0x1a8   :  { %1388 = vmatmul.mubr.bf16.vlgmr.msra.gmra.mxu0 %v19091_v12  ;;  %1429 = vmatmul.mubr.bf16.vlgmr.msra.gmra.mxu1 %v19093_v13  ;;  %v16285_v12 = vld [vmem:[#allocation6 + $0x440] ss:$16 sps:$4 sm:$0xff]  }
 0x1a9   :  { %2242 = vmatpush1.bf16.msra.mxu0 %v16270_v16  ;;  %2283 = vmatpush1.bf16.msra.mxu1 %v16318_v24  ;;  %v16324_v13 = vld [vmem:[#allocation6 + $0x6c0] ss:$16 sps:$4 sm:$0xff]  }
 0x1aa   :  { %2243 = vmatprep.subr.bf16.mxu0 %v16275_v17  ;;  %2284 = vmatprep.subr.bf16.mxu1 %v16326_v28  ;;  %v16396_v16 = vld [vmem:[#allocation6 + $0x740] ss:$16 sps:$4 sm:$0xff]   ;;  %v16404_v17 = vld [vmem:[#allocation6 + $0x724] ss:$16 sps:$4 sm:$0xff]  }
 0x1ad   :  { %2244 = vmatpush1.bf16.msra.mxu0 %v16273_v18  ;;  %2285 = vmatpush1.bf16.msra.mxu1 %v16324_v13  ;;  %v16402_v18 = vld [vmem:[#allocation6 + $0x720] ss:$16 sps:$4 sm:$0xff]  }
 0x1ae   :  { %2245 = vmatprep.subr.bf16.mxu0 %v16278_v19  ;;  %2286 = vmatprep.subr.bf16.mxu1 %v16332_v32  ;;  %v16410_v19 = vld [vmem:[#allocation6 + $0x704] ss:$16 sps:$4 sm:$0xff]  }
 0x1b1   :  { %2246 = vmatpush1.bf16.msra.mxu0 %v16276_v20  ;;  %2287 = vmatpush1.bf16.msra.mxu1 %v16330_v31  ;;  %v16408_v20 = vld [vmem:[#allocation6 + $0x700] ss:$16 sps:$4 sm:$0xff]  }
 0x1b2   :  { %2247 = vmatprep.subr.bf16.mxu0 %v16281_v21  ;;  %2288 = vmatprep.subr.bf16.mxu1 %v16338_v36  ;;  %v16416_v21 = vld [vmem:[#allocation6 + $0x6ec] ss:$16 sps:$4 sm:$0xff]  }
 0x1b5   :  { %2248 = vmatpush1.bf16.msra.mxu0 %v16279_v22  ;;  %2289 = vmatpush1.bf16.msra.mxu1 %v16336_v35  ;;  %v19099_v22 = vld [vmem:[#allocation7] sm:$0xf] }
 0x1b6   :  { %2249 = vmatprep.subr.bf16.mxu0 %v16284_v23  ;;  %2290 = vmatprep.subr.bf16.mxu1 %v16344_v40  ;;  %v616_v23 = vrot.slane %v19099_v22, %v19079_v41  ;;  %v620_v24 = vrot.slane %v19099_v22, %v19083_v43  ;;  %v16329_v40 = vld [vmem:[#allocation6 + $0x4cc] ss:$16 sps:$4 sm:$0xff]  }
 0x1b9   :  { %2250 = vmatpush1.bf16.msra.mxu0 %v16282_v26  ;;  %2291 = vmatpush1.bf16.msra.mxu1 %v16342_v39  ;;  %v16321_v39 = vld [vmem:[#allocation6 + $0x4e8] ss:$16 sps:$4 sm:$0xff]  }
 0x1ba   :  { %2251 = vmatprep.subr.bf16.mxu0 %v16287_v27  ;;  %2292 = vmatprep.subr.bf16.mxu1 %v16350_v48  ;;  %v16335_v48 = vld [vmem:[#allocation6 + $0x4ac] ss:$16 sps:$4 sm:$0xff]  }
 0x1bd   :  { %2252 = vmatpush1.bf16.msra.mxu0 %v16285_v12  ;;  %2293 = vmatpush1.bf16.msra.mxu1 %v16348_v47  ;;  %v16327_v47 = vld [vmem:[#allocation6 + $0x4c8] ss:$16 sps:$4 sm:$0xff]  }
 0x1be   :  { %2253 = vmatprep.subr.bf16.mxu0 %v16290_v29  ;;  %2294 = vmatprep.subr.bf16.mxu1 %v16356_v52  ;;  %v16347_v52 = vld [vmem:[#allocation6 + $0x46c] ss:$16 sps:$4 sm:$0xff]  }
 0x1c1   :  { %2254 = vmatpush1.bf16.msra.mxu0 %v16288_v30  ;;  %2295 = vmatpush1.bf16.msra.mxu1 %v16354_v51  ;;  %v16339_v51 = vld [vmem:[#allocation6 + $0x488] ss:$16 sps:$4 sm:$0xff]  }
 0x1c2   :  { %2255 = vmatprep.subr.bf16.mxu0 %v16293_v33  ;;  %2296 = vmatprep.subr.bf16.mxu1 %v16362_v56  ;;  %v16359_v56 = vld [vmem:[#allocation6 + $0x42c] ss:$16 sps:$4 sm:$0xff]  }
 0x1c5   :  { %2256 = vmatpush1.bf16.msra.mxu0 %v16291_v34  ;;  %2297 = vmatpush1.bf16.msra.mxu1 %v16360_v55  ;;  %v16351_v55 = vld [vmem:[#allocation6 + $0x448] ss:$16 sps:$4 sm:$0xff]  }
 0x1c6   :  { %2257 = vmatprep.subr.bf16.mxu0 %v16296_v37  ;;  %2298 = vmatprep.subr.bf16.mxu1 %v16368_v60  ;;  %v16371_v60 = vld [vmem:[#allocation6 + $0x5ec] ss:$16 sps:$4 sm:$0xff]  }
 0x1c9   :  { %2258 = vmatpush2.bf16.msra.mxu0 %v16294_v38  ;;  %2299 = vmatpush2.bf16.msra.mxu1 %v16366_v59  ;;  %v16363_v59 = vld [vmem:[#allocation6 + $0x408] ss:$16 sps:$4 sm:$0xff]  }
 0x1ca   :  { %2259 = vmatprep.subr.bf16.mxu0 %v16299_v45  ;;  %2300 = vmatprep.subr.bf16.mxu1 %v16374_v1  ;;  %v16383_v1 = vld [vmem:[#allocation6 + $0x5ac] ss:$16 sps:$4 sm:$0xff]  }
 0x1cd   :  { %2260 = vmatpush2.bf16.msra.mxu0 %v16297_v46  ;;  %2301 = vmatpush2.bf16.msra.mxu1 %v16372_v63  ;;  %v16375_v63 = vld [vmem:[#allocation6 + $0x5c8] ss:$16 sps:$4 sm:$0xff]  }
 0x1ce   :  { %2261 = vmatprep.subr.bf16.mxu0 %v16302_v49  ;;  %2302 = vmatprep.subr.bf16.mxu1 %v16380_v5  ;;  %v16333_v49 = vld [vmem:[#allocation6 + $0x4a8] ss:$16 sps:$4 sm:$0xff]   ;;  %v16395_v5 = vld [vmem:[#allocation6 + $0x56c] ss:$16 sps:$4 sm:$0xff]  }
 0x1d1   :  { %2262 = vmatpush2.bf16.msra.mxu0 %v16300_v50  ;;  %2303 = vmatpush2.bf16.msra.mxu1 %v16378_v4  ;;  %v16341_v50 = vld [vmem:[#allocation6 + $0x48c] ss:$16 sps:$4 sm:$0xff]   ;;  %v16387_v4 = vld [vmem:[#allocation6 + $0x588] ss:$16 sps:$4 sm:$0xff]  }
 0x1d2   :  { %2263 = vmatprep.subr.bf16.mxu0 %v16305_v53  ;;  %2304 = vmatprep.subr.bf16.mxu1 %v16386_v9  ;;  %v16345_v53 = vld [vmem:[#allocation6 + $0x468] ss:$16 sps:$4 sm:$0xff]  }
 0x1d3   :  { %v16399_v9 = vld [vmem:[#allocation6 + $0x548] ss:$16 sps:$4 sm:$0xff]  }
 0x1d5   :  { %2264 = vmatpush2.bf16.msra.mxu0 %v16303_v54  ;;  %2305 = vmatpush2.bf16.msra.mxu1 %v16384_v8  ;;  %v16353_v54 = vld [vmem:[#allocation6 + $0x44c] ss:$16 sps:$4 sm:$0xff]   ;;  %v624_v8 = vrot.slane %v19099_v22, %v19081_v42 }
 0x1d6   :  { %2265 = vmatprep.subr.bf16.mxu0 %v16308_v57  ;;  %2306 = vmatprep.subr.bf16.mxu1 %v16392_v14  ;;  %v16357_v57 = vld [vmem:[#allocation6 + $0x428] ss:$16 sps:$4 sm:$0xff]  }
 0x1d9   :  { %2266 = vmatpush2.bf16.msra.mxu0 %v16306_v58  ;;  %2307 = vmatpush2.bf16.msra.mxu1 %v16390_v11  ;;  %v16365_v58 = vld [vmem:[#allocation6 + $0x40c] ss:$16 sps:$4 sm:$0xff]   ;;  %v628_v11 = vrot.slane %v19099_v22, %v19085_v44 }
 0x1da   :  { %2267 = vmatprep.subr.bf16.mxu0 %v16311_v61  ;;  %2308 = vmatprep.subr.bf16.mxu1 %v16398_v15  ;;  %v16369_v61 = vld [vmem:[#allocation6 + $0x5e8] ss:$16 sps:$4 sm:$0xff]  }
 0x1dd   :  { %2268 = vmatpush2.bf16.msra.mxu0 %v16309_v62  ;;  %2309 = vmatpush2.bf16.msra.mxu1 %v16396_v16  ;;  %v16377_v62 = vld [vmem:[#allocation6 + $0x5cc] ss:$16 sps:$4 sm:$0xff]  }
 0x1de   :  { %2269 = vmatprep.subr.bf16.mxu0 %v16314_v2  ;;  %2310 = vmatprep.subr.bf16.mxu1 %v16404_v17  ;;  %v16381_v2 = vld [vmem:[#allocation6 + $0x5a8] ss:$16 sps:$4 sm:$0xff]  }
 0x1df   :  { %v16405_v17 = vld [vmem:[#allocation6 + $0x528] ss:$16 sps:$4 sm:$0xff]  }
 0x1e1   :  { %2270 = vmatpush2.bf16.msra.mxu0 %v16312_v3  ;;  %2311 = vmatpush2.bf16.msra.mxu1 %v16402_v18  ;;  %v16389_v3 = vld [vmem:[#allocation6 + $0x58c] ss:$16 sps:$4 sm:$0xff]  }
 0x1e2   :  { %2271 = vmatprep.subr.bf16.mxu0 %v16317_v6  ;;  %2312 = vmatprep.subr.bf16.mxu1 %v16410_v19  ;;  %v16393_v6 = vld [vmem:[#allocation6 + $0x568] ss:$16 sps:$4 sm:$0xff]  }
 0x1e5   :  { %2272 = vmatpush2.bf16.msra.mxu0 %v16315_v7  ;;  %2313 = vmatpush2.bf16.msra.mxu1 %v16408_v20  ;;  %v16401_v7 = vld [vmem:[#allocation6 + $0x54c] ss:$16 sps:$4 sm:$0xff]  }
 0x1e6   :  { %2323 = vmatprep.subr.bf16.mxu0 %v16323_v10  ;;  %2364 = vmatprep.subr.bf16.mxu1 %v16416_v21  ;;  %v16407_v10 = vld [vmem:[#allocation6 + $0x52c] ss:$16 sps:$4 sm:$0xff]  }
 0x1e7   :  { %v16413_v20 = vld [vmem:[#allocation6 + $0x50c] ss:$16 sps:$4 sm:$0xff]  }
 0x228   :  { %v1307_v25 = vpop.f32.mrf.mxu0  ;;  %v1348_v26 = vpop.f32.mrf.mxu1 }
 0x229   :  { %v1308_v27 = vadd.f32 %v1307_v25, %v616_v23 }
 0x22a   :  { %v1309_v12 = vpop.f32.mrf.mxu0  ;;  %v1350_v13 = vpop.f32.mrf.mxu1 }
 0x22b   :  { %v1349_v28 = vadd.f32 %v1348_v26, %v1308_v27  ;;  %v1310_v29 = vadd.f32 %v1309_v12, %v620_v24  ;;  %v16411_v12 = vld [vmem:[#allocation6 + $0x508] ss:$16 sps:$4 sm:$0xff]  }
 0x22c   :  { %v1311_v30 = vpop.f32.mrf.mxu0  ;;  %v1352_v31 = vpop.f32.mrf.mxu1 }
 0x22d   :  { %v1437_v32 = vmul.f32 0.01, %v1349_v28  ;;  %v1351_v33 = vadd.f32 %v1350_v13, %v1310_v29  ;;  %v16414_v31 = vld [vmem:[#allocation6 + $0x6e8] ss:$16 sps:$4 sm:$0xff]  }
 0x22e   :  { %v1312_v34 = vpop.f32.mrf.mxu0  ;;  %v1353_v35 = vpop.f32.mrf.mxu1 }
 0x22f   :  { %v1438_v36 = vmul.f32 0.01, %v1351_v33  ;;  %v1441_v37 = vmax.f32 %v1349_v28, %v1437_v32  ;;  %v16419_v32 = vld [vmem:[#allocation6 + $0x6cc] ss:$16 sps:$4 sm:$0xff]   ;;  %v16417_v35 = vld [vmem:[#allocation6 + $0x6c8] ss:$16 sps:$4 sm:$0xff]  }
 0x231   :  { %v1442_v38 = vmax.f32 %v1351_v33, %v1438_v36  ;;  %v19105_v46 = vpack.c.bf16 %v1441_v37, %v1441_v37  ;;  %v16422_v36 = vld [vmem:[#allocation6 + $0x6ac] ss:$16 sps:$4 sm:$0xff]   ;;  %v16420_v37 = vld [vmem:[#allocation6 + $0x6a8] ss:$16 sps:$4 sm:$0xff]  }
 0x233   :  { %v1575_v45 = vpack.c.bf16 %v1442_v38, %v1442_v38  ;;  %v16425_v38 = vld [vmem:[#allocation6 + $0x68c] ss:$16 sps:$4 sm:$0xff]  }
 0x235   :  { %2273 = vmatprep.mubr.bf16.mxu0 %v1575_v45 }
 0x236   :  { %2274 = vmatmul.mubr.bf16.vlgmr.msra.gmra.mxu0 %v19105_v46 }
 0x237   :  { %2324 = vmatpush1.bf16.msra.mxu0 %v16321_v39  ;;  %2355 = vmatprep.mubr.bf16.mxu0 %v1575_v45  ;;  %v16462_v39 = vld [vmem:[#allocation6 + $0x8e0] ss:$16 sps:$4 sm:$0xff]   ;;  %v16467_v45 = vld [vmem:[#allocation6 + $0x8c4] ss:$16 sps:$4 sm:$0xff]  }
 0x238   :  { %2325 = vmatprep.subr.bf16.mxu0 %v16329_v40  ;;  %v16464_v40 = vld [vmem:[#allocation6 + $0x8e4] ss:$16 sps:$4 sm:$0xff]  }
 0x23b   :  { %2326 = vmatpush1.bf16.msra.mxu0 %v16327_v47  ;;  %v16423_v47 = vld [vmem:[#allocation6 + $0x688] ss:$16 sps:$4 sm:$0xff]  }
 0x23c   :  { %2327 = vmatprep.subr.bf16.mxu0 %v16335_v48  ;;  %v16465_v48 = vld [vmem:[#allocation6 + $0x8c0] ss:$16 sps:$4 sm:$0xff]  }
 0x23f   :  { %2328 = vmatpush1.bf16.msra.mxu0 %v16333_v49  ;;  %v16428_v49 = vld [vmem:[#allocation6 + $0x66c] ss:$16 sps:$4 sm:$0xff]  }
 0x240   :  { %2329 = vmatprep.subr.bf16.mxu0 %v16341_v50  ;;  %v16426_v50 = vld [vmem:[#allocation6 + $0x668] ss:$16 sps:$4 sm:$0xff]  }
 0x243   :  { %2330 = vmatpush1.bf16.msra.mxu0 %v16339_v51  ;;  %v16468_v51 = vld [vmem:[#allocation6 + $0x8a0] ss:$16 sps:$4 sm:$0xff]  }
 0x244   :  { %2331 = vmatprep.subr.bf16.mxu0 %v16347_v52  ;;  %v16431_v52 = vld [vmem:[#allocation6 + $0x64c] ss:$16 sps:$4 sm:$0xff]  }
 0x247   :  { %2332 = vmatpush1.bf16.msra.mxu0 %v16345_v53  ;;  %v16473_v53 = vld [vmem:[#allocation6 + $0x884] ss:$16 sps:$4 sm:$0xff]  }
 0x248   :  { %2333 = vmatprep.subr.bf16.mxu0 %v16353_v54  ;;  %v16429_v54 = vld [vmem:[#allocation6 + $0x648] ss:$16 sps:$4 sm:$0xff]  }
 0x24b   :  { %2334 = vmatpush1.bf16.msra.mxu0 %v16351_v55  ;;  %v16471_v55 = vld [vmem:[#allocation6 + $0x880] ss:$16 sps:$4 sm:$0xff]  }
 0x24c   :  { %2335 = vmatprep.subr.bf16.mxu0 %v16359_v56  ;;  %v16434_v56 = vld [vmem:[#allocation6 + $0x62c] ss:$16 sps:$4 sm:$0xff]  }
 0x24f   :  { %2336 = vmatpush1.bf16.msra.mxu0 %v16357_v57  ;;  %v16476_v57 = vld [vmem:[#allocation6 + $0x864] ss:$16 sps:$4 sm:$0xff]  }
 0x250   :  { %2337 = vmatprep.subr.bf16.mxu0 %v16365_v58  ;;  %v16432_v58 = vld [vmem:[#allocation6 + $0x628] ss:$16 sps:$4 sm:$0xff]  }
 0x253   :  { %2338 = vmatpush1.bf16.msra.mxu0 %v16363_v59  ;;  %v16474_v59 = vld [vmem:[#allocation6 + $0x860] ss:$16 sps:$4 sm:$0xff]  }
 0x254   :  { %2339 = vmatprep.subr.bf16.mxu0 %v16371_v60  ;;  %v16437_v60 = vld [vmem:[#allocation6 + $0x60c] ss:$16 sps:$4 sm:$0xff]  }
 0x257   :  { %2340 = vmatpush2.bf16.msra.mxu0 %v16369_v61  ;;  %v16479_v61 = vld [vmem:[#allocation6 + $0x844] ss:$16 sps:$4 sm:$0xff]  }
 0x258   :  { %2341 = vmatprep.subr.bf16.mxu0 %v16377_v62  ;;  %v16435_v62 = vld [vmem:[#allocation6 + $0x608] ss:$16 sps:$4 sm:$0xff]  }
 0x25b   :  { %2342 = vmatpush2.bf16.msra.mxu0 %v16375_v63  ;;  %v16477_v63 = vld [vmem:[#allocation6 + $0x840] ss:$16 sps:$4 sm:$0xff]  }
 0x25c   :  { %2343 = vmatprep.subr.bf16.mxu0 %v16383_v1  ;;  %v16440_v1 = vld [vmem:[#allocation6 + $0x7ec] ss:$16 sps:$4 sm:$0xff]  }
 0x25f   :  { %2344 = vmatpush2.bf16.msra.mxu0 %v16381_v2  ;;  %v16482_v2 = vld [vmem:[#allocation6 + $0x824] ss:$16 sps:$4 sm:$0xff]  }
 0x260   :  { %2345 = vmatprep.subr.bf16.mxu0 %v16389_v3  ;;  %v16438_v3 = vld [vmem:[#allocation6 + $0x7e8] ss:$16 sps:$4 sm:$0xff]  }
 0x263   :  { %2346 = vmatpush2.bf16.msra.mxu0 %v16387_v4  ;;  %v16480_v4 = vld [vmem:[#allocation6 + $0x820] ss:$16 sps:$4 sm:$0xff]  }
 0x264   :  { %2347 = vmatprep.subr.bf16.mxu0 %v16395_v5  ;;  %v16443_v5 = vld [vmem:[#allocation6 + $0x7cc] ss:$16 sps:$4 sm:$0xff]  }
 0x267   :  { %2348 = vmatpush2.bf16.msra.mxu0 %v16393_v6  ;;  %v16485_v6 = vld [vmem:[#allocation6 + $0x804] ss:$16 sps:$4 sm:$0xff]  }
 0x268   :  { %v1389_v14 = vpop.f32.mrf.mxu0  ;;  %v1430_v15 = vpop.f32.mrf.mxu1  ;;  %2349 = vmatprep.subr.bf16.mxu0 %v16401_v7  ;;  %v16441_v7 = vld [vmem:[#allocation6 + $0x7c8] ss:$16 sps:$4 sm:$0xff]  }
 0x269   :  { %v1390_v16 = vadd.f32 %v1389_v14, %v624_v8  ;;  %v16483_v8 = vld [vmem:[#allocation6 + $0x800] ss:$16 sps:$4 sm:$0xff]  }
 0x26a   :  { %v1391_v18 = vpop.f32.mrf.mxu0  ;;  %v1432_v19 = vpop.f32.mrf.mxu1  ;;  %v16486_v14 = vld [vmem:[#allocation6 + $0x9e0] ss:$16 sps:$4 sm:$0xff]  }
 0x26b   :  { %v1431_v21 = vadd.f32 %v1430_v15, %v1390_v16  ;;  %v1392_v23 = vadd.f32 %v1391_v18, %v628_v11  ;;  %2350 = vmatpush2.bf16.msra.mxu0 %v16399_v9  ;;  %v16446_v9 = vld [vmem:[#allocation6 + $0x7ac] ss:$16 sps:$4 sm:$0xff]   ;;  %v16444_v11 = vld [vmem:[#allocation6 + $0x7a8] ss:$16 sps:$4 sm:$0xff]   ;;  %v16491_v16 = vld [vmem:[#allocation6 + $0x9c4] ss:$16 sps:$4 sm:$0xff]  }
 0x26c   :  { %v1393_v24 = vpop.f32.mrf.mxu0  ;;  %v1434_v25 = vpop.f32.mrf.mxu1  ;;  %2351 = vmatprep.subr.bf16.mxu0 %v16407_v10  ;;  %v16488_v10 = vld [vmem:[#allocation6 + $0x9e4] ss:$16 sps:$4 sm:$0xff]   ;;  %v16449_v15 = vld [vmem:[#allocation6 + $0x78c] ss:$16 sps:$4 sm:$0xff]   ;;  %v16489_v18 = vld [vmem:[#allocation6 + $0x9c0] ss:$16 sps:$4 sm:$0xff]  }
 0x26d   :  { %v1439_v26 = vmul.f32 0.01, %v1431_v21  ;;  %v1433_v27 = vadd.f32 %v1432_v19, %v1392_v23  ;;  %v16452_v19 = vld [vmem:[#allocation6 + $0x76c] ss:$16 sps:$4 sm:$0xff]   ;;  %v16492_v23 = vld [vmem:[#allocation6 + $0x9a0] ss:$16 sps:$4 sm:$0xff]  }
 0x26e   :  { %v1394_v13 = vpop.f32.mrf.mxu0  ;;  %v1435_v28 = vpop.f32.mrf.mxu1  ;;  %v16455_v24 = vld [vmem:[#allocation6 + $0x74c] ss:$16 sps:$4 sm:$0xff]   ;;  %v16497_v25 = vld [vmem:[#allocation6 + $0x984] ss:$16 sps:$4 sm:$0xff]  }
 0x26f   :  { %v1440_v22 = vmul.f32 0.01, %v1433_v27  ;;  %2352 = vmatpush2.bf16.msra.mxu0 %v16405_v17  ;;  %v1443_v29 = vmax.f32 %v1431_v21, %v1439_v26  ;;  %v16447_v17 = vld [vmem:[#allocation6 + $0x788] ss:$16 sps:$4 sm:$0xff]   ;;  %v16500_v13 = vld [vmem:[#allocation6 + $0x964] ss:$16 sps:$4 sm:$0xff]  }
 0x270   :  { %2353 = vmatprep.subr.bf16.mxu0 %v16413_v20  ;;  %v16494_v20 = vld [vmem:[#allocation6 + $0x9a4] ss:$16 sps:$4 sm:$0xff]   ;;  %v16450_v21 = vld [vmem:[#allocation6 + $0x768] ss:$16 sps:$4 sm:$0xff]  }
 0x271   :  { %v1444_v30 = vmax.f32 %v1433_v27, %v1440_v22  ;;  %v19112_v34 = vpack.c.bf16 %v1443_v29, %v1443_v29  ;;  %v16453_v26 = vld [vmem:[#allocation6 + $0x748] ss:$16 sps:$4 sm:$0xff]   ;;  %v16495_v27 = vld [vmem:[#allocation6 + $0x980] ss:$16 sps:$4 sm:$0xff]   ;;  %v16461_v29 = vld [vmem:[#allocation6 + $0x70c] ss:$16 sps:$4 sm:$0xff]  }
 0x272   :  { %v16456_v28 = vld [vmem:[#allocation6 + $0x728] ss:$16 sps:$4 sm:$0xff]   ;;  %v16498_v22 = vld [vmem:[#allocation6 + $0x960] ss:$16 sps:$4 sm:$0xff]  }
 0x273   :  { %v1577_v33 = vpack.c.bf16 %v1444_v30, %v1444_v30  ;;  %2354 = vmatpush2.bf16.msra.mxu0 %v16411_v12  ;;  %v16458_v12 = vld [vmem:[#allocation6 + $0x72c] ss:$16 sps:$4 sm:$0xff]   ;;  %v16503_v30 = vld [vmem:[#allocation6 + $0x944] ss:$16 sps:$4 sm:$0xff]  }
 0x274   :  { %3209 = vmatprep.subr.bf16.mxu0 %v16464_v40  ;;  %v16515_v40 = vld [vmem:[#allocation6 + $0x8ec] ss:$16 sps:$4 sm:$0xff]  }
 0x275   :  { %2314 = vmatprep.mubr.bf16.mxu1 %v1577_v33 }
 0x276   :  { %2315 = vmatmul.mubr.bf16.vlgmr.msra.gmra.mxu1 %v19112_v34  ;;  %2356 = vmatmul.mubr.bf16.vlgmr.msra.gmra.mxu0 %v19105_v46  ;;  %v16470_v46 = vld [vmem:[#allocation6 + $0x8a4] ss:$16 sps:$4 sm:$0xff]  }
 0x277   :  { %2365 = vmatpush1.bf16.msra.mxu1 %v16414_v31  ;;  %2396 = vmatprep.mubr.bf16.mxu1 %v1577_v33  ;;  %v16459_v31 = vld [vmem:[#allocation6 + $0x708] ss:$16 sps:$4 sm:$0xff]   ;;  %v16506_v33 = vld [vmem:[#allocation6 + $0x924] ss:$16 sps:$4 sm:$0xff]  }
 0x278   :  { %2366 = vmatprep.subr.bf16.mxu1 %v16419_v32  ;;  %3210 = vmatpush1.bf16.msra.mxu0 %v16462_v39  ;;  %v16501_v32 = vld [vmem:[#allocation6 + $0x940] ss:$16 sps:$4 sm:$0xff]   ;;  %v16512_v39 = vld [vmem:[#allocation6 + $0xae4] ss:$16 sps:$4 sm:$0xff]  }
 0x279   :  { %3211 = vmatprep.subr.bf16.mxu0 %v16467_v45  ;;  %v16516_v45 = vld [vmem:[#allocation6 + $0xac0] ss:$16 sps:$4 sm:$0xff]  }
 0x27b   :  { %2367 = vmatpush1.bf16.msra.mxu1 %v16417_v35  ;;  %v16504_v35 = vld [vmem:[#allocation6 + $0x920] ss:$16 sps:$4 sm:$0xff]  }
 0x27c   :  { %2368 = vmatprep.subr.bf16.mxu1 %v16422_v36  ;;  %3212 = vmatpush1.bf16.msra.mxu0 %v16465_v48  ;;  %v16509_v36 = vld [vmem:[#allocation6 + $0x904] ss:$16 sps:$4 sm:$0xff]   ;;  %v16522_v48 = vld [vmem:[#allocation6 + $0xaa0] ss:$16 sps:$4 sm:$0xff]  }
 0x27d   :  { %3213 = vmatprep.subr.bf16.mxu0 %v16470_v46  ;;  %v16530_v46 = vld [vmem:[#allocation6 + $0xa84] ss:$16 sps:$4 sm:$0xff]  }
 0x27f   :  { %2369 = vmatpush1.bf16.msra.mxu1 %v16420_v37  ;;  %v16507_v37 = vld [vmem:[#allocation6 + $0x900] ss:$16 sps:$4 sm:$0xff]  }
 0x280   :  { %2370 = vmatprep.subr.bf16.mxu1 %v16425_v38  ;;  %3214 = vmatpush1.bf16.msra.mxu0 %v16468_v51  ;;  %v16510_v38 = vld [vmem:[#allocation6 + $0xae0] ss:$16 sps:$4 sm:$0xff]   ;;  %v16536_v51 = vld [vmem:[#allocation6 + $0xa64] ss:$16 sps:$4 sm:$0xff]  }
 0x281   :  { %3215 = vmatprep.subr.bf16.mxu0 %v16473_v53  ;;  %v16542_v53 = vld [vmem:[#allocation6 + $0xa44] ss:$16 sps:$4 sm:$0xff]  }
 0x283   :  { %2371 = vmatpush1.bf16.msra.mxu1 %v16423_v47  ;;  %v16518_v47 = vld [vmem:[#allocation6 + $0xac4] ss:$16 sps:$4 sm:$0xff]  }
 0x284   :  { %2372 = vmatprep.subr.bf16.mxu1 %v16428_v49  ;;  %3216 = vmatpush1.bf16.msra.mxu0 %v16471_v55  ;;  %v16528_v49 = vld [vmem:[#allocation6 + $0xa80] ss:$16 sps:$4 sm:$0xff]   ;;  %v16548_v55 = vld [vmem:[#allocation6 + $0xa24] ss:$16 sps:$4 sm:$0xff]  }
 0x285   :  { %3217 = vmatprep.subr.bf16.mxu0 %v16476_v57  ;;  %v16554_v57 = vld [vmem:[#allocation6 + $0xa04] ss:$16 sps:$4 sm:$0xff]  }
 0x287   :  { %2373 = vmatpush1.bf16.msra.mxu1 %v16426_v50  ;;  %v16534_v50 = vld [vmem:[#allocation6 + $0xa60] ss:$16 sps:$4 sm:$0xff]  }
 0x288   :  { %2374 = vmatprep.subr.bf16.mxu1 %v16431_v52  ;;  %3218 = vmatpush1.bf16.msra.mxu0 %v16474_v59  ;;  %v16540_v52 = vld [vmem:[#allocation6 + $0xa40] ss:$16 sps:$4 sm:$0xff]   ;;  %v16560_v59 = vld [vmem:[#allocation6 + $0xbe4] ss:$16 sps:$4 sm:$0xff]  }
 0x289   :  { %3219 = vmatprep.subr.bf16.mxu0 %v16479_v61  ;;  %v16566_v61 = vld [vmem:[#allocation6 + $0xbc4] ss:$16 sps:$4 sm:$0xff]  }
 0x28b   :  { %2375 = vmatpush1.bf16.msra.mxu1 %v16429_v54  ;;  %v16546_v54 = vld [vmem:[#allocation6 + $0xa20] ss:$16 sps:$4 sm:$0xff]  }
 0x28c   :  { %2376 = vmatprep.subr.bf16.mxu1 %v16434_v56  ;;  %3220 = vmatpush1.bf16.msra.mxu0 %v16477_v63  ;;  %v16552_v56 = vld [vmem:[#allocation6 + $0xa00] ss:$16 sps:$4 sm:$0xff]   ;;  %v16572_v63 = vld [vmem:[#allocation6 + $0xba4] ss:$16 sps:$4 sm:$0xff]  }
 0x28d   :  { %3221 = vmatprep.subr.bf16.mxu0 %v16482_v2  ;;  %v16578_v2 = vld [vmem:[#allocation6 + $0xb84] ss:$16 sps:$4 sm:$0xff]  }
 0x28f   :  { %2377 = vmatpush1.bf16.msra.mxu1 %v16432_v58  ;;  %v16558_v58 = vld [vmem:[#allocation6 + $0xbe0] ss:$16 sps:$4 sm:$0xff]  }
 0x290   :  { %2378 = vmatprep.subr.bf16.mxu1 %v16437_v60  ;;  %3222 = vmatpush1.bf16.msra.mxu0 %v16480_v4  ;;  %v16564_v60 = vld [vmem:[#allocation6 + $0xbc0] ss:$16 sps:$4 sm:$0xff]   ;;  %v16584_v4 = vld [vmem:[#allocation6 + $0xb64] ss:$16 sps:$4 sm:$0xff]  }
 0x291   :  { %3223 = vmatprep.subr.bf16.mxu0 %v16485_v6  ;;  %v16590_v6 = vld [vmem:[#allocation6 + $0xb44] ss:$16 sps:$4 sm:$0xff]  }
 0x293   :  { %2379 = vmatpush1.bf16.msra.mxu1 %v16435_v62  ;;  %v16570_v62 = vld [vmem:[#allocation6 + $0xba0] ss:$16 sps:$4 sm:$0xff]  }
 0x294   :  { %2380 = vmatprep.subr.bf16.mxu1 %v16440_v1  ;;  %3224 = vmatpush1.bf16.msra.mxu0 %v16483_v8  ;;  %v16576_v1 = vld [vmem:[#allocation6 + $0xb80] ss:$16 sps:$4 sm:$0xff]   ;;  %v16596_v8 = vld [vmem:[#allocation6 + $0xb24] ss:$16 sps:$4 sm:$0xff]  }
 0x295   :  { %3225 = vmatprep.subr.bf16.mxu0 %v16488_v10  ;;  %v16594_v10 = vld [vmem:[#allocation6 + $0xb20] ss:$16 sps:$4 sm:$0xff]  }
 0x297   :  { %2381 = vmatpush2.bf16.msra.mxu1 %v16438_v3  ;;  %v16582_v3 = vld [vmem:[#allocation6 + $0xb60] ss:$16 sps:$4 sm:$0xff]  }
 0x298   :  { %2382 = vmatprep.subr.bf16.mxu1 %v16443_v5  ;;  %3226 = vmatpush2.bf16.msra.mxu0 %v16486_v14  ;;  %v16588_v5 = vld [vmem:[#allocation6 + $0xb40] ss:$16 sps:$4 sm:$0xff]   ;;  %v16602_v14 = vld [vmem:[#allocation6 + $0xb04] ss:$16 sps:$4 sm:$0xff]  }
 0x299   :  { %3227 = vmatprep.subr.bf16.mxu0 %v16491_v16  ;;  %v16600_v16 = vld [vmem:[#allocation6 + $0xb00] ss:$16 sps:$4 sm:$0xff]  }
 0x29b   :  { %2383 = vmatpush2.bf16.msra.mxu1 %v16441_v7 }
 0x29c   :  { %2384 = vmatprep.subr.bf16.mxu1 %v16446_v9  ;;  %3228 = vmatpush2.bf16.msra.mxu0 %v16489_v18  ;;  %v19117_v18 = vld [vmem:[#allocation7 + $0x4] sm:$0xf] }
 0x29d   :  { %3229 = vmatprep.subr.bf16.mxu0 %v16494_v20  ;;  %v1588_v20 = vrot.slane %v19117_v18, %v19083_v43 }
 0x29f   :  { %2385 = vmatpush2.bf16.msra.mxu1 %v16444_v11 }
 0x2a0   :  { %2386 = vmatprep.subr.bf16.mxu1 %v16449_v15  ;;  %3230 = vmatpush2.bf16.msra.mxu0 %v16492_v23 }
 0x2a1   :  { %3231 = vmatprep.subr.bf16.mxu0 %v16497_v25 }
 0x2a3   :  { %2387 = vmatpush2.bf16.msra.mxu1 %v16447_v17  ;;  %v16608_v17 = vld [vmem:[#allocation6 + $0xaec] ss:$16 sps:$4 sm:$0xff]  }
 0x2a4   :  { %2388 = vmatprep.subr.bf16.mxu1 %v16452_v19  ;;  %3232 = vmatpush2.bf16.msra.mxu0 %v16495_v27  ;;  %v1584_v19 = vrot.slane %v19117_v18, %v19079_v41 }
 0x2a5   :  { %3233 = vmatprep.subr.bf16.mxu0 %v16500_v13 }
 0x2a7   :  { %2389 = vmatpush2.bf16.msra.mxu1 %v16450_v21 }
 0x2a8   :  { %2390 = vmatprep.subr.bf16.mxu1 %v16455_v24  ;;  %3234 = vmatpush2.bf16.msra.mxu0 %v16498_v22 }
 0x2a9   :  { %3235 = vmatprep.subr.bf16.mxu0 %v16503_v30 }
 0x2ab   :  { %2391 = vmatpush2.bf16.msra.mxu1 %v16453_v26 }
 0x2ac   :  { %2392 = vmatprep.subr.bf16.mxu1 %v16458_v12  ;;  %3236 = vmatpush2.bf16.msra.mxu0 %v16501_v32 }
 0x2ad   :  { %3237 = vmatprep.subr.bf16.mxu0 %v16506_v33 }
 0x2af   :  { %2393 = vmatpush2.bf16.msra.mxu1 %v16456_v28 }
 0x2b0   :  { %2394 = vmatprep.subr.bf16.mxu1 %v16461_v29  ;;  %3238 = vmatpush2.bf16.msra.mxu0 %v16504_v35 }
 0x2b1   :  { %3239 = vmatprep.subr.bf16.mxu0 %v16509_v36  ;;  %v16513_v36 = vld [vmem:[#allocation6 + $0x8e8] ss:$16 sps:$4 sm:$0xff]  }
 0x2b3   :  { %2395 = vmatpush2.bf16.msra.mxu1 %v16459_v31 }
 0x2b4   :  { %3240 = vmatpush2.bf16.msra.mxu0 %v16507_v37  ;;  %3250 = vmatprep.subr.bf16.mxu1 %v16512_v39  ;;  %v16521_v39 = vld [vmem:[#allocation6 + $0x8cc] ss:$16 sps:$4 sm:$0xff]  }
 0x2b5   :  { %3291 = vmatprep.subr.bf16.mxu0 %v16515_v40  ;;  %v16519_v40 = vld [vmem:[#allocation6 + $0x8c8] ss:$16 sps:$4 sm:$0xff]  }
 0x2b6   :  { %2397 = vmatmul.mubr.bf16.vlgmr.msra.gmra.mxu1 %v19112_v34  ;;  %v16524_v34 = vld [vmem:[#allocation6 + $0xaa4] ss:$16 sps:$4 sm:$0xff]  }
 0x2b7   :  { %3251 = vmatpush1.bf16.msra.mxu1 %v16510_v38 }
 0x2b8   :  { %3252 = vmatprep.subr.bf16.mxu1 %v16518_v47  ;;  %v16525_v47 = vld [vmem:[#allocation6 + $0x8a8] ss:$16 sps:$4 sm:$0xff]  }
 0x2bb   :  { %3253 = vmatpush1.bf16.msra.mxu1 %v16516_v45  ;;  %v16527_v45 = vld [vmem:[#allocation6 + $0x8ac] ss:$16 sps:$4 sm:$0xff]  }
 0x2bc   :  { %3254 = vmatprep.subr.bf16.mxu1 %v16524_v34  ;;  %v16531_v34 = vld [vmem:[#allocation6 + $0x888] ss:$16 sps:$4 sm:$0xff]  }
 0x2bf   :  { %3255 = vmatpush1.bf16.msra.mxu1 %v16522_v48  ;;  %v16533_v48 = vld [vmem:[#allocation6 + $0x88c] ss:$16 sps:$4 sm:$0xff]  }
 0x2c0   :  { %3256 = vmatprep.subr.bf16.mxu1 %v16530_v46  ;;  %v16537_v46 = vld [vmem:[#allocation6 + $0x868] ss:$16 sps:$4 sm:$0xff]  }
 0x2c3   :  { %3257 = vmatpush1.bf16.msra.mxu1 %v16528_v49  ;;  %v16539_v49 = vld [vmem:[#allocation6 + $0x86c] ss:$16 sps:$4 sm:$0xff]  }
 0x2c4   :  { %3258 = vmatprep.subr.bf16.mxu1 %v16536_v51  ;;  %v16543_v51 = vld [vmem:[#allocation6 + $0x848] ss:$16 sps:$4 sm:$0xff]  }
 0x2c7   :  { %3259 = vmatpush1.bf16.msra.mxu1 %v16534_v50  ;;  %v16545_v50 = vld [vmem:[#allocation6 + $0x84c] ss:$16 sps:$4 sm:$0xff]  }
 0x2c8   :  { %3260 = vmatprep.subr.bf16.mxu1 %v16542_v53  ;;  %v16549_v53 = vld [vmem:[#allocation6 + $0x828] ss:$16 sps:$4 sm:$0xff]  }
 0x2cb   :  { %3261 = vmatpush1.bf16.msra.mxu1 %v16540_v52  ;;  %v16551_v52 = vld [vmem:[#allocation6 + $0x82c] ss:$16 sps:$4 sm:$0xff]  }
 0x2cc   :  { %3262 = vmatprep.subr.bf16.mxu1 %v16548_v55  ;;  %v16555_v55 = vld [vmem:[#allocation6 + $0x808] ss:$16 sps:$4 sm:$0xff]  }
 0x2cf   :  { %3263 = vmatpush1.bf16.msra.mxu1 %v16546_v54  ;;  %v16557_v54 = vld [vmem:[#allocation6 + $0x80c] ss:$16 sps:$4 sm:$0xff]  }
 0x2d0   :  { %3264 = vmatprep.subr.bf16.mxu1 %v16554_v57  ;;  %v16561_v57 = vld [vmem:[#allocation6 + $0x9e8] ss:$16 sps:$4 sm:$0xff]  }
 0x2d3   :  { %3265 = vmatpush1.bf16.msra.mxu1 %v16552_v56  ;;  %v16563_v56 = vld [vmem:[#allocation6 + $0x9ec] ss:$16 sps:$4 sm:$0xff]  }
 0x2d4   :  { %3266 = vmatprep.subr.bf16.mxu1 %v16560_v59  ;;  %v16567_v59 = vld [vmem:[#allocation6 + $0x9c8] ss:$16 sps:$4 sm:$0xff]  }
 0x2d7   :  { %3267 = vmatpush2.bf16.msra.mxu1 %v16558_v58  ;;  %v16569_v58 = vld [vmem:[#allocation6 + $0x9cc] ss:$16 sps:$4 sm:$0xff]  }
 0x2d8   :  { %3268 = vmatprep.subr.bf16.mxu1 %v16566_v61  ;;  %v16573_v61 = vld [vmem:[#allocation6 + $0x9a8] ss:$16 sps:$4 sm:$0xff]  }
 0x2db   :  { %3269 = vmatpush2.bf16.msra.mxu1 %v16564_v60  ;;  %v16575_v60 = vld [vmem:[#allocation6 + $0x9ac] ss:$16 sps:$4 sm:$0xff]  }
 0x2dc   :  { %3270 = vmatprep.subr.bf16.mxu1 %v16572_v63  ;;  %v16579_v63 = vld [vmem:[#allocation6 + $0x988] ss:$16 sps:$4 sm:$0xff]  }
 0x2df   :  { %3271 = vmatpush2.bf16.msra.mxu1 %v16570_v62  ;;  %v16581_v62 = vld [vmem:[#allocation6 + $0x98c] ss:$16 sps:$4 sm:$0xff]  }
 0x2e0   :  { %3272 = vmatprep.subr.bf16.mxu1 %v16578_v2  ;;  %v16585_v2 = vld [vmem:[#allocation6 + $0x968] ss:$16 sps:$4 sm:$0xff]  }
 0x2e3   :  { %3273 = vmatpush2.bf16.msra.mxu1 %v16576_v1  ;;  %v16587_v1 = vld [vmem:[#allocation6 + $0x96c] ss:$16 sps:$4 sm:$0xff]  }
 0x2e4   :  { %3274 = vmatprep.subr.bf16.mxu1 %v16584_v4  ;;  %v1592_v4 = vrot.slane %v19117_v18, %v19081_v42 }
 0x2e7   :  { %3275 = vmatpush2.bf16.msra.mxu1 %v16582_v3  ;;  %v16593_v3 = vld [vmem:[#allocation6 + $0x94c] ss:$16 sps:$4 sm:$0xff]  }
 0x2e8   :  { %3276 = vmatprep.subr.bf16.mxu1 %v16590_v6  ;;  %v16591_v6 = vld [vmem:[#allocation6 + $0x948] ss:$16 sps:$4 sm:$0xff]  }
 0x2eb   :  { %3277 = vmatpush2.bf16.msra.mxu1 %v16588_v5  ;;  %v1596_v5 = vrot.slane %v19117_v18, %v19085_v44  ;;  %v16603_v18 = vld [vmem:[#allocation6 + $0x908] ss:$16 sps:$4 sm:$0xff]  }
 0x2ec   :  { %3278 = vmatprep.subr.bf16.mxu1 %v16596_v8 }
 0x2ef   :  { %3279 = vmatpush2.bf16.msra.mxu1 %v16594_v10 }
 0x2f0   :  { %3280 = vmatprep.subr.bf16.mxu1 %v16602_v14  ;;  %v16597_v14 = vld [vmem:[#allocation6 + $0x928] ss:$16 sps:$4 sm:$0xff]  }
 0x2f3   :  { %3281 = vmatpush2.bf16.msra.mxu1 %v16600_v16  ;;  %v16605_v16 = vld [vmem:[#allocation6 + $0x90c] ss:$16 sps:$4 sm:$0xff]  }
 0x2f4   :  { %3332 = vmatprep.subr.bf16.mxu1 %v16608_v17 }
 0x2f6   :  { %v2275_v7 = vpop.f32.mrf.mxu0 }
 0x2f7   :  { %v2276_v21 = vadd.f32 %v2275_v7, %v1584_v19  ;;  %v16599_v7 = vld [vmem:[#allocation6 + $0x92c] ss:$16 sps:$4 sm:$0xff]  }
 0x2f8   :  { %v2277_v9 = vpop.f32.mrf.mxu0 }
 0x2f9   :  { %v2278_v25 = vadd.f32 %v2277_v9, %v1588_v20 }
 0x2fa   :  { %v2279_v11 = vpop.f32.mrf.mxu0 }
 0x2fc   :  { %v2280_v15 = vpop.f32.mrf.mxu0 }
 0x336   :  { %v2316_v23 = vpop.f32.mrf.mxu1  ;;  %v19123_v24 = vpop.f32.mrf.mxu0 }
 0x337   :  { %v2317_v26 = vadd.f32 %v2316_v23, %v2276_v21  ;;  %v2358_v8 = vadd.f32 %v19123_v24, %v1592_v4  ;;  %v16707_v4 = vld [vmem:[#allocation6 + $0xcc4] ss:$16 sps:$4 sm:$0xff]  }
 0x338   :  { %v2318_v27 = vpop.f32.mrf.mxu1  ;;  %v19125_v12 = vpop.f32.mrf.mxu0 }
 0x339   :  { %v2405_v13 = vmul.f32 0.01, %v2317_v26  ;;  %v2319_v28 = vadd.f32 %v2318_v27, %v2278_v25  ;;  %v2360_v10 = vadd.f32 %v19125_v12, %v1596_v5  ;;  %v16606_v12 = vld [vmem:[#allocation6 + $0xae8] ss:$16 sps:$4 sm:$0xff]  }
 0x33a   :  { %v2320_v22 = vpop.f32.mrf.mxu1  ;;  %v2361_v29 = vpop.f32.mrf.mxu0  ;;  %v16657_v5 = vld [vmem:[#allocation6 + $0xbc8] ss:$16 sps:$4 sm:$0xff]  }
 0x33b   :  { %v2406_v30 = vmul.f32 0.01, %v2319_v28  ;;  %v2409_v31 = vmax.f32 %v2317_v26, %v2405_v13  ;;  %v16611_v26 = vld [vmem:[#allocation2 + $0x1e4] ss:$16 sps:$4 sm:$0xff]  }
 0x33c   :  { %v2321_v32 = vpop.f32.mrf.mxu1  ;;  %v2362_v33 = vpop.f32.mrf.mxu0  ;;  %v16614_v22 = vld [vmem:[#allocation6 + $0xacc] ss:$16 sps:$4 sm:$0xff]  }
 0x33d   :  { %v2410_v35 = vmax.f32 %v2319_v28, %v2406_v30  ;;  %v19127_v38 = vpack.c.bf16 %v2409_v31, %v2409_v31  ;;  %v16609_v28 = vld [vmem:[#allocation2 + $0x1e0] ss:$16 sps:$4 sm:$0xff]   ;;  %v16617_v29 = vld [vmem:[#allocation2 + $0x1c4] ss:$16 sps:$4 sm:$0xff]  }
 0x33e   :  { %v16612_v30 = vld [vmem:[#allocation6 + $0xac8] ss:$16 sps:$4 sm:$0xff]   ;;  %v16620_v32 = vld [vmem:[#allocation6 + $0xaac] ss:$16 sps:$4 sm:$0xff]  }
 0x33f   :  { %v2543_v37 = vpack.c.bf16 %v2410_v35, %v2410_v35  ;;  %v16615_v31 = vld [vmem:[#allocation2 + $0x1c0] ss:$16 sps:$4 sm:$0xff]   ;;  %v16623_v33 = vld [vmem:[#allocation2 + $0x1a4] ss:$16 sps:$4 sm:$0xff]  }
 0x340   :  { %v16618_v35 = vld [vmem:[#allocation6 + $0xaa8] ss:$16 sps:$4 sm:$0xff]  }
 0x341   :  { %3241 = vmatprep.mubr.bf16.mxu0 %v2543_v37 }
 0x342   :  { %3242 = vmatmul.mubr.bf16.vlgmr.msra.gmra.mxu0 %v19127_v38 }
 0x343   :  { %3292 = vmatpush1.bf16.msra.mxu0 %v16513_v36  ;;  %3323 = vmatprep.mubr.bf16.mxu0 %v2543_v37  ;;  %v16621_v36 = vld [vmem:[#allocation2 + $0x1a0] ss:$16 sps:$4 sm:$0xff]   ;;  %v16626_v37 = vld [vmem:[#allocation6 + $0xa8c] ss:$16 sps:$4 sm:$0xff]  }
 0x344   :  { %3293 = vmatprep.subr.bf16.mxu0 %v16521_v39  ;;  %v16629_v39 = vld [vmem:[#allocation2 + $0x184] ss:$16 sps:$4 sm:$0xff]  }
 0x347   :  { %3294 = vmatpush1.bf16.msra.mxu0 %v16519_v40  ;;  %v16627_v40 = vld [vmem:[#allocation2 + $0x180] ss:$16 sps:$4 sm:$0xff]  }
 0x348   :  { %3295 = vmatprep.subr.bf16.mxu0 %v16527_v45  ;;  %v16632_v45 = vld [vmem:[#allocation6 + $0xa6c] ss:$16 sps:$4 sm:$0xff]  }
 0x34b   :  { %3296 = vmatpush1.bf16.msra.mxu0 %v16525_v47  ;;  %v16635_v47 = vld [vmem:[#allocation2 + $0x164] ss:$16 sps:$4 sm:$0xff]  }
 0x34c   :  { %3297 = vmatprep.subr.bf16.mxu0 %v16533_v48  ;;  %v16630_v48 = vld [vmem:[#allocation6 + $0xa68] ss:$16 sps:$4 sm:$0xff]  }
 0x34f   :  { %3298 = vmatpush1.bf16.msra.mxu0 %v16531_v34  ;;  %v16633_v34 = vld [vmem:[#allocation2 + $0x160] ss:$16 sps:$4 sm:$0xff]  }
 0x350   :  { %3299 = vmatprep.subr.bf16.mxu0 %v16539_v49  ;;  %v16638_v49 = vld [vmem:[#allocation6 + $0xa4c] ss:$16 sps:$4 sm:$0xff]  }
 0x353   :  { %3300 = vmatpush1.bf16.msra.mxu0 %v16537_v46  ;;  %v16641_v46 = vld [vmem:[#allocation2 + $0x144] ss:$16 sps:$4 sm:$0xff]  }
 0x354   :  { %3301 = vmatprep.subr.bf16.mxu0 %v16545_v50  ;;  %v16636_v50 = vld [vmem:[#allocation6 + $0xa48] ss:$16 sps:$4 sm:$0xff]  }
 0x357   :  { %3302 = vmatpush1.bf16.msra.mxu0 %v16543_v51  ;;  %v16639_v51 = vld [vmem:[#allocation2 + $0x140] ss:$16 sps:$4 sm:$0xff]  }
 0x358   :  { %3303 = vmatprep.subr.bf16.mxu0 %v16551_v52  ;;  %v16644_v52 = vld [vmem:[#allocation6 + $0xa2c] ss:$16 sps:$4 sm:$0xff]  }
 0x35b   :  { %3304 = vmatpush1.bf16.msra.mxu0 %v16549_v53  ;;  %v16647_v53 = vld [vmem:[#allocation2 + $0x124] ss:$16 sps:$4 sm:$0xff]  }
 0x35c   :  { %3305 = vmatprep.subr.bf16.mxu0 %v16557_v54  ;;  %v16642_v54 = vld [vmem:[#allocation6 + $0xa28] ss:$16 sps:$4 sm:$0xff]  }
 0x35f   :  { %3306 = vmatpush1.bf16.msra.mxu0 %v16555_v55  ;;  %v16645_v55 = vld [vmem:[#allocation2 + $0x120] ss:$16 sps:$4 sm:$0xff]  }
 0x360   :  { %3307 = vmatprep.subr.bf16.mxu0 %v16563_v56  ;;  %v16650_v56 = vld [vmem:[#allocation6 + $0xa0c] ss:$16 sps:$4 sm:$0xff]  }
 0x363   :  { %3308 = vmatpush2.bf16.msra.mxu0 %v16561_v57  ;;  %v16653_v57 = vld [vmem:[#allocation2 + $0x104] ss:$16 sps:$4 sm:$0xff]  }
 0x364   :  { %3309 = vmatprep.subr.bf16.mxu0 %v16569_v58  ;;  %v16648_v58 = vld [vmem:[#allocation6 + $0xa08] ss:$16 sps:$4 sm:$0xff]  }
 0x367   :  { %3310 = vmatpush2.bf16.msra.mxu0 %v16567_v59  ;;  %v16651_v59 = vld [vmem:[#allocation2 + $0x100] ss:$16 sps:$4 sm:$0xff]  }
 0x368   :  { %3311 = vmatprep.subr.bf16.mxu0 %v16575_v60  ;;  %v16656_v60 = vld [vmem:[#allocation6 + $0xbec] ss:$16 sps:$4 sm:$0xff]  }
 0x36b   :  { %3312 = vmatpush2.bf16.msra.mxu0 %v16573_v61  ;;  %v14593_v61 = vld [vmem:[%s19406_s0 + $0x8] sm:$0xff] }
 0x36c   :  { %3313 = vmatprep.subr.bf16.mxu0 %v16581_v62  ;;  %v16704_v62 = vld [vmem:[#allocation6 + $0xce4] ss:$16 sps:$4 sm:$0xff]  }
 0x36f   :  { %3314 = vmatpush2.bf16.msra.mxu0 %v16579_v63  ;;  %v16654_v63 = vld [vmem:[#allocation6 + $0xbe8] ss:$16 sps:$4 sm:$0xff]  }
 0x370   :  { %3315 = vmatprep.subr.bf16.mxu0 %v16587_v1  ;;  %v19144_v1 = vpack.c.bf16 %v14593_v61, %v14593_v61  ;;  %v16741_v61 = vld [vmem:[#allocation6 + $0xd40] ss:$16 sps:$4 sm:$0xff]  }
 0x373   :  { %3316 = vmatpush2.bf16.msra.mxu0 %v16585_v2  ;;  %v16659_v2 = vld [vmem:[#allocation6 + $0xbcc] ss:$16 sps:$4 sm:$0xff]  }
 0x374   :  { %3317 = vmatprep.subr.bf16.mxu0 %v16593_v3  ;;  %v16702_v3 = vld [vmem:[#allocation6 + $0xce0] ss:$16 sps:$4 sm:$0xff]  }
 0x376   :  { %v2398_v9 = vpop.f32.mrf.mxu1 }
 0x377   :  { %v2399_v11 = vadd.f32 %v2398_v9, %v2358_v8  ;;  %3318 = vmatpush2.bf16.msra.mxu0 %v16591_v6  ;;  %v16662_v6 = vld [vmem:[#allocation6 + $0xbac] ss:$16 sps:$4 sm:$0xff]   ;;  %v16710_v8 = vld [vmem:[#allocation6 + $0xca4] ss:$16 sps:$4 sm:$0xff]   ;;  %v16660_v9 = vld [vmem:[#allocation6 + $0xba8] ss:$16 sps:$4 sm:$0xff]  }
 0x378   :  { %v2400_v15 = vpop.f32.mrf.mxu1  ;;  %3319 = vmatprep.subr.bf16.mxu0 %v16599_v7  ;;  %v16705_v7 = vld [vmem:[#allocation6 + $0xcc0] ss:$16 sps:$4 sm:$0xff]  }
 0x379   :  { %v2407_v17 = vmul.f32 0.01, %v2399_v11  ;;  %v2401_v19 = vadd.f32 %v2400_v15, %v2360_v10  ;;  %v16665_v10 = vld [vmem:[#allocation6 + $0xb8c] ss:$16 sps:$4 sm:$0xff]   ;;  %v16663_v15 = vld [vmem:[#allocation6 + $0xb88] ss:$16 sps:$4 sm:$0xff]  }
 0x37a   :  { %v2402_v20 = vpop.f32.mrf.mxu1 }
 0x37b   :  { %v2408_v21 = vmul.f32 0.01, %v2401_v19  ;;  %3320 = vmatpush2.bf16.msra.mxu0 %v16597_v14  ;;  %v2411_v23 = vmax.f32 %v2399_v11, %v2407_v17  ;;  %v16708_v11 = vld [vmem:[#allocation6 + $0xca0] ss:$16 sps:$4 sm:$0xff]   ;;  %v16713_v14 = vld [vmem:[#allocation6 + $0xc84] ss:$16 sps:$4 sm:$0xff]  }
 0x37c   :  { %v2403_v25 = vpop.f32.mrf.mxu1  ;;  %3321 = vmatprep.subr.bf16.mxu0 %v16605_v16  ;;  %v16668_v16 = vld [vmem:[#allocation6 + $0xb6c] ss:$16 sps:$4 sm:$0xff]   ;;  %v16711_v17 = vld [vmem:[#allocation6 + $0xc80] ss:$16 sps:$4 sm:$0xff]   ;;  %v16666_v20 = vld [vmem:[#allocation6 + $0xb68] ss:$16 sps:$4 sm:$0xff]  }
 0x37d   :  { %v2412_v24 = vmax.f32 %v2401_v19, %v2408_v21  ;;  %v19136_v13 = vpack.c.bf16 %v2411_v23, %v2411_v23  ;;  %v16716_v19 = vld [vmem:[#allocation6 + $0xc64] ss:$16 sps:$4 sm:$0xff]   ;;  %v16671_v21 = vld [vmem:[#allocation6 + $0xb4c] ss:$16 sps:$4 sm:$0xff]   ;;  %v16669_v25 = vld [vmem:[#allocation6 + $0xb48] ss:$16 sps:$4 sm:$0xff]  }
 0x37e   :  { %v16719_v23 = vld [vmem:[#allocation6 + $0xc44] ss:$16 sps:$4 sm:$0xff]  }
 0x37f   :  { %v2545_v27 = vpack.c.bf16 %v2412_v24, %v2412_v24  ;;  %3322 = vmatpush2.bf16.msra.mxu0 %v16603_v18  ;;  %v16714_v18 = vld [vmem:[#allocation6 + $0xc60] ss:$16 sps:$4 sm:$0xff]  }
 0x380   :  { %3600 = vmatprep.subr.bf16.mxu0 %v16611_v26  ;;  %v16674_v26 = vld [vmem:[#allocation6 + $0xb2c] ss:$16 sps:$4 sm:$0xff]   ;;  %v16717_v24 = vld [vmem:[#allocation6 + $0xc40] ss:$16 sps:$4 sm:$0xff]  }
 0x381   :  { %3282 = vmatprep.mubr.bf16.mxu1 %v2545_v27 }
 0x382   :  { %3283 = vmatmul.mubr.bf16.vlgmr.msra.gmra.mxu1 %v19136_v13  ;;  %3324 = vmatmul.mubr.bf16.vlgmr.msra.gmra.mxu0 %v19127_v38  ;;  %v16624_v38 = vld [vmem:[#allocation6 + $0xa88] ss:$16 sps:$4 sm:$0xff]  }
 0x383   :  { %3333 = vmatpush1.bf16.msra.mxu1 %v16606_v12  ;;  %3364 = vmatprep.mubr.bf16.mxu1 %v2545_v27  ;;  %v16672_v27 = vld [vmem:[#allocation6 + $0xb28] ss:$16 sps:$4 sm:$0xff]   ;;  %v16677_v12 = vld [vmem:[#allocation6 + $0xb0c] ss:$16 sps:$4 sm:$0xff]  }
 0x384   :  { %3601 = vmatpush1.bf16.msra.mxu0 %v16609_v28  ;;  %3334 = vmatprep.subr.bf16.mxu1 %v16614_v22  ;;  %v16675_v28 = vld [vmem:[#allocation6 + $0xb08] ss:$16 sps:$4 sm:$0xff]   ;;  %v16680_v22 = vld [vmem:[#allocation2 + $0x1ec] ss:$16 sps:$4 sm:$0xff]  }
 0x385   :  { %3602 = vmatprep.subr.bf16.mxu0 %v16617_v29  ;;  %3632 = vmatprep.mubr.bf16.mxu0 %v18966_v0  ;;  %v16678_v29 = vld [vmem:[#allocation2 + $0x1e8] ss:$16 sps:$4 sm:$0xff]  }
 0x387   :  { %3335 = vmatpush1.bf16.msra.mxu1 %v16612_v30  ;;  %v16683_v30 = vld [vmem:[#allocation2 + $0x1cc] ss:$16 sps:$4 sm:$0xff]  }
 0x388   :  { %3603 = vmatpush1.bf16.msra.mxu0 %v16615_v31  ;;  %3336 = vmatprep.subr.bf16.mxu1 %v16620_v32  ;;  %v16681_v31 = vld [vmem:[#allocation2 + $0x1c8] ss:$16 sps:$4 sm:$0xff]   ;;  %v16686_v32 = vld [vmem:[#allocation2 + $0x1ac] ss:$16 sps:$4 sm:$0xff]  }
 0x389   :  { %3604 = vmatprep.subr.bf16.mxu0 %v16623_v33  ;;  %v16722_v33 = vld [vmem:[#allocation6 + $0xc24] ss:$16 sps:$4 sm:$0xff]  }
 0x38b   :  { %3337 = vmatpush1.bf16.msra.mxu1 %v16618_v35  ;;  %v16720_v35 = vld [vmem:[#allocation6 + $0xc20] ss:$16 sps:$4 sm:$0xff]  }
 0x38c   :  { %3605 = vmatpush1.bf16.msra.mxu0 %v16621_v36  ;;  %3338 = vmatprep.subr.bf16.mxu1 %v16626_v37  ;;  %v16684_v36 = vld [vmem:[#allocation2 + $0x1a8] ss:$16 sps:$4 sm:$0xff]   ;;  %v16689_v37 = vld [vmem:[#allocation2 + $0x18c] ss:$16 sps:$4 sm:$0xff]  }
 0x38d   :  { %3606 = vmatprep.subr.bf16.mxu0 %v16629_v39  ;;  %v16725_v39 = vld [vmem:[#allocation6 + $0xc04] ss:$16 sps:$4 sm:$0xff]  }
 0x38f   :  { %3339 = vmatpush1.bf16.msra.mxu1 %v16624_v38  ;;  %v16723_v38 = vld [vmem:[#allocation6 + $0xc00] ss:$16 sps:$4 sm:$0xff]  }
 0x390   :  { %3607 = vmatpush1.bf16.msra.mxu0 %v16627_v40  ;;  %3340 = vmatprep.subr.bf16.mxu1 %v16632_v45  ;;  %v16687_v40 = vld [vmem:[#allocation2 + $0x188] ss:$16 sps:$4 sm:$0xff]   ;;  %v16728_v45 = vld [vmem:[#allocation6 + $0xde4] ss:$16 sps:$4 sm:$0xff]  }
 0x391   :  { %3608 = vmatprep.subr.bf16.mxu0 %v16635_v47  ;;  %v16731_v47 = vld [vmem:[#allocation6 + $0xdc4] ss:$16 sps:$4 sm:$0xff]  }
 0x393   :  { %3341 = vmatpush1.bf16.msra.mxu1 %v16630_v48  ;;  %v16690_v48 = vld [vmem:[#allocation2 + $0x168] ss:$16 sps:$4 sm:$0xff]  }
 0x394   :  { %3609 = vmatpush1.bf16.msra.mxu0 %v16633_v34  ;;  %3342 = vmatprep.subr.bf16.mxu1 %v16638_v49  ;;  %v16729_v34 = vld [vmem:[#allocation6 + $0xdc0] ss:$16 sps:$4 sm:$0xff]   ;;  %v16695_v49 = vld [vmem:[#allocation2 + $0x14c] ss:$16 sps:$4 sm:$0xff]  }
 0x395   :  { %3610 = vmatprep.subr.bf16.mxu0 %v16641_v46  ;;  %v16734_v46 = vld [vmem:[#allocation6 + $0xda4] ss:$16 sps:$4 sm:$0xff]  }
 0x397   :  { %3343 = vmatpush1.bf16.msra.mxu1 %v16636_v50  ;;  %v16693_v50 = vld [vmem:[#allocation2 + $0x148] ss:$16 sps:$4 sm:$0xff]  }
 0x398   :  { %3611 = vmatpush1.bf16.msra.mxu0 %v16639_v51  ;;  %3344 = vmatprep.subr.bf16.mxu1 %v16644_v52  ;;  %v16732_v51 = vld [vmem:[#allocation6 + $0xda0] ss:$16 sps:$4 sm:$0xff]   ;;  %v16698_v52 = vld [vmem:[#allocation2 + $0x12c] ss:$16 sps:$4 sm:$0xff]  }
 0x399   :  { %3612 = vmatprep.subr.bf16.mxu0 %v16647_v53  ;;  %v16737_v53 = vld [vmem:[#allocation6 + $0xd84] ss:$16 sps:$4 sm:$0xff]  }
 0x39b   :  { %3345 = vmatpush1.bf16.msra.mxu1 %v16642_v54  ;;  %v16696_v54 = vld [vmem:[#allocation2 + $0x128] ss:$16 sps:$4 sm:$0xff]  }
 0x39c   :  { %3613 = vmatpush1.bf16.msra.mxu0 %v16645_v55  ;;  %3346 = vmatprep.subr.bf16.mxu1 %v16650_v56  ;;  %v16735_v55 = vld [vmem:[#allocation6 + $0xd80] ss:$16 sps:$4 sm:$0xff]   ;;  %v16701_v56 = vld [vmem:[#allocation2 + $0x10c] ss:$16 sps:$4 sm:$0xff]  }
 0x39d   :  { %3614 = vmatprep.subr.bf16.mxu0 %v16653_v57  ;;  %v16740_v57 = vld [vmem:[#allocation6 + $0xd64] ss:$16 sps:$4 sm:$0xff]  }
 0x39f   :  { %3347 = vmatpush1.bf16.msra.mxu1 %v16648_v58  ;;  %v16699_v58 = vld [vmem:[#allocation2 + $0x108] ss:$16 sps:$4 sm:$0xff]  }
 0x3a0   :  { %3615 = vmatpush1.bf16.msra.mxu0 %v16651_v59  ;;  %3348 = vmatprep.subr.bf16.mxu1 %v16656_v60  ;;  %v16738_v59 = vld [vmem:[#allocation6 + $0xd60] ss:$16 sps:$4 sm:$0xff]   ;;  %v16743_v60 = vld [vmem:[#allocation6 + $0xd44] ss:$16 sps:$4 sm:$0xff]  }
 0x3a1   :  { %4486 = vmatprep.subr.bf16.mxu0 %v16704_v62  ;;  %v16746_v62 = vld [vmem:[#allocation6 + $0xd24] ss:$16 sps:$4 sm:$0xff]  }
 0x3a3   :  { %3349 = vmatpush2.bf16.msra.mxu1 %v16654_v63  ;;  %3633 = vmatmul.mubr.bf16.vlgmr.msra.gmra.mxu0 %v19144_v1  ;;  %v16744_v63 = vld [vmem:[#allocation6 + $0xd20] ss:$16 sps:$4 sm:$0xff]  }
 0x3a4   :  { %3350 = vmatprep.subr.bf16.mxu1 %v16659_v2  ;;  %4487 = vmatpush1.bf16.msra.mxu0 %v16702_v3  ;;  %v16749_v2 = vld [vmem:[#allocation6 + $0xd04] ss:$16 sps:$4 sm:$0xff]   ;;  %v16747_v3 = vld [vmem:[#allocation6 + $0xd00] ss:$16 sps:$4 sm:$0xff]  }
 0x3a5   :  { %4488 = vmatprep.subr.bf16.mxu0 %v16707_v4  ;;  %v16752_v4 = vld [vmem:[#allocation6 + $0xee4] ss:$16 sps:$4 sm:$0xff]  }
 0x3a7   :  { %3351 = vmatpush2.bf16.msra.mxu1 %v16657_v5  ;;  %v16750_v5 = vld [vmem:[#allocation6 + $0xee0] ss:$16 sps:$4 sm:$0xff]  }
 0x3a8   :  { %3352 = vmatprep.subr.bf16.mxu1 %v16662_v6  ;;  %4489 = vmatpush1.bf16.msra.mxu0 %v16705_v7  ;;  %v16755_v6 = vld [vmem:[#allocation6 + $0xcec] ss:$16 sps:$4 sm:$0xff]   ;;  %v16756_v7 = vld [vmem:[#allocation6 + $0xec0] ss:$16 sps:$4 sm:$0xff]  }
 0x3a9   :  { %4490 = vmatprep.subr.bf16.mxu0 %v16710_v8  ;;  %v16758_v8 = vld [vmem:[#allocation6 + $0xec4] ss:$16 sps:$4 sm:$0xff]  }
 0x3ab   :  { %3353 = vmatpush2.bf16.msra.mxu1 %v16660_v9  ;;  %v16764_v9 = vld [vmem:[#allocation6 + $0xea4] ss:$16 sps:$4 sm:$0xff]  }
 0x3ac   :  { %3354 = vmatprep.subr.bf16.mxu1 %v16665_v10  ;;  %4491 = vmatpush1.bf16.msra.mxu0 %v16708_v11  ;;  %v16768_v10 = vld [vmem:[#allocation6 + $0xe80] ss:$16 sps:$4 sm:$0xff]   ;;  %v16770_v11 = vld [vmem:[#allocation6 + $0xe84] ss:$16 sps:$4 sm:$0xff]  }
 0x3ad   :  { %4492 = vmatprep.subr.bf16.mxu0 %v16713_v14  ;;  %v16774_v14 = vld [vmem:[#allocation6 + $0xe60] ss:$16 sps:$4 sm:$0xff]  }
 0x3af   :  { %3355 = vmatpush2.bf16.msra.mxu1 %v16663_v15  ;;  %v16776_v15 = vld [vmem:[#allocation6 + $0xe64] ss:$16 sps:$4 sm:$0xff]  }
 0x3b0   :  { %3356 = vmatprep.subr.bf16.mxu1 %v16668_v16  ;;  %4493 = vmatpush1.bf16.msra.mxu0 %v16711_v17  ;;  %v16780_v16 = vld [vmem:[#allocation6 + $0xe40] ss:$16 sps:$4 sm:$0xff]   ;;  %v16782_v17 = vld [vmem:[#allocation6 + $0xe44] ss:$16 sps:$4 sm:$0xff]  }
 0x3b1   :  { %4494 = vmatprep.subr.bf16.mxu0 %v16716_v19 }
 0x3b3   :  { %3357 = vmatpush2.bf16.msra.mxu1 %v16666_v20 }
 0x3b4   :  { %3358 = vmatprep.subr.bf16.mxu1 %v16671_v21  ;;  %4495 = vmatpush1.bf16.msra.mxu0 %v16714_v18  ;;  %v16788_v21 = vld [vmem:[#allocation6 + $0xe24] ss:$16 sps:$4 sm:$0xff]   ;;  %v16786_v18 = vld [vmem:[#allocation6 + $0xe20] ss:$16 sps:$4 sm:$0xff]  }
 0x3b5   :  { %4496 = vmatprep.subr.bf16.mxu0 %v16719_v23 }
 0x3b7   :  { %3359 = vmatpush2.bf16.msra.mxu1 %v16669_v25 }
 0x3b8   :  { %3360 = vmatprep.subr.bf16.mxu1 %v16674_v26  ;;  %4497 = vmatpush1.bf16.msra.mxu0 %v16717_v24  ;;  %v16794_v26 = vld [vmem:[#allocation6 + $0xe04] ss:$16 sps:$4 sm:$0xff]   ;;  %v16792_v24 = vld [vmem:[#allocation6 + $0xe00] ss:$16 sps:$4 sm:$0xff]  }
 0x3b9   :  { %4498 = vmatprep.subr.bf16.mxu0 %v16722_v33  ;;  %v16822_v33 = vld [vmem:[#allocation6 + $0xf60] ss:$16 sps:$4 sm:$0xff]  }
 0x3bb   :  { %3361 = vmatpush2.bf16.msra.mxu1 %v16672_v27  ;;  %v16798_v27 = vld [vmem:[#allocation6 + $0xfe0] ss:$16 sps:$4 sm:$0xff]  }
 0x3bc   :  { %3362 = vmatprep.subr.bf16.mxu1 %v16677_v12  ;;  %4499 = vmatpush1.bf16.msra.mxu0 %v16720_v35  ;;  %v16800_v12 = vld [vmem:[#allocation6 + $0xfe4] ss:$16 sps:$4 sm:$0xff]  }
 0x3bd   :  { %4500 = vmatprep.subr.bf16.mxu0 %v16725_v39  ;;  %v16824_v35 = vld [vmem:[#allocation6 + $0xf64] ss:$16 sps:$4 sm:$0xff]  }
 0x3be   :  { %v16836_v39 = vld [vmem:[#allocation6 + $0xf24] ss:$16 sps:$4 sm:$0xff]  }
 0x3bf   :  { %3363 = vmatpush2.bf16.msra.mxu1 %v16675_v28  ;;  %v16804_v28 = vld [vmem:[#allocation6 + $0xfc0] ss:$16 sps:$4 sm:$0xff]  }
 0x3c0   :  { %3641 = vmatprep.subr.bf16.mxu1 %v16680_v22  ;;  %4501 = vmatpush1.bf16.msra.mxu0 %v16723_v38  ;;  %v16806_v22 = vld [vmem:[#allocation6 + $0xfc4] ss:$16 sps:$4 sm:$0xff]   ;;  %v16834_v38 = vld [vmem:[#allocation6 + $0xf20] ss:$16 sps:$4 sm:$0xff]  }
 0x3c1   :  { %4502 = vmatprep.subr.bf16.mxu0 %v16728_v45  ;;  %v16848_v45 = vld [vmem:[#allocation6 + $0xeec] ss:$16 sps:$4 sm:$0xff]  }
 0x3c2   :  { %3365 = vmatmul.mubr.bf16.vlgmr.msra.gmra.mxu1 %v19136_v13  ;;  %v16726_v13 = vld [vmem:[#allocation6 + $0xde0] ss:$16 sps:$4 sm:$0xff]  }
 0x3c3   :  { %3642 = vmatpush1.bf16.msra.mxu1 %v16678_v29  ;;  %3673 = vmatprep.mubr.bf16.mxu1 %v18966_v0  ;;  %v16692_v0 = vld [vmem:[#allocation2 + $0x16c] ss:$16 sps:$4 sm:$0xff]   ;;  %v16810_v29 = vld [vmem:[#allocation6 + $0xfa0] ss:$16 sps:$4 sm:$0xff]  }
 0x3c4   :  { %3643 = vmatprep.subr.bf16.mxu1 %v16683_v30  ;;  %4503 = vmatpush2.bf16.msra.mxu0 %v16726_v13  ;;  %v16812_v30 = vld [vmem:[#allocation6 + $0xfa4] ss:$16 sps:$4 sm:$0xff]   ;;  %v16840_v13 = vld [vmem:[#allocation6 + $0xf00] ss:$16 sps:$4 sm:$0xff]  }
 0x3c5   :  { %4504 = vmatprep.subr.bf16.mxu0 %v16731_v47 }
 0x3c7   :  { %3644 = vmatpush1.bf16.msra.mxu1 %v16681_v31  ;;  %v16816_v31 = vld [vmem:[#allocation6 + $0xf80] ss:$16 sps:$4 sm:$0xff]  }
 0x3c8   :  { %3645 = vmatprep.subr.bf16.mxu1 %v16686_v32  ;;  %4505 = vmatpush2.bf16.msra.mxu0 %v16729_v34  ;;  %v16818_v32 = vld [vmem:[#allocation6 + $0xf84] ss:$16 sps:$4 sm:$0xff]  }
 0x3c9   :  { %4506 = vmatprep.subr.bf16.mxu0 %v16734_v46 }
 0x3cb   :  { %3646 = vmatpush1.bf16.msra.mxu1 %v16684_v36  ;;  %v16828_v36 = vld [vmem:[#allocation6 + $0xf40] ss:$16 sps:$4 sm:$0xff]  }
 0x3cc   :  { %3647 = vmatprep.subr.bf16.mxu1 %v16689_v37  ;;  %4507 = vmatpush2.bf16.msra.mxu0 %v16732_v51  ;;  %v16830_v37 = vld [vmem:[#allocation6 + $0xf44] ss:$16 sps:$4 sm:$0xff]  }
 0x3cd   :  { %4508 = vmatprep.subr.bf16.mxu0 %v16737_v53 }
 0x3cf   :  { %3648 = vmatpush1.bf16.msra.mxu1 %v16687_v40  ;;  %v16842_v40 = vld [vmem:[#allocation6 + $0xf04] ss:$16 sps:$4 sm:$0xff]  }
 0x3d0   :  { %3649 = vmatprep.subr.bf16.mxu1 %v16692_v0  ;;  %4509 = vmatpush2.bf16.msra.mxu0 %v16735_v55  ;;  %v19150_v0 = vld [vmem:[#allocation7 + $0x8] sm:$0xf] }
 0x3d1   :  { %4510 = vmatprep.subr.bf16.mxu0 %v16740_v57  ;;  %v2552_v47 = vrot.slane %v19150_v0, %v19079_v41 }
 0x3d3   :  { %3650 = vmatpush1.bf16.msra.mxu1 %v16690_v48  ;;  %v2556_v48 = vrot.slane %v19150_v0, %v19083_v43 }
 0x3d4   :  { %3651 = vmatprep.subr.bf16.mxu1 %v16695_v49  ;;  %4511 = vmatpush2.bf16.msra.mxu0 %v16738_v59 }
 0x3d5   :  { %4512 = vmatprep.subr.bf16.mxu0 %v16743_v60 }
 0x3d7   :  { %3652 = vmatpush1.bf16.msra.mxu1 %v16693_v50 }
 0x3d8   :  { %3653 = vmatprep.subr.bf16.mxu1 %v16698_v52  ;;  %4513 = vmatpush2.bf16.msra.mxu0 %v16741_v61 }
 0x3d9   :  { %4514 = vmatprep.subr.bf16.mxu0 %v16746_v62 }
 0x3db   :  { %3654 = vmatpush1.bf16.msra.mxu1 %v16696_v54 }
 0x3dc   :  { %3655 = vmatprep.subr.bf16.mxu1 %v16701_v56  ;;  %4515 = vmatpush2.bf16.msra.mxu0 %v16744_v63  ;;  %v19162_v63 = vld [vmem:[#allocation4 + $0x4] sm:$0xf] }
 0x3dd   :  { %4516 = vmatprep.subr.bf16.mxu0 %v16749_v2  ;;  %v3423_v2 = vrot.slane %v19162_v63, %v19079_v41 }
 0x3df   :  { %3656 = vmatpush1.bf16.msra.mxu1 %v16699_v58 }
 0x3e0   :  { %4517 = vmatpush2.bf16.msra.mxu0 %v16747_v3  ;;  %4527 = vmatprep.subr.bf16.mxu1 %v16752_v4  ;;  %v3427_v3 = vrot.slane %v19162_v63, %v19083_v43 }
 0x3e1   :  { %4568 = vmatprep.subr.bf16.mxu0 %v16755_v6 }
 0x3e2   :  { %3674 = vmatmul.mubr.bf16.vlgmr.msra.gmra.mxu1 %v19144_v1  ;;  %v16762_v1 = vld [vmem:[#allocation6 + $0xea0] ss:$16 sps:$4 sm:$0xff]  }
 0x3e3   :  { %4528 = vmatpush1.bf16.msra.mxu1 %v16750_v5 }
 0x3e4   :  { %4529 = vmatprep.subr.bf16.mxu1 %v16758_v8 }
 0x3e7   :  { %4530 = vmatpush1.bf16.msra.mxu1 %v16756_v7 }
 0x3e8   :  { %4531 = vmatprep.subr.bf16.mxu1 %v16764_v9 }
 0x3eb   :  { %4532 = vmatpush1.bf16.msra.mxu1 %v16762_v1 }
 0x3ec   :  { %4533 = vmatprep.subr.bf16.mxu1 %v16770_v11 }
 0x3ef   :  { %4534 = vmatpush1.bf16.msra.mxu1 %v16768_v10 }
 0x3f0   :  { %4535 = vmatprep.subr.bf16.mxu1 %v16776_v15 }
 0x3f3   :  { %4536 = vmatpush1.bf16.msra.mxu1 %v16774_v14 }
 0x3f4   :  { %4537 = vmatprep.subr.bf16.mxu1 %v16782_v17  ;;  %v16753_v17 = vld [vmem:[#allocation6 + $0xce8] ss:$16 sps:$4 sm:$0xff]  }
 0x3f7   :  { %4538 = vmatpush1.bf16.msra.mxu1 %v16780_v16 }
 0x3f8   :  { %4539 = vmatprep.subr.bf16.mxu1 %v16788_v21  ;;  %v16767_v21 = vld [vmem:[#allocation6 + $0xcac] ss:$16 sps:$4 sm:$0xff]  }
 0x3fb   :  { %4540 = vmatpush1.bf16.msra.mxu1 %v16786_v18  ;;  %v16765_v18 = vld [vmem:[#allocation6 + $0xca8] ss:$16 sps:$4 sm:$0xff]  }
 0x3fc   :  { %4541 = vmatprep.subr.bf16.mxu1 %v16794_v26  ;;  %v16779_v26 = vld [vmem:[#allocation6 + $0xc6c] ss:$16 sps:$4 sm:$0xff]  }
 0x3ff   :  { %4542 = vmatpush1.bf16.msra.mxu1 %v16792_v24  ;;  %v16777_v24 = vld [vmem:[#allocation6 + $0xc68] ss:$16 sps:$4 sm:$0xff]  }
 0x400   :  { %4543 = vmatprep.subr.bf16.mxu1 %v16800_v12  ;;  %v16785_v12 = vld [vmem:[#allocation6 + $0xc4c] ss:$16 sps:$4 sm:$0xff]  }
 0x402   :  { %v3243_v19 = vpop.f32.mrf.mxu0 }
 0x403   :  { %4544 = vmatpush2.bf16.msra.mxu1 %v16798_v27  ;;  %v3244_v34 = vadd.f32 %v3243_v19, %v2552_v47  ;;  %v16761_v19 = vld [vmem:[#allocation6 + $0xccc] ss:$16 sps:$4 sm:$0xff]   ;;  %v2560_v27 = vrot.slane %v19150_v0, %v19081_v42  ;;  %v16795_v47 = vld [vmem:[#allocation6 + $0xc08] ss:$16 sps:$4 sm:$0xff]  }
 0x404   :  { %v3245_v20 = vpop.f32.mrf.mxu0  ;;  %4545 = vmatprep.subr.bf16.mxu1 %v16806_v22  ;;  %v16783_v22 = vld [vmem:[#allocation6 + $0xc48] ss:$16 sps:$4 sm:$0xff]  }
 0x405   :  { %v3246_v50 = vadd.f32 %v3245_v20, %v2556_v48  ;;  %v16759_v20 = vld [vmem:[#allocation6 + $0xcc8] ss:$16 sps:$4 sm:$0xff]  }
 0x406   :  { %v3247_v23 = vpop.f32.mrf.mxu0 }
 0x407   :  { %4546 = vmatpush2.bf16.msra.mxu1 %v16804_v28  ;;  %v16773_v23 = vld [vmem:[#allocation6 + $0xc8c] ss:$16 sps:$4 sm:$0xff]   ;;  %v2564_v28 = vrot.slane %v19150_v0, %v19085_v44 }
 0x408   :  { %v3248_v25 = vpop.f32.mrf.mxu0  ;;  %4547 = vmatprep.subr.bf16.mxu1 %v16812_v30  ;;  %v16791_v30 = vld [vmem:[#allocation6 + $0xc2c] ss:$16 sps:$4 sm:$0xff]  }
 0x409   :  { %v16771_v25 = vld [vmem:[#allocation6 + $0xc88] ss:$16 sps:$4 sm:$0xff]  }
 0x40b   :  { %4548 = vmatpush2.bf16.msra.mxu1 %v16810_v29 }
 0x40c   :  { %4549 = vmatprep.subr.bf16.mxu1 %v16818_v32 }
 0x40f   :  { %4550 = vmatpush2.bf16.msra.mxu1 %v16816_v31 }
 0x410   :  { %4551 = vmatprep.subr.bf16.mxu1 %v16824_v35 }
 0x413   :  { %4552 = vmatpush2.bf16.msra.mxu1 %v16822_v33 }
 0x414   :  { %4553 = vmatprep.subr.bf16.mxu1 %v16830_v37 }
 0x417   :  { %4554 = vmatpush2.bf16.msra.mxu1 %v16828_v36  ;;  %v16789_v36 = vld [vmem:[#allocation6 + $0xc28] ss:$16 sps:$4 sm:$0xff]  }
 0x418   :  { %4555 = vmatprep.subr.bf16.mxu1 %v16836_v39 }
 0x41b   :  { %4556 = vmatpush2.bf16.msra.mxu1 %v16834_v38  ;;  %v16797_v38 = vld [vmem:[#allocation6 + $0xc0c] ss:$16 sps:$4 sm:$0xff]  }
 0x41c   :  { %4557 = vmatprep.subr.bf16.mxu1 %v16842_v40 }
 0x41f   :  { %4558 = vmatpush2.bf16.msra.mxu1 %v16840_v13 }
 0x420   :  { %4609 = vmatprep.subr.bf16.mxu1 %v16848_v45 }
 0x442   :  { %v3284_v49 = vpop.f32.mrf.mxu1  ;;  %v3325_v46 = vpop.f32.mrf.mxu0 }
 0x443   :  { %v3285_v51 = vadd.f32 %v3284_v49, %v3244_v34  ;;  %v3326_v29 = vadd.f32 %v3325_v46, %v2560_v27  ;;  %v16803_v34 = vld [vmem:[#allocation6 + $0xdec] ss:$16 sps:$4 sm:$0xff]   ;;  %v16801_v49 = vld [vmem:[#allocation6 + $0xde8] ss:$16 sps:$4 sm:$0xff]  }
 0x444   :  { %v3286_v52 = vpop.f32.mrf.mxu1  ;;  %v3327_v53 = vpop.f32.mrf.mxu0  ;;  %v16809_v46 = vld [vmem:[#allocation6 + $0xdcc] ss:$16 sps:$4 sm:$0xff]   ;;  %v16852_v27 = vld [vmem:[#allocation6 + $0xea8] ss:$16 sps:$4 sm:$0xff]  }
 0x445   :  { %v3373_v54 = vmul.f32 0.01, %v3285_v51  ;;  %v3287_v55 = vadd.f32 %v3286_v52, %v3246_v50  ;;  %v3328_v32 = vadd.f32 %v3327_v53, %v2564_v28  ;;  %v16807_v50 = vld [vmem:[#allocation6 + $0xdc8] ss:$16 sps:$4 sm:$0xff]   ;;  %v16821_v53 = vld [vmem:[#allocation6 + $0xd8c] ss:$16 sps:$4 sm:$0xff]  }
 0x446   :  { %v3288_v56 = vpop.f32.mrf.mxu1  ;;  %v3329_v57 = vpop.f32.mrf.mxu0  ;;  %v16813_v52 = vld [vmem:[#allocation6 + $0xda8] ss:$16 sps:$4 sm:$0xff]   ;;  %v16900_v28 = vld [vmem:[#allocation6 + $0x10a0] ss:$16 sps:$4 sm:$0xff]  }
 0x447   :  { %v3377_v58 = vmax.f32 %v3285_v51, %v3373_v54  ;;  %v3374_v59 = vmul.f32 0.01, %v3287_v55  ;;  %v16815_v51 = vld [vmem:[#allocation6 + $0xdac] ss:$16 sps:$4 sm:$0xff]   ;;  %v16819_v54 = vld [vmem:[#allocation6 + $0xd88] ss:$16 sps:$4 sm:$0xff]  }
 0x448   :  { %v3289_v60 = vpop.f32.mrf.mxu1  ;;  %v3330_v61 = vpop.f32.mrf.mxu0  ;;  %v16825_v56 = vld [vmem:[#allocation6 + $0xd68] ss:$16 sps:$4 sm:$0xff]   ;;  %v16833_v57 = vld [vmem:[#allocation6 + $0xd4c] ss:$16 sps:$4 sm:$0xff]  }
 0x449   :  { %6594 = vst [vmem:[%s19417_s11] sm:$0xff] %v3377_v58  ;;  %v3378_v62 = vmax.f32 %v3287_v55, %v3374_v59  ;;  %v16827_v55 = vld [vmem:[#allocation6 + $0xd6c] ss:$16 sps:$4 sm:$0xff]   ;;  %v3431_v58 = vrot.slane %v19162_v63, %v19081_v42  ;;  %v16831_v59 = vld [vmem:[#allocation6 + $0xd48] ss:$16 sps:$4 sm:$0xff]   ;;  %v3435_v60 = vrot.slane %v19162_v63, %v19085_v44 }
 0x44a   :  { %v16839_v61 = vld [vmem:[#allocation6 + $0xd2c] ss:$16 sps:$4 sm:$0xff]  }
 0x44b   :  { %6595 = vst [vmem:[%s19417_s11 + $0x8] sm:$0xff] %v3378_v62 }
 0x463   :  { %v3634_v4 = vpop.f32.mrf.mxu0 }
 0x464   :  { %v3635_v5 = vadd.f32 %v3634_v4, %v3423_v2  ;;  %v16837_v4 = vld [vmem:[#allocation6 + $0xd28] ss:$16 sps:$4 sm:$0xff]  }
 0x465   :  { %v3636_v6 = vpop.f32.mrf.mxu0 }
 0x466   :  { %v3682_v7 = vmul.f32 0.01, %v3635_v5  ;;  %v3637_v8 = vadd.f32 %v3636_v6, %v3427_v3 }
 0x467   :  { %v3638_v1 = vpop.f32.mrf.mxu0 }
 0x468   :  { %v3686_v9 = vmax.f32 %v3635_v5, %v3682_v7  ;;  %v3683_v10 = vmul.f32 0.01, %v3637_v8  ;;  %v16845_v7 = vld [vmem:[#allocation6 + $0xd0c] ss:$16 sps:$4 sm:$0xff]  }
 0x469   :  { %v3639_v11 = vpop.f32.mrf.mxu0 }
 0x46a   :  { %v3687_v14 = vmax.f32 %v3637_v8, %v3683_v10  ;;  %v19168_v15 = vpack.c.bf16 %v3686_v9, %v3686_v9  ;;  %v16843_v11 = vld [vmem:[#allocation6 + $0xd08] ss:$16 sps:$4 sm:$0xff]  }
 0x46c   :  { %v3820_v16 = vpack.c.bf16 %v3687_v14, %v3687_v14 }
 0x46e   :  { %4518 = vmatprep.mubr.bf16.mxu0 %v3820_v16 }
 0x46f   :  { %4519 = vmatmul.mubr.bf16.vlgmr.msra.gmra.mxu0 %v19168_v15 }
 0x470   :  { %4569 = vmatpush1.bf16.msra.mxu0 %v16753_v17  ;;  %4600 = vmatprep.mubr.bf16.mxu0 %v3820_v16  ;;  %v16896_v16 = vld [vmem:[#allocation6 + $0x10e4] ss:$16 sps:$4 sm:$0xff]   ;;  %v16846_v17 = vld [vmem:[#allocation6 + $0xee8] ss:$16 sps:$4 sm:$0xff]  }
 0x471   :  { %4570 = vmatprep.subr.bf16.mxu0 %v16761_v19 }
 0x474   :  { %4571 = vmatpush1.bf16.msra.mxu0 %v16759_v20  ;;  %v16851_v20 = vld [vmem:[#allocation6 + $0xecc] ss:$16 sps:$4 sm:$0xff]  }
 0x475   :  { %4572 = vmatprep.subr.bf16.mxu0 %v16767_v21  ;;  %v16894_v21 = vld [vmem:[#allocation6 + $0x10e0] ss:$16 sps:$4 sm:$0xff]  }
 0x478   :  { %4573 = vmatpush1.bf16.msra.mxu0 %v16765_v18  ;;  %v16899_v18 = vld [vmem:[#allocation6 + $0x10c4] ss:$16 sps:$4 sm:$0xff]  }
 0x479   :  { %4574 = vmatprep.subr.bf16.mxu0 %v16773_v23  ;;  %v16849_v23 = vld [vmem:[#allocation6 + $0xec8] ss:$16 sps:$4 sm:$0xff]  }
 0x47c   :  { %4575 = vmatpush1.bf16.msra.mxu0 %v16771_v25  ;;  %v16854_v25 = vld [vmem:[#allocation6 + $0xeac] ss:$16 sps:$4 sm:$0xff]  }
 0x47d   :  { %4576 = vmatprep.subr.bf16.mxu0 %v16779_v26  ;;  %v16897_v26 = vld [vmem:[#allocation6 + $0x10c0] ss:$16 sps:$4 sm:$0xff]  }
 0x480   :  { %4577 = vmatpush1.bf16.msra.mxu0 %v16777_v24  ;;  %v16902_v24 = vld [vmem:[#allocation6 + $0x10a4] ss:$16 sps:$4 sm:$0xff]  }
 0x481   :  { %4578 = vmatprep.subr.bf16.mxu0 %v16785_v12  ;;  %v16857_v12 = vld [vmem:[#allocation6 + $0xe8c] ss:$16 sps:$4 sm:$0xff]  }
 0x482   :  { %v3366_v31 = vpop.f32.mrf.mxu1 }
 0x483   :  { %v3367_v33 = vadd.f32 %v3366_v31, %v3326_v29  ;;  %v16855_v29 = vld [vmem:[#allocation6 + $0xe88] ss:$16 sps:$4 sm:$0xff]   ;;  %v16908_v31 = vld [vmem:[#allocation6 + $0x1064] ss:$16 sps:$4 sm:$0xff]  }
 0x484   :  { %4579 = vmatpush1.bf16.msra.mxu0 %v16783_v22  ;;  %v3368_v35 = vpop.f32.mrf.mxu1  ;;  %v16905_v22 = vld [vmem:[#allocation6 + $0x1084] ss:$16 sps:$4 sm:$0xff]  }
 0x485   :  { %v3375_v37 = vmul.f32 0.01, %v3367_v33  ;;  %v3369_v39 = vadd.f32 %v3368_v35, %v3328_v32  ;;  %4580 = vmatprep.subr.bf16.mxu0 %v16791_v30  ;;  %v16903_v30 = vld [vmem:[#allocation6 + $0x1080] ss:$16 sps:$4 sm:$0xff]   ;;  %v16858_v32 = vld [vmem:[#allocation6 + $0xe68] ss:$16 sps:$4 sm:$0xff]  }
 0x486   :  { %v3370_v40 = vpop.f32.mrf.mxu1  ;;  %v16906_v35 = vld [vmem:[#allocation6 + $0x1060] ss:$16 sps:$4 sm:$0xff]  }
 0x487   :  { %v3379_v13 = vmax.f32 %v3367_v33, %v3375_v37  ;;  %v3376_v45 = vmul.f32 0.01, %v3369_v39  ;;  %v16863_v33 = vld [vmem:[#allocation6 + $0xe4c] ss:$16 sps:$4 sm:$0xff]   ;;  %v16861_v37 = vld [vmem:[#allocation6 + $0xe48] ss:$16 sps:$4 sm:$0xff]  }
 0x488   :  { %4581 = vmatpush1.bf16.msra.mxu0 %v16789_v36  ;;  %v3371_v0 = vpop.f32.mrf.mxu1  ;;  %v16911_v36 = vld [vmem:[#allocation6 + $0x1044] ss:$16 sps:$4 sm:$0xff]  }
 0x489   :  { %6596 = vst [vmem:[%s19417_s11 + $0x10] sm:$0xff] %v3379_v13  ;;  %v3380_v48 = vmax.f32 %v3369_v39, %v3376_v45  ;;  %4582 = vmatprep.subr.bf16.mxu0 %v16797_v38  ;;  %v16866_v39 = vld [vmem:[#allocation6 + $0xe2c] ss:$16 sps:$4 sm:$0xff]   ;;  %v16909_v38 = vld [vmem:[#allocation6 + $0x1040] ss:$16 sps:$4 sm:$0xff]  }
 0x48a   :  { %v16914_v40 = vld [vmem:[#allocation6 + $0x1024] ss:$16 sps:$4 sm:$0xff]   ;;  %v16864_v13 = vld [vmem:[#allocation6 + $0xe28] ss:$16 sps:$4 sm:$0xff]   ;;  %v16869_v45 = vld [vmem:[#allocation6 + $0xe0c] ss:$16 sps:$4 sm:$0xff]  }
 0x48b   :  { %6597 = vst [vmem:[%s19417_s11 + $0x18] sm:$0xff] %v3380_v48  ;;  %v16912_v0 = vld [vmem:[#allocation6 + $0x1020] ss:$16 sps:$4 sm:$0xff]   ;;  %v16867_v48 = vld [vmem:[#allocation6 + $0xe08] ss:$16 sps:$4 sm:$0xff]  }
 0x48c   :  { %4583 = vmatpush1.bf16.msra.mxu0 %v16795_v47  ;;  %v16917_v47 = vld [vmem:[#allocation6 + $0x1004] ss:$16 sps:$4 sm:$0xff]  }
 0x48d   :  { %4584 = vmatprep.subr.bf16.mxu0 %v16803_v34  ;;  %v16872_v34 = vld [vmem:[#allocation6 + $0xfec] ss:$16 sps:$4 sm:$0xff]  }
 0x490   :  { %4585 = vmatpush2.bf16.msra.mxu0 %v16801_v49  ;;  %v16915_v49 = vld [vmem:[#allocation6 + $0x1000] ss:$16 sps:$4 sm:$0xff]  }
 0x491   :  { %4586 = vmatprep.subr.bf16.mxu0 %v16809_v46  ;;  %v16920_v46 = vld [vmem:[#allocation6 + $0x11e4] ss:$16 sps:$4 sm:$0xff]  }
 0x494   :  { %4587 = vmatpush2.bf16.msra.mxu0 %v16807_v50  ;;  %v16870_v50 = vld [vmem:[#allocation6 + $0xfe8] ss:$16 sps:$4 sm:$0xff]  }
 0x495   :  { %4588 = vmatprep.subr.bf16.mxu0 %v16815_v51  ;;  %v16875_v51 = vld [vmem:[#allocation6 + $0xfcc] ss:$16 sps:$4 sm:$0xff]  }
 0x498   :  { %4589 = vmatpush2.bf16.msra.mxu0 %v16813_v52  ;;  %v16918_v52 = vld [vmem:[#allocation6 + $0x11e0] ss:$16 sps:$4 sm:$0xff]  }
 0x499   :  { %4590 = vmatprep.subr.bf16.mxu0 %v16821_v53  ;;  %v16923_v53 = vld [vmem:[#allocation6 + $0x11c4] ss:$16 sps:$4 sm:$0xff]  }
 0x49c   :  { %4591 = vmatpush2.bf16.msra.mxu0 %v16819_v54  ;;  %v16873_v54 = vld [vmem:[#allocation6 + $0xfc8] ss:$16 sps:$4 sm:$0xff]  }
 0x49d   :  { %4592 = vmatprep.subr.bf16.mxu0 %v16827_v55  ;;  %v16878_v55 = vld [vmem:[#allocation6 + $0xfac] ss:$16 sps:$4 sm:$0xff]  }
 0x4a0   :  { %4593 = vmatpush2.bf16.msra.mxu0 %v16825_v56  ;;  %v16921_v56 = vld [vmem:[#allocation6 + $0x11c0] ss:$16 sps:$4 sm:$0xff]  }
 0x4a1   :  { %4594 = vmatprep.subr.bf16.mxu0 %v16833_v57  ;;  %v16926_v57 = vld [vmem:[#allocation6 + $0x11a4] ss:$16 sps:$4 sm:$0xff]  }
 0x4a2   :  { %v3675_v62 = vpop.f32.mrf.mxu1 }
 0x4a3   :  { %v3676_v2 = vadd.f32 %v3675_v62, %v3431_v58  ;;  %v16876_v58 = vld [vmem:[#allocation6 + $0xfa8] ss:$16 sps:$4 sm:$0xff]  }
 0x4a4   :  { %4595 = vmatpush2.bf16.msra.mxu0 %v16831_v59  ;;  %v3677_v3 = vpop.f32.mrf.mxu1  ;;  %v16881_v59 = vld [vmem:[#allocation6 + $0xf8c] ss:$16 sps:$4 sm:$0xff]   ;;  %v16879_v62 = vld [vmem:[#allocation6 + $0xf88] ss:$16 sps:$4 sm:$0xff]  }
 0x4a5   :  { %v3684_v5 = vmul.f32 0.01, %v3676_v2  ;;  %v3678_v6 = vadd.f32 %v3677_v3, %v3435_v60  ;;  %4596 = vmatprep.subr.bf16.mxu0 %v16839_v61  ;;  %v16924_v60 = vld [vmem:[#allocation6 + $0x11a0] ss:$16 sps:$4 sm:$0xff]   ;;  %v16929_v61 = vld [vmem:[#allocation6 + $0x1184] ss:$16 sps:$4 sm:$0xff]  }
 0x4a6   :  { %v3679_v8 = vpop.f32.mrf.mxu1  ;;  %v16927_v3 = vld [vmem:[#allocation6 + $0x1180] ss:$16 sps:$4 sm:$0xff]  }
 0x4a7   :  { %v3685_v1 = vmul.f32 0.01, %v3678_v6  ;;  %v3688_v9 = vmax.f32 %v3676_v2, %v3684_v5  ;;  %v16884_v2 = vld [vmem:[#allocation6 + $0xf6c] ss:$16 sps:$4 sm:$0xff]   ;;  %v16882_v5 = vld [vmem:[#allocation6 + $0xf68] ss:$16 sps:$4 sm:$0xff]  }
 0x4a8   :  { %4597 = vmatpush2.bf16.msra.mxu0 %v16837_v4  ;;  %v3680_v10 = vpop.f32.mrf.mxu1  ;;  %v16932_v4 = vld [vmem:[#allocation6 + $0x1164] ss:$16 sps:$4 sm:$0xff]  }
 0x4a9   :  { %v3689_v14 = vmax.f32 %v3678_v6, %v3685_v1  ;;  %4598 = vmatprep.subr.bf16.mxu0 %v16845_v7  ;;  %v19185_v19 = vpack.c.bf16 %v3688_v9, %v3688_v9  ;;  %v16887_v6 = vld [vmem:[#allocation6 + $0xf4c] ss:$16 sps:$4 sm:$0xff]   ;;  %v16930_v7 = vld [vmem:[#allocation6 + $0x1160] ss:$16 sps:$4 sm:$0xff]   ;;  %v16935_v8 = vld [vmem:[#allocation6 + $0x1144] ss:$16 sps:$4 sm:$0xff]  }
 0x4aa   :  { %v16885_v1 = vld [vmem:[#allocation6 + $0xf48] ss:$16 sps:$4 sm:$0xff]   ;;  %v16890_v9 = vld [vmem:[#allocation6 + $0xf2c] ss:$16 sps:$4 sm:$0xff]   ;;  %v16933_v10 = vld [vmem:[#allocation6 + $0x1140] ss:$16 sps:$4 sm:$0xff]  }
 0x4ab   :  { %v3822_v63 = vpack.c.bf16 %v3689_v14, %v3689_v14  ;;  %v16893_v14 = vld [vmem:[#allocation6 + $0xf0c] ss:$16 sps:$4 sm:$0xff]  }
 0x4ac   :  { %4599 = vmatpush2.bf16.msra.mxu0 %v16843_v11  ;;  %v16888_v11 = vld [vmem:[#allocation6 + $0xf28] ss:$16 sps:$4 sm:$0xff]  }
 0x4ad   :  { %4559 = vmatprep.mubr.bf16.mxu1 %v3822_v63  ;;  %5454 = vmatprep.subr.bf16.mxu0 %v16896_v16  ;;  %v16891_v16 = vld [vmem:[#allocation6 + $0xf08] ss:$16 sps:$4 sm:$0xff]  }
 0x4ae   :  { %4560 = vmatmul.mubr.bf16.vlgmr.msra.gmra.mxu1 %v19185_v19 }
 0x4af   :  { %4601 = vmatmul.mubr.bf16.vlgmr.msra.gmra.mxu0 %v19168_v15  ;;  %4610 = vmatpush1.bf16.msra.mxu1 %v16846_v17  ;;  %v16860_v15 = vld [vmem:[#allocation6 + $0xe6c] ss:$16 sps:$4 sm:$0xff]   ;;  %v16936_v17 = vld [vmem:[#allocation6 + $0x1120] ss:$16 sps:$4 sm:$0xff]  }
 0x4b0   :  { %4641 = vmatprep.mubr.bf16.mxu1 %v3822_v63  ;;  %4611 = vmatprep.subr.bf16.mxu1 %v16851_v20  ;;  %v16938_v63 = vld [vmem:[#allocation6 + $0x1124] ss:$16 sps:$4 sm:$0xff]  }
 0x4b1   :  { %5455 = vmatpush1.bf16.msra.mxu0 %v16894_v21  ;;  %v16941_v20 = vld [vmem:[#allocation6 + $0x1104] ss:$16 sps:$4 sm:$0xff]   ;;  %v16939_v21 = vld [vmem:[#allocation6 + $0x1100] ss:$16 sps:$4 sm:$0xff]  }
 0x4b2   :  { %5456 = vmatprep.subr.bf16.mxu0 %v16899_v18  ;;  %v16942_v18 = vld [vmem:[#allocation6 + $0x12e0] ss:$16 sps:$4 sm:$0xff]  }
 0x4b3   :  { %4612 = vmatpush1.bf16.msra.mxu1 %v16849_v23  ;;  %v16944_v23 = vld [vmem:[#allocation6 + $0x12e4] ss:$16 sps:$4 sm:$0xff]  }
 0x4b4   :  { %4613 = vmatprep.subr.bf16.mxu1 %v16854_v25  ;;  %v16947_v25 = vld [vmem:[#allocation6 + $0x10ec] ss:$16 sps:$4 sm:$0xff]  }
 0x4b5   :  { %5457 = vmatpush1.bf16.msra.mxu0 %v16897_v26  ;;  %v16948_v26 = vld [vmem:[#allocation6 + $0x12c0] ss:$16 sps:$4 sm:$0xff]  }
 0x4b6   :  { %5458 = vmatprep.subr.bf16.mxu0 %v16902_v24  ;;  %v16950_v24 = vld [vmem:[#allocation6 + $0x12c4] ss:$16 sps:$4 sm:$0xff]  }
 0x4b7   :  { %4614 = vmatpush1.bf16.msra.mxu1 %v16852_v27  ;;  %v16954_v27 = vld [vmem:[#allocation6 + $0x12a0] ss:$16 sps:$4 sm:$0xff]  }
 0x4b8   :  { %4615 = vmatprep.subr.bf16.mxu1 %v16857_v12  ;;  %v16960_v12 = vld [vmem:[#allocation6 + $0x1280] ss:$16 sps:$4 sm:$0xff]  }
 0x4b9   :  { %5459 = vmatpush1.bf16.msra.mxu0 %v16900_v28  ;;  %v16962_v28 = vld [vmem:[#allocation6 + $0x1284] ss:$16 sps:$4 sm:$0xff]  }
 0x4ba   :  { %5460 = vmatprep.subr.bf16.mxu0 %v16905_v22  ;;  %v16966_v22 = vld [vmem:[#allocation6 + $0x1260] ss:$16 sps:$4 sm:$0xff]  }
 0x4bb   :  { %4616 = vmatpush1.bf16.msra.mxu1 %v16855_v29  ;;  %v16968_v29 = vld [vmem:[#allocation6 + $0x1264] ss:$16 sps:$4 sm:$0xff]  }
 0x4bc   :  { %4617 = vmatprep.subr.bf16.mxu1 %v16860_v15  ;;  %v16972_v15 = vld [vmem:[#allocation6 + $0x1240] ss:$16 sps:$4 sm:$0xff]  }
 0x4bd   :  { %5461 = vmatpush1.bf16.msra.mxu0 %v16903_v30  ;;  %v16974_v30 = vld [vmem:[#allocation6 + $0x1244] ss:$16 sps:$4 sm:$0xff]  }
 0x4be   :  { %5462 = vmatprep.subr.bf16.mxu0 %v16908_v31  ;;  %v16978_v31 = vld [vmem:[#allocation6 + $0x1220] ss:$16 sps:$4 sm:$0xff]  }
 0x4bf   :  { %4618 = vmatpush1.bf16.msra.mxu1 %v16858_v32  ;;  %v16980_v32 = vld [vmem:[#allocation6 + $0x1224] ss:$16 sps:$4 sm:$0xff]  }
 0x4c0   :  { %4619 = vmatprep.subr.bf16.mxu1 %v16863_v33  ;;  %v16984_v33 = vld [vmem:[#allocation6 + $0x1200] ss:$16 sps:$4 sm:$0xff]  }
 0x4c1   :  { %5463 = vmatpush1.bf16.msra.mxu0 %v16906_v35  ;;  %v16986_v35 = vld [vmem:[#allocation6 + $0x1204] ss:$16 sps:$4 sm:$0xff]  }
 0x4c2   :  { %5464 = vmatprep.subr.bf16.mxu0 %v16911_v36  ;;  %v16990_v36 = vld [vmem:[#allocation6 + $0x13e0] ss:$16 sps:$4 sm:$0xff]  }
 0x4c3   :  { %4620 = vmatpush1.bf16.msra.mxu1 %v16861_v37  ;;  %v16992_v37 = vld [vmem:[#allocation6 + $0x13e4] ss:$16 sps:$4 sm:$0xff]  }
 0x4c4   :  { %4621 = vmatprep.subr.bf16.mxu1 %v16866_v39  ;;  %v16996_v39 = vld [vmem:[#allocation6 + $0x13c0] ss:$16 sps:$4 sm:$0xff]  }
 0x4c5   :  { %5465 = vmatpush1.bf16.msra.mxu0 %v16909_v38  ;;  %v16998_v38 = vld [vmem:[#allocation6 + $0x13c4] ss:$16 sps:$4 sm:$0xff]  }
 0x4c6   :  { %5466 = vmatprep.subr.bf16.mxu0 %v16914_v40  ;;  %v17002_v40 = vld [vmem:[#allocation6 + $0x13a0] ss:$16 sps:$4 sm:$0xff]  }
 0x4c7   :  { %4622 = vmatpush1.bf16.msra.mxu1 %v16864_v13  ;;  %v17004_v13 = vld [vmem:[#allocation6 + $0x13a4] ss:$16 sps:$4 sm:$0xff]  }
 0x4c8   :  { %4623 = vmatprep.subr.bf16.mxu1 %v16869_v45  ;;  %v17008_v45 = vld [vmem:[#allocation6 + $0x1380] ss:$16 sps:$4 sm:$0xff]  }
 0x4c9   :  { %5467 = vmatpush1.bf16.msra.mxu0 %v16912_v0  ;;  %v17010_v0 = vld [vmem:[#allocation6 + $0x1384] ss:$16 sps:$4 sm:$0xff]  }
 0x4ca   :  { %5468 = vmatprep.subr.bf16.mxu0 %v16917_v47  ;;  %v17014_v47 = vld [vmem:[#allocation6 + $0x1360] ss:$16 sps:$4 sm:$0xff]  }
 0x4cb   :  { %4624 = vmatpush1.bf16.msra.mxu1 %v16867_v48  ;;  %v17016_v48 = vld [vmem:[#allocation6 + $0x1364] ss:$16 sps:$4 sm:$0xff]  }
 0x4cc   :  { %4625 = vmatprep.subr.bf16.mxu1 %v16872_v34  ;;  %v17020_v34 = vld [vmem:[#allocation6 + $0x1340] ss:$16 sps:$4 sm:$0xff]  }
 0x4cd   :  { %5469 = vmatpush1.bf16.msra.mxu0 %v16915_v49  ;;  %v17022_v49 = vld [vmem:[#allocation6 + $0x1344] ss:$16 sps:$4 sm:$0xff]  }
 0x4ce   :  { %5470 = vmatprep.subr.bf16.mxu0 %v16920_v46 }
 0x4cf   :  { %4626 = vmatpush2.bf16.msra.mxu1 %v16870_v50  ;;  %v17028_v50 = vld [vmem:[#allocation6 + $0x1324] ss:$16 sps:$4 sm:$0xff]  }
 0x4d0   :  { %4627 = vmatprep.subr.bf16.mxu1 %v16875_v51  ;;  %v17026_v51 = vld [vmem:[#allocation6 + $0x1320] ss:$16 sps:$4 sm:$0xff]  }
 0x4d1   :  { %5471 = vmatpush2.bf16.msra.mxu0 %v16918_v52 }
 0x4d2   :  { %5472 = vmatprep.subr.bf16.mxu0 %v16923_v53 }
 0x4d3   :  { %4628 = vmatpush2.bf16.msra.mxu1 %v16873_v54  ;;  %v17034_v54 = vld [vmem:[#allocation6 + $0x1304] ss:$16 sps:$4 sm:$0xff]  }
 0x4d4   :  { %4629 = vmatprep.subr.bf16.mxu1 %v16878_v55  ;;  %v17032_v55 = vld [vmem:[#allocation6 + $0x1300] ss:$16 sps:$4 sm:$0xff]  }
 0x4d5   :  { %5473 = vmatpush2.bf16.msra.mxu0 %v16921_v56 }
 0x4d6   :  { %5474 = vmatprep.subr.bf16.mxu0 %v16926_v57  ;;  %v17040_v57 = vld [vmem:[#allocation6 + $0x12ec] ss:$16 sps:$4 sm:$0xff]  }
 0x4d7   :  { %4630 = vmatpush2.bf16.msra.mxu1 %v16876_v58  ;;  %v19190_v58 = vld [vmem:[#allocation7 + $0xc] sm:$0xf] }
 0x4d8   :  { %4631 = vmatprep.subr.bf16.mxu1 %v16881_v59  ;;  %v3829_v59 = vrot.slane %v19190_v58, %v19079_v41 }
 0x4d9   :  { %5475 = vmatpush2.bf16.msra.mxu0 %v16924_v60  ;;  %v3833_v60 = vrot.slane %v19190_v58, %v19083_v43 }
 0x4da   :  { %5476 = vmatprep.subr.bf16.mxu0 %v16929_v61 }
 0x4db   :  { %4632 = vmatpush2.bf16.msra.mxu1 %v16879_v62 }
 0x4dc   :  { %4633 = vmatprep.subr.bf16.mxu1 %v16884_v2 }
 0x4dd   :  { %5477 = vmatpush2.bf16.msra.mxu0 %v16927_v3 }
 0x4de   :  { %5478 = vmatprep.subr.bf16.mxu0 %v16932_v4 }
 0x4df   :  { %4634 = vmatpush2.bf16.msra.mxu1 %v16882_v5 }
 0x4e0   :  { %4635 = vmatprep.subr.bf16.mxu1 %v16887_v6 }
 0x4e1   :  { %5479 = vmatpush2.bf16.msra.mxu0 %v16930_v7 }
 0x4e2   :  { %5480 = vmatprep.subr.bf16.mxu0 %v16935_v8 }
 0x4e3   :  { %4636 = vmatpush2.bf16.msra.mxu1 %v16885_v1 }
 0x4e4   :  { %4637 = vmatprep.subr.bf16.mxu1 %v16890_v9 }
 0x4e5   :  { %5481 = vmatpush2.bf16.msra.mxu0 %v16933_v10 }
 0x4e6   :  { %5482 = vmatprep.subr.bf16.mxu0 %v16938_v63 }
 0x4e7   :  { %4638 = vmatpush2.bf16.msra.mxu1 %v16888_v11 }
 0x4e8   :  { %4639 = vmatprep.subr.bf16.mxu1 %v16893_v14 }
 0x4e9   :  { %5483 = vmatpush2.bf16.msra.mxu0 %v16936_v17 }
 0x4ea   :  { %5484 = vmatprep.subr.bf16.mxu0 %v16941_v20  ;;  %v16945_v20 = vld [vmem:[#allocation6 + $0x10e8] ss:$16 sps:$4 sm:$0xff]  }
 0x4eb   :  { %4640 = vmatpush2.bf16.msra.mxu1 %v16891_v16 }
 0x4ec   :  { %5495 = vmatprep.subr.bf16.mxu1 %v16944_v23  ;;  %v16951_v23 = vld [vmem:[#allocation6 + $0x10c8] ss:$16 sps:$4 sm:$0xff]  }
 0x4ed   :  { %5485 = vmatpush2.bf16.msra.mxu0 %v16939_v21 }
 0x4ee   :  { %4642 = vmatmul.mubr.bf16.vlgmr.msra.gmra.mxu1 %v19185_v19  ;;  %5536 = vmatprep.subr.bf16.mxu0 %v16947_v25  ;;  %v16956_v19 = vld [vmem:[#allocation6 + $0x12a4] ss:$16 sps:$4 sm:$0xff]   ;;  %v16959_v25 = vld [vmem:[#allocation6 + $0x10ac] ss:$16 sps:$4 sm:$0xff]  }
 0x4ef   :  { %5496 = vmatpush1.bf16.msra.mxu1 %v16942_v18  ;;  %v16953_v18 = vld [vmem:[#allocation6 + $0x10cc] ss:$16 sps:$4 sm:$0xff]  }
 0x4f0   :  { %5497 = vmatprep.subr.bf16.mxu1 %v16950_v24  ;;  %v16965_v24 = vld [vmem:[#allocation6 + $0x108c] ss:$16 sps:$4 sm:$0xff]  }
 0x4f3   :  { %5498 = vmatpush1.bf16.msra.mxu1 %v16948_v26  ;;  %v16957_v26 = vld [vmem:[#allocation6 + $0x10a8] ss:$16 sps:$4 sm:$0xff]  }
 0x4f4   :  { %5499 = vmatprep.subr.bf16.mxu1 %v16956_v19  ;;  %v16971_v19 = vld [vmem:[#allocation6 + $0x106c] ss:$16 sps:$4 sm:$0xff]  }
 0x4f7   :  { %5500 = vmatpush1.bf16.msra.mxu1 %v16954_v27  ;;  %v16963_v27 = vld [vmem:[#allocation6 + $0x1088] ss:$16 sps:$4 sm:$0xff]  }
 0x4f8   :  { %5501 = vmatprep.subr.bf16.mxu1 %v16962_v28  ;;  %v16977_v28 = vld [vmem:[#allocation6 + $0x104c] ss:$16 sps:$4 sm:$0xff]  }
 0x4fb   :  { %5502 = vmatpush1.bf16.msra.mxu1 %v16960_v12  ;;  %v16969_v12 = vld [vmem:[#allocation6 + $0x1068] ss:$16 sps:$4 sm:$0xff]  }
 0x4fc   :  { %5503 = vmatprep.subr.bf16.mxu1 %v16968_v29  ;;  %v16983_v29 = vld [vmem:[#allocation6 + $0x102c] ss:$16 sps:$4 sm:$0xff]  }
 0x4ff   :  { %5504 = vmatpush1.bf16.msra.mxu1 %v16966_v22  ;;  %v16975_v22 = vld [vmem:[#allocation6 + $0x1048] ss:$16 sps:$4 sm:$0xff]  }
 0x500   :  { %5505 = vmatprep.subr.bf16.mxu1 %v16974_v30  ;;  %v16989_v30 = vld [vmem:[#allocation6 + $0x100c] ss:$16 sps:$4 sm:$0xff]  }
 0x503   :  { %5506 = vmatpush1.bf16.msra.mxu1 %v16972_v15  ;;  %v16981_v15 = vld [vmem:[#allocation6 + $0x1028] ss:$16 sps:$4 sm:$0xff]  }
 0x504   :  { %5507 = vmatprep.subr.bf16.mxu1 %v16980_v32  ;;  %v16995_v32 = vld [vmem:[#allocation6 + $0x11ec] ss:$16 sps:$4 sm:$0xff]  }
 0x507   :  { %5508 = vmatpush1.bf16.msra.mxu1 %v16978_v31  ;;  %v16987_v31 = vld [vmem:[#allocation6 + $0x1008] ss:$16 sps:$4 sm:$0xff]  }
 0x508   :  { %5509 = vmatprep.subr.bf16.mxu1 %v16986_v35  ;;  %v17001_v35 = vld [vmem:[#allocation6 + $0x11cc] ss:$16 sps:$4 sm:$0xff]  }
 0x50b   :  { %5510 = vmatpush1.bf16.msra.mxu1 %v16984_v33  ;;  %v16993_v33 = vld [vmem:[#allocation6 + $0x11e8] ss:$16 sps:$4 sm:$0xff]  }
 0x50c   :  { %5511 = vmatprep.subr.bf16.mxu1 %v16992_v37  ;;  %v17007_v37 = vld [vmem:[#allocation6 + $0x11ac] ss:$16 sps:$4 sm:$0xff]  }
 0x50f   :  { %5512 = vmatpush2.bf16.msra.mxu1 %v16990_v36  ;;  %v16999_v36 = vld [vmem:[#allocation6 + $0x11c8] ss:$16 sps:$4 sm:$0xff]  }
 0x510   :  { %5513 = vmatprep.subr.bf16.mxu1 %v16998_v38  ;;  %v17013_v38 = vld [vmem:[#allocation6 + $0x118c] ss:$16 sps:$4 sm:$0xff]  }
 0x513   :  { %5514 = vmatpush2.bf16.msra.mxu1 %v16996_v39  ;;  %v17005_v39 = vld [vmem:[#allocation6 + $0x11a8] ss:$16 sps:$4 sm:$0xff]  }
 0x514   :  { %5515 = vmatprep.subr.bf16.mxu1 %v17004_v13  ;;  %v17019_v13 = vld [vmem:[#allocation6 + $0x116c] ss:$16 sps:$4 sm:$0xff]  }
 0x517   :  { %5516 = vmatpush2.bf16.msra.mxu1 %v17002_v40  ;;  %v17011_v40 = vld [vmem:[#allocation6 + $0x1188] ss:$16 sps:$4 sm:$0xff]  }
 0x518   :  { %5517 = vmatprep.subr.bf16.mxu1 %v17010_v0  ;;  %v17025_v0 = vld [vmem:[#allocation6 + $0x114c] ss:$16 sps:$4 sm:$0xff]  }
 0x51b   :  { %5518 = vmatpush2.bf16.msra.mxu1 %v17008_v45  ;;  %v17017_v45 = vld [vmem:[#allocation6 + $0x1168] ss:$16 sps:$4 sm:$0xff]  }
 0x51c   :  { %5519 = vmatprep.subr.bf16.mxu1 %v17016_v48  ;;  %v3841_v48 = vrot.slane %v19190_v58, %v19085_v44 }
 0x51f   :  { %5520 = vmatpush2.bf16.msra.mxu1 %v17014_v47  ;;  %v3837_v47 = vrot.slane %v19190_v58, %v19081_v42  ;;  %v17035_v58 = vld [vmem:[#allocation6 + $0x1108] ss:$16 sps:$4 sm:$0xff]  }
 0x520   :  { %5521 = vmatprep.subr.bf16.mxu1 %v17022_v49  ;;  %v17031_v49 = vld [vmem:[#allocation6 + $0x112c] ss:$16 sps:$4 sm:$0xff]  }
 0x523   :  { %5522 = vmatpush2.bf16.msra.mxu1 %v17020_v34  ;;  %v17023_v34 = vld [vmem:[#allocation6 + $0x1148] ss:$16 sps:$4 sm:$0xff]  }
 0x524   :  { %5523 = vmatprep.subr.bf16.mxu1 %v17028_v50 }
 0x527   :  { %5524 = vmatpush2.bf16.msra.mxu1 %v17026_v51 }
 0x528   :  { %5525 = vmatprep.subr.bf16.mxu1 %v17034_v54 }
 0x52b   :  { %5526 = vmatpush2.bf16.msra.mxu1 %v17032_v55  ;;  %v17037_v55 = vld [vmem:[#allocation6 + $0x110c] ss:$16 sps:$4 sm:$0xff]  }
 0x52c   :  { %5577 = vmatprep.subr.bf16.mxu1 %v17040_v57 }
 0x52f   :  { %v4520_v46 = vpop.f32.mrf.mxu0 }
 0x530   :  { %v4521_v61 = vadd.f32 %v4520_v46, %v3829_v59 }
 0x531   :  { %v4522_v52 = vpop.f32.mrf.mxu0 }
 0x532   :  { %v4523_v2 = vadd.f32 %v4522_v52, %v3833_v60 }
 0x533   :  { %v4524_v53 = vpop.f32.mrf.mxu0 }
 0x534   :  { %v17029_v53 = vld [vmem:[#allocation6 + $0x1128] ss:$16 sps:$4 sm:$0xff]  }
 0x535   :  { %v4525_v56 = vpop.f32.mrf.mxu0 }
 0x56e   :  { %v4561_v62 = vpop.f32.mrf.mxu1 }
 0x56f   :  { %v4562_v3 = vadd.f32 %v4561_v62, %v4521_v61  ;;  %v19196_v4 = vpop.f32.mrf.mxu0 }
 0x570   :  { %v4563_v5 = vpop.f32.mrf.mxu1  ;;  %v4603_v46 = vadd.f32 %v19196_v4, %v3837_v47  ;;  %v17038_v4 = vld [vmem:[#allocation6 + $0x12e8] ss:$16 sps:$4 sm:$0xff]   ;;  %v17073_v47 = vld [vmem:[#allocation6 + $0x138c] ss:$16 sps:$4 sm:$0xff]  }
 0x571   :  { %v4650_v6 = vmul.f32 0.01, %v4562_v3  ;;  %v4564_v7 = vadd.f32 %v4563_v5, %v4523_v2  ;;  %v19198_v8 = vpop.f32.mrf.mxu0 }
 0x572   :  { %v4565_v1 = vpop.f32.mrf.mxu1  ;;  %v4605_v51 = vadd.f32 %v19198_v8, %v3841_v48  ;;  %v17046_v8 = vld [vmem:[#allocation6 + $0x12ac] ss:$16 sps:$4 sm:$0xff]   ;;  %v17115_v48 = vld [vmem:[#allocation6 + $0x15c4] ss:$16 sps:$4 sm:$0xff]  }
 0x573   :  { %v4651_v9 = vmul.f32 0.01, %v4564_v7  ;;  %v4606_v10 = vpop.f32.mrf.mxu0  ;;  %v4654_v11 = vmax.f32 %v4562_v3, %v4650_v6  ;;  %v17043_v6 = vld [vmem:[#allocation6 + $0x12cc] ss:$16 sps:$4 sm:$0xff]   ;;  %v17044_v1 = vld [vmem:[#allocation6 + $0x12a8] ss:$16 sps:$4 sm:$0xff]  }
 0x574   :  { %v4566_v14 = vpop.f32.mrf.mxu1  ;;  %v17086_v10 = vld [vmem:[#allocation6 + $0x14e0] ss:$16 sps:$4 sm:$0xff]  }
 0x575   :  { %v4655_v16 = vmax.f32 %v4564_v7, %v4651_v9  ;;  %v4607_v63 = vpop.f32.mrf.mxu0  ;;  %v19200_v21 = vpack.c.bf16 %v4654_v11, %v4654_v11  ;;  %v17041_v7 = vld [vmem:[#allocation6 + $0x12c8] ss:$16 sps:$4 sm:$0xff]   ;;  %v17049_v9 = vld [vmem:[#allocation6 + $0x128c] ss:$16 sps:$4 sm:$0xff]   ;;  %v17088_v11 = vld [vmem:[#allocation6 + $0x14e4] ss:$16 sps:$4 sm:$0xff]  }
 0x576   :  { %v17091_v14 = vld [vmem:[#allocation6 + $0x14c4] ss:$16 sps:$4 sm:$0xff]   ;;  %v17089_v63 = vld [vmem:[#allocation6 + $0x14c0] ss:$16 sps:$4 sm:$0xff]  }
 0x577   :  { %v4788_v17 = vpack.c.bf16 %v4655_v16, %v4655_v16  ;;  %v17047_v16 = vld [vmem:[#allocation6 + $0x1288] ss:$16 sps:$4 sm:$0xff]  }
 0x579   :  { %5486 = vmatprep.mubr.bf16.mxu0 %v4788_v17 }
 0x57a   :  { %5487 = vmatmul.mubr.bf16.vlgmr.msra.gmra.mxu0 %v19200_v21 }
 0x57b   :  { %5537 = vmatpush1.bf16.msra.mxu0 %v16945_v20  ;;  %5568 = vmatprep.mubr.bf16.mxu0 %v4788_v17  ;;  %v17052_v17 = vld [vmem:[#allocation6 + $0x126c] ss:$16 sps:$4 sm:$0xff]   ;;  %v17094_v20 = vld [vmem:[#allocation6 + $0x14a4] ss:$16 sps:$4 sm:$0xff]  }
 0x57c   :  { %5538 = vmatprep.subr.bf16.mxu0 %v16953_v18  ;;  %v17092_v18 = vld [vmem:[#allocation6 + $0x14a0] ss:$16 sps:$4 sm:$0xff]  }
 0x57f   :  { %5539 = vmatpush1.bf16.msra.mxu0 %v16951_v23  ;;  %v17055_v23 = vld [vmem:[#allocation6 + $0x124c] ss:$16 sps:$4 sm:$0xff]  }
 0x580   :  { %5540 = vmatprep.subr.bf16.mxu0 %v16959_v25  ;;  %v17097_v25 = vld [vmem:[#allocation6 + $0x1484] ss:$16 sps:$4 sm:$0xff]  }
 0x583   :  { %5541 = vmatpush1.bf16.msra.mxu0 %v16957_v26  ;;  %v17053_v26 = vld [vmem:[#allocation6 + $0x1248] ss:$16 sps:$4 sm:$0xff]  }
 0x584   :  { %5542 = vmatprep.subr.bf16.mxu0 %v16965_v24  ;;  %v17095_v24 = vld [vmem:[#allocation6 + $0x1480] ss:$16 sps:$4 sm:$0xff]  }
 0x587   :  { %5543 = vmatpush1.bf16.msra.mxu0 %v16963_v27  ;;  %v17058_v27 = vld [vmem:[#allocation6 + $0x122c] ss:$16 sps:$4 sm:$0xff]  }
 0x588   :  { %5544 = vmatprep.subr.bf16.mxu0 %v16971_v19  ;;  %v17100_v19 = vld [vmem:[#allocation6 + $0x1464] ss:$16 sps:$4 sm:$0xff]  }
 0x58b   :  { %5545 = vmatpush1.bf16.msra.mxu0 %v16969_v12  ;;  %v17056_v12 = vld [vmem:[#allocation6 + $0x1228] ss:$16 sps:$4 sm:$0xff]  }
 0x58c   :  { %5546 = vmatprep.subr.bf16.mxu0 %v16977_v28  ;;  %v17098_v28 = vld [vmem:[#allocation6 + $0x1460] ss:$16 sps:$4 sm:$0xff]  }
 0x58f   :  { %5547 = vmatpush1.bf16.msra.mxu0 %v16975_v22  ;;  %v17061_v22 = vld [vmem:[#allocation6 + $0x120c] ss:$16 sps:$4 sm:$0xff]  }
 0x590   :  { %5548 = vmatprep.subr.bf16.mxu0 %v16983_v29  ;;  %v17103_v29 = vld [vmem:[#allocation6 + $0x1444] ss:$16 sps:$4 sm:$0xff]  }
 0x593   :  { %5549 = vmatpush1.bf16.msra.mxu0 %v16981_v15  ;;  %v17059_v15 = vld [vmem:[#allocation6 + $0x1208] ss:$16 sps:$4 sm:$0xff]  }
 0x594   :  { %5550 = vmatprep.subr.bf16.mxu0 %v16989_v30  ;;  %v17101_v30 = vld [vmem:[#allocation6 + $0x1440] ss:$16 sps:$4 sm:$0xff]  }
 0x597   :  { %5551 = vmatpush1.bf16.msra.mxu0 %v16987_v31  ;;  %v17064_v31 = vld [vmem:[#allocation6 + $0x13ec] ss:$16 sps:$4 sm:$0xff]  }
 0x598   :  { %5552 = vmatprep.subr.bf16.mxu0 %v16995_v32  ;;  %v17106_v32 = vld [vmem:[#allocation6 + $0x1424] ss:$16 sps:$4 sm:$0xff]  }
 0x59b   :  { %5553 = vmatpush2.bf16.msra.mxu0 %v16993_v33  ;;  %v17062_v33 = vld [vmem:[#allocation6 + $0x13e8] ss:$16 sps:$4 sm:$0xff]  }
 0x59c   :  { %5554 = vmatprep.subr.bf16.mxu0 %v17001_v35  ;;  %v17104_v35 = vld [vmem:[#allocation6 + $0x1420] ss:$16 sps:$4 sm:$0xff]  }
 0x59f   :  { %5555 = vmatpush2.bf16.msra.mxu0 %v16999_v36  ;;  %v17067_v36 = vld [vmem:[#allocation6 + $0x13cc] ss:$16 sps:$4 sm:$0xff]  }
 0x5a0   :  { %5556 = vmatprep.subr.bf16.mxu0 %v17007_v37  ;;  %v17109_v37 = vld [vmem:[#allocation6 + $0x1404] ss:$16 sps:$4 sm:$0xff]  }
 0x5a3   :  { %5557 = vmatpush2.bf16.msra.mxu0 %v17005_v39  ;;  %v17065_v39 = vld [vmem:[#allocation6 + $0x13c8] ss:$16 sps:$4 sm:$0xff]  }
 0x5a4   :  { %5558 = vmatprep.subr.bf16.mxu0 %v17013_v38  ;;  %v17107_v38 = vld [vmem:[#allocation6 + $0x1400] ss:$16 sps:$4 sm:$0xff]  }
 0x5a7   :  { %5559 = vmatpush2.bf16.msra.mxu0 %v17011_v40  ;;  %v17070_v40 = vld [vmem:[#allocation6 + $0x13ac] ss:$16 sps:$4 sm:$0xff]  }
 0x5a8   :  { %5560 = vmatprep.subr.bf16.mxu0 %v17019_v13  ;;  %v17112_v13 = vld [vmem:[#allocation6 + $0x15e4] ss:$16 sps:$4 sm:$0xff]  }
 0x5ab   :  { %5561 = vmatpush2.bf16.msra.mxu0 %v17017_v45  ;;  %v17068_v45 = vld [vmem:[#allocation6 + $0x13a8] ss:$16 sps:$4 sm:$0xff]  }
 0x5ac   :  { %5562 = vmatprep.subr.bf16.mxu0 %v17025_v0  ;;  %v17110_v0 = vld [vmem:[#allocation6 + $0x15e0] ss:$16 sps:$4 sm:$0xff]  }
 0x5ae   :  { %v4643_v50 = vpop.f32.mrf.mxu1 }
 0x5af   :  { %v4644_v52 = vadd.f32 %v4643_v50, %v4603_v46  ;;  %5563 = vmatpush2.bf16.msra.mxu0 %v17023_v34  ;;  %v17071_v34 = vld [vmem:[#allocation6 + $0x1388] ss:$16 sps:$4 sm:$0xff]   ;;  %v17076_v46 = vld [vmem:[#allocation6 + $0x136c] ss:$16 sps:$4 sm:$0xff]   ;;  %v17118_v50 = vld [vmem:[#allocation6 + $0x15a4] ss:$16 sps:$4 sm:$0xff]  }
 0x5b0   :  { %v4645_v54 = vpop.f32.mrf.mxu1  ;;  %5564 = vmatprep.subr.bf16.mxu0 %v17031_v49  ;;  %v17113_v49 = vld [vmem:[#allocation6 + $0x15c0] ss:$16 sps:$4 sm:$0xff]  }
 0x5b1   :  { %v4652_v56 = vmul.f32 0.01, %v4644_v52  ;;  %v4646_v57 = vadd.f32 %v4645_v54, %v4605_v51  ;;  %v17074_v51 = vld [vmem:[#allocation6 + $0x1368] ss:$16 sps:$4 sm:$0xff]   ;;  %v17121_v54 = vld [vmem:[#allocation6 + $0x1584] ss:$16 sps:$4 sm:$0xff]  }
 0x5b2   :  { %v4647_v59 = vpop.f32.mrf.mxu1 }
 0x5b3   :  { %v4653_v60 = vmul.f32 0.01, %v4646_v57  ;;  %5565 = vmatpush2.bf16.msra.mxu0 %v17029_v53  ;;  %v4656_v61 = vmax.f32 %v4644_v52, %v4652_v56  ;;  %v17116_v52 = vld [vmem:[#allocation6 + $0x15a0] ss:$16 sps:$4 sm:$0xff]   ;;  %v17079_v53 = vld [vmem:[#allocation6 + $0x134c] ss:$16 sps:$4 sm:$0xff]  }
 0x5b4   :  { %v4648_v62 = vpop.f32.mrf.mxu1  ;;  %5566 = vmatprep.subr.bf16.mxu0 %v17037_v55  ;;  %v17077_v55 = vld [vmem:[#allocation6 + $0x1348] ss:$16 sps:$4 sm:$0xff]   ;;  %v17119_v56 = vld [vmem:[#allocation6 + $0x1580] ss:$16 sps:$4 sm:$0xff]   ;;  %v17124_v59 = vld [vmem:[#allocation6 + $0x1564] ss:$16 sps:$4 sm:$0xff]  }
 0x5b5   :  { %v4657_v2 = vmax.f32 %v4646_v57, %v4653_v60  ;;  %v19209_v5 = vpack.c.bf16 %v4656_v61, %v4656_v61  ;;  %v17082_v57 = vld [vmem:[#allocation6 + $0x132c] ss:$16 sps:$4 sm:$0xff]   ;;  %v17080_v60 = vld [vmem:[#allocation6 + $0x1328] ss:$16 sps:$4 sm:$0xff]   ;;  %v17127_v62 = vld [vmem:[#allocation6 + $0x1544] ss:$16 sps:$4 sm:$0xff]  }
 0x5b6   :  { %v17085_v61 = vld [vmem:[#allocation6 + $0x130c] ss:$16 sps:$4 sm:$0xff]  }
 0x5b7   :  { %v4790_v3 = vpack.c.bf16 %v4657_v2, %v4657_v2  ;;  %5567 = vmatpush2.bf16.msra.mxu0 %v17035_v58  ;;  %v17122_v58 = vld [vmem:[#allocation6 + $0x1560] ss:$16 sps:$4 sm:$0xff]   ;;  %v17083_v2 = vld [vmem:[#allocation6 + $0x1308] ss:$16 sps:$4 sm:$0xff]  }
 0x5b8   :  { %6422 = vmatprep.subr.bf16.mxu0 %v17088_v11  ;;  %v17140_v11 = vld [vmem:[#allocation6 + $0x16c0] ss:$16 sps:$4 sm:$0xff]  }
 0x5b9   :  { %5527 = vmatprep.mubr.bf16.mxu1 %v4790_v3 }
 0x5ba   :  { %5528 = vmatmul.mubr.bf16.vlgmr.msra.gmra.mxu1 %v19209_v5  ;;  %5569 = vmatmul.mubr.bf16.vlgmr.msra.gmra.mxu0 %v19200_v21  ;;  %v17050_v21 = vld [vmem:[#allocation6 + $0x1268] ss:$16 sps:$4 sm:$0xff]  }
 0x5bb   :  { %5578 = vmatpush1.bf16.msra.mxu1 %v17038_v4  ;;  %5609 = vmatprep.mubr.bf16.mxu1 %v4790_v3  ;;  %v17125_v3 = vld [vmem:[#allocation6 + $0x1540] ss:$16 sps:$4 sm:$0xff]   ;;  %v17130_v4 = vld [vmem:[#allocation6 + $0x1524] ss:$16 sps:$4 sm:$0xff]  }
 0x5bc   :  { %5579 = vmatprep.subr.bf16.mxu1 %v17043_v6  ;;  %6423 = vmatpush1.bf16.msra.mxu0 %v17086_v10  ;;  %v17128_v6 = vld [vmem:[#allocation6 + $0x1520] ss:$16 sps:$4 sm:$0xff]   ;;  %v17139_v10 = vld [vmem:[#allocation6 + $0x14ec] ss:$16 sps:$4 sm:$0xff]  }
 0x5bd   :  { %6424 = vmatprep.subr.bf16.mxu0 %v17091_v14  ;;  %v17142_v14 = vld [vmem:[#allocation6 + $0x16c4] ss:$16 sps:$4 sm:$0xff]  }
 0x5bf   :  { %5580 = vmatpush1.bf16.msra.mxu1 %v17041_v7  ;;  %v17133_v7 = vld [vmem:[#allocation6 + $0x1504] ss:$16 sps:$4 sm:$0xff]  }
 0x5c0   :  { %5581 = vmatprep.subr.bf16.mxu1 %v17046_v8  ;;  %6425 = vmatpush1.bf16.msra.mxu0 %v17089_v63  ;;  %v17131_v8 = vld [vmem:[#allocation6 + $0x1500] ss:$16 sps:$4 sm:$0xff]  }
 0x5c1   :  { %6426 = vmatprep.subr.bf16.mxu0 %v17094_v20  ;;  %v17152_v63 = vld [vmem:[#allocation6 + $0x1680] ss:$16 sps:$4 sm:$0xff]  }
 0x5c2   :  { %v17158_v20 = vld [vmem:[#allocation6 + $0x1660] ss:$16 sps:$4 sm:$0xff]  }
 0x5c3   :  { %5582 = vmatpush1.bf16.msra.mxu1 %v17044_v1  ;;  %v17134_v1 = vld [vmem:[#allocation6 + $0x16e0] ss:$16 sps:$4 sm:$0xff]  }
 0x5c4   :  { %5583 = vmatprep.subr.bf16.mxu1 %v17049_v9  ;;  %6427 = vmatpush1.bf16.msra.mxu0 %v17092_v18  ;;  %v17136_v9 = vld [vmem:[#allocation6 + $0x16e4] ss:$16 sps:$4 sm:$0xff]   ;;  %v17164_v18 = vld [vmem:[#allocation6 + $0x1640] ss:$16 sps:$4 sm:$0xff]  }
 0x5c5   :  { %6428 = vmatprep.subr.bf16.mxu0 %v17097_v25  ;;  %v17170_v25 = vld [vmem:[#allocation6 + $0x1620] ss:$16 sps:$4 sm:$0xff]  }
 0x5c7   :  { %5584 = vmatpush1.bf16.msra.mxu1 %v17047_v16  ;;  %v17146_v16 = vld [vmem:[#allocation6 + $0x16a0] ss:$16 sps:$4 sm:$0xff]  }
 0x5c8   :  { %5585 = vmatprep.subr.bf16.mxu1 %v17052_v17  ;;  %6429 = vmatpush1.bf16.msra.mxu0 %v17095_v24  ;;  %v17154_v17 = vld [vmem:[#allocation6 + $0x1684] ss:$16 sps:$4 sm:$0xff]   ;;  %v17176_v24 = vld [vmem:[#allocation6 + $0x1600] ss:$16 sps:$4 sm:$0xff]  }
 0x5c9   :  { %6430 = vmatprep.subr.bf16.mxu0 %v17100_v19  ;;  %v17182_v19 = vld [vmem:[#allocation6 + $0x17e0] ss:$16 sps:$4 sm:$0xff]  }
 0x5cb   :  { %5586 = vmatpush1.bf16.msra.mxu1 %v17050_v21  ;;  %v17160_v21 = vld [vmem:[#allocation6 + $0x1664] ss:$16 sps:$4 sm:$0xff]  }
 0x5cc   :  { %5587 = vmatprep.subr.bf16.mxu1 %v17055_v23  ;;  %6431 = vmatpush1.bf16.msra.mxu0 %v17098_v28  ;;  %v17166_v23 = vld [vmem:[#allocation6 + $0x1644] ss:$16 sps:$4 sm:$0xff]   ;;  %v17188_v28 = vld [vmem:[#allocation6 + $0x17c0] ss:$16 sps:$4 sm:$0xff]  }
 0x5cd   :  { %6432 = vmatprep.subr.bf16.mxu0 %v17103_v29  ;;  %v17194_v29 = vld [vmem:[#allocation6 + $0x17a0] ss:$16 sps:$4 sm:$0xff]  }
 0x5cf   :  { %5588 = vmatpush1.bf16.msra.mxu1 %v17053_v26  ;;  %v17172_v26 = vld [vmem:[#allocation6 + $0x1624] ss:$16 sps:$4 sm:$0xff]  }
 0x5d0   :  { %5589 = vmatprep.subr.bf16.mxu1 %v17058_v27  ;;  %6433 = vmatpush1.bf16.msra.mxu0 %v17101_v30  ;;  %v17178_v27 = vld [vmem:[#allocation6 + $0x1604] ss:$16 sps:$4 sm:$0xff]   ;;  %v17200_v30 = vld [vmem:[#allocation6 + $0x1780] ss:$16 sps:$4 sm:$0xff]  }
 0x5d1   :  { %6434 = vmatprep.subr.bf16.mxu0 %v17106_v32  ;;  %v17206_v32 = vld [vmem:[#allocation6 + $0x1760] ss:$16 sps:$4 sm:$0xff]  }
 0x5d3   :  { %5590 = vmatpush1.bf16.msra.mxu1 %v17056_v12  ;;  %v17184_v12 = vld [vmem:[#allocation6 + $0x17e4] ss:$16 sps:$4 sm:$0xff]  }
 0x5d4   :  { %5591 = vmatprep.subr.bf16.mxu1 %v17061_v22  ;;  %6435 = vmatpush1.bf16.msra.mxu0 %v17104_v35  ;;  %v17190_v22 = vld [vmem:[#allocation6 + $0x17c4] ss:$16 sps:$4 sm:$0xff]   ;;  %v17212_v35 = vld [vmem:[#allocation6 + $0x1740] ss:$16 sps:$4 sm:$0xff]  }
 0x5d5   :  { %6436 = vmatprep.subr.bf16.mxu0 %v17109_v37 }
 0x5d7   :  { %5592 = vmatpush1.bf16.msra.mxu1 %v17059_v15  ;;  %v17196_v15 = vld [vmem:[#allocation6 + $0x17a4] ss:$16 sps:$4 sm:$0xff]  }
 0x5d8   :  { %5593 = vmatprep.subr.bf16.mxu1 %v17064_v31  ;;  %6437 = vmatpush1.bf16.msra.mxu0 %v17107_v38  ;;  %v17202_v31 = vld [vmem:[#allocation6 + $0x1784] ss:$16 sps:$4 sm:$0xff]  }
 0x5d9   :  { %6438 = vmatprep.subr.bf16.mxu0 %v17112_v13 }
 0x5db   :  { %5594 = vmatpush2.bf16.msra.mxu1 %v17062_v33  ;;  %v17208_v33 = vld [vmem:[#allocation6 + $0x1764] ss:$16 sps:$4 sm:$0xff]  }
 0x5dc   :  { %5595 = vmatprep.subr.bf16.mxu1 %v17067_v36  ;;  %6439 = vmatpush2.bf16.msra.mxu0 %v17110_v0  ;;  %v17214_v36 = vld [vmem:[#allocation6 + $0x1744] ss:$16 sps:$4 sm:$0xff]  }
 0x5dd   :  { %6440 = vmatprep.subr.bf16.mxu0 %v17115_v48  ;;  %v17232_v48 = vld [vmem:[#allocation6 + $0x16ec] ss:$16 sps:$4 sm:$0xff]  }
 0x5df   :  { %5596 = vmatpush2.bf16.msra.mxu1 %v17065_v39  ;;  %v17220_v39 = vld [vmem:[#allocation6 + $0x1724] ss:$16 sps:$4 sm:$0xff]  }
 0x5e0   :  { %5597 = vmatprep.subr.bf16.mxu1 %v17070_v40  ;;  %6441 = vmatpush2.bf16.msra.mxu0 %v17113_v49  ;;  %v17218_v40 = vld [vmem:[#allocation6 + $0x1720] ss:$16 sps:$4 sm:$0xff]  }
 0x5e1   :  { %6442 = vmatprep.subr.bf16.mxu0 %v17118_v50 }
 0x5e3   :  { %5598 = vmatpush2.bf16.msra.mxu1 %v17068_v45  ;;  %v17226_v45 = vld [vmem:[#allocation6 + $0x1704] ss:$16 sps:$4 sm:$0xff]  }
 0x5e4   :  { %5599 = vmatprep.subr.bf16.mxu1 %v17073_v47  ;;  %6443 = vmatpush2.bf16.msra.mxu0 %v17116_v52  ;;  %v17224_v47 = vld [vmem:[#allocation6 + $0x1700] ss:$16 sps:$4 sm:$0xff]  }
 0x5e5   :  { %6444 = vmatprep.subr.bf16.mxu0 %v17121_v54 }
 0x5e7   :  { %5600 = vmatpush2.bf16.msra.mxu1 %v17071_v34  ;;  %v19214_v34 = vld [vmem:[#allocation7 + $0x10] sm:$0xf] }
 0x5e8   :  { %5601 = vmatprep.subr.bf16.mxu1 %v17076_v46  ;;  %6445 = vmatpush2.bf16.msra.mxu0 %v17119_v56  ;;  %v4797_v49 = vrot.slane %v19214_v34, %v19079_v41  ;;  %v4801_v46 = vrot.slane %v19214_v34, %v19083_v43 }
 0x5e9   :  { %6446 = vmatprep.subr.bf16.mxu0 %v17124_v59 }
 0x5eb   :  { %5602 = vmatpush2.bf16.msra.mxu1 %v17074_v51 }
 0x5ec   :  { %5603 = vmatprep.subr.bf16.mxu1 %v17079_v53  ;;  %6447 = vmatpush2.bf16.msra.mxu0 %v17122_v58 }
 0x5ed   :  { %6448 = vmatprep.subr.bf16.mxu0 %v17127_v62 }
 0x5ef   :  { %5604 = vmatpush2.bf16.msra.mxu1 %v17077_v55 }
 0x5f0   :  { %5605 = vmatprep.subr.bf16.mxu1 %v17082_v57  ;;  %6449 = vmatpush2.bf16.msra.mxu0 %v17125_v3 }
 0x5f1   :  { %6450 = vmatprep.subr.bf16.mxu0 %v17130_v4 }
 0x5f3   :  { %5606 = vmatpush2.bf16.msra.mxu1 %v17080_v60 }
 0x5f4   :  { %5607 = vmatprep.subr.bf16.mxu1 %v17085_v61  ;;  %6451 = vmatpush2.bf16.msra.mxu0 %v17128_v6 }
 0x5f5   :  { %6452 = vmatprep.subr.bf16.mxu0 %v17133_v7  ;;  %v17137_v7 = vld [vmem:[#allocation6 + $0x14e8] ss:$16 sps:$4 sm:$0xff]  }
 0x5f7   :  { %5608 = vmatpush2.bf16.msra.mxu1 %v17083_v2 }
 0x5f8   :  { %6453 = vmatpush2.bf16.msra.mxu0 %v17131_v8  ;;  %6463 = vmatprep.subr.bf16.mxu1 %v17136_v9  ;;  %v17143_v9 = vld [vmem:[#allocation6 + $0x14c8] ss:$16 sps:$4 sm:$0xff]  }
 0x5f9   :  { %6504 = vmatprep.subr.bf16.mxu0 %v17139_v10  ;;  %v17151_v10 = vld [vmem:[#allocation6 + $0x14ac] ss:$16 sps:$4 sm:$0xff]  }
 0x5fa   :  { %5610 = vmatmul.mubr.bf16.vlgmr.msra.gmra.mxu1 %v19209_v5  ;;  %v17148_v5 = vld [vmem:[#allocation6 + $0x16a4] ss:$16 sps:$4 sm:$0xff]  }
 0x5fb   :  { %6464 = vmatpush1.bf16.msra.mxu1 %v17134_v1  ;;  %v17145_v1 = vld [vmem:[#allocation6 + $0x14cc] ss:$16 sps:$4 sm:$0xff]  }
 0x5fc   :  { %6465 = vmatprep.subr.bf16.mxu1 %v17142_v14  ;;  %v17157_v14 = vld [vmem:[#allocation6 + $0x148c] ss:$16 sps:$4 sm:$0xff]  }
 0x5ff   :  { %6466 = vmatpush1.bf16.msra.mxu1 %v17140_v11  ;;  %v17149_v11 = vld [vmem:[#allocation6 + $0x14a8] ss:$16 sps:$4 sm:$0xff]  }
 0x600   :  { %6467 = vmatprep.subr.bf16.mxu1 %v17148_v5  ;;  %v17163_v5 = vld [vmem:[#allocation6 + $0x146c] ss:$16 sps:$4 sm:$0xff]  }
 0x603   :  { %6468 = vmatpush1.bf16.msra.mxu1 %v17146_v16  ;;  %v17155_v16 = vld [vmem:[#allocation6 + $0x1488] ss:$16 sps:$4 sm:$0xff]  }
 0x604   :  { %6469 = vmatprep.subr.bf16.mxu1 %v17154_v17  ;;  %v17169_v17 = vld [vmem:[#allocation6 + $0x144c] ss:$16 sps:$4 sm:$0xff]  }
 0x607   :  { %6470 = vmatpush1.bf16.msra.mxu1 %v17152_v63  ;;  %v17161_v63 = vld [vmem:[#allocation6 + $0x1468] ss:$16 sps:$4 sm:$0xff]  }
 0x608   :  { %6471 = vmatprep.subr.bf16.mxu1 %v17160_v21  ;;  %v17175_v21 = vld [vmem:[#allocation6 + $0x142c] ss:$16 sps:$4 sm:$0xff]  }
 0x60b   :  { %6472 = vmatpush1.bf16.msra.mxu1 %v17158_v20  ;;  %v17167_v20 = vld [vmem:[#allocation6 + $0x1448] ss:$16 sps:$4 sm:$0xff]  }
 0x60c   :  { %6473 = vmatprep.subr.bf16.mxu1 %v17166_v23  ;;  %v17181_v23 = vld [vmem:[#allocation6 + $0x140c] ss:$16 sps:$4 sm:$0xff]  }
 0x60f   :  { %6474 = vmatpush1.bf16.msra.mxu1 %v17164_v18  ;;  %v17173_v18 = vld [vmem:[#allocation6 + $0x1428] ss:$16 sps:$4 sm:$0xff]  }
 0x610   :  { %6475 = vmatprep.subr.bf16.mxu1 %v17172_v26  ;;  %v17187_v26 = vld [vmem:[#allocation6 + $0x15ec] ss:$16 sps:$4 sm:$0xff]  }
 0x613   :  { %6476 = vmatpush1.bf16.msra.mxu1 %v17170_v25  ;;  %v17179_v25 = vld [vmem:[#allocation6 + $0x1408] ss:$16 sps:$4 sm:$0xff]  }
 0x614   :  { %6477 = vmatprep.subr.bf16.mxu1 %v17178_v27  ;;  %v17193_v27 = vld [vmem:[#allocation6 + $0x15cc] ss:$16 sps:$4 sm:$0xff]  }
 0x617   :  { %6478 = vmatpush1.bf16.msra.mxu1 %v17176_v24  ;;  %v17185_v24 = vld [vmem:[#allocation6 + $0x15e8] ss:$16 sps:$4 sm:$0xff]  }
 0x618   :  { %6479 = vmatprep.subr.bf16.mxu1 %v17184_v12  ;;  %v17199_v12 = vld [vmem:[#allocation6 + $0x15ac] ss:$16 sps:$4 sm:$0xff]  }
 0x61b   :  { %6480 = vmatpush2.bf16.msra.mxu1 %v17182_v19  ;;  %v17191_v19 = vld [vmem:[#allocation6 + $0x15c8] ss:$16 sps:$4 sm:$0xff]  }
 0x61c   :  { %6481 = vmatprep.subr.bf16.mxu1 %v17190_v22  ;;  %v17205_v22 = vld [vmem:[#allocation6 + $0x158c] ss:$16 sps:$4 sm:$0xff]  }
 0x61f   :  { %6482 = vmatpush2.bf16.msra.mxu1 %v17188_v28  ;;  %v17197_v28 = vld [vmem:[#allocation6 + $0x15a8] ss:$16 sps:$4 sm:$0xff]  }
 0x620   :  { %6483 = vmatprep.subr.bf16.mxu1 %v17196_v15  ;;  %v17211_v15 = vld [vmem:[#allocation6 + $0x156c] ss:$16 sps:$4 sm:$0xff]  }
 0x623   :  { %6484 = vmatpush2.bf16.msra.mxu1 %v17194_v29  ;;  %v17203_v29 = vld [vmem:[#allocation6 + $0x1588] ss:$16 sps:$4 sm:$0xff]  }
 0x624   :  { %6485 = vmatprep.subr.bf16.mxu1 %v17202_v31  ;;  %v17217_v31 = vld [vmem:[#allocation6 + $0x154c] ss:$16 sps:$4 sm:$0xff]  }
 0x627   :  { %6486 = vmatpush2.bf16.msra.mxu1 %v17200_v30  ;;  %v17209_v30 = vld [vmem:[#allocation6 + $0x1568] ss:$16 sps:$4 sm:$0xff]  }
 0x628   :  { %6487 = vmatprep.subr.bf16.mxu1 %v17208_v33  ;;  %v4809_v33 = vrot.slane %v19214_v34, %v19085_v44 }
 0x62b   :  { %6488 = vmatpush2.bf16.msra.mxu1 %v17206_v32  ;;  %v4805_v32 = vrot.slane %v19214_v34, %v19081_v42  ;;  %v17227_v34 = vld [vmem:[#allocation6 + $0x1508] ss:$16 sps:$4 sm:$0xff]  }
 0x62c   :  { %6489 = vmatprep.subr.bf16.mxu1 %v17214_v36  ;;  %v17223_v36 = vld [vmem:[#allocation6 + $0x152c] ss:$16 sps:$4 sm:$0xff]  }
 0x62f   :  { %6490 = vmatpush2.bf16.msra.mxu1 %v17212_v35  ;;  %v17215_v35 = vld [vmem:[#allocation6 + $0x1548] ss:$16 sps:$4 sm:$0xff]  }
 0x630   :  { %6491 = vmatprep.subr.bf16.mxu1 %v17220_v39 }
 0x633   :  { %6492 = vmatpush2.bf16.msra.mxu1 %v17218_v40 }
 0x634   :  { %6493 = vmatprep.subr.bf16.mxu1 %v17226_v45 }
 0x637   :  { %6494 = vmatpush2.bf16.msra.mxu1 %v17224_v47 }
 0x638   :  { %6545 = vmatprep.subr.bf16.mxu1 %v17232_v48 }
 0x63a   :  { %v5488_v37 = vpop.f32.mrf.mxu0 }
 0x63b   :  { %v5489_v50 = vadd.f32 %v5488_v37, %v4797_v49 }
 0x63c   :  { %v5490_v38 = vpop.f32.mrf.mxu0 }
 0x63d   :  { %v5491_v53 = vadd.f32 %v5490_v38, %v4801_v46 }
 0x63e   :  { %v5492_v13 = vpop.f32.mrf.mxu0 }
 0x63f   :  { %v17221_v13 = vld [vmem:[#allocation6 + $0x1528] ss:$16 sps:$4 sm:$0xff]  }
 0x640   :  { %v5493_v0 = vpop.f32.mrf.mxu0 }
 0x641   :  { %v17229_v0 = vld [vmem:[#allocation6 + $0x150c] ss:$16 sps:$4 sm:$0xff]  }
 0x67a   :  { %v5529_v51 = vpop.f32.mrf.mxu1  ;;  %v19220_v52 = vpop.f32.mrf.mxu0 }
 0x67b   :  { %v5530_v54 = vadd.f32 %v5529_v51, %v5489_v50  ;;  %v5571_v37 = vadd.f32 %v19220_v52, %v4805_v32  ;;  %v17265_v32 = vld [vmem:[#allocation6 + $0x178c] ss:$16 sps:$4 sm:$0xff]  }
 0x67c   :  { %v5531_v55 = vpop.f32.mrf.mxu1  ;;  %v19222_v56 = vpop.f32.mrf.mxu0 }
 0x67d   :  { %v5618_v57 = vmul.f32 0.01, %v5530_v54  ;;  %v5532_v59 = vadd.f32 %v5531_v55, %v5491_v53  ;;  %v5573_v38 = vadd.f32 %v19222_v56, %v4809_v33  ;;  %v17235_v56 = vld [vmem:[#allocation6 + $0x16cc] ss:$16 sps:$4 sm:$0xff]  }
 0x67e   :  { %v5533_v60 = vpop.f32.mrf.mxu1  ;;  %v5574_v58 = vpop.f32.mrf.mxu0  ;;  %v17307_v33 = vld [vmem:[#allocation9 + $0x1c4] ss:$16 sps:$4 sm:$0xff]  }
 0x67f   :  { %v5619_v61 = vmul.f32 0.01, %v5532_v59  ;;  %v5622_v62 = vmax.f32 %v5530_v54, %v5618_v57  ;;  %v17230_v54 = vld [vmem:[#allocation6 + $0x16e8] ss:$16 sps:$4 sm:$0xff]   ;;  %v17241_v58 = vld [vmem:[#allocation6 + $0x168c] ss:$16 sps:$4 sm:$0xff]  }
 0x680   :  { %v5534_v2 = vpop.f32.mrf.mxu1  ;;  %v5575_v3 = vpop.f32.mrf.mxu0  ;;  %v17233_v57 = vld [vmem:[#allocation6 + $0x16c8] ss:$16 sps:$4 sm:$0xff]  }
 0x681   :  { %v5623_v4 = vmax.f32 %v5532_v59, %v5619_v61  ;;  %v19224_v8 = vpack.c.bf16 %v5622_v62, %v5622_v62  ;;  %v17238_v59 = vld [vmem:[#allocation6 + $0x16ac] ss:$16 sps:$4 sm:$0xff]   ;;  %v17236_v60 = vld [vmem:[#allocation6 + $0x16a8] ss:$16 sps:$4 sm:$0xff]  }
 0x682   :  { %v17278_v61 = vld [vmem:[#allocation9 + $0xe0] ss:$16 sps:$4 sm:$0xff]   ;;  %v17280_v62 = vld [vmem:[#allocation9 + $0xe4] ss:$16 sps:$4 sm:$0xff]  }
 0x683   :  { %v5756_v6 = vpack.c.bf16 %v5623_v4, %v5623_v4  ;;  %v17283_v2 = vld [vmem:[#allocation9 + $0xc4] ss:$16 sps:$4 sm:$0xff]   ;;  %v17239_v3 = vld [vmem:[#allocation6 + $0x1688] ss:$16 sps:$4 sm:$0xff]  }
 0x684   :  { %v17281_v4 = vld [vmem:[#allocation9 + $0xc0] ss:$16 sps:$4 sm:$0xff]  }
 0x685   :  { %6454 = vmatprep.mubr.bf16.mxu0 %v5756_v6 }
 0x686   :  { %6455 = vmatmul.mubr.bf16.vlgmr.msra.gmra.mxu0 %v19224_v8 }
 0x687   :  { %6505 = vmatpush1.bf16.msra.mxu0 %v17137_v7  ;;  %6536 = vmatprep.mubr.bf16.mxu0 %v5756_v6  ;;  %v17244_v6 = vld [vmem:[#allocation6 + $0x166c] ss:$16 sps:$4 sm:$0xff]  }
 0x688   :  { %6506 = vmatprep.subr.bf16.mxu0 %v17145_v1  ;;  %v17286_v7 = vld [vmem:[#allocation9 + $0xa4] ss:$16 sps:$4 sm:$0xff]   ;;  %v17284_v1 = vld [vmem:[#allocation9 + $0xa0] ss:$16 sps:$4 sm:$0xff]  }
 0x68b   :  { %6507 = vmatpush1.bf16.msra.mxu0 %v17143_v9  ;;  %v17247_v9 = vld [vmem:[#allocation6 + $0x164c] ss:$16 sps:$4 sm:$0xff]  }
 0x68c   :  { %6508 = vmatprep.subr.bf16.mxu0 %v17151_v10  ;;  %v17289_v10 = vld [vmem:[#allocation9 + $0x84] ss:$16 sps:$4 sm:$0xff]  }
 0x68f   :  { %6509 = vmatpush1.bf16.msra.mxu0 %v17149_v11  ;;  %v17245_v11 = vld [vmem:[#allocation6 + $0x1648] ss:$16 sps:$4 sm:$0xff]  }
 0x690   :  { %6510 = vmatprep.subr.bf16.mxu0 %v17157_v14  ;;  %v17287_v14 = vld [vmem:[#allocation9 + $0x80] ss:$16 sps:$4 sm:$0xff]  }
 0x693   :  { %6511 = vmatpush1.bf16.msra.mxu0 %v17155_v16  ;;  %v17250_v16 = vld [vmem:[#allocation6 + $0x162c] ss:$16 sps:$4 sm:$0xff]  }
 0x694   :  { %6512 = vmatprep.subr.bf16.mxu0 %v17163_v5  ;;  %v17292_v5 = vld [vmem:[#allocation9 + $0x64] ss:$16 sps:$4 sm:$0xff]  }
 0x697   :  { %6513 = vmatpush1.bf16.msra.mxu0 %v17161_v63  ;;  %v17248_v63 = vld [vmem:[#allocation6 + $0x1628] ss:$16 sps:$4 sm:$0xff]  }
 0x698   :  { %6514 = vmatprep.subr.bf16.mxu0 %v17169_v17  ;;  %v17290_v17 = vld [vmem:[#allocation9 + $0x60] ss:$16 sps:$4 sm:$0xff]  }
 0x69b   :  { %6515 = vmatpush1.bf16.msra.mxu0 %v17167_v20  ;;  %v17253_v20 = vld [vmem:[#allocation6 + $0x160c] ss:$16 sps:$4 sm:$0xff]  }
 0x69c   :  { %6516 = vmatprep.subr.bf16.mxu0 %v17175_v21  ;;  %v17295_v21 = vld [vmem:[#allocation9 + $0x44] ss:$16 sps:$4 sm:$0xff]  }
 0x69f   :  { %6517 = vmatpush1.bf16.msra.mxu0 %v17173_v18  ;;  %v17251_v18 = vld [vmem:[#allocation6 + $0x1608] ss:$16 sps:$4 sm:$0xff]  }
 0x6a0   :  { %6518 = vmatprep.subr.bf16.mxu0 %v17181_v23  ;;  %v17293_v23 = vld [vmem:[#allocation9 + $0x40] ss:$16 sps:$4 sm:$0xff]  }
 0x6a3   :  { %6519 = vmatpush1.bf16.msra.mxu0 %v17179_v25  ;;  %v17256_v25 = vld [vmem:[#allocation6 + $0x17ec] ss:$16 sps:$4 sm:$0xff]  }
 0x6a4   :  { %6520 = vmatprep.subr.bf16.mxu0 %v17187_v26  ;;  %v17298_v26 = vld [vmem:[#allocation9 + $0x24] ss:$16 sps:$4 sm:$0xff]  }
 0x6a7   :  { %6521 = vmatpush2.bf16.msra.mxu0 %v17185_v24  ;;  %v17254_v24 = vld [vmem:[#allocation6 + $0x17e8] ss:$16 sps:$4 sm:$0xff]  }
 0x6a8   :  { %6522 = vmatprep.subr.bf16.mxu0 %v17193_v27  ;;  %v17296_v27 = vld [vmem:[#allocation9 + $0x20] ss:$16 sps:$4 sm:$0xff]  }
 0x6ab   :  { %6523 = vmatpush2.bf16.msra.mxu0 %v17191_v19  ;;  %v17259_v19 = vld [vmem:[#allocation6 + $0x17cc] ss:$16 sps:$4 sm:$0xff]  }
 0x6ac   :  { %6524 = vmatprep.subr.bf16.mxu0 %v17199_v12  ;;  %v17301_v12 = vld [vmem:[#allocation9 + $0x4] ss:$16 sps:$4 sm:$0xff]  }
 0x6af   :  { %6525 = vmatpush2.bf16.msra.mxu0 %v17197_v28  ;;  %v17257_v28 = vld [vmem:[#allocation6 + $0x17c8] ss:$16 sps:$4 sm:$0xff]  }
 0x6b0   :  { %6526 = vmatprep.subr.bf16.mxu0 %v17205_v22  ;;  %v17299_v22 = vld [vmem:[#allocation9] ss:$16 sps:$4 sm:$0xff]  }
 0x6b3   :  { %6527 = vmatpush2.bf16.msra.mxu0 %v17203_v29  ;;  %v17262_v29 = vld [vmem:[#allocation6 + $0x17ac] ss:$16 sps:$4 sm:$0xff]  }
 0x6b4   :  { %6528 = vmatprep.subr.bf16.mxu0 %v17211_v15  ;;  %v17304_v15 = vld [vmem:[#allocation9 + $0x1e4] ss:$16 sps:$4 sm:$0xff]  }
 0x6b7   :  { %6529 = vmatpush2.bf16.msra.mxu0 %v17209_v30  ;;  %v17260_v30 = vld [vmem:[#allocation6 + $0x17a8] ss:$16 sps:$4 sm:$0xff]  }
 0x6b8   :  { %6530 = vmatprep.subr.bf16.mxu0 %v17217_v31  ;;  %v17302_v31 = vld [vmem:[#allocation9 + $0x1e0] ss:$16 sps:$4 sm:$0xff]  }
 0x6ba   :  { %v5611_v39 = vpop.f32.mrf.mxu1 }
 0x6bb   :  { %v5612_v40 = vadd.f32 %v5611_v39, %v5571_v37  ;;  %6531 = vmatpush2.bf16.msra.mxu0 %v17215_v35  ;;  %v17263_v35 = vld [vmem:[#allocation6 + $0x1788] ss:$16 sps:$4 sm:$0xff]   ;;  %v17268_v37 = vld [vmem:[#allocation6 + $0x176c] ss:$16 sps:$4 sm:$0xff]  }
 0x6bc   :  { %v5613_v45 = vpop.f32.mrf.mxu1  ;;  %6532 = vmatprep.subr.bf16.mxu0 %v17223_v36  ;;  %v17305_v36 = vld [vmem:[#allocation9 + $0x1c0] ss:$16 sps:$4 sm:$0xff]   ;;  %v17310_v39 = vld [vmem:[#allocation9 + $0x1a4] ss:$16 sps:$4 sm:$0xff]  }
 0x6bd   :  { %v5620_v47 = vmul.f32 0.01, %v5612_v40  ;;  %v5614_v48 = vadd.f32 %v5613_v45, %v5573_v38  ;;  %v17266_v38 = vld [vmem:[#allocation6 + $0x1768] ss:$16 sps:$4 sm:$0xff]   ;;  %v17313_v45 = vld [vmem:[#allocation9 + $0x184] ss:$16 sps:$4 sm:$0xff]  }
 0x6be   :  { %v5615_v49 = vpop.f32.mrf.mxu1 }
 0x6bf   :  { %v5621_v46 = vmul.f32 0.01, %v5614_v48  ;;  %6533 = vmatpush2.bf16.msra.mxu0 %v17221_v13  ;;  %v5624_v50 = vmax.f32 %v5612_v40, %v5620_v47  ;;  %v17308_v40 = vld [vmem:[#allocation9 + $0x1a0] ss:$16 sps:$4 sm:$0xff]   ;;  %v17271_v13 = vld [vmem:[#allocation6 + $0x174c] ss:$16 sps:$4 sm:$0xff]  }
 0x6c0   :  { %v5616_v51 = vpop.f32.mrf.mxu1  ;;  %6534 = vmatprep.subr.bf16.mxu0 %v17229_v0  ;;  %v17269_v0 = vld [vmem:[#allocation6 + $0x1748] ss:$16 sps:$4 sm:$0xff]   ;;  %v17316_v49 = vld [vmem:[#allocation9 + $0x164] ss:$16 sps:$4 sm:$0xff]  }
 0x6c1   :  { %v5625_v53 = vmax.f32 %v5614_v48, %v5621_v46  ;;  %v19233_v55 = vpack.c.bf16 %v5624_v50, %v5624_v50  ;;  %v17311_v47 = vld [vmem:[#allocation9 + $0x180] ss:$16 sps:$4 sm:$0xff]   ;;  %v17274_v48 = vld [vmem:[#allocation6 + $0x172c] ss:$16 sps:$4 sm:$0xff]  }
 0x6c2   :  { %v17272_v46 = vld [vmem:[#allocation6 + $0x1728] ss:$16 sps:$4 sm:$0xff]   ;;  %v17277_v50 = vld [vmem:[#allocation6 + $0x170c] ss:$16 sps:$4 sm:$0xff]  }
 0x6c3   :  { %v5758_v52 = vpack.c.bf16 %v5625_v53, %v5625_v53  ;;  %6535 = vmatpush2.bf16.msra.mxu0 %v17227_v34  ;;  %v17314_v34 = vld [vmem:[#allocation9 + $0x160] ss:$16 sps:$4 sm:$0xff]   ;;  %v17319_v51 = vld [vmem:[#allocation9 + $0x144] ss:$16 sps:$4 sm:$0xff]  }
 0x6c4   :  { %7397 = vmatprep.subr.bf16.mxu0 %v17280_v62  ;;  %v17275_v53 = vld [vmem:[#allocation6 + $0x1708] ss:$16 sps:$4 sm:$0xff]  }
 0x6c5   :  { %6495 = vmatprep.mubr.bf16.mxu1 %v5758_v52  ;;  %v17332_v62 = vld [vmem:[#allocation9 + $0x2c0] ss:$16 sps:$4 sm:$0xff]  }
 0x6c6   :  { %6496 = vmatmul.mubr.bf16.vlgmr.msra.gmra.mxu1 %v19233_v55  ;;  %6537 = vmatmul.mubr.bf16.vlgmr.msra.gmra.mxu0 %v19224_v8  ;;  %v17242_v8 = vld [vmem:[#allocation6 + $0x1668] ss:$16 sps:$4 sm:$0xff]  }
 0x6c7   :  { %6546 = vmatpush1.bf16.msra.mxu1 %v17230_v54  ;;  %6577 = vmatprep.mubr.bf16.mxu1 %v5758_v52  ;;  %v17317_v52 = vld [vmem:[#allocation9 + $0x140] ss:$16 sps:$4 sm:$0xff]   ;;  %v17322_v54 = vld [vmem:[#allocation9 + $0x124] ss:$16 sps:$4 sm:$0xff]  }
 0x6c8   :  { %6547 = vmatprep.subr.bf16.mxu1 %v17235_v56  ;;  %7398 = vmatpush1.bf16.msra.mxu0 %v17278_v61  ;;  %v17320_v56 = vld [vmem:[#allocation9 + $0x120] ss:$16 sps:$4 sm:$0xff]   ;;  %v17331_v61 = vld [vmem:[#allocation9 + $0xec] ss:$16 sps:$4 sm:$0xff]  }
 0x6c9   :  { %7399 = vmatprep.subr.bf16.mxu0 %v17283_v2  ;;  %v17334_v2 = vld [vmem:[#allocation9 + $0x2c4] ss:$16 sps:$4 sm:$0xff]  }
 0x6cb   :  { %6548 = vmatpush1.bf16.msra.mxu1 %v17233_v57  ;;  %v17325_v57 = vld [vmem:[#allocation9 + $0x104] ss:$16 sps:$4 sm:$0xff]  }
 0x6cc   :  { %6549 = vmatprep.subr.bf16.mxu1 %v17238_v59  ;;  %7400 = vmatpush1.bf16.msra.mxu0 %v17281_v4  ;;  %v17323_v59 = vld [vmem:[#allocation9 + $0x100] ss:$16 sps:$4 sm:$0xff]  }
 0x6cd   :  { %7401 = vmatprep.subr.bf16.mxu0 %v17286_v7  ;;  %v17344_v4 = vld [vmem:[#allocation9 + $0x280] ss:$16 sps:$4 sm:$0xff]  }
 0x6ce   :  { %v17350_v7 = vld [vmem:[#allocation9 + $0x260] ss:$16 sps:$4 sm:$0xff]  }
 0x6cf   :  { %6550 = vmatpush1.bf16.msra.mxu1 %v17236_v60  ;;  %v17326_v60 = vld [vmem:[#allocation9 + $0x2e0] ss:$16 sps:$4 sm:$0xff]  }
 0x6d0   :  { %6551 = vmatprep.subr.bf16.mxu1 %v17241_v58  ;;  %7402 = vmatpush1.bf16.msra.mxu0 %v17284_v1  ;;  %v17328_v58 = vld [vmem:[#allocation9 + $0x2e4] ss:$16 sps:$4 sm:$0xff]   ;;  %v17356_v1 = vld [vmem:[#allocation9 + $0x240] ss:$16 sps:$4 sm:$0xff]  }
 0x6d1   :  { %7403 = vmatprep.subr.bf16.mxu0 %v17289_v10  ;;  %v17362_v10 = vld [vmem:[#allocation9 + $0x220] ss:$16 sps:$4 sm:$0xff]  }
 0x6d3   :  { %6552 = vmatpush1.bf16.msra.mxu1 %v17239_v3  ;;  %v17338_v3 = vld [vmem:[#allocation9 + $0x2a0] ss:$16 sps:$4 sm:$0xff]  }
 0x6d4   :  { %6553 = vmatprep.subr.bf16.mxu1 %v17244_v6  ;;  %7404 = vmatpush1.bf16.msra.mxu0 %v17287_v14  ;;  %v17346_v6 = vld [vmem:[#allocation9 + $0x284] ss:$16 sps:$4 sm:$0xff]   ;;  %v17368_v14 = vld [vmem:[#allocation9 + $0x200] ss:$16 sps:$4 sm:$0xff]  }
 0x6d5   :  { %7405 = vmatprep.subr.bf16.mxu0 %v17292_v5  ;;  %v17374_v5 = vld [vmem:[#allocation9 + $0x3e0] ss:$16 sps:$4 sm:$0xff]  }
 0x6d7   :  { %6554 = vmatpush1.bf16.msra.mxu1 %v17242_v8  ;;  %v17352_v8 = vld [vmem:[#allocation9 + $0x264] ss:$16 sps:$4 sm:$0xff]  }
 0x6d8   :  { %6555 = vmatprep.subr.bf16.mxu1 %v17247_v9  ;;  %7406 = vmatpush1.bf16.msra.mxu0 %v17290_v17  ;;  %v17358_v9 = vld [vmem:[#allocation9 + $0x244] ss:$16 sps:$4 sm:$0xff]   ;;  %v17380_v17 = vld [vmem:[#allocation9 + $0x3c0] ss:$16 sps:$4 sm:$0xff]  }
 0x6d9   :  { %7407 = vmatprep.subr.bf16.mxu0 %v17295_v21  ;;  %v17386_v21 = vld [vmem:[#allocation9 + $0x3a0] ss:$16 sps:$4 sm:$0xff]  }
 0x6db   :  { %6556 = vmatpush1.bf16.msra.mxu1 %v17245_v11  ;;  %v17364_v11 = vld [vmem:[#allocation9 + $0x224] ss:$16 sps:$4 sm:$0xff]  }
 0x6dc   :  { %6557 = vmatprep.subr.bf16.mxu1 %v17250_v16  ;;  %7408 = vmatpush1.bf16.msra.mxu0 %v17293_v23  ;;  %v17370_v16 = vld [vmem:[#allocation9 + $0x204] ss:$16 sps:$4 sm:$0xff]   ;;  %v17392_v23 = vld [vmem:[#allocation9 + $0x380] ss:$16 sps:$4 sm:$0xff]  }
 0x6dd   :  { %7409 = vmatprep.subr.bf16.mxu0 %v17298_v26  ;;  %v17398_v26 = vld [vmem:[#allocation9 + $0x360] ss:$16 sps:$4 sm:$0xff]  }
 0x6df   :  { %6558 = vmatpush1.bf16.msra.mxu1 %v17248_v63  ;;  %v17376_v63 = vld [vmem:[#allocation9 + $0x3e4] ss:$16 sps:$4 sm:$0xff]  }
 0x6e0   :  { %6559 = vmatprep.subr.bf16.mxu1 %v17253_v20  ;;  %7410 = vmatpush1.bf16.msra.mxu0 %v17296_v27  ;;  %v17382_v20 = vld [vmem:[#allocation9 + $0x3c4] ss:$16 sps:$4 sm:$0xff]   ;;  %v17404_v27 = vld [vmem:[#allocation9 + $0x340] ss:$16 sps:$4 sm:$0xff]  }
 0x6e1   :  { %7411 = vmatprep.subr.bf16.mxu0 %v17301_v12 }
 0x6e3   :  { %6560 = vmatpush1.bf16.msra.mxu1 %v17251_v18  ;;  %v17388_v18 = vld [vmem:[#allocation9 + $0x3a4] ss:$16 sps:$4 sm:$0xff]  }
 0x6e4   :  { %6561 = vmatprep.subr.bf16.mxu1 %v17256_v25  ;;  %7412 = vmatpush1.bf16.msra.mxu0 %v17299_v22  ;;  %v17394_v25 = vld [vmem:[#allocation9 + $0x384] ss:$16 sps:$4 sm:$0xff]  }
 0x6e5   :  { %7413 = vmatprep.subr.bf16.mxu0 %v17304_v15 }
 0x6e7   :  { %6562 = vmatpush2.bf16.msra.mxu1 %v17254_v24  ;;  %v17400_v24 = vld [vmem:[#allocation9 + $0x364] ss:$16 sps:$4 sm:$0xff]  }
 0x6e8   :  { %6563 = vmatprep.subr.bf16.mxu1 %v17259_v19  ;;  %7414 = vmatpush2.bf16.msra.mxu0 %v17302_v31  ;;  %v17406_v19 = vld [vmem:[#allocation9 + $0x344] ss:$16 sps:$4 sm:$0xff]  }
 0x6e9   :  { %7415 = vmatprep.subr.bf16.mxu0 %v17307_v33  ;;  %v17424_v33 = vld [vmem:[#allocation9 + $0x2ec] ss:$16 sps:$4 sm:$0xff]  }
 0x6eb   :  { %6564 = vmatpush2.bf16.msra.mxu1 %v17257_v28  ;;  %v17412_v28 = vld [vmem:[#allocation9 + $0x324] ss:$16 sps:$4 sm:$0xff]  }
 0x6ec   :  { %6565 = vmatprep.subr.bf16.mxu1 %v17262_v29  ;;  %7416 = vmatpush2.bf16.msra.mxu0 %v17305_v36  ;;  %v17410_v29 = vld [vmem:[#allocation9 + $0x320] ss:$16 sps:$4 sm:$0xff]  }
 0x6ed   :  { %7417 = vmatprep.subr.bf16.mxu0 %v17310_v39 }
 0x6ef   :  { %6566 = vmatpush2.bf16.msra.mxu1 %v17260_v30  ;;  %v17418_v30 = vld [vmem:[#allocation9 + $0x304] ss:$16 sps:$4 sm:$0xff]  }
 0x6f0   :  { %6567 = vmatprep.subr.bf16.mxu1 %v17265_v32  ;;  %7418 = vmatpush2.bf16.msra.mxu0 %v17308_v40  ;;  %v17416_v32 = vld [vmem:[#allocation9 + $0x300] ss:$16 sps:$4 sm:$0xff]  }
 0x6f1   :  { %7419 = vmatprep.subr.bf16.mxu0 %v17313_v45 }
 0x6f3   :  { %6568 = vmatpush2.bf16.msra.mxu1 %v17263_v35  ;;  %v19238_v35 = vld [vmem:[#allocation7 + $0x14] sm:$0xf] }
 0x6f4   :  { %6569 = vmatprep.subr.bf16.mxu1 %v17268_v37  ;;  %7420 = vmatpush2.bf16.msra.mxu0 %v17311_v47  ;;  %v5765_v36 = vrot.slane %v19238_v35, %v19079_v41  ;;  %v5769_v37 = vrot.slane %v19238_v35, %v19083_v43 }
 0x6f5   :  { %7421 = vmatprep.subr.bf16.mxu0 %v17316_v49 }
 0x6f7   :  { %6570 = vmatpush2.bf16.msra.mxu1 %v17266_v38 }
 0x6f8   :  { %6571 = vmatprep.subr.bf16.mxu1 %v17271_v13  ;;  %7422 = vmatpush2.bf16.msra.mxu0 %v17314_v34 }
 0x6f9   :  { %7423 = vmatprep.subr.bf16.mxu0 %v17319_v51 }
 0x6fb   :  { %6572 = vmatpush2.bf16.msra.mxu1 %v17269_v0 }
 0x6fc   :  { %6573 = vmatprep.subr.bf16.mxu1 %v17274_v48  ;;  %7424 = vmatpush2.bf16.msra.mxu0 %v17317_v52 }
 0x6fd   :  { %7425 = vmatprep.subr.bf16.mxu0 %v17322_v54 }
 0x6ff   :  { %6574 = vmatpush2.bf16.msra.mxu1 %v17272_v46 }
 0x700   :  { %6575 = vmatprep.subr.bf16.mxu1 %v17277_v50  ;;  %7426 = vmatpush2.bf16.msra.mxu0 %v17320_v56  ;;  %v18734_v56 = vld [vmem:[%s19417_s11 + $0x8] sm:$0xff] }
 0x701   :  { %7427 = vmatprep.subr.bf16.mxu0 %v17325_v57 }
 0x703   :  { %6576 = vmatpush2.bf16.msra.mxu1 %v17275_v53 }
 0x704   :  { %7428 = vmatpush2.bf16.msra.mxu0 %v17323_v59  ;;  %7440 = vmatprep.subr.bf16.mxu1 %v17328_v58  ;;  %v17329_v59 = vld [vmem:[#allocation9 + $0xe8] ss:$16 sps:$4 sm:$0xff]  }
 0x705   :  { %7483 = vmatprep.subr.bf16.mxu0 %v17331_v61  ;;  %v17337_v61 = vld [vmem:[#allocation9 + $0xcc] ss:$16 sps:$4 sm:$0xff]  }
 0x706   :  { %6578 = vmatmul.mubr.bf16.vlgmr.msra.gmra.mxu1 %v19233_v55  ;;  %v17340_v55 = vld [vmem:[#allocation9 + $0x2a4] ss:$16 sps:$4 sm:$0xff]  }
 0x707   :  { %7441 = vmatpush1.bf16.msra.mxu1 %v17326_v60  ;;  %v18735_v60 = vld [vmem:[%s19417_s11] sm:$0xff] }
 0x708   :  { %7442 = vmatprep.subr.bf16.mxu1 %v17334_v2  ;;  %v17343_v2 = vld [vmem:[#allocation9 + $0xac] ss:$16 sps:$4 sm:$0xff]  }
 0x70b   :  { %7443 = vmatpush1.bf16.msra.mxu1 %v17332_v62  ;;  %v17335_v62 = vld [vmem:[#allocation9 + $0xc8] ss:$16 sps:$4 sm:$0xff]  }
 0x70c   :  { %7444 = vmatprep.subr.bf16.mxu1 %v17340_v55  ;;  %v17349_v55 = vld [vmem:[#allocation9 + $0x8c] ss:$16 sps:$4 sm:$0xff]  }
 0x70f   :  { %7445 = vmatpush1.bf16.msra.mxu1 %v17338_v3  ;;  %v17341_v3 = vld [vmem:[#allocation9 + $0xa8] ss:$16 sps:$4 sm:$0xff]  }
 0x710   :  { %7446 = vmatprep.subr.bf16.mxu1 %v17346_v6  ;;  %v17355_v6 = vld [vmem:[#allocation9 + $0x6c] ss:$16 sps:$4 sm:$0xff]  }
 0x713   :  { %7447 = vmatpush1.bf16.msra.mxu1 %v17344_v4  ;;  %v17347_v4 = vld [vmem:[#allocation9 + $0x88] ss:$16 sps:$4 sm:$0xff]  }
 0x714   :  { %7448 = vmatprep.subr.bf16.mxu1 %v17352_v8  ;;  %v17361_v8 = vld [vmem:[#allocation9 + $0x4c] ss:$16 sps:$4 sm:$0xff]  }
 0x717   :  { %7449 = vmatpush1.bf16.msra.mxu1 %v17350_v7  ;;  %v17353_v7 = vld [vmem:[#allocation9 + $0x68] ss:$16 sps:$4 sm:$0xff]  }
 0x718   :  { %7450 = vmatprep.subr.bf16.mxu1 %v17358_v9  ;;  %v17367_v9 = vld [vmem:[#allocation9 + $0x2c] ss:$16 sps:$4 sm:$0xff]  }
 0x71b   :  { %7451 = vmatpush1.bf16.msra.mxu1 %v17356_v1  ;;  %v17359_v1 = vld [vmem:[#allocation9 + $0x48] ss:$16 sps:$4 sm:$0xff]  }
 0x71c   :  { %7452 = vmatprep.subr.bf16.mxu1 %v17364_v11  ;;  %v17373_v11 = vld [vmem:[#allocation9 + $0xc] ss:$16 sps:$4 sm:$0xff]  }
 0x71f   :  { %7453 = vmatpush1.bf16.msra.mxu1 %v17362_v10  ;;  %v17365_v10 = vld [vmem:[#allocation9 + $0x28] ss:$16 sps:$4 sm:$0xff]  }
 0x720   :  { %7454 = vmatprep.subr.bf16.mxu1 %v17370_v16  ;;  %v17379_v16 = vld [vmem:[#allocation9 + $0x1ec] ss:$16 sps:$4 sm:$0xff]  }
 0x723   :  { %7455 = vmatpush1.bf16.msra.mxu1 %v17368_v14  ;;  %v17371_v14 = vld [vmem:[#allocation9 + $0x8] ss:$16 sps:$4 sm:$0xff]  }
 0x724   :  { %7456 = vmatprep.subr.bf16.mxu1 %v17376_v63  ;;  %v17385_v63 = vld [vmem:[#allocation9 + $0x1cc] ss:$16 sps:$4 sm:$0xff]  }
 0x727   :  { %7457 = vmatpush2.bf16.msra.mxu1 %v17374_v5  ;;  %v17377_v5 = vld [vmem:[#allocation9 + $0x1e8] ss:$16 sps:$4 sm:$0xff]  }
 0x728   :  { %7458 = vmatprep.subr.bf16.mxu1 %v17382_v20  ;;  %v17391_v20 = vld [vmem:[#allocation9 + $0x1ac] ss:$16 sps:$4 sm:$0xff]  }
 0x72b   :  { %7459 = vmatpush2.bf16.msra.mxu1 %v17380_v17  ;;  %v17383_v17 = vld [vmem:[#allocation9 + $0x1c8] ss:$16 sps:$4 sm:$0xff]  }
 0x72c   :  { %7460 = vmatprep.subr.bf16.mxu1 %v17388_v18  ;;  %v17397_v18 = vld [vmem:[#allocation9 + $0x18c] ss:$16 sps:$4 sm:$0xff]  }
 0x72f   :  { %7461 = vmatpush2.bf16.msra.mxu1 %v17386_v21  ;;  %v17389_v21 = vld [vmem:[#allocation9 + $0x1a8] ss:$16 sps:$4 sm:$0xff]  }
 0x730   :  { %7462 = vmatprep.subr.bf16.mxu1 %v17394_v25  ;;  %v17403_v25 = vld [vmem:[#allocation9 + $0x16c] ss:$16 sps:$4 sm:$0xff]  }
 0x733   :  { %7463 = vmatpush2.bf16.msra.mxu1 %v17392_v23  ;;  %v17395_v23 = vld [vmem:[#allocation9 + $0x188] ss:$16 sps:$4 sm:$0xff]  }
 0x734   :  { %7464 = vmatprep.subr.bf16.mxu1 %v17400_v24  ;;  %v17409_v24 = vld [vmem:[#allocation9 + $0x14c] ss:$16 sps:$4 sm:$0xff]  }
 0x737   :  { %7465 = vmatpush2.bf16.msra.mxu1 %v17398_v26  ;;  %v17401_v26 = vld [vmem:[#allocation9 + $0x168] ss:$16 sps:$4 sm:$0xff]  }
 0x738   :  { %7466 = vmatprep.subr.bf16.mxu1 %v17406_v19  ;;  %v5777_v19 = vrot.slane %v19238_v35, %v19085_v44 }
 0x73b   :  { %7467 = vmatpush2.bf16.msra.mxu1 %v17404_v27  ;;  %v5773_v27 = vrot.slane %v19238_v35, %v19081_v42 }
 0x73c   :  { %7468 = vmatprep.subr.bf16.mxu1 %v17412_v28  ;;  %v17415_v28 = vld [vmem:[#allocation9 + $0x12c] ss:$16 sps:$4 sm:$0xff]  }
 0x73f   :  { %7469 = vmatpush2.bf16.msra.mxu1 %v17410_v29 }
 0x740   :  { %7470 = vmatprep.subr.bf16.mxu1 %v17418_v30 }
 0x743   :  { %7471 = vmatpush2.bf16.msra.mxu1 %v17416_v32 }
 0x744   :  { %7526 = vmatprep.subr.bf16.mxu1 %v17424_v33  ;;  %v17421_v33 = vld [vmem:[#allocation9 + $0x10c] ss:$16 sps:$4 sm:$0xff]  }
 0x746   :  { %v6456_v12 = vpop.f32.mrf.mxu0 }
 0x747   :  { %v6457_v39 = vadd.f32 %v6456_v12, %v5765_v36  ;;  %v17407_v12 = vld [vmem:[#allocation9 + $0x148] ss:$16 sps:$4 sm:$0xff]  }
 0x748   :  { %v6458_v22 = vpop.f32.mrf.mxu0 }
 0x749   :  { %v6459_v13 = vadd.f32 %v6458_v22, %v5769_v37 }
 0x74a   :  { %v6460_v15 = vpop.f32.mrf.mxu0 }
 0x74c   :  { %v6461_v31 = vpop.f32.mrf.mxu0 }
 0x74d   :  { %v17413_v31 = vld [vmem:[#allocation9 + $0x128] ss:$16 sps:$4 sm:$0xff]  }
 0x786   :  { %v6497_v38 = vpop.f32.mrf.mxu1  ;;  %v19244_v40 = vpop.f32.mrf.mxu0 }
 0x787   :  { %v6498_v45 = vadd.f32 %v6497_v38, %v6457_v39  ;;  %v6539_v22 = vadd.f32 %v19244_v40, %v5773_v27  ;;  %v17452_v27 = vld [vmem:[#allocation9 + $0x3a8] ss:$16 sps:$4 sm:$0xff]  }
 0x788   :  { %v6499_v0 = vpop.f32.mrf.mxu1  ;;  %v19246_v47 = vpop.f32.mrf.mxu0 }
 0x789   :  { %v6586_v48 = vmul.f32 0.01, %v6498_v45  ;;  %v6500_v49 = vadd.f32 %v6499_v0, %v6459_v13  ;;  %v6541_v15 = vadd.f32 %v19246_v47, %v5777_v19  ;;  %v17419_v13 = vld [vmem:[#allocation9 + $0x108] ss:$16 sps:$4 sm:$0xff]   ;;  %v17457_v19 = vld [vmem:[#allocation9 + $0x38c] ss:$16 sps:$4 sm:$0xff]  }
 0x78a   :  { %v6501_v46 = vpop.f32.mrf.mxu1  ;;  %v6542_v34 = vpop.f32.mrf.mxu0  ;;  %v18736_v0 = vld [vmem:[%s19417_s11 + $0x18] sm:$0xff] }
 0x78b   :  { %v6590_v50 = vmax.f32 %v6498_v45, %v6586_v48  ;;  %v6587_v51 = vmul.f32 0.01, %v6500_v49  ;;  %v17422_v48 = vld [vmem:[#allocation9 + $0x2e8] ss:$16 sps:$4 sm:$0xff]   ;;  %v17427_v34 = vld [vmem:[#allocation9 + $0x2cc] ss:$16 sps:$4 sm:$0xff]  }
 0x78c   :  { %v6502_v53 = vpop.f32.mrf.mxu1  ;;  %v6543_v52 = vpop.f32.mrf.mxu0 }
 0x78d   :  { %15010 = vst [vmem:[%s19417_s11 + $0x20] sm:$0xff] %v6590_v50  ;;  %v6591_v54 = vmax.f32 %v6500_v49, %v6587_v51  ;;  %v19260_v58 = vpack.c.bf16 %v6590_v50, %v18735_v60  ;;  %v18737_v49 = vld [vmem:[%s19417_s11 + $0x10] sm:$0xff]  ;;  %v17425_v50 = vld [vmem:[#allocation9 + $0x2c8] ss:$16 sps:$4 sm:$0xff]   ;;  %v17430_v51 = vld [vmem:[#allocation9 + $0x2ac] ss:$16 sps:$4 sm:$0xff]  }
 0x78e   :  { %v17428_v53 = vld [vmem:[#allocation9 + $0x2a8] ss:$16 sps:$4 sm:$0xff]   ;;  %v17433_v52 = vld [vmem:[#allocation9 + $0x28c] ss:$16 sps:$4 sm:$0xff]  }
 0x78f   :  { %15011 = vst [vmem:[%s19417_s11 + $0x28] sm:$0xff] %v6591_v54  ;;  %v6732_v57 = vpack.c.bf16 %v6591_v54, %v18734_v56  ;;  %v17470_v54 = vld [vmem:[#allocation9 + $0x4e0] ss:$16 sps:$4 sm:$0xff]   ;;  %v17472_v56 = vld [vmem:[#allocation9 + $0x4e4] ss:$16 sps:$4 sm:$0xff]  }
 0x790   :  { %v17436_v60 = vld [vmem:[#allocation9 + $0x26c] ss:$16 sps:$4 sm:$0xff]  }
 0x791   :  { %7429 = vmatprep.mubr.bf16.mxu0 %v6732_v57 }
 0x792   :  { %7430 = vmatmul.mubr.bf16.vlgmr.msra.gmra.mxu0 %v19260_v58 }
 0x793   :  { %7484 = vmatpush1.bf16.msra.mxu0 %v17329_v59  ;;  %7515 = vmatprep.mubr.bf16.mxu0 %v6732_v57  ;;  %v17475_v57 = vld [vmem:[#allocation9 + $0x4c4] ss:$16 sps:$4 sm:$0xff]   ;;  %v17431_v59 = vld [vmem:[#allocation9 + $0x288] ss:$16 sps:$4 sm:$0xff]  }
 0x794   :  { %7485 = vmatprep.subr.bf16.mxu0 %v17337_v61  ;;  %v17473_v61 = vld [vmem:[#allocation9 + $0x4c0] ss:$16 sps:$4 sm:$0xff]  }
 0x797   :  { %7486 = vmatpush1.bf16.msra.mxu0 %v17335_v62  ;;  %v17434_v62 = vld [vmem:[#allocation9 + $0x268] ss:$16 sps:$4 sm:$0xff]  }
 0x798   :  { %7487 = vmatprep.subr.bf16.mxu0 %v17343_v2  ;;  %v17439_v2 = vld [vmem:[#allocation9 + $0x24c] ss:$16 sps:$4 sm:$0xff]  }
 0x79b   :  { %7488 = vmatpush1.bf16.msra.mxu0 %v17341_v3  ;;  %v17476_v3 = vld [vmem:[#allocation9 + $0x4a0] ss:$16 sps:$4 sm:$0xff]  }
 0x79c   :  { %7489 = vmatprep.subr.bf16.mxu0 %v17349_v55  ;;  %v17481_v55 = vld [vmem:[#allocation9 + $0x484] ss:$16 sps:$4 sm:$0xff]  }
 0x79f   :  { %7490 = vmatpush1.bf16.msra.mxu0 %v17347_v4  ;;  %v17437_v4 = vld [vmem:[#allocation9 + $0x248] ss:$16 sps:$4 sm:$0xff]  }
 0x7a0   :  { %7491 = vmatprep.subr.bf16.mxu0 %v17355_v6  ;;  %v17442_v6 = vld [vmem:[#allocation9 + $0x22c] ss:$16 sps:$4 sm:$0xff]  }
 0x7a3   :  { %7492 = vmatpush1.bf16.msra.mxu0 %v17353_v7  ;;  %v17479_v7 = vld [vmem:[#allocation9 + $0x480] ss:$16 sps:$4 sm:$0xff]  }
 0x7a4   :  { %7493 = vmatprep.subr.bf16.mxu0 %v17361_v8  ;;  %v17484_v8 = vld [vmem:[#allocation9 + $0x464] ss:$16 sps:$4 sm:$0xff]  }
 0x7a7   :  { %7494 = vmatpush1.bf16.msra.mxu0 %v17359_v1  ;;  %v17440_v1 = vld [vmem:[#allocation9 + $0x228] ss:$16 sps:$4 sm:$0xff]  }
 0x7a8   :  { %7495 = vmatprep.subr.bf16.mxu0 %v17367_v9  ;;  %v17445_v9 = vld [vmem:[#allocation9 + $0x20c] ss:$16 sps:$4 sm:$0xff]  }
 0x7ab   :  { %7496 = vmatpush1.bf16.msra.mxu0 %v17365_v10  ;;  %v17482_v10 = vld [vmem:[#allocation9 + $0x460] ss:$16 sps:$4 sm:$0xff]  }
 0x7ac   :  { %7497 = vmatprep.subr.bf16.mxu0 %v17373_v11  ;;  %v17487_v11 = vld [vmem:[#allocation9 + $0x444] ss:$16 sps:$4 sm:$0xff]  }
 0x7af   :  { %7498 = vmatpush1.bf16.msra.mxu0 %v17371_v14  ;;  %v17443_v14 = vld [vmem:[#allocation9 + $0x208] ss:$16 sps:$4 sm:$0xff]  }
 0x7b0   :  { %7499 = vmatprep.subr.bf16.mxu0 %v17379_v16  ;;  %v17448_v16 = vld [vmem:[#allocation9 + $0x3ec] ss:$16 sps:$4 sm:$0xff]  }
 0x7b3   :  { %7500 = vmatpush2.bf16.msra.mxu0 %v17377_v5  ;;  %v17485_v5 = vld [vmem:[#allocation9 + $0x440] ss:$16 sps:$4 sm:$0xff]  }
 0x7b4   :  { %7501 = vmatprep.subr.bf16.mxu0 %v17385_v63  ;;  %v17490_v63 = vld [vmem:[#allocation9 + $0x424] ss:$16 sps:$4 sm:$0xff]  }
 0x7b7   :  { %7502 = vmatpush2.bf16.msra.mxu0 %v17383_v17  ;;  %v17446_v17 = vld [vmem:[#allocation9 + $0x3e8] ss:$16 sps:$4 sm:$0xff]  }
 0x7b8   :  { %7503 = vmatprep.subr.bf16.mxu0 %v17391_v20  ;;  %v17451_v20 = vld [vmem:[#allocation9 + $0x3cc] ss:$16 sps:$4 sm:$0xff]  }
 0x7bb   :  { %7504 = vmatpush2.bf16.msra.mxu0 %v17389_v21  ;;  %v17488_v21 = vld [vmem:[#allocation9 + $0x420] ss:$16 sps:$4 sm:$0xff]  }
 0x7bc   :  { %7505 = vmatprep.subr.bf16.mxu0 %v17397_v18  ;;  %v17493_v18 = vld [vmem:[#allocation9 + $0x404] ss:$16 sps:$4 sm:$0xff]  }
 0x7bf   :  { %7506 = vmatpush2.bf16.msra.mxu0 %v17395_v23  ;;  %v17449_v23 = vld [vmem:[#allocation9 + $0x3c8] ss:$16 sps:$4 sm:$0xff]  }
 0x7c0   :  { %7507 = vmatprep.subr.bf16.mxu0 %v17403_v25  ;;  %v17454_v25 = vld [vmem:[#allocation9 + $0x3ac] ss:$16 sps:$4 sm:$0xff]  }
 0x7c3   :  { %7508 = vmatpush2.bf16.msra.mxu0 %v17401_v26  ;;  %v17491_v26 = vld [vmem:[#allocation9 + $0x400] ss:$16 sps:$4 sm:$0xff]  }
 0x7c4   :  { %7509 = vmatprep.subr.bf16.mxu0 %v17409_v24  ;;  %v17496_v24 = vld [vmem:[#allocation9 + $0x5e4] ss:$16 sps:$4 sm:$0xff]  }
 0x7c6   :  { %v6579_v29 = vpop.f32.mrf.mxu1 }
 0x7c7   :  { %v6580_v30 = vadd.f32 %v6579_v29, %v6539_v22  ;;  %7510 = vmatpush2.bf16.msra.mxu0 %v17407_v12  ;;  %v17494_v12 = vld [vmem:[#allocation9 + $0x5e0] ss:$16 sps:$4 sm:$0xff]   ;;  %v17455_v22 = vld [vmem:[#allocation9 + $0x388] ss:$16 sps:$4 sm:$0xff]   ;;  %v17460_v29 = vld [vmem:[#allocation9 + $0x36c] ss:$16 sps:$4 sm:$0xff]  }
 0x7c8   :  { %v6581_v32 = vpop.f32.mrf.mxu1  ;;  %7511 = vmatprep.subr.bf16.mxu0 %v17415_v28  ;;  %v17499_v28 = vld [vmem:[#allocation9 + $0x5c4] ss:$16 sps:$4 sm:$0xff]  }
 0x7c9   :  { %v6588_v36 = vmul.f32 0.01, %v6580_v30  ;;  %v6582_v37 = vadd.f32 %v6581_v32, %v6541_v15  ;;  %v17497_v15 = vld [vmem:[#allocation9 + $0x5c0] ss:$16 sps:$4 sm:$0xff]   ;;  %v17463_v32 = vld [vmem:[#allocation9 + $0x34c] ss:$16 sps:$4 sm:$0xff]  }
 0x7ca   :  { %v6583_v39 = vpop.f32.mrf.mxu1 }
 0x7cb   :  { %v6592_v38 = vmax.f32 %v6580_v30, %v6588_v36  ;;  %v6589_v35 = vmul.f32 0.01, %v6582_v37  ;;  %7512 = vmatpush2.bf16.msra.mxu0 %v17413_v31  ;;  %v17502_v30 = vld [vmem:[#allocation9 + $0x5a4] ss:$16 sps:$4 sm:$0xff]   ;;  %v17458_v31 = vld [vmem:[#allocation9 + $0x368] ss:$16 sps:$4 sm:$0xff]  }
 0x7cc   :  { %v6584_v45 = vpop.f32.mrf.mxu1  ;;  %7513 = vmatprep.subr.bf16.mxu0 %v17421_v33  ;;  %v17500_v33 = vld [vmem:[#allocation9 + $0x5a0] ss:$16 sps:$4 sm:$0xff]   ;;  %v17505_v36 = vld [vmem:[#allocation9 + $0x584] ss:$16 sps:$4 sm:$0xff]   ;;  %v17466_v39 = vld [vmem:[#allocation9 + $0x32c] ss:$16 sps:$4 sm:$0xff]  }
 0x7cd   :  { %15012 = vst [vmem:[%s19417_s11 + $0x30] sm:$0xff] %v6592_v38  ;;  %v6593_v40 = vmax.f32 %v6582_v37, %v6589_v35  ;;  %v19281_v46 = vpack.c.bf16 %v6592_v38, %v18737_v49  ;;  %v17461_v37 = vld [vmem:[#allocation9 + $0x348] ss:$16 sps:$4 sm:$0xff]   ;;  %v17503_v38 = vld [vmem:[#allocation9 + $0x580] ss:$16 sps:$4 sm:$0xff]  }
 0x7ce   :  { %v17508_v35 = vld [vmem:[#allocation9 + $0x564] ss:$16 sps:$4 sm:$0xff]   ;;  %v17469_v45 = vld [vmem:[#allocation9 + $0x30c] ss:$16 sps:$4 sm:$0xff]  }
 0x7cf   :  { %15013 = vst [vmem:[%s19417_s11 + $0x38] sm:$0xff] %v6593_v40  ;;  %7514 = vmatpush2.bf16.msra.mxu0 %v17419_v13  ;;  %v6734_v47 = vpack.c.bf16 %v6593_v40, %v18736_v0  ;;  %v17464_v13 = vld [vmem:[#allocation9 + $0x328] ss:$16 sps:$4 sm:$0xff]   ;;  %v17506_v40 = vld [vmem:[#allocation9 + $0x560] ss:$16 sps:$4 sm:$0xff]  }
 0x7d0   :  { %8381 = vmatprep.subr.bf16.mxu0 %v17472_v56  ;;  %v17467_v0 = vld [vmem:[#allocation9 + $0x308] ss:$16 sps:$4 sm:$0xff]   ;;  %v17514_v49 = vld [vmem:[#allocation9 + $0x524] ss:$16 sps:$4 sm:$0xff]   ;;  %v17524_v56 = vld [vmem:[#allocation9 + $0x6c0] ss:$16 sps:$4 sm:$0xff]  }
 0x7d1   :  { %7472 = vmatprep.mubr.bf16.mxu1 %v6734_v47 }
 0x7d2   :  { %7473 = vmatmul.mubr.bf16.vlgmr.msra.gmra.mxu1 %v19281_v46  ;;  %7516 = vmatmul.mubr.bf16.vlgmr.msra.gmra.mxu0 %v19260_v58  ;;  %v17478_v58 = vld [vmem:[#allocation9 + $0x4a4] ss:$16 sps:$4 sm:$0xff]  }
 0x7d3   :  { %7527 = vmatpush1.bf16.msra.mxu1 %v17422_v48  ;;  %7558 = vmatprep.mubr.bf16.mxu1 %v6734_v47  ;;  %v17511_v47 = vld [vmem:[#allocation9 + $0x544] ss:$16 sps:$4 sm:$0xff]   ;;  %v17509_v48 = vld [vmem:[#allocation9 + $0x540] ss:$16 sps:$4 sm:$0xff]  }
 0x7d4   :  { %7528 = vmatprep.subr.bf16.mxu1 %v17427_v34  ;;  %8382 = vmatpush1.bf16.msra.mxu0 %v17470_v54  ;;  %v17512_v34 = vld [vmem:[#allocation9 + $0x520] ss:$16 sps:$4 sm:$0xff]   ;;  %v17523_v54 = vld [vmem:[#allocation9 + $0x4ec] ss:$16 sps:$4 sm:$0xff]  }
 0x7d5   :  { %8383 = vmatprep.subr.bf16.mxu0 %v17475_v57  ;;  %v17530_v57 = vld [vmem:[#allocation9 + $0x6a0] ss:$16 sps:$4 sm:$0xff]  }
 0x7d7   :  { %7529 = vmatpush1.bf16.msra.mxu1 %v17425_v50  ;;  %v17517_v50 = vld [vmem:[#allocation9 + $0x504] ss:$16 sps:$4 sm:$0xff]  }
 0x7d8   :  { %7530 = vmatprep.subr.bf16.mxu1 %v17430_v51  ;;  %8384 = vmatpush1.bf16.msra.mxu0 %v17473_v61  ;;  %v17515_v51 = vld [vmem:[#allocation9 + $0x500] ss:$16 sps:$4 sm:$0xff]   ;;  %v17538_v61 = vld [vmem:[#allocation9 + $0x684] ss:$16 sps:$4 sm:$0xff]  }
 0x7d9   :  { %8385 = vmatprep.subr.bf16.mxu0 %v17478_v58  ;;  %v17542_v58 = vld [vmem:[#allocation9 + $0x660] ss:$16 sps:$4 sm:$0xff]  }
 0x7db   :  { %7531 = vmatpush1.bf16.msra.mxu1 %v17428_v53  ;;  %v17518_v53 = vld [vmem:[#allocation9 + $0x6e0] ss:$16 sps:$4 sm:$0xff]  }
 0x7dc   :  { %7532 = vmatprep.subr.bf16.mxu1 %v17433_v52  ;;  %8386 = vmatpush1.bf16.msra.mxu0 %v17476_v3  ;;  %v17520_v52 = vld [vmem:[#allocation9 + $0x6e4] ss:$16 sps:$4 sm:$0xff]  }
 0x7dd   :  { %8387 = vmatprep.subr.bf16.mxu0 %v17481_v55  ;;  %v17550_v3 = vld [vmem:[#allocation9 + $0x644] ss:$16 sps:$4 sm:$0xff]   ;;  %v17554_v55 = vld [vmem:[#allocation9 + $0x620] ss:$16 sps:$4 sm:$0xff]  }
 0x7df   :  { %7533 = vmatpush1.bf16.msra.mxu1 %v17431_v59  ;;  %v17532_v59 = vld [vmem:[#allocation9 + $0x6a4] ss:$16 sps:$4 sm:$0xff]  }
 0x7e0   :  { %7534 = vmatprep.subr.bf16.mxu1 %v17436_v60  ;;  %8388 = vmatpush1.bf16.msra.mxu0 %v17479_v7  ;;  %v17536_v60 = vld [vmem:[#allocation9 + $0x680] ss:$16 sps:$4 sm:$0xff]   ;;  %v17562_v7 = vld [vmem:[#allocation9 + $0x604] ss:$16 sps:$4 sm:$0xff]  }
 0x7e1   :  { %8389 = vmatprep.subr.bf16.mxu0 %v17484_v8  ;;  %v17566_v8 = vld [vmem:[#allocation9 + $0x7e0] ss:$16 sps:$4 sm:$0xff]  }
 0x7e3   :  { %7535 = vmatpush1.bf16.msra.mxu1 %v17434_v62  ;;  %v17544_v62 = vld [vmem:[#allocation9 + $0x664] ss:$16 sps:$4 sm:$0xff]  }
 0x7e4   :  { %7536 = vmatprep.subr.bf16.mxu1 %v17439_v2  ;;  %8390 = vmatpush1.bf16.msra.mxu0 %v17482_v10  ;;  %v17548_v2 = vld [vmem:[#allocation9 + $0x640] ss:$16 sps:$4 sm:$0xff]   ;;  %v17574_v10 = vld [vmem:[#allocation9 + $0x7c4] ss:$16 sps:$4 sm:$0xff]  }
 0x7e5   :  { %8391 = vmatprep.subr.bf16.mxu0 %v17487_v11  ;;  %v17578_v11 = vld [vmem:[#allocation9 + $0x7a0] ss:$16 sps:$4 sm:$0xff]  }
 0x7e7   :  { %7537 = vmatpush1.bf16.msra.mxu1 %v17437_v4  ;;  %v17556_v4 = vld [vmem:[#allocation9 + $0x624] ss:$16 sps:$4 sm:$0xff]  }
 0x7e8   :  { %7538 = vmatprep.subr.bf16.mxu1 %v17442_v6  ;;  %8392 = vmatpush1.bf16.msra.mxu0 %v17485_v5  ;;  %v17560_v6 = vld [vmem:[#allocation9 + $0x600] ss:$16 sps:$4 sm:$0xff]   ;;  %v17586_v5 = vld [vmem:[#allocation9 + $0x784] ss:$16 sps:$4 sm:$0xff]  }
 0x7e9   :  { %8393 = vmatprep.subr.bf16.mxu0 %v17490_v63  ;;  %v17590_v63 = vld [vmem:[#allocation9 + $0x760] ss:$16 sps:$4 sm:$0xff]  }
 0x7eb   :  { %7539 = vmatpush1.bf16.msra.mxu1 %v17440_v1  ;;  %v17568_v1 = vld [vmem:[#allocation9 + $0x7e4] ss:$16 sps:$4 sm:$0xff]  }
 0x7ec   :  { %7540 = vmatprep.subr.bf16.mxu1 %v17445_v9  ;;  %8394 = vmatpush1.bf16.msra.mxu0 %v17488_v21  ;;  %v17572_v9 = vld [vmem:[#allocation9 + $0x7c0] ss:$16 sps:$4 sm:$0xff]  }
 0x7ed   :  { %8395 = vmatprep.subr.bf16.mxu0 %v17493_v18  ;;  %v17596_v21 = vld [vmem:[#allocation9 + $0x740] ss:$16 sps:$4 sm:$0xff]   ;;  %v17604_v18 = vld [vmem:[#allocation9 + $0x724] ss:$16 sps:$4 sm:$0xff]  }
 0x7ef   :  { %7541 = vmatpush1.bf16.msra.mxu1 %v17443_v14  ;;  %v17580_v14 = vld [vmem:[#allocation9 + $0x7a4] ss:$16 sps:$4 sm:$0xff]  }
 0x7f0   :  { %7542 = vmatprep.subr.bf16.mxu1 %v17448_v16  ;;  %8396 = vmatpush1.bf16.msra.mxu0 %v17491_v26  ;;  %v17584_v16 = vld [vmem:[#allocation9 + $0x780] ss:$16 sps:$4 sm:$0xff]  }
 0x7f1   :  { %8397 = vmatprep.subr.bf16.mxu0 %v17496_v24  ;;  %v17608_v26 = vld [vmem:[#allocation9 + $0x700] ss:$16 sps:$4 sm:$0xff]   ;;  %v17616_v24 = vld [vmem:[#allocation9 + $0x6ec] ss:$16 sps:$4 sm:$0xff]  }
 0x7f3   :  { %7543 = vmatpush2.bf16.msra.mxu1 %v17446_v17  ;;  %v17592_v17 = vld [vmem:[#allocation9 + $0x764] ss:$16 sps:$4 sm:$0xff]  }
 0x7f4   :  { %7544 = vmatprep.subr.bf16.mxu1 %v17451_v20  ;;  %8398 = vmatpush2.bf16.msra.mxu0 %v17494_v12  ;;  %v17598_v20 = vld [vmem:[#allocation9 + $0x744] ss:$16 sps:$4 sm:$0xff]   ;;  %v19286_v12 = vld [vmem:[#allocation10] sm:$0xf] }
 0x7f5   :  { %8399 = vmatprep.subr.bf16.mxu0 %v17499_v28  ;;  %v6744_v28 = vrot.slane %v19286_v12, %v19083_v43 }
 0x7f7   :  { %7545 = vmatpush2.bf16.msra.mxu1 %v17449_v23  ;;  %v17602_v23 = vld [vmem:[#allocation9 + $0x720] ss:$16 sps:$4 sm:$0xff]  }
 0x7f8   :  { %7546 = vmatprep.subr.bf16.mxu1 %v17454_v25  ;;  %8400 = vmatpush2.bf16.msra.mxu0 %v17497_v15  ;;  %v17610_v25 = vld [vmem:[#allocation9 + $0x704] ss:$16 sps:$4 sm:$0xff]  }
 0x7f9   :  { %8401 = vmatprep.subr.bf16.mxu0 %v17502_v30 }
 0x7fb   :  { %7547 = vmatpush2.bf16.msra.mxu1 %v17452_v27 }
 0x7fc   :  { %7548 = vmatprep.subr.bf16.mxu1 %v17457_v19  ;;  %8402 = vmatpush2.bf16.msra.mxu0 %v17500_v33 }
 0x7fd   :  { %8403 = vmatprep.subr.bf16.mxu0 %v17505_v36 }
 0x7ff   :  { %7549 = vmatpush2.bf16.msra.mxu1 %v17455_v22  ;;  %v6740_v22 = vrot.slane %v19286_v12, %v19079_v41 }
 0x800   :  { %7550 = vmatprep.subr.bf16.mxu1 %v17460_v29  ;;  %8404 = vmatpush2.bf16.msra.mxu0 %v17503_v38 }
 0x801   :  { %8405 = vmatprep.subr.bf16.mxu0 %v17508_v35 }
 0x803   :  { %7551 = vmatpush2.bf16.msra.mxu1 %v17458_v31 }
 0x804   :  { %7552 = vmatprep.subr.bf16.mxu1 %v17463_v32  ;;  %8406 = vmatpush2.bf16.msra.mxu0 %v17506_v40 }
 0x805   :  { %8407 = vmatprep.subr.bf16.mxu0 %v17511_v47 }
 0x807   :  { %7553 = vmatpush2.bf16.msra.mxu1 %v17461_v37 }
 0x808   :  { %7554 = vmatprep.subr.bf16.mxu1 %v17466_v39  ;;  %8408 = vmatpush2.bf16.msra.mxu0 %v17509_v48 }
 0x809   :  { %8409 = vmatprep.subr.bf16.mxu0 %v17514_v49 }
 0x80b   :  { %7555 = vmatpush2.bf16.msra.mxu1 %v17464_v13 }
 0x80c   :  { %7556 = vmatprep.subr.bf16.mxu1 %v17469_v45  ;;  %8410 = vmatpush2.bf16.msra.mxu0 %v17512_v34 }
 0x80d   :  { %8411 = vmatprep.subr.bf16.mxu0 %v17517_v50 }
 0x80f   :  { %7557 = vmatpush2.bf16.msra.mxu1 %v17467_v0 }
 0x810   :  { %8412 = vmatpush2.bf16.msra.mxu0 %v17515_v51  ;;  %8424 = vmatprep.subr.bf16.mxu1 %v17520_v52 }
 0x811   :  { %8467 = vmatprep.subr.bf16.mxu0 %v17523_v54  ;;  %v17521_v54 = vld [vmem:[#allocation9 + $0x4e8] ss:$16 sps:$4 sm:$0xff]  }
 0x812   :  { %7559 = vmatmul.mubr.bf16.vlgmr.msra.gmra.mxu1 %v19281_v46  ;;  %v17526_v46 = vld [vmem:[#allocation9 + $0x6c4] ss:$16 sps:$4 sm:$0xff]  }
 0x813   :  { %8425 = vmatpush1.bf16.msra.mxu1 %v17518_v53 }
 0x814   :  { %8426 = vmatprep.subr.bf16.mxu1 %v17526_v46  ;;  %v17529_v46 = vld [vmem:[#allocation9 + $0x4cc] ss:$16 sps:$4 sm:$0xff]  }
 0x817   :  { %8427 = vmatpush1.bf16.msra.mxu1 %v17524_v56 }
 0x818   :  { %8428 = vmatprep.subr.bf16.mxu1 %v17532_v59  ;;  %v17535_v59 = vld [vmem:[#allocation9 + $0x4ac] ss:$16 sps:$4 sm:$0xff]  }
 0x81b   :  { %8429 = vmatpush1.bf16.msra.mxu1 %v17530_v57  ;;  %v17527_v57 = vld [vmem:[#allocation9 + $0x4c8] ss:$16 sps:$4 sm:$0xff]  }
 0x81c   :  { %8430 = vmatprep.subr.bf16.mxu1 %v17538_v61  ;;  %v17541_v61 = vld [vmem:[#allocation9 + $0x48c] ss:$16 sps:$4 sm:$0xff]  }
 0x81f   :  { %8431 = vmatpush1.bf16.msra.mxu1 %v17536_v60  ;;  %v17533_v60 = vld [vmem:[#allocation9 + $0x4a8] ss:$16 sps:$4 sm:$0xff]  }
 0x820   :  { %8432 = vmatprep.subr.bf16.mxu1 %v17544_v62  ;;  %v17547_v62 = vld [vmem:[#allocation9 + $0x46c] ss:$16 sps:$4 sm:$0xff]  }
 0x823   :  { %8433 = vmatpush1.bf16.msra.mxu1 %v17542_v58  ;;  %v17539_v58 = vld [vmem:[#allocation9 + $0x488] ss:$16 sps:$4 sm:$0xff]  }
 0x824   :  { %8434 = vmatprep.subr.bf16.mxu1 %v17550_v3  ;;  %v17553_v3 = vld [vmem:[#allocation9 + $0x44c] ss:$16 sps:$4 sm:$0xff]  }
 0x827   :  { %8435 = vmatpush1.bf16.msra.mxu1 %v17548_v2  ;;  %v17545_v2 = vld [vmem:[#allocation9 + $0x468] ss:$16 sps:$4 sm:$0xff]  }
 0x828   :  { %8436 = vmatprep.subr.bf16.mxu1 %v17556_v4  ;;  %v17559_v4 = vld [vmem:[#allocation9 + $0x42c] ss:$16 sps:$4 sm:$0xff]  }
 0x82b   :  { %8437 = vmatpush1.bf16.msra.mxu1 %v17554_v55  ;;  %v17551_v55 = vld [vmem:[#allocation9 + $0x448] ss:$16 sps:$4 sm:$0xff]  }
 0x82c   :  { %8438 = vmatprep.subr.bf16.mxu1 %v17562_v7  ;;  %v17565_v7 = vld [vmem:[#allocation9 + $0x40c] ss:$16 sps:$4 sm:$0xff]  }
 0x82f   :  { %8439 = vmatpush1.bf16.msra.mxu1 %v17560_v6  ;;  %v17557_v6 = vld [vmem:[#allocation9 + $0x428] ss:$16 sps:$4 sm:$0xff]  }
 0x830   :  { %8440 = vmatprep.subr.bf16.mxu1 %v17568_v1  ;;  %v17571_v1 = vld [vmem:[#allocation9 + $0x5ec] ss:$16 sps:$4 sm:$0xff]  }
 0x833   :  { %8441 = vmatpush2.bf16.msra.mxu1 %v17566_v8  ;;  %v17563_v8 = vld [vmem:[#allocation9 + $0x408] ss:$16 sps:$4 sm:$0xff]  }
 0x834   :  { %8442 = vmatprep.subr.bf16.mxu1 %v17574_v10  ;;  %v17577_v10 = vld [vmem:[#allocation9 + $0x5cc] ss:$16 sps:$4 sm:$0xff]  }
 0x837   :  { %8443 = vmatpush2.bf16.msra.mxu1 %v17572_v9  ;;  %v17569_v9 = vld [vmem:[#allocation9 + $0x5e8] ss:$16 sps:$4 sm:$0xff]  }
 0x838   :  { %8444 = vmatprep.subr.bf16.mxu1 %v17580_v14  ;;  %v17583_v14 = vld [vmem:[#allocation9 + $0x5ac] ss:$16 sps:$4 sm:$0xff]  }
 0x83b   :  { %8445 = vmatpush2.bf16.msra.mxu1 %v17578_v11  ;;  %v17575_v11 = vld [vmem:[#allocation9 + $0x5c8] ss:$16 sps:$4 sm:$0xff]  }
 0x83c   :  { %8446 = vmatprep.subr.bf16.mxu1 %v17586_v5 }
 0x83f   :  { %8447 = vmatpush2.bf16.msra.mxu1 %v17584_v16  ;;  %v17581_v16 = vld [vmem:[#allocation9 + $0x5a8] ss:$16 sps:$4 sm:$0xff]  }
 0x840   :  { %8448 = vmatprep.subr.bf16.mxu1 %v17592_v17  ;;  %v17587_v17 = vld [vmem:[#allocation9 + $0x588] ss:$16 sps:$4 sm:$0xff]  }
 0x843   :  { %8449 = vmatpush2.bf16.msra.mxu1 %v17590_v63  ;;  %v17589_v63 = vld [vmem:[#allocation9 + $0x58c] ss:$16 sps:$4 sm:$0xff]  }
 0x844   :  { %8450 = vmatprep.subr.bf16.mxu1 %v17598_v20 }
 0x847   :  { %8451 = vmatpush2.bf16.msra.mxu1 %v17596_v21  ;;  %v17595_v21 = vld [vmem:[#allocation9 + $0x56c] ss:$16 sps:$4 sm:$0xff]  }
 0x848   :  { %8452 = vmatprep.subr.bf16.mxu1 %v17604_v18  ;;  %v6752_v18 = vrot.slane %v19286_v12, %v19085_v44 }
 0x84b   :  { %8453 = vmatpush2.bf16.msra.mxu1 %v17602_v23  ;;  %v17593_v23 = vld [vmem:[#allocation9 + $0x568] ss:$16 sps:$4 sm:$0xff]  }
 0x84c   :  { %8454 = vmatprep.subr.bf16.mxu1 %v17610_v25  ;;  %v6748_v25 = vrot.slane %v19286_v12, %v19081_v42  ;;  %v17605_v12 = vld [vmem:[#allocation9 + $0x528] ss:$16 sps:$4 sm:$0xff]  }
 0x84f   :  { %8455 = vmatpush2.bf16.msra.mxu1 %v17608_v26 }
 0x850   :  { %8510 = vmatprep.subr.bf16.mxu1 %v17616_v24  ;;  %v17601_v24 = vld [vmem:[#allocation9 + $0x54c] ss:$16 sps:$4 sm:$0xff]  }
 0x852   :  { %v7431_v27 = vpop.f32.mrf.mxu0 }
 0x853   :  { %v7432_v31 = vadd.f32 %v7431_v27, %v6740_v22 }
 0x854   :  { %v7433_v19 = vpop.f32.mrf.mxu0 }
 0x855   :  { %v7434_v30 = vadd.f32 %v7433_v19, %v6744_v28 }
 0x856   :  { %v7435_v29 = vpop.f32.mrf.mxu0 }
 0x857   :  { %v7436_v36 = vadd.f32 %v7435_v29, %v6740_v22 }
 0x858   :  { %v7437_v32 = vpop.f32.mrf.mxu0 }
 0x859   :  { %v7438_v35 = vadd.f32 %v7437_v32, %v6744_v28  ;;  %v17599_v28 = vld [vmem:[#allocation9 + $0x548] ss:$16 sps:$4 sm:$0xff]  }
 0x892   :  { %v7474_v15 = vpop.f32.mrf.mxu1  ;;  %v7517_v5 = vpop.f32.mrf.mxu0 }
 0x893   :  { %v7475_v39 = vadd.f32 %v7474_v15, %v7432_v31  ;;  %v7518_v22 = vadd.f32 %v7517_v5, %v6748_v25  ;;  %v17637_v5 = vld [vmem:[#allocation9 + $0x60c] ss:$16 sps:$4 sm:$0xff]  }
 0x894   :  { %v7476_v33 = vpop.f32.mrf.mxu1  ;;  %v7519_v20 = vpop.f32.mrf.mxu0 }
 0x895   :  { %v7477_v37 = vadd.f32 %v7476_v33, %v7434_v30  ;;  %v7569_v48 = vmul.f32 0.01, %v7475_v39  ;;  %v7520_v19 = vadd.f32 %v7519_v20, %v6752_v18  ;;  %v17607_v30 = vld [vmem:[#allocation9 + $0x52c] ss:$16 sps:$4 sm:$0xff]   ;;  %v17635_v20 = vld [vmem:[#allocation9 + $0x608] ss:$16 sps:$4 sm:$0xff]  }
 0x896   :  { %v7478_v38 = vpop.f32.mrf.mxu1  ;;  %v7521_v26 = vpop.f32.mrf.mxu0 }
 0x897   :  { %v7479_v13 = vadd.f32 %v7478_v38, %v7436_v36  ;;  %v7570_v40 = vmul.f32 0.01, %v7477_v37  ;;  %v7577_v53 = vmax.f32 %v7475_v39, %v7569_v48  ;;  %v7522_v31 = vadd.f32 %v7521_v26, %v6748_v25  ;;  %v17611_v48 = vld [vmem:[#allocation9 + $0x508] ss:$16 sps:$4 sm:$0xff]   ;;  %v17643_v26 = vld [vmem:[#allocation9 + $0x7cc] ss:$16 sps:$4 sm:$0xff]  }
 0x898   :  { %v7480_v45 = vpop.f32.mrf.mxu1  ;;  %v7523_v29 = vpop.f32.mrf.mxu0  ;;  %v17638_v25 = vld [vmem:[#allocation9 + $0x7e8] ss:$16 sps:$4 sm:$0xff]  }
 0x899   :  { %v7573_v0 = vmul.f32 0.01, %v7479_v13  ;;  %v7481_v47 = vadd.f32 %v7480_v45, %v7438_v35  ;;  %v7578_v50 = vmax.f32 %v7477_v37, %v7570_v40  ;;  %v7524_v37 = vadd.f32 %v7523_v29, %v6752_v18  ;;  %v17613_v35 = vld [vmem:[#allocation9 + $0x50c] ss:$16 sps:$4 sm:$0xff]   ;;  %v17677_v18 = vld [vmem:[#allocation9 + $0x840] ss:$16 sps:$4 sm:$0xff]  }
 0x89a   :  { %v17688_v29 = vld [vmem:[#allocation9 + $0x9e4] ss:$16 sps:$4 sm:$0xff]  }
 0x89b   :  { %v7574_v49 = vmul.f32 0.01, %v7481_v47  ;;  %v7581_v34 = vmax.f32 %v7479_v13, %v7573_v0 }
 0x89d   :  { %v7582_v51 = vmax.f32 %v7481_v47, %v7574_v49  ;;  %v19292_v56 = vpack.c.bf16 %v7581_v34, %v7577_v53 }
 0x89f   :  { %v7715_v52 = vpack.c.bf16 %v7582_v51, %v7578_v50 }
 0x8a1   :  { %8413 = vmatprep.mubr.bf16.mxu0 %v7715_v52 }
 0x8a2   :  { %8414 = vmatmul.mubr.bf16.vlgmr.msra.gmra.mxu0 %v19292_v56 }
 0x8a3   :  { %8468 = vmatpush1.bf16.msra.mxu0 %v17521_v54  ;;  %8499 = vmatprep.mubr.bf16.mxu0 %v7715_v52  ;;  %v17614_v52 = vld [vmem:[#allocation9 + $0x6e8] ss:$16 sps:$4 sm:$0xff]  }
 0x8a4   :  { %8469 = vmatprep.subr.bf16.mxu0 %v17529_v46  ;;  %v17619_v46 = vld [vmem:[#allocation9 + $0x6cc] ss:$16 sps:$4 sm:$0xff]  }
 0x8a7   :  { %8470 = vmatpush1.bf16.msra.mxu0 %v17527_v57  ;;  %v17617_v57 = vld [vmem:[#allocation9 + $0x6c8] ss:$16 sps:$4 sm:$0xff]  }
 0x8a8   :  { %8471 = vmatprep.subr.bf16.mxu0 %v17535_v59  ;;  %v17622_v59 = vld [vmem:[#allocation9 + $0x6ac] ss:$16 sps:$4 sm:$0xff]  }
 0x8ab   :  { %8472 = vmatpush1.bf16.msra.mxu0 %v17533_v60  ;;  %v17620_v60 = vld [vmem:[#allocation9 + $0x6a8] ss:$16 sps:$4 sm:$0xff]  }
 0x8ac   :  { %8473 = vmatprep.subr.bf16.mxu0 %v17541_v61  ;;  %v17625_v61 = vld [vmem:[#allocation9 + $0x68c] ss:$16 sps:$4 sm:$0xff]  }
 0x8af   :  { %8474 = vmatpush1.bf16.msra.mxu0 %v17539_v58  ;;  %v17662_v58 = vld [vmem:[#allocation9 + $0x8e0] ss:$16 sps:$4 sm:$0xff]  }
 0x8b0   :  { %8475 = vmatprep.subr.bf16.mxu0 %v17547_v62  ;;  %v17664_v62 = vld [vmem:[#allocation9 + $0x8e4] ss:$16 sps:$4 sm:$0xff]  }
 0x8b3   :  { %8476 = vmatpush1.bf16.msra.mxu0 %v17545_v2  ;;  %v17667_v2 = vld [vmem:[#allocation9 + $0x8c4] ss:$16 sps:$4 sm:$0xff]  }
 0x8b4   :  { %8477 = vmatprep.subr.bf16.mxu0 %v17553_v3  ;;  %v17623_v3 = vld [vmem:[#allocation9 + $0x688] ss:$16 sps:$4 sm:$0xff]  }
 0x8b7   :  { %8478 = vmatpush1.bf16.msra.mxu0 %v17551_v55  ;;  %v17628_v55 = vld [vmem:[#allocation9 + $0x66c] ss:$16 sps:$4 sm:$0xff]  }
 0x8b8   :  { %8479 = vmatprep.subr.bf16.mxu0 %v17559_v4  ;;  %v17665_v4 = vld [vmem:[#allocation9 + $0x8c0] ss:$16 sps:$4 sm:$0xff]  }
 0x8bb   :  { %8480 = vmatpush1.bf16.msra.mxu0 %v17557_v6  ;;  %v17626_v6 = vld [vmem:[#allocation9 + $0x668] ss:$16 sps:$4 sm:$0xff]  }
 0x8bc   :  { %8481 = vmatprep.subr.bf16.mxu0 %v17565_v7  ;;  %v17631_v7 = vld [vmem:[#allocation9 + $0x64c] ss:$16 sps:$4 sm:$0xff]  }
 0x8bf   :  { %8482 = vmatpush1.bf16.msra.mxu0 %v17563_v8  ;;  %v17668_v8 = vld [vmem:[#allocation9 + $0x8a0] ss:$16 sps:$4 sm:$0xff]  }
 0x8c0   :  { %8483 = vmatprep.subr.bf16.mxu0 %v17571_v1  ;;  %v17673_v1 = vld [vmem:[#allocation9 + $0x884] ss:$16 sps:$4 sm:$0xff]  }
 0x8c3   :  { %8484 = vmatpush2.bf16.msra.mxu0 %v17569_v9  ;;  %v17629_v9 = vld [vmem:[#allocation9 + $0x648] ss:$16 sps:$4 sm:$0xff]  }
 0x8c4   :  { %8485 = vmatprep.subr.bf16.mxu0 %v17577_v10  ;;  %v17634_v10 = vld [vmem:[#allocation9 + $0x62c] ss:$16 sps:$4 sm:$0xff]  }
 0x8c7   :  { %8486 = vmatpush2.bf16.msra.mxu0 %v17575_v11  ;;  %v17671_v11 = vld [vmem:[#allocation9 + $0x880] ss:$16 sps:$4 sm:$0xff]  }
 0x8c8   :  { %8487 = vmatprep.subr.bf16.mxu0 %v17583_v14  ;;  %v17676_v14 = vld [vmem:[#allocation9 + $0x864] ss:$16 sps:$4 sm:$0xff]  }
 0x8cb   :  { %8488 = vmatpush2.bf16.msra.mxu0 %v17581_v16  ;;  %v17632_v16 = vld [vmem:[#allocation9 + $0x628] ss:$16 sps:$4 sm:$0xff]  }
 0x8cc   :  { %8489 = vmatprep.subr.bf16.mxu0 %v17589_v63  ;;  %v17674_v63 = vld [vmem:[#allocation9 + $0x860] ss:$16 sps:$4 sm:$0xff]  }
 0x8cf   :  { %8490 = vmatpush2.bf16.msra.mxu0 %v17587_v17  ;;  %v17679_v17 = vld [vmem:[#allocation9 + $0x844] ss:$16 sps:$4 sm:$0xff]  }
 0x8d0   :  { %8491 = vmatprep.subr.bf16.mxu0 %v17595_v21  ;;  %v17640_v21 = vld [vmem:[#allocation9 + $0x7ec] ss:$16 sps:$4 sm:$0xff]  }
 0x8d2   :  { %v7560_v27 = vpop.f32.mrf.mxu1 }
 0x8d3   :  { %8492 = vmatpush2.bf16.msra.mxu0 %v17593_v23  ;;  %v7561_v33 = vadd.f32 %v7560_v27, %v7518_v22  ;;  %v17682_v23 = vld [vmem:[#allocation9 + $0x824] ss:$16 sps:$4 sm:$0xff]   ;;  %v17683_v22 = vld [vmem:[#allocation9 + $0x800] ss:$16 sps:$4 sm:$0xff]  }
 0x8d4   :  { %v7562_v15 = vpop.f32.mrf.mxu1  ;;  %8493 = vmatprep.subr.bf16.mxu0 %v17601_v24  ;;  %v17680_v24 = vld [vmem:[#allocation9 + $0x820] ss:$16 sps:$4 sm:$0xff]   ;;  %v17685_v27 = vld [vmem:[#allocation9 + $0x804] ss:$16 sps:$4 sm:$0xff]  }
 0x8d5   :  { %v7563_v32 = vadd.f32 %v7562_v15, %v7520_v19  ;;  %v7571_v0 = vmul.f32 0.01, %v7561_v33  ;;  %v17641_v19 = vld [vmem:[#allocation9 + $0x7c8] ss:$16 sps:$4 sm:$0xff]  }
 0x8d6   :  { %v7564_v36 = vpop.f32.mrf.mxu1  ;;  %v17644_v15 = vld [vmem:[#allocation9 + $0x7a8] ss:$16 sps:$4 sm:$0xff]  }
 0x8d7   :  { %v7565_v39 = vadd.f32 %v7564_v36, %v7522_v31  ;;  %8494 = vmatpush2.bf16.msra.mxu0 %v17599_v28  ;;  %v7572_v13 = vmul.f32 0.01, %v7563_v32  ;;  %v7579_v51 = vmax.f32 %v7561_v33, %v7571_v0  ;;  %v17646_v28 = vld [vmem:[#allocation9 + $0x7ac] ss:$16 sps:$4 sm:$0xff]   ;;  %v17686_v31 = vld [vmem:[#allocation9 + $0x9e0] ss:$16 sps:$4 sm:$0xff]  }
 0x8d8   :  { %v7566_v38 = vpop.f32.mrf.mxu1  ;;  %8495 = vmatprep.subr.bf16.mxu0 %v17607_v30  ;;  %v17649_v30 = vld [vmem:[#allocation9 + $0x78c] ss:$16 sps:$4 sm:$0xff]   ;;  %v17647_v33 = vld [vmem:[#allocation9 + $0x788] ss:$16 sps:$4 sm:$0xff]   ;;  %v17695_v0 = vld [vmem:[#allocation9 + $0x980] ss:$16 sps:$4 sm:$0xff]  }
 0x8d9   :  { %v7575_v45 = vmul.f32 0.01, %v7565_v39  ;;  %v7567_v40 = vadd.f32 %v7566_v38, %v7524_v37  ;;  %v7580_v34 = vmax.f32 %v7563_v32, %v7572_v13  ;;  %v17691_v32 = vld [vmem:[#allocation9 + $0x9c4] ss:$16 sps:$4 sm:$0xff]   ;;  %v17652_v36 = vld [vmem:[#allocation9 + $0x76c] ss:$16 sps:$4 sm:$0xff]  }
 0x8da   :  { %v17689_v37 = vld [vmem:[#allocation9 + $0x9c0] ss:$16 sps:$4 sm:$0xff]   ;;  %v17655_v38 = vld [vmem:[#allocation9 + $0x74c] ss:$16 sps:$4 sm:$0xff]   ;;  %v17697_v13 = vld [vmem:[#allocation9 + $0x984] ss:$16 sps:$4 sm:$0xff]  }
 0x8db   :  { %v7576_v47 = vmul.f32 0.01, %v7567_v40  ;;  %8496 = vmatpush2.bf16.msra.mxu0 %v17605_v12  ;;  %v7583_v49 = vmax.f32 %v7565_v39, %v7575_v45  ;;  %v17694_v39 = vld [vmem:[#allocation9 + $0x9a4] ss:$16 sps:$4 sm:$0xff]   ;;  %v17650_v12 = vld [vmem:[#allocation9 + $0x768] ss:$16 sps:$4 sm:$0xff]  }
 0x8dc   :  { %8497 = vmatprep.subr.bf16.mxu0 %v17613_v35  ;;  %v17692_v35 = vld [vmem:[#allocation9 + $0x9a0] ss:$16 sps:$4 sm:$0xff]   ;;  %v17653_v45 = vld [vmem:[#allocation9 + $0x748] ss:$16 sps:$4 sm:$0xff]  }
 0x8dd   :  { %v7584_v50 = vmax.f32 %v7567_v40, %v7576_v47  ;;  %v19299_v54 = vpack.c.bf16 %v7583_v49, %v7579_v51  ;;  %v17658_v40 = vld [vmem:[#allocation9 + $0x72c] ss:$16 sps:$4 sm:$0xff]   ;;  %v17700_v47 = vld [vmem:[#allocation9 + $0x964] ss:$16 sps:$4 sm:$0xff]  }
 0x8de   :  { %v17661_v49 = vld [vmem:[#allocation9 + $0x70c] ss:$16 sps:$4 sm:$0xff]   ;;  %v17703_v51 = vld [vmem:[#allocation9 + $0x944] ss:$16 sps:$4 sm:$0xff]  }
 0x8df   :  { %8498 = vmatpush2.bf16.msra.mxu0 %v17611_v48  ;;  %v7717_v53 = vpack.c.bf16 %v7584_v50, %v7580_v34  ;;  %v17656_v48 = vld [vmem:[#allocation9 + $0x728] ss:$16 sps:$4 sm:$0xff]   ;;  %v17698_v34 = vld [vmem:[#allocation9 + $0x960] ss:$16 sps:$4 sm:$0xff]  }
 0x8e0   :  { %9365 = vmatprep.subr.bf16.mxu0 %v17664_v62  ;;  %v17659_v50 = vld [vmem:[#allocation9 + $0x708] ss:$16 sps:$4 sm:$0xff]   ;;  %v17716_v62 = vld [vmem:[#allocation9 + $0xac0] ss:$16 sps:$4 sm:$0xff]  }
 0x8e1   :  { %8456 = vmatprep.mubr.bf16.mxu1 %v7717_v53 }
 0x8e2   :  { %8457 = vmatmul.mubr.bf16.vlgmr.msra.gmra.mxu1 %v19299_v54  ;;  %8500 = vmatmul.mubr.bf16.vlgmr.msra.gmra.mxu0 %v19292_v56  ;;  %v17670_v56 = vld [vmem:[#allocation9 + $0x8a4] ss:$16 sps:$4 sm:$0xff]  }
 0x8e3   :  { %8511 = vmatpush1.bf16.msra.mxu1 %v17614_v52  ;;  %8542 = vmatprep.mubr.bf16.mxu1 %v7717_v53  ;;  %v17701_v53 = vld [vmem:[#allocation9 + $0x940] ss:$16 sps:$4 sm:$0xff]   ;;  %v17706_v52 = vld [vmem:[#allocation9 + $0x924] ss:$16 sps:$4 sm:$0xff]  }
 0x8e4   :  { %8512 = vmatprep.subr.bf16.mxu1 %v17619_v46  ;;  %9366 = vmatpush1.bf16.msra.mxu0 %v17662_v58  ;;  %v17704_v46 = vld [vmem:[#allocation9 + $0x920] ss:$16 sps:$4 sm:$0xff]   ;;  %v17715_v58 = vld [vmem:[#allocation9 + $0x8ec] ss:$16 sps:$4 sm:$0xff]  }
 0x8e5   :  { %9367 = vmatprep.subr.bf16.mxu0 %v17667_v2  ;;  %v17722_v2 = vld [vmem:[#allocation9 + $0xaa0] ss:$16 sps:$4 sm:$0xff]  }
 0x8e7   :  { %8513 = vmatpush1.bf16.msra.mxu1 %v17617_v57  ;;  %v17709_v57 = vld [vmem:[#allocation9 + $0x904] ss:$16 sps:$4 sm:$0xff]  }
 0x8e8   :  { %8514 = vmatprep.subr.bf16.mxu1 %v17622_v59  ;;  %9368 = vmatpush1.bf16.msra.mxu0 %v17665_v4  ;;  %v17707_v59 = vld [vmem:[#allocation9 + $0x900] ss:$16 sps:$4 sm:$0xff]   ;;  %v17730_v4 = vld [vmem:[#allocation9 + $0xa84] ss:$16 sps:$4 sm:$0xff]  }
 0x8e9   :  { %9369 = vmatprep.subr.bf16.mxu0 %v17670_v56  ;;  %v17734_v56 = vld [vmem:[#allocation9 + $0xa60] ss:$16 sps:$4 sm:$0xff]  }
 0x8eb   :  { %8515 = vmatpush1.bf16.msra.mxu1 %v17620_v60  ;;  %v17710_v60 = vld [vmem:[#allocation9 + $0xae0] ss:$16 sps:$4 sm:$0xff]  }
 0x8ec   :  { %8516 = vmatprep.subr.bf16.mxu1 %v17625_v61  ;;  %9370 = vmatpush1.bf16.msra.mxu0 %v17668_v8  ;;  %v17712_v61 = vld [vmem:[#allocation9 + $0xae4] ss:$16 sps:$4 sm:$0xff]  }
 0x8ed   :  { %9371 = vmatprep.subr.bf16.mxu0 %v17673_v1  ;;  %v17742_v8 = vld [vmem:[#allocation9 + $0xa44] ss:$16 sps:$4 sm:$0xff]   ;;  %v17746_v1 = vld [vmem:[#allocation9 + $0xa20] ss:$16 sps:$4 sm:$0xff]  }
 0x8ef   :  { %8517 = vmatpush1.bf16.msra.mxu1 %v17623_v3  ;;  %v17724_v3 = vld [vmem:[#allocation9 + $0xaa4] ss:$16 sps:$4 sm:$0xff]  }
 0x8f0   :  { %8518 = vmatprep.subr.bf16.mxu1 %v17628_v55  ;;  %9372 = vmatpush1.bf16.msra.mxu0 %v17671_v11  ;;  %v17728_v55 = vld [vmem:[#allocation9 + $0xa80] ss:$16 sps:$4 sm:$0xff]   ;;  %v17754_v11 = vld [vmem:[#allocation9 + $0xa04] ss:$16 sps:$4 sm:$0xff]  }
 0x8f1   :  { %9373 = vmatprep.subr.bf16.mxu0 %v17676_v14  ;;  %v17758_v14 = vld [vmem:[#allocation9 + $0xbe0] ss:$16 sps:$4 sm:$0xff]  }
 0x8f3   :  { %8519 = vmatpush1.bf16.msra.mxu1 %v17626_v6  ;;  %v17736_v6 = vld [vmem:[#allocation9 + $0xa64] ss:$16 sps:$4 sm:$0xff]  }
 0x8f4   :  { %8520 = vmatprep.subr.bf16.mxu1 %v17631_v7  ;;  %9374 = vmatpush1.bf16.msra.mxu0 %v17674_v63  ;;  %v17740_v7 = vld [vmem:[#allocation9 + $0xa40] ss:$16 sps:$4 sm:$0xff]   ;;  %v17766_v63 = vld [vmem:[#allocation9 + $0xbc4] ss:$16 sps:$4 sm:$0xff]  }
 0x8f5   :  { %9375 = vmatprep.subr.bf16.mxu0 %v17679_v17  ;;  %v17770_v17 = vld [vmem:[#allocation9 + $0xba0] ss:$16 sps:$4 sm:$0xff]  }
 0x8f7   :  { %8521 = vmatpush1.bf16.msra.mxu1 %v17629_v9  ;;  %v17748_v9 = vld [vmem:[#allocation9 + $0xa24] ss:$16 sps:$4 sm:$0xff]  }
 0x8f8   :  { %8522 = vmatprep.subr.bf16.mxu1 %v17634_v10  ;;  %9376 = vmatpush1.bf16.msra.mxu0 %v17677_v18  ;;  %v17752_v10 = vld [vmem:[#allocation9 + $0xa00] ss:$16 sps:$4 sm:$0xff]   ;;  %v17778_v18 = vld [vmem:[#allocation9 + $0xb84] ss:$16 sps:$4 sm:$0xff]  }
 0x8f9   :  { %9377 = vmatprep.subr.bf16.mxu0 %v17682_v23  ;;  %v17782_v23 = vld [vmem:[#allocation9 + $0xb60] ss:$16 sps:$4 sm:$0xff]  }
 0x8fb   :  { %8523 = vmatpush1.bf16.msra.mxu1 %v17632_v16  ;;  %v17760_v16 = vld [vmem:[#allocation9 + $0xbe4] ss:$16 sps:$4 sm:$0xff]  }
 0x8fc   :  { %8524 = vmatprep.subr.bf16.mxu1 %v17637_v5  ;;  %9378 = vmatpush1.bf16.msra.mxu0 %v17680_v24  ;;  %v17764_v5 = vld [vmem:[#allocation9 + $0xbc0] ss:$16 sps:$4 sm:$0xff]  }
 0x8fd   :  { %9379 = vmatprep.subr.bf16.mxu0 %v17685_v27  ;;  %v17788_v24 = vld [vmem:[#allocation9 + $0xb40] ss:$16 sps:$4 sm:$0xff]   ;;  %v17796_v27 = vld [vmem:[#allocation9 + $0xb24] ss:$16 sps:$4 sm:$0xff]  }
 0x8ff   :  { %8525 = vmatpush1.bf16.msra.mxu1 %v17635_v20  ;;  %v17772_v20 = vld [vmem:[#allocation9 + $0xba4] ss:$16 sps:$4 sm:$0xff]  }
 0x900   :  { %8526 = vmatprep.subr.bf16.mxu1 %v17640_v21  ;;  %9380 = vmatpush1.bf16.msra.mxu0 %v17683_v22  ;;  %v17776_v21 = vld [vmem:[#allocation9 + $0xb80] ss:$16 sps:$4 sm:$0xff]  }
 0x901   :  { %9381 = vmatprep.subr.bf16.mxu0 %v17688_v29  ;;  %v17800_v22 = vld [vmem:[#allocation9 + $0xb00] ss:$16 sps:$4 sm:$0xff]   ;;  %v17808_v29 = vld [vmem:[#allocation9 + $0xaec] ss:$16 sps:$4 sm:$0xff]  }
 0x903   :  { %8527 = vmatpush2.bf16.msra.mxu1 %v17638_v25  ;;  %v17784_v25 = vld [vmem:[#allocation9 + $0xb64] ss:$16 sps:$4 sm:$0xff]  }
 0x904   :  { %8528 = vmatprep.subr.bf16.mxu1 %v17643_v26  ;;  %9382 = vmatpush2.bf16.msra.mxu0 %v17686_v31  ;;  %v17790_v26 = vld [vmem:[#allocation9 + $0xb44] ss:$16 sps:$4 sm:$0xff]  }
 0x905   :  { %9383 = vmatprep.subr.bf16.mxu0 %v17691_v32  ;;  %v19304_v31 = vld [vmem:[#allocation10 + $0x4] sm:$0xf] }
 0x906   :  { %v7728_v32 = vrot.slane %v19304_v31, %v19083_v43 }
 0x907   :  { %8529 = vmatpush2.bf16.msra.mxu1 %v17641_v19  ;;  %v17794_v19 = vld [vmem:[#allocation9 + $0xb20] ss:$16 sps:$4 sm:$0xff]  }
 0x908   :  { %8530 = vmatprep.subr.bf16.mxu1 %v17646_v28  ;;  %9384 = vmatpush2.bf16.msra.mxu0 %v17689_v37  ;;  %v17802_v28 = vld [vmem:[#allocation9 + $0xb04] ss:$16 sps:$4 sm:$0xff]  }
 0x909   :  { %9385 = vmatprep.subr.bf16.mxu0 %v17694_v39 }
 0x90b   :  { %8531 = vmatpush2.bf16.msra.mxu1 %v17644_v15 }
 0x90c   :  { %8532 = vmatprep.subr.bf16.mxu1 %v17649_v30  ;;  %9386 = vmatpush2.bf16.msra.mxu0 %v17692_v35 }
 0x90d   :  { %9387 = vmatprep.subr.bf16.mxu0 %v17697_v13 }
 0x90f   :  { %8533 = vmatpush2.bf16.msra.mxu1 %v17647_v33  ;;  %v7724_v33 = vrot.slane %v19304_v31, %v19079_v41 }
 0x910   :  { %8534 = vmatprep.subr.bf16.mxu1 %v17652_v36  ;;  %9388 = vmatpush2.bf16.msra.mxu0 %v17695_v0 }
 0x911   :  { %9389 = vmatprep.subr.bf16.mxu0 %v17700_v47 }
 0x913   :  { %8535 = vmatpush2.bf16.msra.mxu1 %v17650_v12 }
 0x914   :  { %8536 = vmatprep.subr.bf16.mxu1 %v17655_v38  ;;  %9390 = vmatpush2.bf16.msra.mxu0 %v17698_v34 }
 0x915   :  { %9391 = vmatprep.subr.bf16.mxu0 %v17703_v51 }
 0x917   :  { %8537 = vmatpush2.bf16.msra.mxu1 %v17653_v45 }
 0x918   :  { %8538 = vmatprep.subr.bf16.mxu1 %v17658_v40  ;;  %9392 = vmatpush2.bf16.msra.mxu0 %v17701_v53 }
 0x919   :  { %9393 = vmatprep.subr.bf16.mxu0 %v17706_v52 }
 0x91b   :  { %8539 = vmatpush2.bf16.msra.mxu1 %v17656_v48 }
 0x91c   :  { %8540 = vmatprep.subr.bf16.mxu1 %v17661_v49  ;;  %9394 = vmatpush2.bf16.msra.mxu0 %v17704_v46 }
 0x91d   :  { %9395 = vmatprep.subr.bf16.mxu0 %v17709_v57 }
 0x91f   :  { %8541 = vmatpush2.bf16.msra.mxu1 %v17659_v50 }
 0x920   :  { %9396 = vmatpush2.bf16.msra.mxu0 %v17707_v59  ;;  %9408 = vmatprep.subr.bf16.mxu1 %v17712_v61 }
 0x921   :  { %9451 = vmatprep.subr.bf16.mxu0 %v17715_v58  ;;  %v17713_v58 = vld [vmem:[#allocation9 + $0x8e8] ss:$16 sps:$4 sm:$0xff]  }
 0x922   :  { %8543 = vmatmul.mubr.bf16.vlgmr.msra.gmra.mxu1 %v19299_v54  ;;  %v17718_v54 = vld [vmem:[#allocation9 + $0xac4] ss:$16 sps:$4 sm:$0xff]  }
 0x923   :  { %9409 = vmatpush1.bf16.msra.mxu1 %v17710_v60 }
 0x924   :  { %9410 = vmatprep.subr.bf16.mxu1 %v17718_v54  ;;  %v17721_v54 = vld [vmem:[#allocation9 + $0x8cc] ss:$16 sps:$4 sm:$0xff]  }
 0x927   :  { %9411 = vmatpush1.bf16.msra.mxu1 %v17716_v62 }
 0x928   :  { %9412 = vmatprep.subr.bf16.mxu1 %v17724_v3  ;;  %v17727_v3 = vld [vmem:[#allocation9 + $0x8ac] ss:$16 sps:$4 sm:$0xff]  }
 0x92b   :  { %9413 = vmatpush1.bf16.msra.mxu1 %v17722_v2  ;;  %v17719_v2 = vld [vmem:[#allocation9 + $0x8c8] ss:$16 sps:$4 sm:$0xff]  }
 0x92c   :  { %9414 = vmatprep.subr.bf16.mxu1 %v17730_v4  ;;  %v17733_v4 = vld [vmem:[#allocation9 + $0x88c] ss:$16 sps:$4 sm:$0xff]  }
 0x92f   :  { %9415 = vmatpush1.bf16.msra.mxu1 %v17728_v55  ;;  %v17725_v55 = vld [vmem:[#allocation9 + $0x8a8] ss:$16 sps:$4 sm:$0xff]  }
 0x930   :  { %9416 = vmatprep.subr.bf16.mxu1 %v17736_v6  ;;  %v17739_v6 = vld [vmem:[#allocation9 + $0x86c] ss:$16 sps:$4 sm:$0xff]  }
 0x933   :  { %9417 = vmatpush1.bf16.msra.mxu1 %v17734_v56  ;;  %v17731_v56 = vld [vmem:[#allocation9 + $0x888] ss:$16 sps:$4 sm:$0xff]  }
 0x934   :  { %9418 = vmatprep.subr.bf16.mxu1 %v17742_v8  ;;  %v17745_v8 = vld [vmem:[#allocation9 + $0x84c] ss:$16 sps:$4 sm:$0xff]  }
 0x937   :  { %9419 = vmatpush1.bf16.msra.mxu1 %v17740_v7  ;;  %v17737_v7 = vld [vmem:[#allocation9 + $0x868] ss:$16 sps:$4 sm:$0xff]  }
 0x938   :  { %9420 = vmatprep.subr.bf16.mxu1 %v17748_v9  ;;  %v17751_v9 = vld [vmem:[#allocation9 + $0x82c] ss:$16 sps:$4 sm:$0xff]  }
 0x93b   :  { %9421 = vmatpush1.bf16.msra.mxu1 %v17746_v1  ;;  %v17743_v1 = vld [vmem:[#allocation9 + $0x848] ss:$16 sps:$4 sm:$0xff]  }
 0x93c   :  { %9422 = vmatprep.subr.bf16.mxu1 %v17754_v11  ;;  %v17757_v11 = vld [vmem:[#allocation9 + $0x80c] ss:$16 sps:$4 sm:$0xff]  }
 0x93f   :  { %9423 = vmatpush1.bf16.msra.mxu1 %v17752_v10  ;;  %v17749_v10 = vld [vmem:[#allocation9 + $0x828] ss:$16 sps:$4 sm:$0xff]  }
 0x940   :  { %9424 = vmatprep.subr.bf16.mxu1 %v17760_v16  ;;  %v17763_v16 = vld [vmem:[#allocation9 + $0x9ec] ss:$16 sps:$4 sm:$0xff]  }
 0x943   :  { %9425 = vmatpush2.bf16.msra.mxu1 %v17758_v14  ;;  %v17755_v14 = vld [vmem:[#allocation9 + $0x808] ss:$16 sps:$4 sm:$0xff]  }
 0x944   :  { %9426 = vmatprep.subr.bf16.mxu1 %v17766_v63  ;;  %v17769_v63 = vld [vmem:[#allocation9 + $0x9cc] ss:$16 sps:$4 sm:$0xff]  }
 0x947   :  { %9427 = vmatpush2.bf16.msra.mxu1 %v17764_v5  ;;  %v17761_v5 = vld [vmem:[#allocation9 + $0x9e8] ss:$16 sps:$4 sm:$0xff]  }
 0x948   :  { %9428 = vmatprep.subr.bf16.mxu1 %v17772_v20  ;;  %v17775_v20 = vld [vmem:[#allocation9 + $0x9ac] ss:$16 sps:$4 sm:$0xff]  }
 0x94b   :  { %9429 = vmatpush2.bf16.msra.mxu1 %v17770_v17  ;;  %v17767_v17 = vld [vmem:[#allocation9 + $0x9c8] ss:$16 sps:$4 sm:$0xff]  }
 0x94c   :  { %9430 = vmatprep.subr.bf16.mxu1 %v17778_v18 }
 0x94f   :  { %9431 = vmatpush2.bf16.msra.mxu1 %v17776_v21  ;;  %v17773_v21 = vld [vmem:[#allocation9 + $0x9a8] ss:$16 sps:$4 sm:$0xff]  }
 0x950   :  { %9432 = vmatprep.subr.bf16.mxu1 %v17784_v25  ;;  %v17779_v25 = vld [vmem:[#allocation9 + $0x988] ss:$16 sps:$4 sm:$0xff]  }
 0x953   :  { %9433 = vmatpush2.bf16.msra.mxu1 %v17782_v23  ;;  %v17781_v23 = vld [vmem:[#allocation9 + $0x98c] ss:$16 sps:$4 sm:$0xff]  }
 0x954   :  { %9434 = vmatprep.subr.bf16.mxu1 %v17790_v26 }
 0x957   :  { %9435 = vmatpush2.bf16.msra.mxu1 %v17788_v24  ;;  %v17787_v24 = vld [vmem:[#allocation9 + $0x96c] ss:$16 sps:$4 sm:$0xff]  }
 0x958   :  { %9436 = vmatprep.subr.bf16.mxu1 %v17796_v27  ;;  %v7736_v27 = vrot.slane %v19304_v31, %v19085_v44 }
 0x95b   :  { %9437 = vmatpush2.bf16.msra.mxu1 %v17794_v19  ;;  %v17785_v19 = vld [vmem:[#allocation9 + $0x968] ss:$16 sps:$4 sm:$0xff]  }
 0x95c   :  { %9438 = vmatprep.subr.bf16.mxu1 %v17802_v28  ;;  %v7732_v28 = vrot.slane %v19304_v31, %v19081_v42  ;;  %v17797_v31 = vld [vmem:[#allocation9 + $0x928] ss:$16 sps:$4 sm:$0xff]  }
 0x95f   :  { %9439 = vmatpush2.bf16.msra.mxu1 %v17800_v22 }
 0x960   :  { %9494 = vmatprep.subr.bf16.mxu1 %v17808_v29  ;;  %v17793_v29 = vld [vmem:[#allocation9 + $0x94c] ss:$16 sps:$4 sm:$0xff]  }
 0x962   :  { %v8415_v15 = vpop.f32.mrf.mxu0 }
 0x963   :  { %v8416_v12 = vadd.f32 %v8415_v15, %v7724_v33 }
 0x964   :  { %v8417_v30 = vpop.f32.mrf.mxu0 }
 0x965   :  { %v8418_v39 = vadd.f32 %v8417_v30, %v7728_v32 }
 0x966   :  { %v8419_v36 = vpop.f32.mrf.mxu0 }
 0x967   :  { %v8420_v13 = vadd.f32 %v8419_v36, %v7724_v33 }
 0x968   :  { %v8421_v38 = vpop.f32.mrf.mxu0 }
 0x969   :  { %v8422_v47 = vadd.f32 %v8421_v38, %v7728_v32  ;;  %v17791_v32 = vld [vmem:[#allocation9 + $0x948] ss:$16 sps:$4 sm:$0xff]  }
 0x9a2   :  { %v8458_v37 = vpop.f32.mrf.mxu1  ;;  %v8501_v18 = vpop.f32.mrf.mxu0 }
 0x9a3   :  { %v8459_v40 = vadd.f32 %v8458_v37, %v8416_v12  ;;  %v8502_v33 = vadd.f32 %v8501_v18, %v7732_v28  ;;  %v17829_v18 = vld [vmem:[#allocation9 + $0xa0c] ss:$16 sps:$4 sm:$0xff]  }
 0x9a4   :  { %v8460_v35 = vpop.f32.mrf.mxu1  ;;  %v8503_v26 = vpop.f32.mrf.mxu0 }
 0x9a5   :  { %v8461_v45 = vadd.f32 %v8460_v35, %v8418_v39  ;;  %v8553_v53 = vmul.f32 0.01, %v8459_v40  ;;  %v8504_v30 = vadd.f32 %v8503_v26, %v7736_v27  ;;  %v17799_v39 = vld [vmem:[#allocation9 + $0x92c] ss:$16 sps:$4 sm:$0xff]   ;;  %v17827_v26 = vld [vmem:[#allocation9 + $0xa08] ss:$16 sps:$4 sm:$0xff]  }
 0x9a6   :  { %v8462_v0 = vpop.f32.mrf.mxu1  ;;  %v8505_v22 = vpop.f32.mrf.mxu0 }
 0x9a7   :  { %v8463_v48 = vadd.f32 %v8462_v0, %v8420_v13  ;;  %v8554_v34 = vmul.f32 0.01, %v8461_v45  ;;  %v8561_v60 = vmax.f32 %v8459_v40, %v8553_v53  ;;  %v8506_v12 = vadd.f32 %v8505_v22, %v7732_v28  ;;  %v17803_v53 = vld [vmem:[#allocation9 + $0x908] ss:$16 sps:$4 sm:$0xff]   ;;  %v17835_v22 = vld [vmem:[#allocation9 + $0xbcc] ss:$16 sps:$4 sm:$0xff]  }
 0x9a8   :  { %v8464_v49 = vpop.f32.mrf.mxu1  ;;  %v8507_v36 = vpop.f32.mrf.mxu0  ;;  %v17830_v28 = vld [vmem:[#allocation9 + $0xbe8] ss:$16 sps:$4 sm:$0xff]  }
 0x9a9   :  { %v8557_v50 = vmul.f32 0.01, %v8463_v48  ;;  %v8465_v51 = vadd.f32 %v8464_v49, %v8422_v47  ;;  %v8562_v57 = vmax.f32 %v8461_v45, %v8554_v34  ;;  %v8508_v45 = vadd.f32 %v8507_v36, %v7736_v27  ;;  %v17805_v47 = vld [vmem:[#allocation9 + $0x90c] ss:$16 sps:$4 sm:$0xff]   ;;  %v17869_v27 = vld [vmem:[#allocation9 + $0xc40] ss:$16 sps:$4 sm:$0xff]  }
 0x9aa   :  { %v17880_v36 = vld [vmem:[#allocation9 + $0xde4] ss:$16 sps:$4 sm:$0xff]  }
 0x9ab   :  { %v8558_v52 = vmul.f32 0.01, %v8465_v51  ;;  %v8565_v46 = vmax.f32 %v8463_v48, %v8557_v50 }
 0x9ad   :  { %v8566_v59 = vmax.f32 %v8465_v51, %v8558_v52  ;;  %v19310_v62 = vpack.c.bf16 %v8565_v46, %v8561_v60 }
 0x9af   :  { %v8699_v61 = vpack.c.bf16 %v8566_v59, %v8562_v57 }
 0x9b1   :  { %9397 = vmatprep.mubr.bf16.mxu0 %v8699_v61 }
 0x9b2   :  { %9398 = vmatmul.mubr.bf16.vlgmr.msra.gmra.mxu0 %v19310_v62 }
 0x9b3   :  { %9452 = vmatpush1.bf16.msra.mxu0 %v17713_v58  ;;  %9483 = vmatprep.mubr.bf16.mxu0 %v8699_v61  ;;  %v17806_v61 = vld [vmem:[#allocation9 + $0xae8] ss:$16 sps:$4 sm:$0xff]  }
 0x9b4   :  { %9453 = vmatprep.subr.bf16.mxu0 %v17721_v54  ;;  %v17811_v54 = vld [vmem:[#allocation9 + $0xacc] ss:$16 sps:$4 sm:$0xff]  }
 0x9b7   :  { %9454 = vmatpush1.bf16.msra.mxu0 %v17719_v2  ;;  %v17809_v2 = vld [vmem:[#allocation9 + $0xac8] ss:$16 sps:$4 sm:$0xff]  }
 0x9b8   :  { %9455 = vmatprep.subr.bf16.mxu0 %v17727_v3  ;;  %v17814_v3 = vld [vmem:[#allocation9 + $0xaac] ss:$16 sps:$4 sm:$0xff]  }
 0x9bb   :  { %9456 = vmatpush1.bf16.msra.mxu0 %v17725_v55  ;;  %v17812_v55 = vld [vmem:[#allocation9 + $0xaa8] ss:$16 sps:$4 sm:$0xff]  }
 0x9bc   :  { %9457 = vmatprep.subr.bf16.mxu0 %v17733_v4  ;;  %v17817_v4 = vld [vmem:[#allocation9 + $0xa8c] ss:$16 sps:$4 sm:$0xff]  }
 0x9bf   :  { %9458 = vmatpush1.bf16.msra.mxu0 %v17731_v56  ;;  %v17854_v56 = vld [vmem:[#allocation9 + $0xce0] ss:$16 sps:$4 sm:$0xff]  }
 0x9c0   :  { %9459 = vmatprep.subr.bf16.mxu0 %v17739_v6  ;;  %v17856_v6 = vld [vmem:[#allocation9 + $0xce4] ss:$16 sps:$4 sm:$0xff]  }
 0x9c3   :  { %9460 = vmatpush1.bf16.msra.mxu0 %v17737_v7  ;;  %v17859_v7 = vld [vmem:[#allocation9 + $0xcc4] ss:$16 sps:$4 sm:$0xff]  }
 0x9c4   :  { %9461 = vmatprep.subr.bf16.mxu0 %v17745_v8  ;;  %v17815_v8 = vld [vmem:[#allocation9 + $0xa88] ss:$16 sps:$4 sm:$0xff]  }
 0x9c7   :  { %9462 = vmatpush1.bf16.msra.mxu0 %v17743_v1  ;;  %v17820_v1 = vld [vmem:[#allocation9 + $0xa6c] ss:$16 sps:$4 sm:$0xff]  }
 0x9c8   :  { %9463 = vmatprep.subr.bf16.mxu0 %v17751_v9  ;;  %v17857_v9 = vld [vmem:[#allocation9 + $0xcc0] ss:$16 sps:$4 sm:$0xff]  }
 0x9cb   :  { %9464 = vmatpush1.bf16.msra.mxu0 %v17749_v10  ;;  %v17818_v10 = vld [vmem:[#allocation9 + $0xa68] ss:$16 sps:$4 sm:$0xff]  }
 0x9cc   :  { %9465 = vmatprep.subr.bf16.mxu0 %v17757_v11  ;;  %v17823_v11 = vld [vmem:[#allocation9 + $0xa4c] ss:$16 sps:$4 sm:$0xff]  }
 0x9cf   :  { %9466 = vmatpush1.bf16.msra.mxu0 %v17755_v14  ;;  %v17860_v14 = vld [vmem:[#allocation9 + $0xca0] ss:$16 sps:$4 sm:$0xff]  }
 0x9d0   :  { %9467 = vmatprep.subr.bf16.mxu0 %v17763_v16  ;;  %v17865_v16 = vld [vmem:[#allocation9 + $0xc84] ss:$16 sps:$4 sm:$0xff]  }
 0x9d3   :  { %9468 = vmatpush2.bf16.msra.mxu0 %v17761_v5  ;;  %v17821_v5 = vld [vmem:[#allocation9 + $0xa48] ss:$16 sps:$4 sm:$0xff]  }
 0x9d4   :  { %9469 = vmatprep.subr.bf16.mxu0 %v17769_v63  ;;  %v17826_v63 = vld [vmem:[#allocation9 + $0xa2c] ss:$16 sps:$4 sm:$0xff]  }
 0x9d7   :  { %9470 = vmatpush2.bf16.msra.mxu0 %v17767_v17  ;;  %v17863_v17 = vld [vmem:[#allocation9 + $0xc80] ss:$16 sps:$4 sm:$0xff]  }
 0x9d8   :  { %9471 = vmatprep.subr.bf16.mxu0 %v17775_v20  ;;  %v17868_v20 = vld [vmem:[#allocation9 + $0xc64] ss:$16 sps:$4 sm:$0xff]  }
 0x9db   :  { %9472 = vmatpush2.bf16.msra.mxu0 %v17773_v21  ;;  %v17824_v21 = vld [vmem:[#allocation9 + $0xa28] ss:$16 sps:$4 sm:$0xff]  }
 0x9dc   :  { %9473 = vmatprep.subr.bf16.mxu0 %v17781_v23  ;;  %v17866_v23 = vld [vmem:[#allocation9 + $0xc60] ss:$16 sps:$4 sm:$0xff]  }
 0x9df   :  { %9474 = vmatpush2.bf16.msra.mxu0 %v17779_v25  ;;  %v17871_v25 = vld [vmem:[#allocation9 + $0xc44] ss:$16 sps:$4 sm:$0xff]  }
 0x9e0   :  { %9475 = vmatprep.subr.bf16.mxu0 %v17787_v24  ;;  %v17832_v24 = vld [vmem:[#allocation9 + $0xbec] ss:$16 sps:$4 sm:$0xff]  }
 0x9e2   :  { %v8544_v15 = vpop.f32.mrf.mxu1 }
 0x9e3   :  { %9476 = vmatpush2.bf16.msra.mxu0 %v17785_v19  ;;  %v8545_v35 = vadd.f32 %v8544_v15, %v8502_v33  ;;  %v17874_v19 = vld [vmem:[#allocation9 + $0xc24] ss:$16 sps:$4 sm:$0xff]   ;;  %v17875_v33 = vld [vmem:[#allocation9 + $0xc00] ss:$16 sps:$4 sm:$0xff]  }
 0x9e4   :  { %v8546_v37 = vpop.f32.mrf.mxu1  ;;  %9477 = vmatprep.subr.bf16.mxu0 %v17793_v29  ;;  %v17872_v29 = vld [vmem:[#allocation9 + $0xc20] ss:$16 sps:$4 sm:$0xff]   ;;  %v17877_v15 = vld [vmem:[#allocation9 + $0xc04] ss:$16 sps:$4 sm:$0xff]  }
 0x9e5   :  { %v8547_v38 = vadd.f32 %v8546_v37, %v8504_v30  ;;  %v8555_v50 = vmul.f32 0.01, %v8545_v35  ;;  %v17833_v30 = vld [vmem:[#allocation9 + $0xbc8] ss:$16 sps:$4 sm:$0xff]  }
 0x9e6   :  { %v8548_v13 = vpop.f32.mrf.mxu1  ;;  %v17836_v37 = vld [vmem:[#allocation9 + $0xba8] ss:$16 sps:$4 sm:$0xff]  }
 0x9e7   :  { %v8549_v40 = vadd.f32 %v8548_v13, %v8506_v12  ;;  %9478 = vmatpush2.bf16.msra.mxu0 %v17791_v32  ;;  %v8556_v48 = vmul.f32 0.01, %v8547_v38  ;;  %v8563_v59 = vmax.f32 %v8545_v35, %v8555_v50  ;;  %v17838_v32 = vld [vmem:[#allocation9 + $0xbac] ss:$16 sps:$4 sm:$0xff]   ;;  %v17878_v12 = vld [vmem:[#allocation9 + $0xde0] ss:$16 sps:$4 sm:$0xff]  }
 0x9e8   :  { %v8550_v0 = vpop.f32.mrf.mxu1  ;;  %9479 = vmatprep.subr.bf16.mxu0 %v17799_v39  ;;  %v17841_v39 = vld [vmem:[#allocation9 + $0xb8c] ss:$16 sps:$4 sm:$0xff]   ;;  %v17839_v35 = vld [vmem:[#allocation9 + $0xb88] ss:$16 sps:$4 sm:$0xff]   ;;  %v17887_v50 = vld [vmem:[#allocation9 + $0xd80] ss:$16 sps:$4 sm:$0xff]  }
 0x9e9   :  { %v8559_v49 = vmul.f32 0.01, %v8549_v40  ;;  %v8551_v34 = vadd.f32 %v8550_v0, %v8508_v45  ;;  %v8564_v46 = vmax.f32 %v8547_v38, %v8556_v48  ;;  %v17883_v38 = vld [vmem:[#allocation9 + $0xdc4] ss:$16 sps:$4 sm:$0xff]   ;;  %v17844_v13 = vld [vmem:[#allocation9 + $0xb6c] ss:$16 sps:$4 sm:$0xff]  }
 0x9ea   :  { %v17881_v45 = vld [vmem:[#allocation9 + $0xdc0] ss:$16 sps:$4 sm:$0xff]   ;;  %v17847_v0 = vld [vmem:[#allocation9 + $0xb4c] ss:$16 sps:$4 sm:$0xff]   ;;  %v17889_v48 = vld [vmem:[#allocation9 + $0xd84] ss:$16 sps:$4 sm:$0xff]  }
 0x9eb   :  { %v8560_v51 = vmul.f32 0.01, %v8551_v34  ;;  %9480 = vmatpush2.bf16.msra.mxu0 %v17797_v31  ;;  %v8567_v52 = vmax.f32 %v8549_v40, %v8559_v49  ;;  %v17886_v40 = vld [vmem:[#allocation9 + $0xda4] ss:$16 sps:$4 sm:$0xff]   ;;  %v17842_v31 = vld [vmem:[#allocation9 + $0xb68] ss:$16 sps:$4 sm:$0xff]  }
 0x9ec   :  { %9481 = vmatprep.subr.bf16.mxu0 %v17805_v47  ;;  %v17884_v47 = vld [vmem:[#allocation9 + $0xda0] ss:$16 sps:$4 sm:$0xff]   ;;  %v17845_v49 = vld [vmem:[#allocation9 + $0xb48] ss:$16 sps:$4 sm:$0xff]  }
 0x9ed   :  { %v8568_v57 = vmax.f32 %v8551_v34, %v8560_v51  ;;  %v19317_v58 = vpack.c.bf16 %v8567_v52, %v8563_v59  ;;  %v17850_v34 = vld [vmem:[#allocation9 + $0xb2c] ss:$16 sps:$4 sm:$0xff]   ;;  %v17892_v51 = vld [vmem:[#allocation9 + $0xd64] ss:$16 sps:$4 sm:$0xff]  }
 0x9ee   :  { %v17853_v52 = vld [vmem:[#allocation9 + $0xb0c] ss:$16 sps:$4 sm:$0xff]   ;;  %v17895_v59 = vld [vmem:[#allocation9 + $0xd44] ss:$16 sps:$4 sm:$0xff]  }
 0x9ef   :  { %9482 = vmatpush2.bf16.msra.mxu0 %v17803_v53  ;;  %v8701_v60 = vpack.c.bf16 %v8568_v57, %v8564_v46  ;;  %v17848_v53 = vld [vmem:[#allocation9 + $0xb28] ss:$16 sps:$4 sm:$0xff]   ;;  %v17890_v46 = vld [vmem:[#allocation9 + $0xd60] ss:$16 sps:$4 sm:$0xff]  }
 0x9f0   :  { %10349 = vmatprep.subr.bf16.mxu0 %v17856_v6  ;;  %v17851_v57 = vld [vmem:[#allocation9 + $0xb08] ss:$16 sps:$4 sm:$0xff]   ;;  %v17908_v6 = vld [vmem:[#allocation9 + $0xec0] ss:$16 sps:$4 sm:$0xff]  }
 0x9f1   :  { %9440 = vmatprep.mubr.bf16.mxu1 %v8701_v60 }
 0x9f2   :  { %9441 = vmatmul.mubr.bf16.vlgmr.msra.gmra.mxu1 %v19317_v58  ;;  %9484 = vmatmul.mubr.bf16.vlgmr.msra.gmra.mxu0 %v19310_v62  ;;  %v17862_v62 = vld [vmem:[#allocation9 + $0xca4] ss:$16 sps:$4 sm:$0xff]  }
 0x9f3   :  { %9495 = vmatpush1.bf16.msra.mxu1 %v17806_v61  ;;  %9526 = vmatprep.mubr.bf16.mxu1 %v8701_v60  ;;  %v17893_v60 = vld [vmem:[#allocation9 + $0xd40] ss:$16 sps:$4 sm:$0xff]   ;;  %v17898_v61 = vld [vmem:[#allocation9 + $0xd24] ss:$16 sps:$4 sm:$0xff]  }
 0x9f4   :  { %9496 = vmatprep.subr.bf16.mxu1 %v17811_v54  ;;  %10350 = vmatpush1.bf16.msra.mxu0 %v17854_v56  ;;  %v17896_v54 = vld [vmem:[#allocation9 + $0xd20] ss:$16 sps:$4 sm:$0xff]   ;;  %v17907_v56 = vld [vmem:[#allocation9 + $0xcec] ss:$16 sps:$4 sm:$0xff]  }
 0x9f5   :  { %10351 = vmatprep.subr.bf16.mxu0 %v17859_v7  ;;  %v17914_v7 = vld [vmem:[#allocation9 + $0xea0] ss:$16 sps:$4 sm:$0xff]  }
 0x9f7   :  { %9497 = vmatpush1.bf16.msra.mxu1 %v17809_v2  ;;  %v17901_v2 = vld [vmem:[#allocation9 + $0xd04] ss:$16 sps:$4 sm:$0xff]  }
 0x9f8   :  { %9498 = vmatprep.subr.bf16.mxu1 %v17814_v3  ;;  %10352 = vmatpush1.bf16.msra.mxu0 %v17857_v9  ;;  %v17899_v3 = vld [vmem:[#allocation9 + $0xd00] ss:$16 sps:$4 sm:$0xff]   ;;  %v17922_v9 = vld [vmem:[#allocation9 + $0xe84] ss:$16 sps:$4 sm:$0xff]  }
 0x9f9   :  { %10353 = vmatprep.subr.bf16.mxu0 %v17862_v62  ;;  %v17926_v62 = vld [vmem:[#allocation9 + $0xe60] ss:$16 sps:$4 sm:$0xff]  }
 0x9fb   :  { %9499 = vmatpush1.bf16.msra.mxu1 %v17812_v55  ;;  %v17902_v55 = vld [vmem:[#allocation9 + $0xee0] ss:$16 sps:$4 sm:$0xff]  }
 0x9fc   :  { %9500 = vmatprep.subr.bf16.mxu1 %v17817_v4  ;;  %10354 = vmatpush1.bf16.msra.mxu0 %v17860_v14  ;;  %v17904_v4 = vld [vmem:[#allocation9 + $0xee4] ss:$16 sps:$4 sm:$0xff]  }
 0x9fd   :  { %10355 = vmatprep.subr.bf16.mxu0 %v17865_v16  ;;  %v17934_v14 = vld [vmem:[#allocation9 + $0xe44] ss:$16 sps:$4 sm:$0xff]   ;;  %v17938_v16 = vld [vmem:[#allocation9 + $0xe20] ss:$16 sps:$4 sm:$0xff]  }
 0x9ff   :  { %9501 = vmatpush1.bf16.msra.mxu1 %v17815_v8  ;;  %v17916_v8 = vld [vmem:[#allocation9 + $0xea4] ss:$16 sps:$4 sm:$0xff]  }
 0xa00   :  { %9502 = vmatprep.subr.bf16.mxu1 %v17820_v1  ;;  %10356 = vmatpush1.bf16.msra.mxu0 %v17863_v17  ;;  %v17920_v1 = vld [vmem:[#allocation9 + $0xe80] ss:$16 sps:$4 sm:$0xff]   ;;  %v17946_v17 = vld [vmem:[#allocation9 + $0xe04] ss:$16 sps:$4 sm:$0xff]  }
 0xa01   :  { %10357 = vmatprep.subr.bf16.mxu0 %v17868_v20  ;;  %v17950_v20 = vld [vmem:[#allocation9 + $0xfe0] ss:$16 sps:$4 sm:$0xff]  }
 0xa03   :  { %9503 = vmatpush1.bf16.msra.mxu1 %v17818_v10  ;;  %v17928_v10 = vld [vmem:[#allocation9 + $0xe64] ss:$16 sps:$4 sm:$0xff]  }
 0xa04   :  { %9504 = vmatprep.subr.bf16.mxu1 %v17823_v11  ;;  %10358 = vmatpush1.bf16.msra.mxu0 %v17866_v23  ;;  %v17932_v11 = vld [vmem:[#allocation9 + $0xe40] ss:$16 sps:$4 sm:$0xff]   ;;  %v17958_v23 = vld [vmem:[#allocation9 + $0xfc4] ss:$16 sps:$4 sm:$0xff]  }
 0xa05   :  { %10359 = vmatprep.subr.bf16.mxu0 %v17871_v25  ;;  %v17962_v25 = vld [vmem:[#allocation9 + $0xfa0] ss:$16 sps:$4 sm:$0xff]  }
 0xa07   :  { %9505 = vmatpush1.bf16.msra.mxu1 %v17821_v5  ;;  %v17940_v5 = vld [vmem:[#allocation9 + $0xe24] ss:$16 sps:$4 sm:$0xff]  }
 0xa08   :  { %9506 = vmatprep.subr.bf16.mxu1 %v17826_v63  ;;  %10360 = vmatpush1.bf16.msra.mxu0 %v17869_v27  ;;  %v17944_v63 = vld [vmem:[#allocation9 + $0xe00] ss:$16 sps:$4 sm:$0xff]   ;;  %v17970_v27 = vld [vmem:[#allocation9 + $0xf84] ss:$16 sps:$4 sm:$0xff]  }
 0xa09   :  { %10361 = vmatprep.subr.bf16.mxu0 %v17874_v19  ;;  %v17974_v19 = vld [vmem:[#allocation9 + $0xf60] ss:$16 sps:$4 sm:$0xff]  }
 0xa0b   :  { %9507 = vmatpush1.bf16.msra.mxu1 %v17824_v21  ;;  %v17952_v21 = vld [vmem:[#allocation9 + $0xfe4] ss:$16 sps:$4 sm:$0xff]  }
 0xa0c   :  { %9508 = vmatprep.subr.bf16.mxu1 %v17829_v18  ;;  %10362 = vmatpush1.bf16.msra.mxu0 %v17872_v29  ;;  %v17956_v18 = vld [vmem:[#allocation9 + $0xfc0] ss:$16 sps:$4 sm:$0xff]  }
 0xa0d   :  { %10363 = vmatprep.subr.bf16.mxu0 %v17877_v15  ;;  %v17980_v29 = vld [vmem:[#allocation9 + $0xf40] ss:$16 sps:$4 sm:$0xff]   ;;  %v17988_v15 = vld [vmem:[#allocation9 + $0xf24] ss:$16 sps:$4 sm:$0xff]  }
 0xa0f   :  { %9509 = vmatpush1.bf16.msra.mxu1 %v17827_v26  ;;  %v17964_v26 = vld [vmem:[#allocation9 + $0xfa4] ss:$16 sps:$4 sm:$0xff]  }
 0xa10   :  { %9510 = vmatprep.subr.bf16.mxu1 %v17832_v24  ;;  %10364 = vmatpush1.bf16.msra.mxu0 %v17875_v33  ;;  %v17968_v24 = vld [vmem:[#allocation9 + $0xf80] ss:$16 sps:$4 sm:$0xff]  }
 0xa11   :  { %10365 = vmatprep.subr.bf16.mxu0 %v17880_v36  ;;  %v17992_v33 = vld [vmem:[#allocation9 + $0xf00] ss:$16 sps:$4 sm:$0xff]   ;;  %v18000_v36 = vld [vmem:[#allocation9 + $0xeec] ss:$16 sps:$4 sm:$0xff]  }
 0xa13   :  { %9511 = vmatpush2.bf16.msra.mxu1 %v17830_v28  ;;  %v17976_v28 = vld [vmem:[#allocation9 + $0xf64] ss:$16 sps:$4 sm:$0xff]  }
 0xa14   :  { %9512 = vmatprep.subr.bf16.mxu1 %v17835_v22  ;;  %10366 = vmatpush2.bf16.msra.mxu0 %v17878_v12  ;;  %v17982_v22 = vld [vmem:[#allocation9 + $0xf44] ss:$16 sps:$4 sm:$0xff]   ;;  %v19322_v12 = vld [vmem:[#allocation10 + $0x8] sm:$0xf] }
 0xa15   :  { %10367 = vmatprep.subr.bf16.mxu0 %v17883_v38  ;;  %v8712_v38 = vrot.slane %v19322_v12, %v19083_v43 }
 0xa17   :  { %9513 = vmatpush2.bf16.msra.mxu1 %v17833_v30  ;;  %v17986_v30 = vld [vmem:[#allocation9 + $0xf20] ss:$16 sps:$4 sm:$0xff]  }
 0xa18   :  { %9514 = vmatprep.subr.bf16.mxu1 %v17838_v32  ;;  %10368 = vmatpush2.bf16.msra.mxu0 %v17881_v45  ;;  %v17994_v32 = vld [vmem:[#allocation9 + $0xf04] ss:$16 sps:$4 sm:$0xff]  }
 0xa19   :  { %10369 = vmatprep.subr.bf16.mxu0 %v17886_v40 }
 0xa1b   :  { %9515 = vmatpush2.bf16.msra.mxu1 %v17836_v37 }
 0xa1c   :  { %9516 = vmatprep.subr.bf16.mxu1 %v17841_v39  ;;  %10370 = vmatpush2.bf16.msra.mxu0 %v17884_v47 }
 0xa1d   :  { %10371 = vmatprep.subr.bf16.mxu0 %v17889_v48 }
 0xa1f   :  { %9517 = vmatpush2.bf16.msra.mxu1 %v17839_v35  ;;  %v8708_v35 = vrot.slane %v19322_v12, %v19079_v41 }
 0xa20   :  { %9518 = vmatprep.subr.bf16.mxu1 %v17844_v13  ;;  %10372 = vmatpush2.bf16.msra.mxu0 %v17887_v50 }
 0xa21   :  { %10373 = vmatprep.subr.bf16.mxu0 %v17892_v51 }
 0xa23   :  { %9519 = vmatpush2.bf16.msra.mxu1 %v17842_v31 }
 0xa24   :  { %9520 = vmatprep.subr.bf16.mxu1 %v17847_v0  ;;  %10374 = vmatpush2.bf16.msra.mxu0 %v17890_v46 }
 0xa25   :  { %10375 = vmatprep.subr.bf16.mxu0 %v17895_v59 }
 0xa27   :  { %9521 = vmatpush2.bf16.msra.mxu1 %v17845_v49 }
 0xa28   :  { %9522 = vmatprep.subr.bf16.mxu1 %v17850_v34  ;;  %10376 = vmatpush2.bf16.msra.mxu0 %v17893_v60 }
 0xa29   :  { %10377 = vmatprep.subr.bf16.mxu0 %v17898_v61 }
 0xa2b   :  { %9523 = vmatpush2.bf16.msra.mxu1 %v17848_v53 }
 0xa2c   :  { %9524 = vmatprep.subr.bf16.mxu1 %v17853_v52  ;;  %10378 = vmatpush2.bf16.msra.mxu0 %v17896_v54 }
 0xa2d   :  { %10379 = vmatprep.subr.bf16.mxu0 %v17901_v2 }
 0xa2f   :  { %9525 = vmatpush2.bf16.msra.mxu1 %v17851_v57 }
 0xa30   :  { %10380 = vmatpush2.bf16.msra.mxu0 %v17899_v3  ;;  %10392 = vmatprep.subr.bf16.mxu1 %v17904_v4 }
 0xa31   :  { %10435 = vmatprep.subr.bf16.mxu0 %v17907_v56  ;;  %v17905_v56 = vld [vmem:[#allocation9 + $0xce8] ss:$16 sps:$4 sm:$0xff]  }
 0xa32   :  { %9527 = vmatmul.mubr.bf16.vlgmr.msra.gmra.mxu1 %v19317_v58  ;;  %v17910_v58 = vld [vmem:[#allocation9 + $0xec4] ss:$16 sps:$4 sm:$0xff]  }
 0xa33   :  { %10393 = vmatpush1.bf16.msra.mxu1 %v17902_v55 }
 0xa34   :  { %10394 = vmatprep.subr.bf16.mxu1 %v17910_v58  ;;  %v17913_v58 = vld [vmem:[#allocation9 + $0xccc] ss:$16 sps:$4 sm:$0xff]  }
 0xa37   :  { %10395 = vmatpush1.bf16.msra.mxu1 %v17908_v6 }
 0xa38   :  { %10396 = vmatprep.subr.bf16.mxu1 %v17916_v8  ;;  %v17919_v8 = vld [vmem:[#allocation9 + $0xcac] ss:$16 sps:$4 sm:$0xff]  }
 0xa3b   :  { %10397 = vmatpush1.bf16.msra.mxu1 %v17914_v7  ;;  %v17911_v7 = vld [vmem:[#allocation9 + $0xcc8] ss:$16 sps:$4 sm:$0xff]  }
 0xa3c   :  { %10398 = vmatprep.subr.bf16.mxu1 %v17922_v9  ;;  %v17925_v9 = vld [vmem:[#allocation9 + $0xc8c] ss:$16 sps:$4 sm:$0xff]  }
 0xa3f   :  { %10399 = vmatpush1.bf16.msra.mxu1 %v17920_v1  ;;  %v17917_v1 = vld [vmem:[#allocation9 + $0xca8] ss:$16 sps:$4 sm:$0xff]  }
 0xa40   :  { %10400 = vmatprep.subr.bf16.mxu1 %v17928_v10  ;;  %v17931_v10 = vld [vmem:[#allocation9 + $0xc6c] ss:$16 sps:$4 sm:$0xff]  }
 0xa43   :  { %10401 = vmatpush1.bf16.msra.mxu1 %v17926_v62  ;;  %v17923_v62 = vld [vmem:[#allocation9 + $0xc88] ss:$16 sps:$4 sm:$0xff]  }
 0xa44   :  { %10402 = vmatprep.subr.bf16.mxu1 %v17934_v14  ;;  %v17937_v14 = vld [vmem:[#allocation9 + $0xc4c] ss:$16 sps:$4 sm:$0xff]  }
 0xa47   :  { %10403 = vmatpush1.bf16.msra.mxu1 %v17932_v11  ;;  %v17929_v11 = vld [vmem:[#allocation9 + $0xc68] ss:$16 sps:$4 sm:$0xff]  }
 0xa48   :  { %10404 = vmatprep.subr.bf16.mxu1 %v17940_v5  ;;  %v17943_v5 = vld [vmem:[#allocation9 + $0xc2c] ss:$16 sps:$4 sm:$0xff]  }
 0xa4b   :  { %10405 = vmatpush1.bf16.msra.mxu1 %v17938_v16  ;;  %v17935_v16 = vld [vmem:[#allocation9 + $0xc48] ss:$16 sps:$4 sm:$0xff]  }
 0xa4c   :  { %10406 = vmatprep.subr.bf16.mxu1 %v17946_v17  ;;  %v17949_v17 = vld [vmem:[#allocation9 + $0xc0c] ss:$16 sps:$4 sm:$0xff]  }
 0xa4f   :  { %10407 = vmatpush1.bf16.msra.mxu1 %v17944_v63  ;;  %v17941_v63 = vld [vmem:[#allocation9 + $0xc28] ss:$16 sps:$4 sm:$0xff]  }
 0xa50   :  { %10408 = vmatprep.subr.bf16.mxu1 %v17952_v21  ;;  %v17955_v21 = vld [vmem:[#allocation9 + $0xdec] ss:$16 sps:$4 sm:$0xff]  }
 0xa53   :  { %10409 = vmatpush2.bf16.msra.mxu1 %v17950_v20  ;;  %v17947_v20 = vld [vmem:[#allocation9 + $0xc08] ss:$16 sps:$4 sm:$0xff]  }
 0xa54   :  { %10410 = vmatprep.subr.bf16.mxu1 %v17958_v23  ;;  %v17961_v23 = vld [vmem:[#allocation9 + $0xdcc] ss:$16 sps:$4 sm:$0xff]  }
 0xa57   :  { %10411 = vmatpush2.bf16.msra.mxu1 %v17956_v18  ;;  %v17953_v18 = vld [vmem:[#allocation9 + $0xde8] ss:$16 sps:$4 sm:$0xff]  }
 0xa58   :  { %10412 = vmatprep.subr.bf16.mxu1 %v17964_v26  ;;  %v17967_v26 = vld [vmem:[#allocation9 + $0xdac] ss:$16 sps:$4 sm:$0xff]  }
 0xa5b   :  { %10413 = vmatpush2.bf16.msra.mxu1 %v17962_v25  ;;  %v17959_v25 = vld [vmem:[#allocation9 + $0xdc8] ss:$16 sps:$4 sm:$0xff]  }
 0xa5c   :  { %10414 = vmatprep.subr.bf16.mxu1 %v17970_v27 }
 0xa5f   :  { %10415 = vmatpush2.bf16.msra.mxu1 %v17968_v24  ;;  %v17965_v24 = vld [vmem:[#allocation9 + $0xda8] ss:$16 sps:$4 sm:$0xff]  }
 0xa60   :  { %10416 = vmatprep.subr.bf16.mxu1 %v17976_v28  ;;  %v17971_v28 = vld [vmem:[#allocation9 + $0xd88] ss:$16 sps:$4 sm:$0xff]  }
 0xa63   :  { %10417 = vmatpush2.bf16.msra.mxu1 %v17974_v19  ;;  %v17973_v19 = vld [vmem:[#allocation9 + $0xd8c] ss:$16 sps:$4 sm:$0xff]  }
 0xa64   :  { %10418 = vmatprep.subr.bf16.mxu1 %v17982_v22 }
 0xa67   :  { %10419 = vmatpush2.bf16.msra.mxu1 %v17980_v29  ;;  %v17979_v29 = vld [vmem:[#allocation9 + $0xd6c] ss:$16 sps:$4 sm:$0xff]  }
 0xa68   :  { %10420 = vmatprep.subr.bf16.mxu1 %v17988_v15  ;;  %v8720_v15 = vrot.slane %v19322_v12, %v19085_v44 }
 0xa6b   :  { %10421 = vmatpush2.bf16.msra.mxu1 %v17986_v30  ;;  %v17977_v30 = vld [vmem:[#allocation9 + $0xd68] ss:$16 sps:$4 sm:$0xff]  }
 0xa6c   :  { %10422 = vmatprep.subr.bf16.mxu1 %v17994_v32  ;;  %v8716_v32 = vrot.slane %v19322_v12, %v19081_v42  ;;  %v17989_v12 = vld [vmem:[#allocation9 + $0xd28] ss:$16 sps:$4 sm:$0xff]  }
 0xa6f   :  { %10423 = vmatpush2.bf16.msra.mxu1 %v17992_v33 }
 0xa70   :  { %10478 = vmatprep.subr.bf16.mxu1 %v18000_v36  ;;  %v17985_v36 = vld [vmem:[#allocation9 + $0xd4c] ss:$16 sps:$4 sm:$0xff]  }
 0xa72   :  { %v9399_v37 = vpop.f32.mrf.mxu0 }
 0xa73   :  { %v9400_v31 = vadd.f32 %v9399_v37, %v8708_v35 }
 0xa74   :  { %v9401_v39 = vpop.f32.mrf.mxu0 }
 0xa75   :  { %v9402_v40 = vadd.f32 %v9401_v39, %v8712_v38 }
 0xa76   :  { %v9403_v13 = vpop.f32.mrf.mxu0 }
 0xa77   :  { %v9404_v48 = vadd.f32 %v9403_v13, %v8708_v35 }
 0xa78   :  { %v9405_v0 = vpop.f32.mrf.mxu0 }
 0xa79   :  { %v9406_v51 = vadd.f32 %v9405_v0, %v8712_v38  ;;  %v17983_v38 = vld [vmem:[#allocation9 + $0xd48] ss:$16 sps:$4 sm:$0xff]  }
 0xab2   :  { %v9442_v45 = vpop.f32.mrf.mxu1  ;;  %v9485_v27 = vpop.f32.mrf.mxu0 }
 0xab3   :  { %v9443_v34 = vadd.f32 %v9442_v45, %v9400_v31  ;;  %v9486_v35 = vadd.f32 %v9485_v27, %v8716_v32  ;;  %v18021_v27 = vld [vmem:[#allocation9 + $0xe0c] ss:$16 sps:$4 sm:$0xff]  }
 0xab4   :  { %v9444_v47 = vpop.f32.mrf.mxu1  ;;  %v9487_v22 = vpop.f32.mrf.mxu0 }
 0xab5   :  { %v9445_v49 = vadd.f32 %v9444_v47, %v9402_v40  ;;  %v9537_v60 = vmul.f32 0.01, %v9443_v34  ;;  %v9488_v39 = vadd.f32 %v9487_v22, %v8720_v15  ;;  %v17991_v40 = vld [vmem:[#allocation9 + $0xd2c] ss:$16 sps:$4 sm:$0xff]   ;;  %v18019_v22 = vld [vmem:[#allocation9 + $0xe08] ss:$16 sps:$4 sm:$0xff]  }
 0xab6   :  { %v9446_v50 = vpop.f32.mrf.mxu1  ;;  %v9489_v33 = vpop.f32.mrf.mxu0 }
 0xab7   :  { %v9447_v53 = vadd.f32 %v9446_v50, %v9404_v48  ;;  %v9538_v46 = vmul.f32 0.01, %v9445_v49  ;;  %v9545_v55 = vmax.f32 %v9443_v34, %v9537_v60  ;;  %v9490_v31 = vadd.f32 %v9489_v33, %v8716_v32  ;;  %v17995_v60 = vld [vmem:[#allocation9 + $0xd08] ss:$16 sps:$4 sm:$0xff]   ;;  %v18027_v33 = vld [vmem:[#allocation9 + $0xfcc] ss:$16 sps:$4 sm:$0xff]  }
 0xab8   :  { %v9448_v52 = vpop.f32.mrf.mxu1  ;;  %v9491_v13 = vpop.f32.mrf.mxu0  ;;  %v18022_v32 = vld [vmem:[#allocation9 + $0xfe8] ss:$16 sps:$4 sm:$0xff]  }
 0xab9   :  { %v9541_v57 = vmul.f32 0.01, %v9447_v53  ;;  %v9449_v59 = vadd.f32 %v9448_v52, %v9406_v51  ;;  %v9546_v2 = vmax.f32 %v9445_v49, %v9538_v46  ;;  %v9492_v49 = vadd.f32 %v9491_v13, %v8720_v15  ;;  %v17997_v51 = vld [vmem:[#allocation9 + $0xd0c] ss:$16 sps:$4 sm:$0xff]   ;;  %v18061_v15 = vld [vmem:[#allocation9 + $0x1040] ss:$16 sps:$4 sm:$0xff]  }
 0xaba   :  { %v18072_v13 = vld [vmem:[#allocation9 + $0x11e4] ss:$16 sps:$4 sm:$0xff]  }
 0xabb   :  { %v9542_v61 = vmul.f32 0.01, %v9449_v59  ;;  %v9549_v54 = vmax.f32 %v9447_v53, %v9541_v57 }
 0xabd   :  { %v9550_v3 = vmax.f32 %v9449_v59, %v9542_v61  ;;  %v19328_v6 = vpack.c.bf16 %v9549_v54, %v9545_v55 }
 0xabf   :  { %v9683_v4 = vpack.c.bf16 %v9550_v3, %v9546_v2 }
 0xac1   :  { %10381 = vmatprep.mubr.bf16.mxu0 %v9683_v4 }
 0xac2   :  { %10382 = vmatmul.mubr.bf16.vlgmr.msra.gmra.mxu0 %v19328_v6 }
 0xac3   :  { %10436 = vmatpush1.bf16.msra.mxu0 %v17905_v56  ;;  %10467 = vmatprep.mubr.bf16.mxu0 %v9683_v4  ;;  %v17998_v4 = vld [vmem:[#allocation9 + $0xee8] ss:$16 sps:$4 sm:$0xff]  }
 0xac4   :  { %10437 = vmatprep.subr.bf16.mxu0 %v17913_v58  ;;  %v18003_v58 = vld [vmem:[#allocation9 + $0xecc] ss:$16 sps:$4 sm:$0xff]  }
 0xac7   :  { %10438 = vmatpush1.bf16.msra.mxu0 %v17911_v7  ;;  %v18001_v7 = vld [vmem:[#allocation9 + $0xec8] ss:$16 sps:$4 sm:$0xff]  }
 0xac8   :  { %10439 = vmatprep.subr.bf16.mxu0 %v17919_v8  ;;  %v18006_v8 = vld [vmem:[#allocation9 + $0xeac] ss:$16 sps:$4 sm:$0xff]  }
 0xacb   :  { %10440 = vmatpush1.bf16.msra.mxu0 %v17917_v1  ;;  %v18004_v1 = vld [vmem:[#allocation9 + $0xea8] ss:$16 sps:$4 sm:$0xff]  }
 0xacc   :  { %10441 = vmatprep.subr.bf16.mxu0 %v17925_v9  ;;  %v18009_v9 = vld [vmem:[#allocation9 + $0xe8c] ss:$16 sps:$4 sm:$0xff]  }
 0xacf   :  { %10442 = vmatpush1.bf16.msra.mxu0 %v17923_v62  ;;  %v18046_v62 = vld [vmem:[#allocation9 + $0x10e0] ss:$16 sps:$4 sm:$0xff]  }
 0xad0   :  { %10443 = vmatprep.subr.bf16.mxu0 %v17931_v10  ;;  %v18048_v10 = vld [vmem:[#allocation9 + $0x10e4] ss:$16 sps:$4 sm:$0xff]  }
 0xad3   :  { %10444 = vmatpush1.bf16.msra.mxu0 %v17929_v11  ;;  %v18051_v11 = vld [vmem:[#allocation9 + $0x10c4] ss:$16 sps:$4 sm:$0xff]  }
 0xad4   :  { %10445 = vmatprep.subr.bf16.mxu0 %v17937_v14  ;;  %v18007_v14 = vld [vmem:[#allocation9 + $0xe88] ss:$16 sps:$4 sm:$0xff]  }
 0xad7   :  { %10446 = vmatpush1.bf16.msra.mxu0 %v17935_v16  ;;  %v18012_v16 = vld [vmem:[#allocation9 + $0xe6c] ss:$16 sps:$4 sm:$0xff]  }
 0xad8   :  { %10447 = vmatprep.subr.bf16.mxu0 %v17943_v5  ;;  %v18049_v5 = vld [vmem:[#allocation9 + $0x10c0] ss:$16 sps:$4 sm:$0xff]  }
 0xadb   :  { %10448 = vmatpush1.bf16.msra.mxu0 %v17941_v63  ;;  %v18010_v63 = vld [vmem:[#allocation9 + $0xe68] ss:$16 sps:$4 sm:$0xff]  }
 0xadc   :  { %10449 = vmatprep.subr.bf16.mxu0 %v17949_v17  ;;  %v18015_v17 = vld [vmem:[#allocation9 + $0xe4c] ss:$16 sps:$4 sm:$0xff]  }
 0xadf   :  { %10450 = vmatpush1.bf16.msra.mxu0 %v17947_v20  ;;  %v18052_v20 = vld [vmem:[#allocation9 + $0x10a0] ss:$16 sps:$4 sm:$0xff]  }
 0xae0   :  { %10451 = vmatprep.subr.bf16.mxu0 %v17955_v21  ;;  %v18057_v21 = vld [vmem:[#allocation9 + $0x1084] ss:$16 sps:$4 sm:$0xff]  }
 0xae3   :  { %10452 = vmatpush2.bf16.msra.mxu0 %v17953_v18  ;;  %v18013_v18 = vld [vmem:[#allocation9 + $0xe48] ss:$16 sps:$4 sm:$0xff]  }
 0xae4   :  { %10453 = vmatprep.subr.bf16.mxu0 %v17961_v23  ;;  %v18018_v23 = vld [vmem:[#allocation9 + $0xe2c] ss:$16 sps:$4 sm:$0xff]  }
 0xae7   :  { %10454 = vmatpush2.bf16.msra.mxu0 %v17959_v25  ;;  %v18055_v25 = vld [vmem:[#allocation9 + $0x1080] ss:$16 sps:$4 sm:$0xff]  }
 0xae8   :  { %10455 = vmatprep.subr.bf16.mxu0 %v17967_v26  ;;  %v18060_v26 = vld [vmem:[#allocation9 + $0x1064] ss:$16 sps:$4 sm:$0xff]  }
 0xaeb   :  { %10456 = vmatpush2.bf16.msra.mxu0 %v17965_v24  ;;  %v18016_v24 = vld [vmem:[#allocation9 + $0xe28] ss:$16 sps:$4 sm:$0xff]  }
 0xaec   :  { %10457 = vmatprep.subr.bf16.mxu0 %v17973_v19  ;;  %v18058_v19 = vld [vmem:[#allocation9 + $0x1060] ss:$16 sps:$4 sm:$0xff]  }
 0xaef   :  { %10458 = vmatpush2.bf16.msra.mxu0 %v17971_v28  ;;  %v18063_v28 = vld [vmem:[#allocation9 + $0x1044] ss:$16 sps:$4 sm:$0xff]  }
 0xaf0   :  { %10459 = vmatprep.subr.bf16.mxu0 %v17979_v29  ;;  %v18024_v29 = vld [vmem:[#allocation9 + $0xfec] ss:$16 sps:$4 sm:$0xff]  }
 0xaf2   :  { %v9528_v37 = vpop.f32.mrf.mxu1 }
 0xaf3   :  { %10460 = vmatpush2.bf16.msra.mxu0 %v17977_v30  ;;  %v9529_v47 = vadd.f32 %v9528_v37, %v9486_v35  ;;  %v18066_v30 = vld [vmem:[#allocation9 + $0x1024] ss:$16 sps:$4 sm:$0xff]   ;;  %v18067_v35 = vld [vmem:[#allocation9 + $0x1000] ss:$16 sps:$4 sm:$0xff]  }
 0xaf4   :  { %v9530_v45 = vpop.f32.mrf.mxu1  ;;  %10461 = vmatprep.subr.bf16.mxu0 %v17985_v36  ;;  %v18064_v36 = vld [vmem:[#allocation9 + $0x1020] ss:$16 sps:$4 sm:$0xff]   ;;  %v18069_v37 = vld [vmem:[#allocation9 + $0x1004] ss:$16 sps:$4 sm:$0xff]  }
 0xaf5   :  { %v9531_v0 = vadd.f32 %v9530_v45, %v9488_v39  ;;  %v9539_v57 = vmul.f32 0.01, %v9529_v47  ;;  %v18025_v39 = vld [vmem:[#allocation9 + $0xfc8] ss:$16 sps:$4 sm:$0xff]  }
 0xaf6   :  { %v9532_v48 = vpop.f32.mrf.mxu1  ;;  %v18028_v45 = vld [vmem:[#allocation9 + $0xfa8] ss:$16 sps:$4 sm:$0xff]  }
 0xaf7   :  { %v9533_v34 = vadd.f32 %v9532_v48, %v9490_v31  ;;  %10462 = vmatpush2.bf16.msra.mxu0 %v17983_v38  ;;  %v9540_v53 = vmul.f32 0.01, %v9531_v0  ;;  %v9547_v3 = vmax.f32 %v9529_v47, %v9539_v57  ;;  %v18030_v38 = vld [vmem:[#allocation9 + $0xfac] ss:$16 sps:$4 sm:$0xff]   ;;  %v18070_v31 = vld [vmem:[#allocation9 + $0x11e0] ss:$16 sps:$4 sm:$0xff]  }
 0xaf8   :  { %v9534_v50 = vpop.f32.mrf.mxu1  ;;  %10463 = vmatprep.subr.bf16.mxu0 %v17991_v40  ;;  %v18033_v40 = vld [vmem:[#allocation9 + $0xf8c] ss:$16 sps:$4 sm:$0xff]   ;;  %v18031_v47 = vld [vmem:[#allocation9 + $0xf88] ss:$16 sps:$4 sm:$0xff]   ;;  %v18079_v57 = vld [vmem:[#allocation9 + $0x1180] ss:$16 sps:$4 sm:$0xff]  }
 0xaf9   :  { %v9543_v52 = vmul.f32 0.01, %v9533_v34  ;;  %v9535_v46 = vadd.f32 %v9534_v50, %v9492_v49  ;;  %v9548_v54 = vmax.f32 %v9531_v0, %v9540_v53  ;;  %v18075_v0 = vld [vmem:[#allocation9 + $0x11c4] ss:$16 sps:$4 sm:$0xff]   ;;  %v18036_v48 = vld [vmem:[#allocation9 + $0xf6c] ss:$16 sps:$4 sm:$0xff]  }
 0xafa   :  { %v18073_v49 = vld [vmem:[#allocation9 + $0x11c0] ss:$16 sps:$4 sm:$0xff]   ;;  %v18039_v50 = vld [vmem:[#allocation9 + $0xf4c] ss:$16 sps:$4 sm:$0xff]   ;;  %v18081_v53 = vld [vmem:[#allocation9 + $0x1184] ss:$16 sps:$4 sm:$0xff]  }
 0xafb   :  { %v9544_v59 = vmul.f32 0.01, %v9535_v46  ;;  %10464 = vmatpush2.bf16.msra.mxu0 %v17989_v12  ;;  %v9551_v61 = vmax.f32 %v9533_v34, %v9543_v52  ;;  %v18078_v34 = vld [vmem:[#allocation9 + $0x11a4] ss:$16 sps:$4 sm:$0xff]   ;;  %v18034_v12 = vld [vmem:[#allocation9 + $0xf68] ss:$16 sps:$4 sm:$0xff]  }
 0xafc   :  { %10465 = vmatprep.subr.bf16.mxu0 %v17997_v51  ;;  %v18076_v51 = vld [vmem:[#allocation9 + $0x11a0] ss:$16 sps:$4 sm:$0xff]   ;;  %v18037_v52 = vld [vmem:[#allocation9 + $0xf48] ss:$16 sps:$4 sm:$0xff]  }
 0xafd   :  { %v9552_v2 = vmax.f32 %v9535_v46, %v9544_v59  ;;  %v19335_v56 = vpack.c.bf16 %v9551_v61, %v9547_v3  ;;  %v18042_v46 = vld [vmem:[#allocation9 + $0xf2c] ss:$16 sps:$4 sm:$0xff]   ;;  %v18084_v59 = vld [vmem:[#allocation9 + $0x1164] ss:$16 sps:$4 sm:$0xff]  }
 0xafe   :  { %v18045_v61 = vld [vmem:[#allocation9 + $0xf0c] ss:$16 sps:$4 sm:$0xff]   ;;  %v18087_v3 = vld [vmem:[#allocation9 + $0x1144] ss:$16 sps:$4 sm:$0xff]  }
 0xaff   :  { %10466 = vmatpush2.bf16.msra.mxu0 %v17995_v60  ;;  %v9685_v55 = vpack.c.bf16 %v9552_v2, %v9548_v54  ;;  %v18040_v60 = vld [vmem:[#allocation9 + $0xf28] ss:$16 sps:$4 sm:$0xff]   ;;  %v18082_v54 = vld [vmem:[#allocation9 + $0x1160] ss:$16 sps:$4 sm:$0xff]  }
 0xb00   :  { %11333 = vmatprep.subr.bf16.mxu0 %v18048_v10  ;;  %v18043_v2 = vld [vmem:[#allocation9 + $0xf08] ss:$16 sps:$4 sm:$0xff]   ;;  %v18100_v10 = vld [vmem:[#allocation9 + $0x12c0] ss:$16 sps:$4 sm:$0xff]  }
 0xb01   :  { %10424 = vmatprep.mubr.bf16.mxu1 %v9685_v55 }
 0xb02   :  { %10425 = vmatmul.mubr.bf16.vlgmr.msra.gmra.mxu1 %v19335_v56  ;;  %10468 = vmatmul.mubr.bf16.vlgmr.msra.gmra.mxu0 %v19328_v6  ;;  %v18054_v6 = vld [vmem:[#allocation9 + $0x10a4] ss:$16 sps:$4 sm:$0xff]  }
 0xb03   :  { %10479 = vmatpush1.bf16.msra.mxu1 %v17998_v4  ;;  %10510 = vmatprep.mubr.bf16.mxu1 %v9685_v55  ;;  %v18085_v55 = vld [vmem:[#allocation9 + $0x1140] ss:$16 sps:$4 sm:$0xff]   ;;  %v18090_v4 = vld [vmem:[#allocation9 + $0x1124] ss:$16 sps:$4 sm:$0xff]  }
 0xb04   :  { %10480 = vmatprep.subr.bf16.mxu1 %v18003_v58  ;;  %11334 = vmatpush1.bf16.msra.mxu0 %v18046_v62  ;;  %v18088_v58 = vld [vmem:[#allocation9 + $0x1120] ss:$16 sps:$4 sm:$0xff]   ;;  %v18099_v62 = vld [vmem:[#allocation9 + $0x10ec] ss:$16 sps:$4 sm:$0xff]  }
 0xb05   :  { %11335 = vmatprep.subr.bf16.mxu0 %v18051_v11  ;;  %v18106_v11 = vld [vmem:[#allocation9 + $0x12a0] ss:$16 sps:$4 sm:$0xff]  }
 0xb07   :  { %10481 = vmatpush1.bf16.msra.mxu1 %v18001_v7  ;;  %v18093_v7 = vld [vmem:[#allocation9 + $0x1104] ss:$16 sps:$4 sm:$0xff]  }
 0xb08   :  { %10482 = vmatprep.subr.bf16.mxu1 %v18006_v8  ;;  %11336 = vmatpush1.bf16.msra.mxu0 %v18049_v5  ;;  %v18091_v8 = vld [vmem:[#allocation9 + $0x1100] ss:$16 sps:$4 sm:$0xff]   ;;  %v18114_v5 = vld [vmem:[#allocation9 + $0x1284] ss:$16 sps:$4 sm:$0xff]  }
 0xb09   :  { %11337 = vmatprep.subr.bf16.mxu0 %v18054_v6  ;;  %v18118_v6 = vld [vmem:[#allocation9 + $0x1260] ss:$16 sps:$4 sm:$0xff]  }
 0xb0b   :  { %10483 = vmatpush1.bf16.msra.mxu1 %v18004_v1  ;;  %v18094_v1 = vld [vmem:[#allocation9 + $0x12e0] ss:$16 sps:$4 sm:$0xff]  }
 0xb0c   :  { %10484 = vmatprep.subr.bf16.mxu1 %v18009_v9  ;;  %11338 = vmatpush1.bf16.msra.mxu0 %v18052_v20  ;;  %v18096_v9 = vld [vmem:[#allocation9 + $0x12e4] ss:$16 sps:$4 sm:$0xff]  }
 0xb0d   :  { %11339 = vmatprep.subr.bf16.mxu0 %v18057_v21  ;;  %v18126_v20 = vld [vmem:[#allocation9 + $0x1244] ss:$16 sps:$4 sm:$0xff]   ;;  %v18130_v21 = vld [vmem:[#allocation9 + $0x1220] ss:$16 sps:$4 sm:$0xff]  }
 0xb0f   :  { %10485 = vmatpush1.bf16.msra.mxu1 %v18007_v14  ;;  %v18108_v14 = vld [vmem:[#allocation9 + $0x12a4] ss:$16 sps:$4 sm:$0xff]  }
 0xb10   :  { %10486 = vmatprep.subr.bf16.mxu1 %v18012_v16  ;;  %11340 = vmatpush1.bf16.msra.mxu0 %v18055_v25  ;;  %v18112_v16 = vld [vmem:[#allocation9 + $0x1280] ss:$16 sps:$4 sm:$0xff]   ;;  %v18138_v25 = vld [vmem:[#allocation9 + $0x1204] ss:$16 sps:$4 sm:$0xff]  }
 0xb11   :  { %11341 = vmatprep.subr.bf16.mxu0 %v18060_v26  ;;  %v18142_v26 = vld [vmem:[#allocation9 + $0x13e0] ss:$16 sps:$4 sm:$0xff]  }
 0xb13   :  { %10487 = vmatpush1.bf16.msra.mxu1 %v18010_v63  ;;  %v18120_v63 = vld [vmem:[#allocation9 + $0x1264] ss:$16 sps:$4 sm:$0xff]  }
 0xb14   :  { %10488 = vmatprep.subr.bf16.mxu1 %v18015_v17  ;;  %11342 = vmatpush1.bf16.msra.mxu0 %v18058_v19  ;;  %v18124_v17 = vld [vmem:[#allocation9 + $0x1240] ss:$16 sps:$4 sm:$0xff]   ;;  %v18150_v19 = vld [vmem:[#allocation9 + $0x13c4] ss:$16 sps:$4 sm:$0xff]  }
 0xb15   :  { %11343 = vmatprep.subr.bf16.mxu0 %v18063_v28  ;;  %v18154_v28 = vld [vmem:[#allocation9 + $0x13a0] ss:$16 sps:$4 sm:$0xff]  }
 0xb17   :  { %10489 = vmatpush1.bf16.msra.mxu1 %v18013_v18  ;;  %v18132_v18 = vld [vmem:[#allocation9 + $0x1224] ss:$16 sps:$4 sm:$0xff]  }
 0xb18   :  { %10490 = vmatprep.subr.bf16.mxu1 %v18018_v23  ;;  %11344 = vmatpush1.bf16.msra.mxu0 %v18061_v15  ;;  %v18136_v23 = vld [vmem:[#allocation9 + $0x1200] ss:$16 sps:$4 sm:$0xff]   ;;  %v18162_v15 = vld [vmem:[#allocation9 + $0x1384] ss:$16 sps:$4 sm:$0xff]  }
 0xb19   :  { %11345 = vmatprep.subr.bf16.mxu0 %v18066_v30  ;;  %v18166_v30 = vld [vmem:[#allocation9 + $0x1360] ss:$16 sps:$4 sm:$0xff]  }
 0xb1b   :  { %10491 = vmatpush1.bf16.msra.mxu1 %v18016_v24  ;;  %v18144_v24 = vld [vmem:[#allocation9 + $0x13e4] ss:$16 sps:$4 sm:$0xff]  }
 0xb1c   :  { %10492 = vmatprep.subr.bf16.mxu1 %v18021_v27  ;;  %11346 = vmatpush1.bf16.msra.mxu0 %v18064_v36  ;;  %v18148_v27 = vld [vmem:[#allocation9 + $0x13c0] ss:$16 sps:$4 sm:$0xff]  }
 0xb1d   :  { %11347 = vmatprep.subr.bf16.mxu0 %v18069_v37  ;;  %v18172_v36 = vld [vmem:[#allocation9 + $0x1340] ss:$16 sps:$4 sm:$0xff]   ;;  %v18180_v37 = vld [vmem:[#allocation9 + $0x1324] ss:$16 sps:$4 sm:$0xff]  }
 0xb1f   :  { %10493 = vmatpush1.bf16.msra.mxu1 %v18019_v22  ;;  %v18156_v22 = vld [vmem:[#allocation9 + $0x13a4] ss:$16 sps:$4 sm:$0xff]  }
 0xb20   :  { %10494 = vmatprep.subr.bf16.mxu1 %v18024_v29  ;;  %11348 = vmatpush1.bf16.msra.mxu0 %v18067_v35  ;;  %v18160_v29 = vld [vmem:[#allocation9 + $0x1380] ss:$16 sps:$4 sm:$0xff]  }
 0xb21   :  { %11349 = vmatprep.subr.bf16.mxu0 %v18072_v13  ;;  %v18184_v35 = vld [vmem:[#allocation9 + $0x1300] ss:$16 sps:$4 sm:$0xff]   ;;  %v18192_v13 = vld [vmem:[#allocation9 + $0x12ec] ss:$16 sps:$4 sm:$0xff]  }
 0xb23   :  { %10495 = vmatpush2.bf16.msra.mxu1 %v18022_v32  ;;  %v18168_v32 = vld [vmem:[#allocation9 + $0x1364] ss:$16 sps:$4 sm:$0xff]  }
 0xb24   :  { %10496 = vmatprep.subr.bf16.mxu1 %v18027_v33  ;;  %11350 = vmatpush2.bf16.msra.mxu0 %v18070_v31  ;;  %v18174_v33 = vld [vmem:[#allocation9 + $0x1344] ss:$16 sps:$4 sm:$0xff]   ;;  %v19340_v31 = vld [vmem:[#allocation10 + $0xc] sm:$0xf] }
 0xb25   :  { %11351 = vmatprep.subr.bf16.mxu0 %v18075_v0  ;;  %v9696_v0 = vrot.slane %v19340_v31, %v19083_v43 }
 0xb27   :  { %10497 = vmatpush2.bf16.msra.mxu1 %v18025_v39  ;;  %v18178_v39 = vld [vmem:[#allocation9 + $0x1320] ss:$16 sps:$4 sm:$0xff]  }
 0xb28   :  { %10498 = vmatprep.subr.bf16.mxu1 %v18030_v38  ;;  %11352 = vmatpush2.bf16.msra.mxu0 %v18073_v49  ;;  %v18186_v38 = vld [vmem:[#allocation9 + $0x1304] ss:$16 sps:$4 sm:$0xff]  }
 0xb29   :  { %11353 = vmatprep.subr.bf16.mxu0 %v18078_v34 }
 0xb2b   :  { %10499 = vmatpush2.bf16.msra.mxu1 %v18028_v45 }
 0xb2c   :  { %10500 = vmatprep.subr.bf16.mxu1 %v18033_v40  ;;  %11354 = vmatpush2.bf16.msra.mxu0 %v18076_v51 }
 0xb2d   :  { %11355 = vmatprep.subr.bf16.mxu0 %v18081_v53 }
 0xb2f   :  { %10501 = vmatpush2.bf16.msra.mxu1 %v18031_v47  ;;  %v9692_v47 = vrot.slane %v19340_v31, %v19079_v41 }
 0xb30   :  { %10502 = vmatprep.subr.bf16.mxu1 %v18036_v48  ;;  %11356 = vmatpush2.bf16.msra.mxu0 %v18079_v57 }
 0xb31   :  { %11357 = vmatprep.subr.bf16.mxu0 %v18084_v59 }
 0xb33   :  { %10503 = vmatpush2.bf16.msra.mxu1 %v18034_v12 }
 0xb34   :  { %10504 = vmatprep.subr.bf16.mxu1 %v18039_v50  ;;  %11358 = vmatpush2.bf16.msra.mxu0 %v18082_v54 }
 0xb35   :  { %11359 = vmatprep.subr.bf16.mxu0 %v18087_v3 }
 0xb37   :  { %10505 = vmatpush2.bf16.msra.mxu1 %v18037_v52 }
 0xb38   :  { %10506 = vmatprep.subr.bf16.mxu1 %v18042_v46  ;;  %11360 = vmatpush2.bf16.msra.mxu0 %v18085_v55 }
 0xb39   :  { %11361 = vmatprep.subr.bf16.mxu0 %v18090_v4 }
 0xb3b   :  { %10507 = vmatpush2.bf16.msra.mxu1 %v18040_v60 }
 0xb3c   :  { %10508 = vmatprep.subr.bf16.mxu1 %v18045_v61  ;;  %11362 = vmatpush2.bf16.msra.mxu0 %v18088_v58 }
 0xb3d   :  { %11363 = vmatprep.subr.bf16.mxu0 %v18093_v7 }
 0xb3f   :  { %10509 = vmatpush2.bf16.msra.mxu1 %v18043_v2 }
 0xb40   :  { %11364 = vmatpush2.bf16.msra.mxu0 %v18091_v8  ;;  %11376 = vmatprep.subr.bf16.mxu1 %v18096_v9 }
 0xb41   :  { %11419 = vmatprep.subr.bf16.mxu0 %v18099_v62  ;;  %v18097_v62 = vld [vmem:[#allocation9 + $0x10e8] ss:$16 sps:$4 sm:$0xff]  }
 0xb42   :  { %10511 = vmatmul.mubr.bf16.vlgmr.msra.gmra.mxu1 %v19335_v56  ;;  %v18102_v56 = vld [vmem:[#allocation9 + $0x12c4] ss:$16 sps:$4 sm:$0xff]  }
 0xb43   :  { %11377 = vmatpush1.bf16.msra.mxu1 %v18094_v1 }
 0xb44   :  { %11378 = vmatprep.subr.bf16.mxu1 %v18102_v56  ;;  %v18105_v56 = vld [vmem:[#allocation9 + $0x10cc] ss:$16 sps:$4 sm:$0xff]  }
 0xb47   :  { %11379 = vmatpush1.bf16.msra.mxu1 %v18100_v10 }
 0xb48   :  { %11380 = vmatprep.subr.bf16.mxu1 %v18108_v14  ;;  %v18111_v14 = vld [vmem:[#allocation9 + $0x10ac] ss:$16 sps:$4 sm:$0xff]  }
 0xb4b   :  { %11381 = vmatpush1.bf16.msra.mxu1 %v18106_v11  ;;  %v18103_v11 = vld [vmem:[#allocation9 + $0x10c8] ss:$16 sps:$4 sm:$0xff]  }
 0xb4c   :  { %11382 = vmatprep.subr.bf16.mxu1 %v18114_v5  ;;  %v18117_v5 = vld [vmem:[#allocation9 + $0x108c] ss:$16 sps:$4 sm:$0xff]  }
 0xb4f   :  { %11383 = vmatpush1.bf16.msra.mxu1 %v18112_v16  ;;  %v18109_v16 = vld [vmem:[#allocation9 + $0x10a8] ss:$16 sps:$4 sm:$0xff]  }
 0xb50   :  { %11384 = vmatprep.subr.bf16.mxu1 %v18120_v63  ;;  %v18123_v63 = vld [vmem:[#allocation9 + $0x106c] ss:$16 sps:$4 sm:$0xff]  }
 0xb53   :  { %11385 = vmatpush1.bf16.msra.mxu1 %v18118_v6  ;;  %v18115_v6 = vld [vmem:[#allocation9 + $0x1088] ss:$16 sps:$4 sm:$0xff]  }
 0xb54   :  { %11386 = vmatprep.subr.bf16.mxu1 %v18126_v20  ;;  %v18129_v20 = vld [vmem:[#allocation9 + $0x104c] ss:$16 sps:$4 sm:$0xff]  }
 0xb57   :  { %11387 = vmatpush1.bf16.msra.mxu1 %v18124_v17  ;;  %v18121_v17 = vld [vmem:[#allocation9 + $0x1068] ss:$16 sps:$4 sm:$0xff]  }
 0xb58   :  { %11388 = vmatprep.subr.bf16.mxu1 %v18132_v18  ;;  %v18135_v18 = vld [vmem:[#allocation9 + $0x102c] ss:$16 sps:$4 sm:$0xff]  }
 0xb5b   :  { %11389 = vmatpush1.bf16.msra.mxu1 %v18130_v21  ;;  %v18127_v21 = vld [vmem:[#allocation9 + $0x1048] ss:$16 sps:$4 sm:$0xff]  }
 0xb5c   :  { %11390 = vmatprep.subr.bf16.mxu1 %v18138_v25  ;;  %v18141_v25 = vld [vmem:[#allocation9 + $0x100c] ss:$16 sps:$4 sm:$0xff]  }
 0xb5f   :  { %11391 = vmatpush1.bf16.msra.mxu1 %v18136_v23  ;;  %v18133_v23 = vld [vmem:[#allocation9 + $0x1028] ss:$16 sps:$4 sm:$0xff]  }
 0xb60   :  { %11392 = vmatprep.subr.bf16.mxu1 %v18144_v24  ;;  %v18147_v24 = vld [vmem:[#allocation9 + $0x11ec] ss:$16 sps:$4 sm:$0xff]  }
 0xb63   :  { %11393 = vmatpush2.bf16.msra.mxu1 %v18142_v26  ;;  %v18139_v26 = vld [vmem:[#allocation9 + $0x1008] ss:$16 sps:$4 sm:$0xff]  }
 0xb64   :  { %11394 = vmatprep.subr.bf16.mxu1 %v18150_v19  ;;  %v18153_v19 = vld [vmem:[#allocation9 + $0x11cc] ss:$16 sps:$4 sm:$0xff]  }
 0xb67   :  { %11395 = vmatpush2.bf16.msra.mxu1 %v18148_v27  ;;  %v18145_v27 = vld [vmem:[#allocation9 + $0x11e8] ss:$16 sps:$4 sm:$0xff]  }
 0xb68   :  { %11396 = vmatprep.subr.bf16.mxu1 %v18156_v22  ;;  %v18159_v22 = vld [vmem:[#allocation9 + $0x11ac] ss:$16 sps:$4 sm:$0xff]  }
 0xb6b   :  { %11397 = vmatpush2.bf16.msra.mxu1 %v18154_v28  ;;  %v18151_v28 = vld [vmem:[#allocation9 + $0x11c8] ss:$16 sps:$4 sm:$0xff]  }
 0xb6c   :  { %11398 = vmatprep.subr.bf16.mxu1 %v18162_v15 }
 0xb6f   :  { %11399 = vmatpush2.bf16.msra.mxu1 %v18160_v29  ;;  %v18157_v29 = vld [vmem:[#allocation9 + $0x11a8] ss:$16 sps:$4 sm:$0xff]  }
 0xb70   :  { %11400 = vmatprep.subr.bf16.mxu1 %v18168_v32  ;;  %v18163_v32 = vld [vmem:[#allocation9 + $0x1188] ss:$16 sps:$4 sm:$0xff]  }
 0xb73   :  { %11401 = vmatpush2.bf16.msra.mxu1 %v18166_v30  ;;  %v18165_v30 = vld [vmem:[#allocation9 + $0x118c] ss:$16 sps:$4 sm:$0xff]  }
 0xb74   :  { %11402 = vmatprep.subr.bf16.mxu1 %v18174_v33 }
 0xb77   :  { %11403 = vmatpush2.bf16.msra.mxu1 %v18172_v36  ;;  %v18171_v36 = vld [vmem:[#allocation9 + $0x116c] ss:$16 sps:$4 sm:$0xff]  }
 0xb78   :  { %11404 = vmatprep.subr.bf16.mxu1 %v18180_v37  ;;  %v9704_v37 = vrot.slane %v19340_v31, %v19085_v44 }
 0xb7b   :  { %11405 = vmatpush2.bf16.msra.mxu1 %v18178_v39  ;;  %v18169_v39 = vld [vmem:[#allocation9 + $0x1168] ss:$16 sps:$4 sm:$0xff]  }
 0xb7c   :  { %11406 = vmatprep.subr.bf16.mxu1 %v18186_v38  ;;  %v9700_v38 = vrot.slane %v19340_v31, %v19081_v42  ;;  %v18181_v31 = vld [vmem:[#allocation9 + $0x1128] ss:$16 sps:$4 sm:$0xff]  }
 0xb7f   :  { %11407 = vmatpush2.bf16.msra.mxu1 %v18184_v35 }
 0xb80   :  { %11462 = vmatprep.subr.bf16.mxu1 %v18192_v13  ;;  %v18177_v13 = vld [vmem:[#allocation9 + $0x114c] ss:$16 sps:$4 sm:$0xff]  }
 0xb82   :  { %v10383_v45 = vpop.f32.mrf.mxu0 }
 0xb83   :  { %v10384_v12 = vadd.f32 %v10383_v45, %v9692_v47 }
 0xb84   :  { %v10385_v40 = vpop.f32.mrf.mxu0 }
 0xb85   :  { %v10386_v34 = vadd.f32 %v10385_v40, %v9696_v0 }
 0xb86   :  { %v10387_v48 = vpop.f32.mrf.mxu0 }
 0xb87   :  { %v10388_v53 = vadd.f32 %v10387_v48, %v9692_v47 }
 0xb88   :  { %v10389_v50 = vpop.f32.mrf.mxu0 }
 0xb89   :  { %v10390_v59 = vadd.f32 %v10389_v50, %v9696_v0  ;;  %v18175_v0 = vld [vmem:[#allocation9 + $0x1148] ss:$16 sps:$4 sm:$0xff]  }
 0xbc2   :  { %v10426_v49 = vpop.f32.mrf.mxu1  ;;  %v10469_v15 = vpop.f32.mrf.mxu0 }
 0xbc3   :  { %v10427_v46 = vadd.f32 %v10426_v49, %v10384_v12  ;;  %v10470_v47 = vadd.f32 %v10469_v15, %v9700_v38  ;;  %v18213_v15 = vld [vmem:[#allocation9 + $0x120c] ss:$16 sps:$4 sm:$0xff]  }
 0xbc4   :  { %v10428_v51 = vpop.f32.mrf.mxu1  ;;  %v10471_v33 = vpop.f32.mrf.mxu0 }
 0xbc5   :  { %v10429_v52 = vadd.f32 %v10428_v51, %v10386_v34  ;;  %v10521_v55 = vmul.f32 0.01, %v10427_v46  ;;  %v10472_v40 = vadd.f32 %v10471_v33, %v9704_v37  ;;  %v18183_v34 = vld [vmem:[#allocation9 + $0x112c] ss:$16 sps:$4 sm:$0xff]   ;;  %v18211_v33 = vld [vmem:[#allocation9 + $0x1208] ss:$16 sps:$4 sm:$0xff]  }
 0xbc6   :  { %v10430_v57 = vpop.f32.mrf.mxu1  ;;  %v10473_v35 = vpop.f32.mrf.mxu0 }
 0xbc7   :  { %v10431_v60 = vadd.f32 %v10430_v57, %v10388_v53  ;;  %v10522_v54 = vmul.f32 0.01, %v10429_v52  ;;  %v10529_v1 = vmax.f32 %v10427_v46, %v10521_v55  ;;  %v10474_v12 = vadd.f32 %v10473_v35, %v9700_v38  ;;  %v18187_v55 = vld [vmem:[#allocation9 + $0x1108] ss:$16 sps:$4 sm:$0xff]   ;;  %v18219_v35 = vld [vmem:[#allocation9 + $0x13cc] ss:$16 sps:$4 sm:$0xff]  }
 0xbc8   :  { %v10432_v61 = vpop.f32.mrf.mxu1  ;;  %v10475_v48 = vpop.f32.mrf.mxu0  ;;  %v18214_v38 = vld [vmem:[#allocation9 + $0x13e8] ss:$16 sps:$4 sm:$0xff]  }
 0xbc9   :  { %v10525_v2 = vmul.f32 0.01, %v10431_v60  ;;  %v10433_v3 = vadd.f32 %v10432_v61, %v10390_v59  ;;  %v10530_v7 = vmax.f32 %v10429_v52, %v10522_v54  ;;  %v10476_v52 = vadd.f32 %v10475_v48, %v9704_v37  ;;  %v18189_v59 = vld [vmem:[#allocation9 + $0x110c] ss:$16 sps:$4 sm:$0xff]   ;;  %v18253_v37 = vld [vmem:[#allocation9 + $0x1440] ss:$16 sps:$4 sm:$0xff]  }
 0xbca   :  { %v18264_v48 = vld [vmem:[#allocation9 + $0x15e4] ss:$16 sps:$4 sm:$0xff]  }
 0xbcb   :  { %v10526_v4 = vmul.f32 0.01, %v10433_v3  ;;  %v10533_v58 = vmax.f32 %v10431_v60, %v10525_v2 }
 0xbcd   :  { %v10534_v8 = vmax.f32 %v10433_v3, %v10526_v4  ;;  %v19346_v10 = vpack.c.bf16 %v10533_v58, %v10529_v1 }
 0xbcf   :  { %v10667_v9 = vpack.c.bf16 %v10534_v8, %v10530_v7 }
 0xbd1   :  { %11365 = vmatprep.mubr.bf16.mxu0 %v10667_v9 }
 0xbd2   :  { %11366 = vmatmul.mubr.bf16.vlgmr.msra.gmra.mxu0 %v19346_v10 }
 0xbd3   :  { %11420 = vmatpush1.bf16.msra.mxu0 %v18097_v62  ;;  %11451 = vmatprep.mubr.bf16.mxu0 %v10667_v9  ;;  %v18190_v9 = vld [vmem:[#allocation9 + $0x12e8] ss:$16 sps:$4 sm:$0xff]  }
 0xbd4   :  { %11421 = vmatprep.subr.bf16.mxu0 %v18105_v56  ;;  %v18195_v56 = vld [vmem:[#allocation9 + $0x12cc] ss:$16 sps:$4 sm:$0xff]  }
 0xbd7   :  { %11422 = vmatpush1.bf16.msra.mxu0 %v18103_v11  ;;  %v18193_v11 = vld [vmem:[#allocation9 + $0x12c8] ss:$16 sps:$4 sm:$0xff]  }
 0xbd8   :  { %11423 = vmatprep.subr.bf16.mxu0 %v18111_v14  ;;  %v18198_v14 = vld [vmem:[#allocation9 + $0x12ac] ss:$16 sps:$4 sm:$0xff]  }
 0xbdb   :  { %11424 = vmatpush1.bf16.msra.mxu0 %v18109_v16  ;;  %v18196_v16 = vld [vmem:[#allocation9 + $0x12a8] ss:$16 sps:$4 sm:$0xff]  }
 0xbdc   :  { %11425 = vmatprep.subr.bf16.mxu0 %v18117_v5  ;;  %v18201_v5 = vld [vmem:[#allocation9 + $0x128c] ss:$16 sps:$4 sm:$0xff]  }
 0xbdf   :  { %11426 = vmatpush1.bf16.msra.mxu0 %v18115_v6  ;;  %v18238_v6 = vld [vmem:[#allocation9 + $0x14e0] ss:$16 sps:$4 sm:$0xff]  }
 0xbe0   :  { %11427 = vmatprep.subr.bf16.mxu0 %v18123_v63  ;;  %v18240_v63 = vld [vmem:[#allocation9 + $0x14e4] ss:$16 sps:$4 sm:$0xff]  }
 0xbe3   :  { %11428 = vmatpush1.bf16.msra.mxu0 %v18121_v17  ;;  %v18243_v17 = vld [vmem:[#allocation9 + $0x14c4] ss:$16 sps:$4 sm:$0xff]  }
 0xbe4   :  { %11429 = vmatprep.subr.bf16.mxu0 %v18129_v20  ;;  %v18199_v20 = vld [vmem:[#allocation9 + $0x1288] ss:$16 sps:$4 sm:$0xff]  }
 0xbe7   :  { %11430 = vmatpush1.bf16.msra.mxu0 %v18127_v21  ;;  %v18204_v21 = vld [vmem:[#allocation9 + $0x126c] ss:$16 sps:$4 sm:$0xff]  }
 0xbe8   :  { %11431 = vmatprep.subr.bf16.mxu0 %v18135_v18  ;;  %v18241_v18 = vld [vmem:[#allocation9 + $0x14c0] ss:$16 sps:$4 sm:$0xff]  }
 0xbeb   :  { %11432 = vmatpush1.bf16.msra.mxu0 %v18133_v23  ;;  %v18202_v23 = vld [vmem:[#allocation9 + $0x1268] ss:$16 sps:$4 sm:$0xff]  }
 0xbec   :  { %11433 = vmatprep.subr.bf16.mxu0 %v18141_v25  ;;  %v18207_v25 = vld [vmem:[#allocation9 + $0x124c] ss:$16 sps:$4 sm:$0xff]  }
 0xbef   :  { %11434 = vmatpush1.bf16.msra.mxu0 %v18139_v26  ;;  %v18244_v26 = vld [vmem:[#allocation9 + $0x14a0] ss:$16 sps:$4 sm:$0xff]  }
 0xbf0   :  { %11435 = vmatprep.subr.bf16.mxu0 %v18147_v24  ;;  %v18249_v24 = vld [vmem:[#allocation9 + $0x1484] ss:$16 sps:$4 sm:$0xff]  }
 0xbf3   :  { %11436 = vmatpush2.bf16.msra.mxu0 %v18145_v27  ;;  %v18205_v27 = vld [vmem:[#allocation9 + $0x1248] ss:$16 sps:$4 sm:$0xff]  }
 0xbf4   :  { %11437 = vmatprep.subr.bf16.mxu0 %v18153_v19  ;;  %v18210_v19 = vld [vmem:[#allocation9 + $0x122c] ss:$16 sps:$4 sm:$0xff]  }
 0xbf7   :  { %11438 = vmatpush2.bf16.msra.mxu0 %v18151_v28  ;;  %v18247_v28 = vld [vmem:[#allocation9 + $0x1480] ss:$16 sps:$4 sm:$0xff]  }
 0xbf8   :  { %11439 = vmatprep.subr.bf16.mxu0 %v18159_v22  ;;  %v18252_v22 = vld [vmem:[#allocation9 + $0x1464] ss:$16 sps:$4 sm:$0xff]  }
 0xbfb   :  { %11440 = vmatpush2.bf16.msra.mxu0 %v18157_v29  ;;  %v18208_v29 = vld [vmem:[#allocation9 + $0x1228] ss:$16 sps:$4 sm:$0xff]  }
 0xbfc   :  { %11441 = vmatprep.subr.bf16.mxu0 %v18165_v30  ;;  %v18250_v30 = vld [vmem:[#allocation9 + $0x1460] ss:$16 sps:$4 sm:$0xff]  }
 0xbff   :  { %11442 = vmatpush2.bf16.msra.mxu0 %v18163_v32  ;;  %v18255_v32 = vld [vmem:[#allocation9 + $0x1444] ss:$16 sps:$4 sm:$0xff]  }
 0xc00   :  { %11443 = vmatprep.subr.bf16.mxu0 %v18171_v36  ;;  %v18216_v36 = vld [vmem:[#allocation9 + $0x13ec] ss:$16 sps:$4 sm:$0xff]  }
 0xc02   :  { %v10512_v45 = vpop.f32.mrf.mxu1 }
 0xc03   :  { %11444 = vmatpush2.bf16.msra.mxu0 %v18169_v39  ;;  %v10513_v51 = vadd.f32 %v10512_v45, %v10470_v47  ;;  %v18258_v39 = vld [vmem:[#allocation9 + $0x1424] ss:$16 sps:$4 sm:$0xff]   ;;  %v18259_v47 = vld [vmem:[#allocation9 + $0x1400] ss:$16 sps:$4 sm:$0xff]  }
 0xc04   :  { %v10514_v49 = vpop.f32.mrf.mxu1  ;;  %11445 = vmatprep.subr.bf16.mxu0 %v18177_v13  ;;  %v18256_v13 = vld [vmem:[#allocation9 + $0x1420] ss:$16 sps:$4 sm:$0xff]   ;;  %v18261_v45 = vld [vmem:[#allocation9 + $0x1404] ss:$16 sps:$4 sm:$0xff]  }
 0xc05   :  { %v10515_v50 = vadd.f32 %v10514_v49, %v10472_v40  ;;  %v10523_v2 = vmul.f32 0.01, %v10513_v51  ;;  %v18217_v40 = vld [vmem:[#allocation9 + $0x13c8] ss:$16 sps:$4 sm:$0xff]  }
 0xc06   :  { %v10516_v53 = vpop.f32.mrf.mxu1  ;;  %v18220_v49 = vld [vmem:[#allocation9 + $0x13a8] ss:$16 sps:$4 sm:$0xff]  }
 0xc07   :  { %v10517_v46 = vadd.f32 %v10516_v53, %v10474_v12  ;;  %11446 = vmatpush2.bf16.msra.mxu0 %v18175_v0  ;;  %v10524_v60 = vmul.f32 0.01, %v10515_v50  ;;  %v10531_v8 = vmax.f32 %v10513_v51, %v10523_v2  ;;  %v18222_v0 = vld [vmem:[#allocation9 + $0x13ac] ss:$16 sps:$4 sm:$0xff]   ;;  %v18262_v12 = vld [vmem:[#allocation9 + $0x15e0] ss:$16 sps:$4 sm:$0xff]  }
 0xc08   :  { %v10518_v57 = vpop.f32.mrf.mxu1  ;;  %11447 = vmatprep.subr.bf16.mxu0 %v18183_v34  ;;  %v18225_v34 = vld [vmem:[#allocation9 + $0x138c] ss:$16 sps:$4 sm:$0xff]   ;;  %v18223_v51 = vld [vmem:[#allocation9 + $0x1388] ss:$16 sps:$4 sm:$0xff]   ;;  %v18271_v2 = vld [vmem:[#allocation9 + $0x1580] ss:$16 sps:$4 sm:$0xff]  }
 0xc09   :  { %v10527_v61 = vmul.f32 0.01, %v10517_v46  ;;  %v10519_v54 = vadd.f32 %v10518_v57, %v10476_v52  ;;  %v10532_v58 = vmax.f32 %v10515_v50, %v10524_v60  ;;  %v18267_v50 = vld [vmem:[#allocation9 + $0x15c4] ss:$16 sps:$4 sm:$0xff]   ;;  %v18228_v53 = vld [vmem:[#allocation9 + $0x136c] ss:$16 sps:$4 sm:$0xff]  }
 0xc0a   :  { %v18265_v52 = vld [vmem:[#allocation9 + $0x15c0] ss:$16 sps:$4 sm:$0xff]   ;;  %v18231_v57 = vld [vmem:[#allocation9 + $0x134c] ss:$16 sps:$4 sm:$0xff]   ;;  %v18273_v60 = vld [vmem:[#allocation9 + $0x1584] ss:$16 sps:$4 sm:$0xff]  }
 0xc0b   :  { %v10528_v3 = vmul.f32 0.01, %v10519_v54  ;;  %11448 = vmatpush2.bf16.msra.mxu0 %v18181_v31  ;;  %v10535_v4 = vmax.f32 %v10517_v46, %v10527_v61  ;;  %v18270_v46 = vld [vmem:[#allocation9 + $0x15a4] ss:$16 sps:$4 sm:$0xff]   ;;  %v18226_v31 = vld [vmem:[#allocation9 + $0x1368] ss:$16 sps:$4 sm:$0xff]  }
 0xc0c   :  { %11449 = vmatprep.subr.bf16.mxu0 %v18189_v59  ;;  %v18268_v59 = vld [vmem:[#allocation9 + $0x15a0] ss:$16 sps:$4 sm:$0xff]   ;;  %v18229_v61 = vld [vmem:[#allocation9 + $0x1348] ss:$16 sps:$4 sm:$0xff]  }
 0xc0d   :  { %v10536_v7 = vmax.f32 %v10519_v54, %v10528_v3  ;;  %v19353_v62 = vpack.c.bf16 %v10535_v4, %v10531_v8  ;;  %v18234_v54 = vld [vmem:[#allocation9 + $0x132c] ss:$16 sps:$4 sm:$0xff]   ;;  %v18276_v3 = vld [vmem:[#allocation9 + $0x1564] ss:$16 sps:$4 sm:$0xff]  }
 0xc0e   :  { %v18237_v4 = vld [vmem:[#allocation9 + $0x130c] ss:$16 sps:$4 sm:$0xff]   ;;  %v18279_v8 = vld [vmem:[#allocation9 + $0x1544] ss:$16 sps:$4 sm:$0xff]  }
 0xc0f   :  { %11450 = vmatpush2.bf16.msra.mxu0 %v18187_v55  ;;  %v10669_v1 = vpack.c.bf16 %v10536_v7, %v10532_v58  ;;  %v18232_v55 = vld [vmem:[#allocation9 + $0x1328] ss:$16 sps:$4 sm:$0xff]   ;;  %v18274_v58 = vld [vmem:[#allocation9 + $0x1560] ss:$16 sps:$4 sm:$0xff]  }
 0xc10   :  { %12317 = vmatprep.subr.bf16.mxu0 %v18240_v63  ;;  %v18235_v7 = vld [vmem:[#allocation9 + $0x1308] ss:$16 sps:$4 sm:$0xff]   ;;  %v18292_v63 = vld [vmem:[#allocation9 + $0x16c0] ss:$16 sps:$4 sm:$0xff]  }
 0xc11   :  { %11408 = vmatprep.mubr.bf16.mxu1 %v10669_v1 }
 0xc12   :  { %11409 = vmatmul.mubr.bf16.vlgmr.msra.gmra.mxu1 %v19353_v62  ;;  %11452 = vmatmul.mubr.bf16.vlgmr.msra.gmra.mxu0 %v19346_v10  ;;  %v18246_v10 = vld [vmem:[#allocation9 + $0x14a4] ss:$16 sps:$4 sm:$0xff]  }
 0xc13   :  { %11463 = vmatpush1.bf16.msra.mxu1 %v18190_v9  ;;  %11494 = vmatprep.mubr.bf16.mxu1 %v10669_v1  ;;  %v18277_v1 = vld [vmem:[#allocation9 + $0x1540] ss:$16 sps:$4 sm:$0xff]   ;;  %v18282_v9 = vld [vmem:[#allocation9 + $0x1524] ss:$16 sps:$4 sm:$0xff]  }
 0xc14   :  { %11464 = vmatprep.subr.bf16.mxu1 %v18195_v56  ;;  %12318 = vmatpush1.bf16.msra.mxu0 %v18238_v6  ;;  %v18280_v56 = vld [vmem:[#allocation9 + $0x1520] ss:$16 sps:$4 sm:$0xff]   ;;  %v18291_v6 = vld [vmem:[#allocation9 + $0x14ec] ss:$16 sps:$4 sm:$0xff]  }
 0xc15   :  { %12319 = vmatprep.subr.bf16.mxu0 %v18243_v17  ;;  %v18298_v17 = vld [vmem:[#allocation9 + $0x16a0] ss:$16 sps:$4 sm:$0xff]  }
 0xc17   :  { %11465 = vmatpush1.bf16.msra.mxu1 %v18193_v11  ;;  %v18285_v11 = vld [vmem:[#allocation9 + $0x1504] ss:$16 sps:$4 sm:$0xff]  }
 0xc18   :  { %11466 = vmatprep.subr.bf16.mxu1 %v18198_v14  ;;  %12320 = vmatpush1.bf16.msra.mxu0 %v18241_v18  ;;  %v18283_v14 = vld [vmem:[#allocation9 + $0x1500] ss:$16 sps:$4 sm:$0xff]   ;;  %v18306_v18 = vld [vmem:[#allocation9 + $0x1684] ss:$16 sps:$4 sm:$0xff]  }
 0xc19   :  { %12321 = vmatprep.subr.bf16.mxu0 %v18246_v10  ;;  %v18310_v10 = vld [vmem:[#allocation9 + $0x1660] ss:$16 sps:$4 sm:$0xff]  }
 0xc1b   :  { %11467 = vmatpush1.bf16.msra.mxu1 %v18196_v16  ;;  %v18286_v16 = vld [vmem:[#allocation9 + $0x16e0] ss:$16 sps:$4 sm:$0xff]  }
 0xc1c   :  { %11468 = vmatprep.subr.bf16.mxu1 %v18201_v5  ;;  %12322 = vmatpush1.bf16.msra.mxu0 %v18244_v26  ;;  %v18288_v5 = vld [vmem:[#allocation9 + $0x16e4] ss:$16 sps:$4 sm:$0xff]  }
 0xc1d   :  { %12323 = vmatprep.subr.bf16.mxu0 %v18249_v24  ;;  %v18318_v26 = vld [vmem:[#allocation9 + $0x1644] ss:$16 sps:$4 sm:$0xff]   ;;  %v18322_v24 = vld [vmem:[#allocation9 + $0x1620] ss:$16 sps:$4 sm:$0xff]  }
 0xc1f   :  { %11469 = vmatpush1.bf16.msra.mxu1 %v18199_v20  ;;  %v18300_v20 = vld [vmem:[#allocation9 + $0x16a4] ss:$16 sps:$4 sm:$0xff]  }
 0xc20   :  { %11470 = vmatprep.subr.bf16.mxu1 %v18204_v21  ;;  %12324 = vmatpush1.bf16.msra.mxu0 %v18247_v28  ;;  %v18304_v21 = vld [vmem:[#allocation9 + $0x1680] ss:$16 sps:$4 sm:$0xff]   ;;  %v18330_v28 = vld [vmem:[#allocation9 + $0x1604] ss:$16 sps:$4 sm:$0xff]  }
 0xc21   :  { %12325 = vmatprep.subr.bf16.mxu0 %v18252_v22  ;;  %v18334_v22 = vld [vmem:[#allocation9 + $0x17e0] ss:$16 sps:$4 sm:$0xff]  }
 0xc23   :  { %11471 = vmatpush1.bf16.msra.mxu1 %v18202_v23  ;;  %v18312_v23 = vld [vmem:[#allocation9 + $0x1664] ss:$16 sps:$4 sm:$0xff]  }
 0xc24   :  { %11472 = vmatprep.subr.bf16.mxu1 %v18207_v25  ;;  %12326 = vmatpush1.bf16.msra.mxu0 %v18250_v30  ;;  %v18316_v25 = vld [vmem:[#allocation9 + $0x1640] ss:$16 sps:$4 sm:$0xff]   ;;  %v18342_v30 = vld [vmem:[#allocation9 + $0x17c4] ss:$16 sps:$4 sm:$0xff]  }
 0xc25   :  { %12327 = vmatprep.subr.bf16.mxu0 %v18255_v32  ;;  %v18346_v32 = vld [vmem:[#allocation9 + $0x17a0] ss:$16 sps:$4 sm:$0xff]  }
 0xc27   :  { %11473 = vmatpush1.bf16.msra.mxu1 %v18205_v27  ;;  %v18324_v27 = vld [vmem:[#allocation9 + $0x1624] ss:$16 sps:$4 sm:$0xff]  }
 0xc28   :  { %11474 = vmatprep.subr.bf16.mxu1 %v18210_v19  ;;  %12328 = vmatpush1.bf16.msra.mxu0 %v18253_v37  ;;  %v18328_v19 = vld [vmem:[#allocation9 + $0x1600] ss:$16 sps:$4 sm:$0xff]   ;;  %v18354_v37 = vld [vmem:[#allocation9 + $0x1784] ss:$16 sps:$4 sm:$0xff]  }
 0xc29   :  { %12329 = vmatprep.subr.bf16.mxu0 %v18258_v39  ;;  %v18358_v39 = vld [vmem:[#allocation9 + $0x1760] ss:$16 sps:$4 sm:$0xff]  }
 0xc2b   :  { %11475 = vmatpush1.bf16.msra.mxu1 %v18208_v29  ;;  %v18336_v29 = vld [vmem:[#allocation9 + $0x17e4] ss:$16 sps:$4 sm:$0xff]  }
 0xc2c   :  { %11476 = vmatprep.subr.bf16.mxu1 %v18213_v15  ;;  %12330 = vmatpush1.bf16.msra.mxu0 %v18256_v13  ;;  %v18340_v15 = vld [vmem:[#allocation9 + $0x17c0] ss:$16 sps:$4 sm:$0xff]  }
 0xc2d   :  { %12331 = vmatprep.subr.bf16.mxu0 %v18261_v45  ;;  %v18364_v13 = vld [vmem:[#allocation9 + $0x1740] ss:$16 sps:$4 sm:$0xff]   ;;  %v18372_v45 = vld [vmem:[#allocation9 + $0x1724] ss:$16 sps:$4 sm:$0xff]  }
 0xc2f   :  { %11477 = vmatpush1.bf16.msra.mxu1 %v18211_v33  ;;  %v18348_v33 = vld [vmem:[#allocation9 + $0x17a4] ss:$16 sps:$4 sm:$0xff]  }
 0xc30   :  { %11478 = vmatprep.subr.bf16.mxu1 %v18216_v36  ;;  %12332 = vmatpush1.bf16.msra.mxu0 %v18259_v47  ;;  %v18352_v36 = vld [vmem:[#allocation9 + $0x1780] ss:$16 sps:$4 sm:$0xff]  }
 0xc31   :  { %12333 = vmatprep.subr.bf16.mxu0 %v18264_v48  ;;  %v18376_v47 = vld [vmem:[#allocation9 + $0x1700] ss:$16 sps:$4 sm:$0xff]   ;;  %v18384_v48 = vld [vmem:[#allocation9 + $0x16ec] ss:$16 sps:$4 sm:$0xff]  }
 0xc33   :  { %11479 = vmatpush2.bf16.msra.mxu1 %v18214_v38  ;;  %v18360_v38 = vld [vmem:[#allocation9 + $0x1764] ss:$16 sps:$4 sm:$0xff]  }
 0xc34   :  { %11480 = vmatprep.subr.bf16.mxu1 %v18219_v35  ;;  %12334 = vmatpush2.bf16.msra.mxu0 %v18262_v12  ;;  %v18366_v35 = vld [vmem:[#allocation9 + $0x1744] ss:$16 sps:$4 sm:$0xff]   ;;  %v19358_v12 = vld [vmem:[#allocation10 + $0x10] sm:$0xf] }
 0xc35   :  { %12335 = vmatprep.subr.bf16.mxu0 %v18267_v50  ;;  %v10680_v50 = vrot.slane %v19358_v12, %v19083_v43 }
 0xc37   :  { %11481 = vmatpush2.bf16.msra.mxu1 %v18217_v40  ;;  %v18370_v40 = vld [vmem:[#allocation9 + $0x1720] ss:$16 sps:$4 sm:$0xff]  }
 0xc38   :  { %11482 = vmatprep.subr.bf16.mxu1 %v18222_v0  ;;  %12336 = vmatpush2.bf16.msra.mxu0 %v18265_v52  ;;  %v18378_v0 = vld [vmem:[#allocation9 + $0x1704] ss:$16 sps:$4 sm:$0xff]  }
 0xc39   :  { %12337 = vmatprep.subr.bf16.mxu0 %v18270_v46 }
 0xc3b   :  { %11483 = vmatpush2.bf16.msra.mxu1 %v18220_v49 }
 0xc3c   :  { %11484 = vmatprep.subr.bf16.mxu1 %v18225_v34  ;;  %12338 = vmatpush2.bf16.msra.mxu0 %v18268_v59 }
 0xc3d   :  { %12339 = vmatprep.subr.bf16.mxu0 %v18273_v60 }
 0xc3f   :  { %11485 = vmatpush2.bf16.msra.mxu1 %v18223_v51  ;;  %v10676_v51 = vrot.slane %v19358_v12, %v19079_v41 }
 0xc40   :  { %11486 = vmatprep.subr.bf16.mxu1 %v18228_v53  ;;  %12340 = vmatpush2.bf16.msra.mxu0 %v18271_v2 }
 0xc41   :  { %12341 = vmatprep.subr.bf16.mxu0 %v18276_v3 }
 0xc43   :  { %11487 = vmatpush2.bf16.msra.mxu1 %v18226_v31 }
 0xc44   :  { %11488 = vmatprep.subr.bf16.mxu1 %v18231_v57  ;;  %12342 = vmatpush2.bf16.msra.mxu0 %v18274_v58 }
 0xc45   :  { %12343 = vmatprep.subr.bf16.mxu0 %v18279_v8 }
 0xc47   :  { %11489 = vmatpush2.bf16.msra.mxu1 %v18229_v61 }
 0xc48   :  { %11490 = vmatprep.subr.bf16.mxu1 %v18234_v54  ;;  %12344 = vmatpush2.bf16.msra.mxu0 %v18277_v1 }
 0xc49   :  { %12345 = vmatprep.subr.bf16.mxu0 %v18282_v9 }
 0xc4b   :  { %11491 = vmatpush2.bf16.msra.mxu1 %v18232_v55 }
 0xc4c   :  { %11492 = vmatprep.subr.bf16.mxu1 %v18237_v4  ;;  %12346 = vmatpush2.bf16.msra.mxu0 %v18280_v56 }
 0xc4d   :  { %12347 = vmatprep.subr.bf16.mxu0 %v18285_v11 }
 0xc4f   :  { %11493 = vmatpush2.bf16.msra.mxu1 %v18235_v7 }
 0xc50   :  { %12348 = vmatpush2.bf16.msra.mxu0 %v18283_v14  ;;  %12360 = vmatprep.subr.bf16.mxu1 %v18288_v5 }
 0xc51   :  { %12403 = vmatprep.subr.bf16.mxu0 %v18291_v6  ;;  %v18289_v6 = vld [vmem:[#allocation9 + $0x14e8] ss:$16 sps:$4 sm:$0xff]  }
 0xc52   :  { %11495 = vmatmul.mubr.bf16.vlgmr.msra.gmra.mxu1 %v19353_v62  ;;  %v18294_v62 = vld [vmem:[#allocation9 + $0x16c4] ss:$16 sps:$4 sm:$0xff]  }
 0xc53   :  { %12361 = vmatpush1.bf16.msra.mxu1 %v18286_v16 }
 0xc54   :  { %12362 = vmatprep.subr.bf16.mxu1 %v18294_v62  ;;  %v18297_v62 = vld [vmem:[#allocation9 + $0x14cc] ss:$16 sps:$4 sm:$0xff]  }
 0xc57   :  { %12363 = vmatpush1.bf16.msra.mxu1 %v18292_v63 }
 0xc58   :  { %12364 = vmatprep.subr.bf16.mxu1 %v18300_v20  ;;  %v18303_v20 = vld [vmem:[#allocation9 + $0x14ac] ss:$16 sps:$4 sm:$0xff]  }
 0xc5b   :  { %12365 = vmatpush1.bf16.msra.mxu1 %v18298_v17  ;;  %v18295_v17 = vld [vmem:[#allocation9 + $0x14c8] ss:$16 sps:$4 sm:$0xff]  }
 0xc5c   :  { %12366 = vmatprep.subr.bf16.mxu1 %v18306_v18  ;;  %v18309_v18 = vld [vmem:[#allocation9 + $0x148c] ss:$16 sps:$4 sm:$0xff]  }
 0xc5f   :  { %12367 = vmatpush1.bf16.msra.mxu1 %v18304_v21  ;;  %v18301_v21 = vld [vmem:[#allocation9 + $0x14a8] ss:$16 sps:$4 sm:$0xff]  }
 0xc60   :  { %12368 = vmatprep.subr.bf16.mxu1 %v18312_v23  ;;  %v18315_v23 = vld [vmem:[#allocation9 + $0x146c] ss:$16 sps:$4 sm:$0xff]  }
 0xc63   :  { %12369 = vmatpush1.bf16.msra.mxu1 %v18310_v10  ;;  %v18307_v10 = vld [vmem:[#allocation9 + $0x1488] ss:$16 sps:$4 sm:$0xff]  }
 0xc64   :  { %12370 = vmatprep.subr.bf16.mxu1 %v18318_v26  ;;  %v18321_v26 = vld [vmem:[#allocation9 + $0x144c] ss:$16 sps:$4 sm:$0xff]  }
 0xc67   :  { %12371 = vmatpush1.bf16.msra.mxu1 %v18316_v25  ;;  %v18313_v25 = vld [vmem:[#allocation9 + $0x1468] ss:$16 sps:$4 sm:$0xff]  }
 0xc68   :  { %12372 = vmatprep.subr.bf16.mxu1 %v18324_v27  ;;  %v18327_v27 = vld [vmem:[#allocation9 + $0x142c] ss:$16 sps:$4 sm:$0xff]  }
 0xc6b   :  { %12373 = vmatpush1.bf16.msra.mxu1 %v18322_v24  ;;  %v18319_v24 = vld [vmem:[#allocation9 + $0x1448] ss:$16 sps:$4 sm:$0xff]  }
 0xc6c   :  { %12374 = vmatprep.subr.bf16.mxu1 %v18330_v28  ;;  %v18333_v28 = vld [vmem:[#allocation9 + $0x140c] ss:$16 sps:$4 sm:$0xff]  }
 0xc6f   :  { %12375 = vmatpush1.bf16.msra.mxu1 %v18328_v19  ;;  %v18325_v19 = vld [vmem:[#allocation9 + $0x1428] ss:$16 sps:$4 sm:$0xff]  }
 0xc70   :  { %12376 = vmatprep.subr.bf16.mxu1 %v18336_v29  ;;  %v18339_v29 = vld [vmem:[#allocation9 + $0x15ec] ss:$16 sps:$4 sm:$0xff]  }
 0xc73   :  { %12377 = vmatpush2.bf16.msra.mxu1 %v18334_v22  ;;  %v18331_v22 = vld [vmem:[#allocation9 + $0x1408] ss:$16 sps:$4 sm:$0xff]  }
 0xc74   :  { %12378 = vmatprep.subr.bf16.mxu1 %v18342_v30  ;;  %v18345_v30 = vld [vmem:[#allocation9 + $0x15cc] ss:$16 sps:$4 sm:$0xff]  }
 0xc77   :  { %12379 = vmatpush2.bf16.msra.mxu1 %v18340_v15  ;;  %v18337_v15 = vld [vmem:[#allocation9 + $0x15e8] ss:$16 sps:$4 sm:$0xff]  }
 0xc78   :  { %12380 = vmatprep.subr.bf16.mxu1 %v18348_v33  ;;  %v18351_v33 = vld [vmem:[#allocation9 + $0x15ac] ss:$16 sps:$4 sm:$0xff]  }
 0xc7b   :  { %12381 = vmatpush2.bf16.msra.mxu1 %v18346_v32  ;;  %v18343_v32 = vld [vmem:[#allocation9 + $0x15c8] ss:$16 sps:$4 sm:$0xff]  }
 0xc7c   :  { %12382 = vmatprep.subr.bf16.mxu1 %v18354_v37 }
 0xc7f   :  { %12383 = vmatpush2.bf16.msra.mxu1 %v18352_v36  ;;  %v18349_v36 = vld [vmem:[#allocation9 + $0x15a8] ss:$16 sps:$4 sm:$0xff]  }
 0xc80   :  { %12384 = vmatprep.subr.bf16.mxu1 %v18360_v38  ;;  %v18355_v38 = vld [vmem:[#allocation9 + $0x1588] ss:$16 sps:$4 sm:$0xff]  }
 0xc83   :  { %12385 = vmatpush2.bf16.msra.mxu1 %v18358_v39  ;;  %v18357_v39 = vld [vmem:[#allocation9 + $0x158c] ss:$16 sps:$4 sm:$0xff]  }
 0xc84   :  { %12386 = vmatprep.subr.bf16.mxu1 %v18366_v35 }
 0xc87   :  { %12387 = vmatpush2.bf16.msra.mxu1 %v18364_v13  ;;  %v18363_v13 = vld [vmem:[#allocation9 + $0x156c] ss:$16 sps:$4 sm:$0xff]  }
 0xc88   :  { %12388 = vmatprep.subr.bf16.mxu1 %v18372_v45  ;;  %v10688_v45 = vrot.slane %v19358_v12, %v19085_v44 }
 0xc8b   :  { %12389 = vmatpush2.bf16.msra.mxu1 %v18370_v40  ;;  %v18361_v40 = vld [vmem:[#allocation9 + $0x1568] ss:$16 sps:$4 sm:$0xff]  }
 0xc8c   :  { %12390 = vmatprep.subr.bf16.mxu1 %v18378_v0  ;;  %v10684_v0 = vrot.slane %v19358_v12, %v19081_v42  ;;  %v18373_v12 = vld [vmem:[#allocation9 + $0x1528] ss:$16 sps:$4 sm:$0xff]  }
 0xc8f   :  { %12391 = vmatpush2.bf16.msra.mxu1 %v18376_v47 }
 0xc90   :  { %12446 = vmatprep.subr.bf16.mxu1 %v18384_v48  ;;  %v18369_v48 = vld [vmem:[#allocation9 + $0x154c] ss:$16 sps:$4 sm:$0xff]  }
 0xc92   :  { %v11367_v49 = vpop.f32.mrf.mxu0 }
 0xc93   :  { %v11368_v31 = vadd.f32 %v11367_v49, %v10676_v51 }
 0xc94   :  { %v11369_v34 = vpop.f32.mrf.mxu0 }
 0xc95   :  { %v11370_v46 = vadd.f32 %v11369_v34, %v10680_v50 }
 0xc96   :  { %v11371_v53 = vpop.f32.mrf.mxu0 }
 0xc97   :  { %v11372_v60 = vadd.f32 %v11371_v53, %v10676_v51 }
 0xc98   :  { %v11373_v57 = vpop.f32.mrf.mxu0 }
 0xc99   :  { %v11374_v3 = vadd.f32 %v11373_v57, %v10680_v50  ;;  %v18367_v50 = vld [vmem:[#allocation9 + $0x1548] ss:$16 sps:$4 sm:$0xff]  }
 0xcd2   :  { %v11410_v52 = vpop.f32.mrf.mxu1  ;;  %v11453_v37 = vpop.f32.mrf.mxu0 }
 0xcd3   :  { %v11411_v54 = vadd.f32 %v11410_v52, %v11368_v31  ;;  %v11454_v51 = vadd.f32 %v11453_v37, %v10684_v0  ;;  %v18405_v37 = vld [vmem:[#allocation9 + $0x160c] ss:$16 sps:$4 sm:$0xff]  }
 0xcd4   :  { %v11412_v59 = vpop.f32.mrf.mxu1  ;;  %v11455_v35 = vpop.f32.mrf.mxu0 }
 0xcd5   :  { %v11413_v61 = vadd.f32 %v11412_v59, %v11370_v46  ;;  %v11505_v1 = vmul.f32 0.01, %v11411_v54  ;;  %v11456_v34 = vadd.f32 %v11455_v35, %v10688_v45  ;;  %v18375_v46 = vld [vmem:[#allocation9 + $0x152c] ss:$16 sps:$4 sm:$0xff]   ;;  %v18403_v35 = vld [vmem:[#allocation9 + $0x1608] ss:$16 sps:$4 sm:$0xff]  }
 0xcd6   :  { %v11414_v2 = vpop.f32.mrf.mxu1  ;;  %v11457_v47 = vpop.f32.mrf.mxu0 }
 0xcd7   :  { %v11415_v55 = vadd.f32 %v11414_v2, %v11372_v60  ;;  %v11506_v58 = vmul.f32 0.01, %v11413_v61  ;;  %v11513_v16 = vmax.f32 %v11411_v54, %v11505_v1  ;;  %v11458_v31 = vadd.f32 %v11457_v47, %v10684_v0  ;;  %v18379_v1 = vld [vmem:[#allocation9 + $0x1508] ss:$16 sps:$4 sm:$0xff]   ;;  %v18411_v47 = vld [vmem:[#allocation9 + $0x17cc] ss:$16 sps:$4 sm:$0xff]  }
 0xcd8   :  { %v11416_v4 = vpop.f32.mrf.mxu1  ;;  %v11459_v53 = vpop.f32.mrf.mxu0  ;;  %v18406_v0 = vld [vmem:[#allocation9 + $0x17e8] ss:$16 sps:$4 sm:$0xff]  }
 0xcd9   :  { %v11509_v7 = vmul.f32 0.01, %v11415_v55  ;;  %v11417_v8 = vadd.f32 %v11416_v4, %v11374_v3  ;;  %v11514_v11 = vmax.f32 %v11413_v61, %v11506_v58  ;;  %v11460_v61 = vadd.f32 %v11459_v53, %v10688_v45  ;;  %v18381_v3 = vld [vmem:[#allocation9 + $0x150c] ss:$16 sps:$4 sm:$0xff]   ;;  %v18445_v45 = vld [vmem:[#allocation9 + $0x1840] ss:$16 sps:$4 sm:$0xff]  }
 0xcda   :  { %v18456_v53 = vld [vmem:[#allocation9 + $0x19e4] ss:$16 sps:$4 sm:$0xff]  }
 0xcdb   :  { %v11510_v9 = vmul.f32 0.01, %v11417_v8  ;;  %v11517_v56 = vmax.f32 %v11415_v55, %v11509_v7 }
 0xcdd   :  { %v11518_v14 = vmax.f32 %v11417_v8, %v11510_v9  ;;  %v19364_v63 = vpack.c.bf16 %v11517_v56, %v11513_v16 }
 0xcdf   :  { %v11651_v5 = vpack.c.bf16 %v11518_v14, %v11514_v11 }
 0xce1   :  { %12349 = vmatprep.mubr.bf16.mxu0 %v11651_v5 }
 0xce2   :  { %12350 = vmatmul.mubr.bf16.vlgmr.msra.gmra.mxu0 %v19364_v63 }
 0xce3   :  { %12404 = vmatpush1.bf16.msra.mxu0 %v18289_v6  ;;  %12435 = vmatprep.mubr.bf16.mxu0 %v11651_v5  ;;  %v18382_v5 = vld [vmem:[#allocation9 + $0x16e8] ss:$16 sps:$4 sm:$0xff]  }
 0xce4   :  { %12405 = vmatprep.subr.bf16.mxu0 %v18297_v62  ;;  %v18387_v62 = vld [vmem:[#allocation9 + $0x16cc] ss:$16 sps:$4 sm:$0xff]  }
 0xce7   :  { %12406 = vmatpush1.bf16.msra.mxu0 %v18295_v17  ;;  %v18385_v17 = vld [vmem:[#allocation9 + $0x16c8] ss:$16 sps:$4 sm:$0xff]  }
 0xce8   :  { %12407 = vmatprep.subr.bf16.mxu0 %v18303_v20  ;;  %v18390_v20 = vld [vmem:[#allocation9 + $0x16ac] ss:$16 sps:$4 sm:$0xff]  }
 0xceb   :  { %12408 = vmatpush1.bf16.msra.mxu0 %v18301_v21  ;;  %v18388_v21 = vld [vmem:[#allocation9 + $0x16a8] ss:$16 sps:$4 sm:$0xff]  }
 0xcec   :  { %12409 = vmatprep.subr.bf16.mxu0 %v18309_v18  ;;  %v18393_v18 = vld [vmem:[#allocation9 + $0x168c] ss:$16 sps:$4 sm:$0xff]  }
 0xcef   :  { %12410 = vmatpush1.bf16.msra.mxu0 %v18307_v10  ;;  %v18430_v10 = vld [vmem:[#allocation9 + $0x18e0] ss:$16 sps:$4 sm:$0xff]  }
 0xcf0   :  { %12411 = vmatprep.subr.bf16.mxu0 %v18315_v23  ;;  %v18432_v23 = vld [vmem:[#allocation9 + $0x18e4] ss:$16 sps:$4 sm:$0xff]  }
 0xcf3   :  { %12412 = vmatpush1.bf16.msra.mxu0 %v18313_v25  ;;  %v18435_v25 = vld [vmem:[#allocation9 + $0x18c4] ss:$16 sps:$4 sm:$0xff]  }
 0xcf4   :  { %12413 = vmatprep.subr.bf16.mxu0 %v18321_v26  ;;  %v18391_v26 = vld [vmem:[#allocation9 + $0x1688] ss:$16 sps:$4 sm:$0xff]  }
 0xcf7   :  { %12414 = vmatpush1.bf16.msra.mxu0 %v18319_v24  ;;  %v18396_v24 = vld [vmem:[#allocation9 + $0x166c] ss:$16 sps:$4 sm:$0xff]  }
 0xcf8   :  { %12415 = vmatprep.subr.bf16.mxu0 %v18327_v27  ;;  %v18433_v27 = vld [vmem:[#allocation9 + $0x18c0] ss:$16 sps:$4 sm:$0xff]  }
 0xcfb   :  { %12416 = vmatpush1.bf16.msra.mxu0 %v18325_v19  ;;  %v18394_v19 = vld [vmem:[#allocation9 + $0x1668] ss:$16 sps:$4 sm:$0xff]  }
 0xcfc   :  { %12417 = vmatprep.subr.bf16.mxu0 %v18333_v28  ;;  %v18399_v28 = vld [vmem:[#allocation9 + $0x164c] ss:$16 sps:$4 sm:$0xff]  }
 0xcff   :  { %12418 = vmatpush1.bf16.msra.mxu0 %v18331_v22  ;;  %v18436_v22 = vld [vmem:[#allocation9 + $0x18a0] ss:$16 sps:$4 sm:$0xff]  }
 0xd00   :  { %12419 = vmatprep.subr.bf16.mxu0 %v18339_v29  ;;  %v18441_v29 = vld [vmem:[#allocation9 + $0x1884] ss:$16 sps:$4 sm:$0xff]  }
 0xd03   :  { %12420 = vmatpush2.bf16.msra.mxu0 %v18337_v15  ;;  %v18397_v15 = vld [vmem:[#allocation9 + $0x1648] ss:$16 sps:$4 sm:$0xff]  }
 0xd04   :  { %12421 = vmatprep.subr.bf16.mxu0 %v18345_v30  ;;  %v18402_v30 = vld [vmem:[#allocation9 + $0x162c] ss:$16 sps:$4 sm:$0xff]  }
 0xd07   :  { %12422 = vmatpush2.bf16.msra.mxu0 %v18343_v32  ;;  %v18439_v32 = vld [vmem:[#allocation9 + $0x1880] ss:$16 sps:$4 sm:$0xff]  }
 0xd08   :  { %12423 = vmatprep.subr.bf16.mxu0 %v18351_v33  ;;  %v18444_v33 = vld [vmem:[#allocation9 + $0x1864] ss:$16 sps:$4 sm:$0xff]  }
 0xd0b   :  { %12424 = vmatpush2.bf16.msra.mxu0 %v18349_v36  ;;  %v18400_v36 = vld [vmem:[#allocation9 + $0x1628] ss:$16 sps:$4 sm:$0xff]  }
 0xd0c   :  { %12425 = vmatprep.subr.bf16.mxu0 %v18357_v39  ;;  %v18442_v39 = vld [vmem:[#allocation9 + $0x1860] ss:$16 sps:$4 sm:$0xff]  }
 0xd0f   :  { %12426 = vmatpush2.bf16.msra.mxu0 %v18355_v38  ;;  %v18447_v38 = vld [vmem:[#allocation9 + $0x1844] ss:$16 sps:$4 sm:$0xff]  }
 0xd10   :  { %12427 = vmatprep.subr.bf16.mxu0 %v18363_v13  ;;  %v18408_v13 = vld [vmem:[#allocation9 + $0x17ec] ss:$16 sps:$4 sm:$0xff]  }
 0xd12   :  { %v11496_v49 = vpop.f32.mrf.mxu1 }
 0xd13   :  { %12428 = vmatpush2.bf16.msra.mxu0 %v18361_v40  ;;  %v11497_v59 = vadd.f32 %v11496_v49, %v11454_v51  ;;  %v18450_v40 = vld [vmem:[#allocation9 + $0x1824] ss:$16 sps:$4 sm:$0xff]   ;;  %v18451_v51 = vld [vmem:[#allocation9 + $0x1800] ss:$16 sps:$4 sm:$0xff]  }
 0xd14   :  { %v11498_v52 = vpop.f32.mrf.mxu1  ;;  %12429 = vmatprep.subr.bf16.mxu0 %v18369_v48  ;;  %v18448_v48 = vld [vmem:[#allocation9 + $0x1820] ss:$16 sps:$4 sm:$0xff]   ;;  %v18453_v49 = vld [vmem:[#allocation9 + $0x1804] ss:$16 sps:$4 sm:$0xff]  }
 0xd15   :  { %v11499_v57 = vadd.f32 %v11498_v52, %v11456_v34  ;;  %v11507_v7 = vmul.f32 0.01, %v11497_v59  ;;  %v18409_v34 = vld [vmem:[#allocation9 + $0x17c8] ss:$16 sps:$4 sm:$0xff]  }
 0xd16   :  { %v11500_v60 = vpop.f32.mrf.mxu1  ;;  %v18412_v52 = vld [vmem:[#allocation9 + $0x17a8] ss:$16 sps:$4 sm:$0xff]  }
 0xd17   :  { %v11501_v54 = vadd.f32 %v11500_v60, %v11458_v31  ;;  %12430 = vmatpush2.bf16.msra.mxu0 %v18367_v50  ;;  %v11508_v55 = vmul.f32 0.01, %v11499_v57  ;;  %v11515_v14 = vmax.f32 %v11497_v59, %v11507_v7  ;;  %v18414_v50 = vld [vmem:[#allocation9 + $0x17ac] ss:$16 sps:$4 sm:$0xff]   ;;  %v18454_v31 = vld [vmem:[#allocation9 + $0x19e0] ss:$16 sps:$4 sm:$0xff]  }
 0xd18   :  { %v11502_v2 = vpop.f32.mrf.mxu1  ;;  %12431 = vmatprep.subr.bf16.mxu0 %v18375_v46  ;;  %v18417_v46 = vld [vmem:[#allocation9 + $0x178c] ss:$16 sps:$4 sm:$0xff]   ;;  %v18415_v59 = vld [vmem:[#allocation9 + $0x1788] ss:$16 sps:$4 sm:$0xff]   ;;  %v18463_v7 = vld [vmem:[#allocation9 + $0x1980] ss:$16 sps:$4 sm:$0xff]  }
 0xd19   :  { %v11511_v4 = vmul.f32 0.01, %v11501_v54  ;;  %v11503_v58 = vadd.f32 %v11502_v2, %v11460_v61  ;;  %v11516_v56 = vmax.f32 %v11499_v57, %v11508_v55  ;;  %v18459_v57 = vld [vmem:[#allocation9 + $0x19c4] ss:$16 sps:$4 sm:$0xff]   ;;  %v18420_v60 = vld [vmem:[#allocation9 + $0x176c] ss:$16 sps:$4 sm:$0xff]  }
 0xd1a   :  { %v18457_v61 = vld [vmem:[#allocation9 + $0x19c0] ss:$16 sps:$4 sm:$0xff]   ;;  %v18423_v2 = vld [vmem:[#allocation9 + $0x174c] ss:$16 sps:$4 sm:$0xff]   ;;  %v18465_v55 = vld [vmem:[#allocation9 + $0x1984] ss:$16 sps:$4 sm:$0xff]  }
 0xd1b   :  { %v11512_v8 = vmul.f32 0.01, %v11503_v58  ;;  %12432 = vmatpush2.bf16.msra.mxu0 %v18373_v12  ;;  %v11519_v9 = vmax.f32 %v11501_v54, %v11511_v4  ;;  %v18462_v54 = vld [vmem:[#allocation9 + $0x19a4] ss:$16 sps:$4 sm:$0xff]   ;;  %v18418_v12 = vld [vmem:[#allocation9 + $0x1768] ss:$16 sps:$4 sm:$0xff]  }
 0xd1c   :  { %12433 = vmatprep.subr.bf16.mxu0 %v18381_v3  ;;  %v18460_v3 = vld [vmem:[#allocation9 + $0x19a0] ss:$16 sps:$4 sm:$0xff]   ;;  %v18421_v4 = vld [vmem:[#allocation9 + $0x1748] ss:$16 sps:$4 sm:$0xff]  }
 0xd1d   :  { %v11520_v11 = vmax.f32 %v11503_v58, %v11512_v8  ;;  %v19371_v6 = vpack.c.bf16 %v11519_v9, %v11515_v14  ;;  %v18426_v58 = vld [vmem:[#allocation9 + $0x172c] ss:$16 sps:$4 sm:$0xff]   ;;  %v18468_v8 = vld [vmem:[#allocation9 + $0x1964] ss:$16 sps:$4 sm:$0xff]  }
 0xd1e   :  { %v18429_v9 = vld [vmem:[#allocation9 + $0x170c] ss:$16 sps:$4 sm:$0xff]   ;;  %v18471_v14 = vld [vmem:[#allocation9 + $0x1944] ss:$16 sps:$4 sm:$0xff]  }
 0xd1f   :  { %12434 = vmatpush2.bf16.msra.mxu0 %v18379_v1  ;;  %v11653_v16 = vpack.c.bf16 %v11520_v11, %v11516_v56  ;;  %v18424_v1 = vld [vmem:[#allocation9 + $0x1728] ss:$16 sps:$4 sm:$0xff]   ;;  %v18466_v56 = vld [vmem:[#allocation9 + $0x1960] ss:$16 sps:$4 sm:$0xff]  }
 0xd20   :  { %13301 = vmatprep.subr.bf16.mxu0 %v18432_v23  ;;  %v18427_v11 = vld [vmem:[#allocation9 + $0x1708] ss:$16 sps:$4 sm:$0xff]   ;;  %v18484_v23 = vld [vmem:[#allocation9 + $0x1ac0] ss:$16 sps:$4 sm:$0xff]  }
 0xd21   :  { %12392 = vmatprep.mubr.bf16.mxu1 %v11653_v16 }
 0xd22   :  { %12393 = vmatmul.mubr.bf16.vlgmr.msra.gmra.mxu1 %v19371_v6  ;;  %12436 = vmatmul.mubr.bf16.vlgmr.msra.gmra.mxu0 %v19364_v63  ;;  %v18438_v63 = vld [vmem:[#allocation9 + $0x18a4] ss:$16 sps:$4 sm:$0xff]  }
 0xd23   :  { %12447 = vmatpush1.bf16.msra.mxu1 %v18382_v5  ;;  %12478 = vmatprep.mubr.bf16.mxu1 %v11653_v16  ;;  %v18469_v16 = vld [vmem:[#allocation9 + $0x1940] ss:$16 sps:$4 sm:$0xff]   ;;  %v18474_v5 = vld [vmem:[#allocation9 + $0x1924] ss:$16 sps:$4 sm:$0xff]  }
 0xd24   :  { %12448 = vmatprep.subr.bf16.mxu1 %v18387_v62  ;;  %13302 = vmatpush1.bf16.msra.mxu0 %v18430_v10  ;;  %v18472_v62 = vld [vmem:[#allocation9 + $0x1920] ss:$16 sps:$4 sm:$0xff]   ;;  %v18483_v10 = vld [vmem:[#allocation9 + $0x18ec] ss:$16 sps:$4 sm:$0xff]  }
 0xd25   :  { %13303 = vmatprep.subr.bf16.mxu0 %v18435_v25  ;;  %v18490_v25 = vld [vmem:[#allocation9 + $0x1aa0] ss:$16 sps:$4 sm:$0xff]  }
 0xd27   :  { %12449 = vmatpush1.bf16.msra.mxu1 %v18385_v17  ;;  %v18477_v17 = vld [vmem:[#allocation9 + $0x1904] ss:$16 sps:$4 sm:$0xff]  }
 0xd28   :  { %12450 = vmatprep.subr.bf16.mxu1 %v18390_v20  ;;  %13304 = vmatpush1.bf16.msra.mxu0 %v18433_v27  ;;  %v18475_v20 = vld [vmem:[#allocation9 + $0x1900] ss:$16 sps:$4 sm:$0xff]   ;;  %v18498_v27 = vld [vmem:[#allocation9 + $0x1a84] ss:$16 sps:$4 sm:$0xff]  }
 0xd29   :  { %13305 = vmatprep.subr.bf16.mxu0 %v18438_v63  ;;  %v18502_v63 = vld [vmem:[#allocation9 + $0x1a60] ss:$16 sps:$4 sm:$0xff]  }
 0xd2b   :  { %12451 = vmatpush1.bf16.msra.mxu1 %v18388_v21  ;;  %v18478_v21 = vld [vmem:[#allocation9 + $0x1ae0] ss:$16 sps:$4 sm:$0xff]  }
 0xd2c   :  { %12452 = vmatprep.subr.bf16.mxu1 %v18393_v18  ;;  %13306 = vmatpush1.bf16.msra.mxu0 %v18436_v22  ;;  %v18480_v18 = vld [vmem:[#allocation9 + $0x1ae4] ss:$16 sps:$4 sm:$0xff]  }
 0xd2d   :  { %13307 = vmatprep.subr.bf16.mxu0 %v18441_v29  ;;  %v18510_v22 = vld [vmem:[#allocation9 + $0x1a44] ss:$16 sps:$4 sm:$0xff]   ;;  %v18514_v29 = vld [vmem:[#allocation9 + $0x1a20] ss:$16 sps:$4 sm:$0xff]  }
 0xd2f   :  { %12453 = vmatpush1.bf16.msra.mxu1 %v18391_v26  ;;  %v18492_v26 = vld [vmem:[#allocation9 + $0x1aa4] ss:$16 sps:$4 sm:$0xff]  }
 0xd30   :  { %12454 = vmatprep.subr.bf16.mxu1 %v18396_v24  ;;  %13308 = vmatpush1.bf16.msra.mxu0 %v18439_v32  ;;  %v18496_v24 = vld [vmem:[#allocation9 + $0x1a80] ss:$16 sps:$4 sm:$0xff]   ;;  %v18522_v32 = vld [vmem:[#allocation9 + $0x1a04] ss:$16 sps:$4 sm:$0xff]  }
 0xd31   :  { %13309 = vmatprep.subr.bf16.mxu0 %v18444_v33  ;;  %v18526_v33 = vld [vmem:[#allocation9 + $0x1be0] ss:$16 sps:$4 sm:$0xff]  }
 0xd33   :  { %12455 = vmatpush1.bf16.msra.mxu1 %v18394_v19  ;;  %v18504_v19 = vld [vmem:[#allocation9 + $0x1a64] ss:$16 sps:$4 sm:$0xff]  }
 0xd34   :  { %12456 = vmatprep.subr.bf16.mxu1 %v18399_v28  ;;  %13310 = vmatpush1.bf16.msra.mxu0 %v18442_v39  ;;  %v18508_v28 = vld [vmem:[#allocation9 + $0x1a40] ss:$16 sps:$4 sm:$0xff]   ;;  %v18534_v39 = vld [vmem:[#allocation9 + $0x1bc4] ss:$16 sps:$4 sm:$0xff]  }
 0xd35   :  { %13311 = vmatprep.subr.bf16.mxu0 %v18447_v38  ;;  %v18538_v38 = vld [vmem:[#allocation9 + $0x1ba0] ss:$16 sps:$4 sm:$0xff]  }
 0xd37   :  { %12457 = vmatpush1.bf16.msra.mxu1 %v18397_v15  ;;  %v18516_v15 = vld [vmem:[#allocation9 + $0x1a24] ss:$16 sps:$4 sm:$0xff]  }
 0xd38   :  { %12458 = vmatprep.subr.bf16.mxu1 %v18402_v30  ;;  %13312 = vmatpush1.bf16.msra.mxu0 %v18445_v45  ;;  %v18520_v30 = vld [vmem:[#allocation9 + $0x1a00] ss:$16 sps:$4 sm:$0xff]   ;;  %v18546_v45 = vld [vmem:[#allocation9 + $0x1b84] ss:$16 sps:$4 sm:$0xff]  }
 0xd39   :  { %13313 = vmatprep.subr.bf16.mxu0 %v18450_v40  ;;  %v18550_v40 = vld [vmem:[#allocation9 + $0x1b60] ss:$16 sps:$4 sm:$0xff]  }
 0xd3b   :  { %12459 = vmatpush1.bf16.msra.mxu1 %v18400_v36  ;;  %v18528_v36 = vld [vmem:[#allocation9 + $0x1be4] ss:$16 sps:$4 sm:$0xff]  }
 0xd3c   :  { %12460 = vmatprep.subr.bf16.mxu1 %v18405_v37  ;;  %13314 = vmatpush1.bf16.msra.mxu0 %v18448_v48  ;;  %v18532_v37 = vld [vmem:[#allocation9 + $0x1bc0] ss:$16 sps:$4 sm:$0xff]  }
 0xd3d   :  { %13315 = vmatprep.subr.bf16.mxu0 %v18453_v49  ;;  %v18556_v48 = vld [vmem:[#allocation9 + $0x1b40] ss:$16 sps:$4 sm:$0xff]   ;;  %v18564_v49 = vld [vmem:[#allocation9 + $0x1b24] ss:$16 sps:$4 sm:$0xff]  }
 0xd3f   :  { %12461 = vmatpush1.bf16.msra.mxu1 %v18403_v35  ;;  %v18540_v35 = vld [vmem:[#allocation9 + $0x1ba4] ss:$16 sps:$4 sm:$0xff]  }
 0xd40   :  { %12462 = vmatprep.subr.bf16.mxu1 %v18408_v13  ;;  %13316 = vmatpush1.bf16.msra.mxu0 %v18451_v51  ;;  %v18544_v13 = vld [vmem:[#allocation9 + $0x1b80] ss:$16 sps:$4 sm:$0xff]  }
 0xd41   :  { %13317 = vmatprep.subr.bf16.mxu0 %v18456_v53  ;;  %v18568_v51 = vld [vmem:[#allocation9 + $0x1b00] ss:$16 sps:$4 sm:$0xff]   ;;  %v18576_v53 = vld [vmem:[#allocation9 + $0x1aec] ss:$16 sps:$4 sm:$0xff]  }
 0xd43   :  { %12463 = vmatpush2.bf16.msra.mxu1 %v18406_v0  ;;  %v18552_v0 = vld [vmem:[#allocation9 + $0x1b64] ss:$16 sps:$4 sm:$0xff]  }
 0xd44   :  { %12464 = vmatprep.subr.bf16.mxu1 %v18411_v47  ;;  %13318 = vmatpush2.bf16.msra.mxu0 %v18454_v31  ;;  %v18558_v47 = vld [vmem:[#allocation9 + $0x1b44] ss:$16 sps:$4 sm:$0xff]  }
 0xd45   :  { %13319 = vmatprep.subr.bf16.mxu0 %v18459_v57  ;;  %v19376_v31 = vld [vmem:[#allocation10 + $0x14] sm:$0xf] }
 0xd46   :  { %v11664_v57 = vrot.slane %v19376_v31, %v19083_v43 }
 0xd47   :  { %12465 = vmatpush2.bf16.msra.mxu1 %v18409_v34  ;;  %v18562_v34 = vld [vmem:[#allocation9 + $0x1b20] ss:$16 sps:$4 sm:$0xff]  }
 0xd48   :  { %12466 = vmatprep.subr.bf16.mxu1 %v18414_v50  ;;  %13320 = vmatpush2.bf16.msra.mxu0 %v18457_v61  ;;  %v18570_v50 = vld [vmem:[#allocation9 + $0x1b04] ss:$16 sps:$4 sm:$0xff]  }
 0xd49   :  { %13321 = vmatprep.subr.bf16.mxu0 %v18462_v54 }
 0xd4b   :  { %12467 = vmatpush2.bf16.msra.mxu1 %v18412_v52 }
 0xd4c   :  { %12468 = vmatprep.subr.bf16.mxu1 %v18417_v46  ;;  %13322 = vmatpush2.bf16.msra.mxu0 %v18460_v3 }
 0xd4d   :  { %13323 = vmatprep.subr.bf16.mxu0 %v18465_v55 }
 0xd4f   :  { %12469 = vmatpush2.bf16.msra.mxu1 %v18415_v59  ;;  %v11660_v59 = vrot.slane %v19376_v31, %v19079_v41 }
 0xd50   :  { %12470 = vmatprep.subr.bf16.mxu1 %v18420_v60  ;;  %13324 = vmatpush2.bf16.msra.mxu0 %v18463_v7 }
 0xd51   :  { %13325 = vmatprep.subr.bf16.mxu0 %v18468_v8 }
 0xd53   :  { %12471 = vmatpush2.bf16.msra.mxu1 %v18418_v12 }
 0xd54   :  { %12472 = vmatprep.subr.bf16.mxu1 %v18423_v2  ;;  %13326 = vmatpush2.bf16.msra.mxu0 %v18466_v56 }
 0xd55   :  { %13327 = vmatprep.subr.bf16.mxu0 %v18471_v14 }
 0xd57   :  { %12473 = vmatpush2.bf16.msra.mxu1 %v18421_v4 }
 0xd58   :  { %12474 = vmatprep.subr.bf16.mxu1 %v18426_v58  ;;  %13328 = vmatpush2.bf16.msra.mxu0 %v18469_v16 }
 0xd59   :  { %13329 = vmatprep.subr.bf16.mxu0 %v18474_v5 }
 0xd5b   :  { %12475 = vmatpush2.bf16.msra.mxu1 %v18424_v1 }
 0xd5c   :  { %12476 = vmatprep.subr.bf16.mxu1 %v18429_v9  ;;  %13330 = vmatpush2.bf16.msra.mxu0 %v18472_v62 }
 0xd5d   :  { %13331 = vmatprep.subr.bf16.mxu0 %v18477_v17 }
 0xd5f   :  { %12477 = vmatpush2.bf16.msra.mxu1 %v18427_v11 }
 0xd60   :  { %13332 = vmatpush2.bf16.msra.mxu0 %v18475_v20  ;;  %13344 = vmatprep.subr.bf16.mxu1 %v18480_v18 }
 0xd61   :  { %13387 = vmatprep.subr.bf16.mxu0 %v18483_v10  ;;  %v18481_v10 = vld [vmem:[#allocation9 + $0x18e8] ss:$16 sps:$4 sm:$0xff]  }
 0xd62   :  { %12479 = vmatmul.mubr.bf16.vlgmr.msra.gmra.mxu1 %v19371_v6  ;;  %v18486_v6 = vld [vmem:[#allocation9 + $0x1ac4] ss:$16 sps:$4 sm:$0xff]  }
 0xd63   :  { %13345 = vmatpush1.bf16.msra.mxu1 %v18478_v21 }
 0xd64   :  { %13346 = vmatprep.subr.bf16.mxu1 %v18486_v6  ;;  %v18489_v6 = vld [vmem:[#allocation9 + $0x18cc] ss:$16 sps:$4 sm:$0xff]  }
 0xd67   :  { %13347 = vmatpush1.bf16.msra.mxu1 %v18484_v23 }
 0xd68   :  { %13348 = vmatprep.subr.bf16.mxu1 %v18492_v26  ;;  %v18495_v26 = vld [vmem:[#allocation9 + $0x18ac] ss:$16 sps:$4 sm:$0xff]  }
 0xd6b   :  { %13349 = vmatpush1.bf16.msra.mxu1 %v18490_v25  ;;  %v18487_v25 = vld [vmem:[#allocation9 + $0x18c8] ss:$16 sps:$4 sm:$0xff]  }
 0xd6c   :  { %13350 = vmatprep.subr.bf16.mxu1 %v18498_v27  ;;  %v18501_v27 = vld [vmem:[#allocation9 + $0x188c] ss:$16 sps:$4 sm:$0xff]  }
 0xd6f   :  { %13351 = vmatpush1.bf16.msra.mxu1 %v18496_v24  ;;  %v18493_v24 = vld [vmem:[#allocation9 + $0x18a8] ss:$16 sps:$4 sm:$0xff]  }
 0xd70   :  { %13352 = vmatprep.subr.bf16.mxu1 %v18504_v19  ;;  %v18507_v19 = vld [vmem:[#allocation9 + $0x186c] ss:$16 sps:$4 sm:$0xff]  }
 0xd73   :  { %13353 = vmatpush1.bf16.msra.mxu1 %v18502_v63  ;;  %v18499_v63 = vld [vmem:[#allocation9 + $0x1888] ss:$16 sps:$4 sm:$0xff]  }
 0xd74   :  { %13354 = vmatprep.subr.bf16.mxu1 %v18510_v22  ;;  %v18513_v22 = vld [vmem:[#allocation9 + $0x184c] ss:$16 sps:$4 sm:$0xff]  }
 0xd77   :  { %13355 = vmatpush1.bf16.msra.mxu1 %v18508_v28  ;;  %v18505_v28 = vld [vmem:[#allocation9 + $0x1868] ss:$16 sps:$4 sm:$0xff]  }
 0xd78   :  { %13356 = vmatprep.subr.bf16.mxu1 %v18516_v15  ;;  %v18519_v15 = vld [vmem:[#allocation9 + $0x182c] ss:$16 sps:$4 sm:$0xff]  }
 0xd7b   :  { %13357 = vmatpush1.bf16.msra.mxu1 %v18514_v29  ;;  %v18511_v29 = vld [vmem:[#allocation9 + $0x1848] ss:$16 sps:$4 sm:$0xff]  }
 0xd7c   :  { %13358 = vmatprep.subr.bf16.mxu1 %v18522_v32  ;;  %v18525_v32 = vld [vmem:[#allocation9 + $0x180c] ss:$16 sps:$4 sm:$0xff]  }
 0xd7f   :  { %13359 = vmatpush1.bf16.msra.mxu1 %v18520_v30  ;;  %v18517_v30 = vld [vmem:[#allocation9 + $0x1828] ss:$16 sps:$4 sm:$0xff]  }
 0xd80   :  { %13360 = vmatprep.subr.bf16.mxu1 %v18528_v36  ;;  %v18531_v36 = vld [vmem:[#allocation9 + $0x19ec] ss:$16 sps:$4 sm:$0xff]  }
 0xd83   :  { %13361 = vmatpush2.bf16.msra.mxu1 %v18526_v33  ;;  %v18523_v33 = vld [vmem:[#allocation9 + $0x1808] ss:$16 sps:$4 sm:$0xff]  }
 0xd84   :  { %13362 = vmatprep.subr.bf16.mxu1 %v18534_v39  ;;  %v18537_v39 = vld [vmem:[#allocation9 + $0x19cc] ss:$16 sps:$4 sm:$0xff]  }
 0xd87   :  { %13363 = vmatpush2.bf16.msra.mxu1 %v18532_v37  ;;  %v18529_v37 = vld [vmem:[#allocation9 + $0x19e8] ss:$16 sps:$4 sm:$0xff]  }
 0xd88   :  { %13364 = vmatprep.subr.bf16.mxu1 %v18540_v35  ;;  %v18543_v35 = vld [vmem:[#allocation9 + $0x19ac] ss:$16 sps:$4 sm:$0xff]  }
 0xd8b   :  { %13365 = vmatpush2.bf16.msra.mxu1 %v18538_v38  ;;  %v18535_v38 = vld [vmem:[#allocation9 + $0x19c8] ss:$16 sps:$4 sm:$0xff]  }
 0xd8c   :  { %13366 = vmatprep.subr.bf16.mxu1 %v18546_v45 }
 0xd8f   :  { %13367 = vmatpush2.bf16.msra.mxu1 %v18544_v13  ;;  %v18541_v13 = vld [vmem:[#allocation9 + $0x19a8] ss:$16 sps:$4 sm:$0xff]  }
 0xd90   :  { %13368 = vmatprep.subr.bf16.mxu1 %v18552_v0  ;;  %v18547_v0 = vld [vmem:[#allocation9 + $0x1988] ss:$16 sps:$4 sm:$0xff]  }
 0xd93   :  { %13369 = vmatpush2.bf16.msra.mxu1 %v18550_v40  ;;  %v18549_v40 = vld [vmem:[#allocation9 + $0x198c] ss:$16 sps:$4 sm:$0xff]  }
 0xd94   :  { %13370 = vmatprep.subr.bf16.mxu1 %v18558_v47 }
 0xd97   :  { %13371 = vmatpush2.bf16.msra.mxu1 %v18556_v48  ;;  %v18555_v48 = vld [vmem:[#allocation9 + $0x196c] ss:$16 sps:$4 sm:$0xff]  }
 0xd98   :  { %13372 = vmatprep.subr.bf16.mxu1 %v18564_v49  ;;  %v11672_v49 = vrot.slane %v19376_v31, %v19085_v44 }
 0xd9b   :  { %13373 = vmatpush2.bf16.msra.mxu1 %v18562_v34  ;;  %v18553_v34 = vld [vmem:[#allocation9 + $0x1968] ss:$16 sps:$4 sm:$0xff]  }
 0xd9c   :  { %13374 = vmatprep.subr.bf16.mxu1 %v18570_v50  ;;  %v11668_v50 = vrot.slane %v19376_v31, %v19081_v42  ;;  %v18565_v31 = vld [vmem:[#allocation9 + $0x1928] ss:$16 sps:$4 sm:$0xff]  }
 0xd9f   :  { %13375 = vmatpush2.bf16.msra.mxu1 %v18568_v51 }
 0xda0   :  { %13430 = vmatprep.subr.bf16.mxu1 %v18576_v53  ;;  %v18561_v53 = vld [vmem:[#allocation9 + $0x194c] ss:$16 sps:$4 sm:$0xff]  }
 0xda2   :  { %v12351_v52 = vpop.f32.mrf.mxu0 }
 0xda3   :  { %v12352_v12 = vadd.f32 %v12351_v52, %v11660_v59 }
 0xda4   :  { %v12353_v46 = vpop.f32.mrf.mxu0 }
 0xda5   :  { %v12354_v54 = vadd.f32 %v12353_v46, %v11664_v57 }
 0xda6   :  { %v12355_v60 = vpop.f32.mrf.mxu0 }
 0xda7   :  { %v12356_v55 = vadd.f32 %v12355_v60, %v11660_v59 }
 0xda8   :  { %v12357_v2 = vpop.f32.mrf.mxu0 }
 0xda9   :  { %v12358_v8 = vadd.f32 %v12357_v2, %v11664_v57  ;;  %v18559_v57 = vld [vmem:[#allocation9 + $0x1948] ss:$16 sps:$4 sm:$0xff]  }
 0xde2   :  { %v12394_v61 = vpop.f32.mrf.mxu1  ;;  %v12437_v45 = vpop.f32.mrf.mxu0 }
 0xde3   :  { %v12395_v58 = vadd.f32 %v12394_v61, %v12352_v12  ;;  %v12438_v59 = vadd.f32 %v12437_v45, %v11668_v50  ;;  %v18597_v45 = vld [vmem:[#allocation9 + $0x1a0c] ss:$16 sps:$4 sm:$0xff]  }
 0xde4   :  { %v12396_v3 = vpop.f32.mrf.mxu1  ;;  %v12439_v47 = vpop.f32.mrf.mxu0 }
 0xde5   :  { %v12397_v4 = vadd.f32 %v12396_v3, %v12354_v54  ;;  %v12489_v16 = vmul.f32 0.01, %v12395_v58  ;;  %v12440_v46 = vadd.f32 %v12439_v47, %v11672_v49  ;;  %v18567_v54 = vld [vmem:[#allocation9 + $0x192c] ss:$16 sps:$4 sm:$0xff]   ;;  %v18595_v47 = vld [vmem:[#allocation9 + $0x1a08] ss:$16 sps:$4 sm:$0xff]  }
 0xde6   :  { %v12398_v7 = vpop.f32.mrf.mxu1  ;;  %v12441_v51 = vpop.f32.mrf.mxu0 }
 0xde7   :  { %v12399_v1 = vadd.f32 %v12398_v7, %v12356_v55  ;;  %v12490_v56 = vmul.f32 0.01, %v12397_v4  ;;  %v12497_v21 = vmax.f32 %v12395_v58, %v12489_v16  ;;  %v12442_v12 = vadd.f32 %v12441_v51, %v11668_v50  ;;  %v18571_v16 = vld [vmem:[#allocation9 + $0x1908] ss:$16 sps:$4 sm:$0xff]   ;;  %v18603_v51 = vld [vmem:[#allocation9 + $0x1bcc] ss:$16 sps:$4 sm:$0xff]  }
 0xde8   :  { %v12400_v9 = vpop.f32.mrf.mxu1  ;;  %v12443_v60 = vpop.f32.mrf.mxu0  ;;  %v18598_v50 = vld [vmem:[#allocation9 + $0x1be8] ss:$16 sps:$4 sm:$0xff]  }
 0xde9   :  { %v12493_v11 = vmul.f32 0.01, %v12399_v1  ;;  %v12401_v14 = vadd.f32 %v12400_v9, %v12358_v8  ;;  %v12498_v17 = vmax.f32 %v12397_v4, %v12490_v56  ;;  %v12444_v4 = vadd.f32 %v12443_v60, %v11672_v49  ;;  %v18573_v8 = vld [vmem:[#allocation9 + $0x190c] ss:$16 sps:$4 sm:$0xff]   ;;  %v18648_v60 = vld [vmem:[#allocation12 + $0xf4] ss:$8 sps:$4 sm:$0xff]  }
 0xdea   :  { %v18637_v49 = vld [vmem:[#allocation12 + $0x20] ss:$8 sps:$4 sm:$0xff]  }
 0xdeb   :  { %v12494_v5 = vmul.f32 0.01, %v12401_v14  ;;  %v12501_v62 = vmax.f32 %v12399_v1, %v12493_v11 }
 0xded   :  { %v12502_v20 = vmax.f32 %v12401_v14, %v12494_v5  ;;  %v19382_v23 = vpack.c.bf16 %v12501_v62, %v12497_v21 }
 0xdef   :  { %v12635_v18 = vpack.c.bf16 %v12502_v20, %v12498_v17 }
 0xdf1   :  { %13333 = vmatprep.mubr.bf16.mxu0 %v12635_v18 }
 0xdf2   :  { %13334 = vmatmul.mubr.bf16.vlgmr.msra.gmra.mxu0 %v19382_v23 }
 0xdf3   :  { %13388 = vmatpush1.bf16.msra.mxu0 %v18481_v10  ;;  %13419 = vmatprep.mubr.bf16.mxu0 %v12635_v18  ;;  %v18574_v18 = vld [vmem:[#allocation9 + $0x1ae8] ss:$16 sps:$4 sm:$0xff]  }
 0xdf4   :  { %13389 = vmatprep.subr.bf16.mxu0 %v18489_v6  ;;  %v18579_v6 = vld [vmem:[#allocation9 + $0x1acc] ss:$16 sps:$4 sm:$0xff]  }
 0xdf7   :  { %13390 = vmatpush1.bf16.msra.mxu0 %v18487_v25  ;;  %v18577_v25 = vld [vmem:[#allocation9 + $0x1ac8] ss:$16 sps:$4 sm:$0xff]  }
 0xdf8   :  { %13391 = vmatprep.subr.bf16.mxu0 %v18495_v26  ;;  %v18582_v26 = vld [vmem:[#allocation9 + $0x1aac] ss:$16 sps:$4 sm:$0xff]  }
 0xdfb   :  { %13392 = vmatpush1.bf16.msra.mxu0 %v18493_v24  ;;  %v18580_v24 = vld [vmem:[#allocation9 + $0x1aa8] ss:$16 sps:$4 sm:$0xff]  }
 0xdfc   :  { %13393 = vmatprep.subr.bf16.mxu0 %v18501_v27  ;;  %v18585_v27 = vld [vmem:[#allocation9 + $0x1a8c] ss:$16 sps:$4 sm:$0xff]  }
 0xdff   :  { %13394 = vmatpush1.bf16.msra.mxu0 %v18499_v63  ;;  %v18622_v63 = vld [vmem:[#allocation12 + $0x70] ss:$8 sps:$4 sm:$0xff]  }
 0xe00   :  { %13395 = vmatprep.subr.bf16.mxu0 %v18507_v19  ;;  %v18624_v19 = vld [vmem:[#allocation12 + $0x74] ss:$8 sps:$4 sm:$0xff]  }
 0xe03   :  { %13396 = vmatpush1.bf16.msra.mxu0 %v18505_v28  ;;  %v18627_v28 = vld [vmem:[#allocation12 + $0x64] ss:$8 sps:$4 sm:$0xff]  }
 0xe04   :  { %13397 = vmatprep.subr.bf16.mxu0 %v18513_v22  ;;  %v18583_v22 = vld [vmem:[#allocation9 + $0x1a88] ss:$16 sps:$4 sm:$0xff]  }
 0xe07   :  { %13398 = vmatpush1.bf16.msra.mxu0 %v18511_v29  ;;  %v18588_v29 = vld [vmem:[#allocation9 + $0x1a6c] ss:$16 sps:$4 sm:$0xff]  }
 0xe08   :  { %13399 = vmatprep.subr.bf16.mxu0 %v18519_v15  ;;  %v18625_v15 = vld [vmem:[#allocation12 + $0x60] ss:$8 sps:$4 sm:$0xff]  }
 0xe0b   :  { %13400 = vmatpush1.bf16.msra.mxu0 %v18517_v30  ;;  %v18586_v30 = vld [vmem:[#allocation9 + $0x1a68] ss:$16 sps:$4 sm:$0xff]  }
 0xe0c   :  { %13401 = vmatprep.subr.bf16.mxu0 %v18525_v32  ;;  %v18591_v32 = vld [vmem:[#allocation9 + $0x1a4c] ss:$16 sps:$4 sm:$0xff]  }
 0xe0f   :  { %13402 = vmatpush1.bf16.msra.mxu0 %v18523_v33  ;;  %v18628_v33 = vld [vmem:[#allocation12 + $0x50] ss:$8 sps:$4 sm:$0xff]  }
 0xe10   :  { %13403 = vmatprep.subr.bf16.mxu0 %v18531_v36  ;;  %v18633_v36 = vld [vmem:[#allocation12 + $0x44] ss:$8 sps:$4 sm:$0xff]  }
 0xe13   :  { %13404 = vmatpush2.bf16.msra.mxu0 %v18529_v37  ;;  %v18589_v37 = vld [vmem:[#allocation9 + $0x1a48] ss:$16 sps:$4 sm:$0xff]  }
 0xe14   :  { %13405 = vmatprep.subr.bf16.mxu0 %v18537_v39  ;;  %v18594_v39 = vld [vmem:[#allocation9 + $0x1a2c] ss:$16 sps:$4 sm:$0xff]  }
 0xe17   :  { %13406 = vmatpush2.bf16.msra.mxu0 %v18535_v38  ;;  %v18631_v38 = vld [vmem:[#allocation12 + $0x40] ss:$8 sps:$4 sm:$0xff]  }
 0xe18   :  { %13407 = vmatprep.subr.bf16.mxu0 %v18543_v35  ;;  %v18636_v35 = vld [vmem:[#allocation12 + $0x34] ss:$8 sps:$4 sm:$0xff]  }
 0xe1b   :  { %13408 = vmatpush2.bf16.msra.mxu0 %v18541_v13  ;;  %v18592_v13 = vld [vmem:[#allocation9 + $0x1a28] ss:$16 sps:$4 sm:$0xff]  }
 0xe1c   :  { %13409 = vmatprep.subr.bf16.mxu0 %v18549_v40  ;;  %v18634_v40 = vld [vmem:[#allocation12 + $0x30] ss:$8 sps:$4 sm:$0xff]  }
 0xe1f   :  { %13410 = vmatpush2.bf16.msra.mxu0 %v18547_v0  ;;  %v18639_v0 = vld [vmem:[#allocation12 + $0x24] ss:$8 sps:$4 sm:$0xff]  }
 0xe20   :  { %13411 = vmatprep.subr.bf16.mxu0 %v18555_v48  ;;  %v18600_v48 = vld [vmem:[#allocation9 + $0x1bec] ss:$16 sps:$4 sm:$0xff]  }
 0xe22   :  { %v12480_v52 = vpop.f32.mrf.mxu1 }
 0xe23   :  { %13412 = vmatpush2.bf16.msra.mxu0 %v18553_v34  ;;  %v12481_v3 = vadd.f32 %v12480_v52, %v12438_v59  ;;  %v18642_v34 = vld [vmem:[#allocation12 + $0x14] ss:$8 sps:$4 sm:$0xff]   ;;  %v18645_v52 = vld [vmem:[#allocation12 + $0x4] ss:$8 sps:$4 sm:$0xff]   ;;  %v18643_v59 = vld [vmem:[#allocation12] ss:$8 sps:$4 sm:$0xff]  }
 0xe24   :  { %v12482_v61 = vpop.f32.mrf.mxu1  ;;  %13413 = vmatprep.subr.bf16.mxu0 %v18561_v53  ;;  %v18640_v53 = vld [vmem:[#allocation12 + $0x10] ss:$8 sps:$4 sm:$0xff]  }
 0xe25   :  { %v12483_v2 = vadd.f32 %v12482_v61, %v12440_v46  ;;  %v12491_v11 = vmul.f32 0.01, %v12481_v3  ;;  %v18601_v46 = vld [vmem:[#allocation9 + $0x1bc8] ss:$16 sps:$4 sm:$0xff]  }
 0xe26   :  { %v12484_v55 = vpop.f32.mrf.mxu1  ;;  %v18604_v61 = vld [vmem:[#allocation9 + $0x1ba8] ss:$16 sps:$4 sm:$0xff]  }
 0xe27   :  { %v12485_v58 = vadd.f32 %v12484_v55, %v12442_v12  ;;  %13414 = vmatpush2.bf16.msra.mxu0 %v18559_v57  ;;  %v12492_v1 = vmul.f32 0.01, %v12483_v2  ;;  %v12499_v20 = vmax.f32 %v12481_v3, %v12491_v11  ;;  %v18606_v57 = vld [vmem:[#allocation9 + $0x1bac] ss:$16 sps:$4 sm:$0xff]   ;;  %v18607_v3 = vld [vmem:[#allocation9 + $0x1b88] ss:$16 sps:$4 sm:$0xff]  }
 0xe28   :  { %v12486_v7 = vpop.f32.mrf.mxu1  ;;  %13415 = vmatprep.subr.bf16.mxu0 %v18567_v54  ;;  %v18609_v54 = vld [vmem:[#allocation9 + $0x1b8c] ss:$16 sps:$4 sm:$0xff]  }
 0xe29   :  { %v12495_v9 = vmul.f32 0.01, %v12485_v58  ;;  %v12487_v56 = vadd.f32 %v12486_v7, %v12444_v4  ;;  %v12500_v62 = vmax.f32 %v12483_v2, %v12492_v1  ;;  %v18646_v12 = vld [vmem:[#allocation12 + $0xf0] ss:$8 sps:$4 sm:$0xff]   ;;  %v18651_v2 = vld [vmem:[#allocation12 + $0xe4] ss:$8 sps:$4 sm:$0xff]  }
 0xe2a   :  { %v18612_v55 = vld [vmem:[#allocation9 + $0x1b6c] ss:$16 sps:$4 sm:$0xff]   ;;  %v18657_v1 = vld [vmem:[#allocation12 + $0xc4] ss:$8 sps:$4 sm:$0xff]  }
 0xe2b   :  { %v12496_v14 = vmul.f32 0.01, %v12487_v56  ;;  %13416 = vmatpush2.bf16.msra.mxu0 %v18565_v31  ;;  %v12503_v5 = vmax.f32 %v12485_v58, %v12495_v9  ;;  %v18649_v4 = vld [vmem:[#allocation12 + $0xe0] ss:$8 sps:$4 sm:$0xff]   ;;  %v18654_v58 = vld [vmem:[#allocation12 + $0xd4] ss:$8 sps:$4 sm:$0xff]  }
 0xe2c   :  { %13417 = vmatprep.subr.bf16.mxu0 %v18573_v8  ;;  %v18610_v31 = vld [vmem:[#allocation9 + $0x1b68] ss:$16 sps:$4 sm:$0xff]   ;;  %v18615_v7 = vld [vmem:[#allocation9 + $0x1b4c] ss:$16 sps:$4 sm:$0xff]  }
 0xe2d   :  { %v12504_v17 = vmax.f32 %v12487_v56, %v12496_v14  ;;  %v19389_v10 = vpack.c.bf16 %v12503_v5, %v12499_v20  ;;  %v18652_v8 = vld [vmem:[#allocation12 + $0xd0] ss:$8 sps:$4 sm:$0xff]   ;;  %v18613_v9 = vld [vmem:[#allocation9 + $0x1b48] ss:$16 sps:$4 sm:$0xff]   ;;  %v18655_v11 = vld [vmem:[#allocation12 + $0xc0] ss:$8 sps:$4 sm:$0xff]  }
 0xe2e   :  { %v18618_v56 = vld [vmem:[#allocation9 + $0x1b2c] ss:$16 sps:$4 sm:$0xff]   ;;  %v18616_v14 = vld [vmem:[#allocation9 + $0x1b28] ss:$16 sps:$4 sm:$0xff]  }
 0xe2f   :  { %13418 = vmatpush2.bf16.msra.mxu0 %v18571_v16  ;;  %v12637_v21 = vpack.c.bf16 %v12504_v17, %v12500_v62  ;;  %v18621_v16 = vld [vmem:[#allocation9 + $0x1b0c] ss:$16 sps:$4 sm:$0xff]   ;;  %v18619_v5 = vld [vmem:[#allocation9 + $0x1b08] ss:$16 sps:$4 sm:$0xff]  }
 0xe30   :  { %13889 = vmatprep.subr.bf16.mxu0 %v18624_v19  ;;  %v18660_v62 = vld [vmem:[#allocation12 + $0xb4] ss:$8 sps:$4 sm:$0xff]   ;;  %v18658_v17 = vld [vmem:[#allocation12 + $0xb0] ss:$8 sps:$4 sm:$0xff]   ;;  %v18663_v20 = vld [vmem:[#allocation12 + $0xa4] ss:$8 sps:$4 sm:$0xff]  }
 0xe31   :  { %13376 = vmatprep.mubr.bf16.mxu1 %v12637_v21  ;;  %v18678_v19 = vld [vmem:[#allocation12 + $0x154] ss:$8 sps:$4 sm:$0xff]  }
 0xe32   :  { %13377 = vmatmul.mubr.bf16.vlgmr.msra.gmra.mxu1 %v19389_v10  ;;  %13420 = vmatmul.mubr.bf16.vlgmr.msra.gmra.mxu0 %v19382_v23  ;;  %v18630_v23 = vld [vmem:[#allocation12 + $0x54] ss:$8 sps:$4 sm:$0xff]  }
 0xe33   :  { %13431 = vmatpush1.bf16.msra.mxu1 %v18574_v18  ;;  %13462 = vmatprep.mubr.bf16.mxu1 %v12637_v21  ;;  %v18661_v21 = vld [vmem:[#allocation12 + $0xa0] ss:$8 sps:$4 sm:$0xff]   ;;  %v18666_v18 = vld [vmem:[#allocation12 + $0x94] ss:$8 sps:$4 sm:$0xff]  }
 0xe34   :  { %13432 = vmatprep.subr.bf16.mxu1 %v18579_v6  ;;  %13890 = vmatpush1.bf16.msra.mxu0 %v18622_v63  ;;  %v18664_v6 = vld [vmem:[#allocation12 + $0x90] ss:$8 sps:$4 sm:$0xff]   ;;  %v18675_v63 = vld [vmem:[#allocation12 + $0x164] ss:$8 sps:$4 sm:$0xff]  }
 0xe35   :  { %13891 = vmatprep.subr.bf16.mxu0 %v18627_v28  ;;  %v18676_v28 = vld [vmem:[#allocation12 + $0x150] ss:$8 sps:$4 sm:$0xff]  }
 0xe37   :  { %13433 = vmatpush1.bf16.msra.mxu1 %v18577_v25  ;;  %v18667_v25 = vld [vmem:[#allocation12 + $0x80] ss:$8 sps:$4 sm:$0xff]  }
 0xe38   :  { %13434 = vmatprep.subr.bf16.mxu1 %v18582_v26  ;;  %13892 = vmatpush1.bf16.msra.mxu0 %v18625_v15  ;;  %v18669_v26 = vld [vmem:[#allocation12 + $0x84] ss:$8 sps:$4 sm:$0xff]   ;;  %v18684_v15 = vld [vmem:[#allocation12 + $0x134] ss:$8 sps:$4 sm:$0xff]  }
 0xe39   :  { %13893 = vmatprep.subr.bf16.mxu0 %v18630_v23  ;;  %v18682_v23 = vld [vmem:[#allocation12 + $0x130] ss:$8 sps:$4 sm:$0xff]  }
 0xe3b   :  { %13435 = vmatpush1.bf16.msra.mxu1 %v18580_v24  ;;  %v18672_v24 = vld [vmem:[#allocation12 + $0x174] ss:$8 sps:$4 sm:$0xff]  }
 0xe3c   :  { %13436 = vmatprep.subr.bf16.mxu1 %v18585_v27  ;;  %13894 = vmatpush1.bf16.msra.mxu0 %v18628_v33  ;;  %v18670_v27 = vld [vmem:[#allocation12 + $0x170] ss:$8 sps:$4 sm:$0xff]   ;;  %v18690_v33 = vld [vmem:[#allocation12 + $0x114] ss:$8 sps:$4 sm:$0xff]  }
 0xe3d   :  { %13895 = vmatprep.subr.bf16.mxu0 %v18633_v36  ;;  %v18688_v36 = vld [vmem:[#allocation12 + $0x110] ss:$8 sps:$4 sm:$0xff]  }
 0xe3f   :  { %13437 = vmatpush1.bf16.msra.mxu1 %v18583_v22  ;;  %v18681_v22 = vld [vmem:[#allocation12 + $0x144] ss:$8 sps:$4 sm:$0xff]  }
 0xe40   :  { %13438 = vmatprep.subr.bf16.mxu1 %v18588_v29  ;;  %13896 = vmatpush1.bf16.msra.mxu0 %v18631_v38  ;;  %v18679_v29 = vld [vmem:[#allocation12 + $0x140] ss:$8 sps:$4 sm:$0xff]   ;;  %v18696_v38 = vld [vmem:[#allocation12 + $0x1f4] ss:$8 sps:$4 sm:$0xff]  }
 0xe41   :  { %13897 = vmatprep.subr.bf16.mxu0 %v18636_v35  ;;  %v18694_v35 = vld [vmem:[#allocation12 + $0x1f0] ss:$8 sps:$4 sm:$0xff]  }
 0xe43   :  { %13439 = vmatpush1.bf16.msra.mxu1 %v18586_v30  ;;  %v18687_v30 = vld [vmem:[#allocation12 + $0x124] ss:$8 sps:$4 sm:$0xff]  }
 0xe44   :  { %13440 = vmatprep.subr.bf16.mxu1 %v18591_v32  ;;  %13898 = vmatpush1.bf16.msra.mxu0 %v18634_v40  ;;  %v18685_v32 = vld [vmem:[#allocation12 + $0x120] ss:$8 sps:$4 sm:$0xff]   ;;  %v18702_v40 = vld [vmem:[#allocation12 + $0x1d4] ss:$8 sps:$4 sm:$0xff]  }
 0xe45   :  { %13899 = vmatprep.subr.bf16.mxu0 %v18639_v0  ;;  %v18700_v0 = vld [vmem:[#allocation12 + $0x1d0] ss:$8 sps:$4 sm:$0xff]  }
 0xe47   :  { %13441 = vmatpush1.bf16.msra.mxu1 %v18589_v37  ;;  %v18693_v37 = vld [vmem:[#allocation12 + $0x104] ss:$8 sps:$4 sm:$0xff]  }
 0xe48   :  { %13442 = vmatprep.subr.bf16.mxu1 %v18594_v39  ;;  %13900 = vmatpush1.bf16.msra.mxu0 %v18637_v49  ;;  %v18691_v39 = vld [vmem:[#allocation12 + $0x100] ss:$8 sps:$4 sm:$0xff]   ;;  %v18708_v49 = vld [vmem:[#allocation12 + $0x1b4] ss:$8 sps:$4 sm:$0xff]  }
 0xe49   :  { %13901 = vmatprep.subr.bf16.mxu0 %v18642_v34  ;;  %v18706_v34 = vld [vmem:[#allocation12 + $0x1b0] ss:$8 sps:$4 sm:$0xff]  }
 0xe4b   :  { %13443 = vmatpush1.bf16.msra.mxu1 %v18592_v13  ;;  %v18699_v13 = vld [vmem:[#allocation12 + $0x1e4] ss:$8 sps:$4 sm:$0xff]  }
 0xe4c   :  { %13444 = vmatprep.subr.bf16.mxu1 %v18597_v45  ;;  %13902 = vmatpush1.bf16.msra.mxu0 %v18640_v53  ;;  %v18697_v45 = vld [vmem:[#allocation12 + $0x1e0] ss:$8 sps:$4 sm:$0xff]   ;;  %v18714_v53 = vld [vmem:[#allocation12 + $0x194] ss:$8 sps:$4 sm:$0xff]  }
 0xe4d   :  { %13903 = vmatprep.subr.bf16.mxu0 %v18645_v52  ;;  %v18712_v52 = vld [vmem:[#allocation12 + $0x190] ss:$8 sps:$4 sm:$0xff]  }
 0xe4f   :  { %13445 = vmatpush1.bf16.msra.mxu1 %v18595_v47  ;;  %v18705_v47 = vld [vmem:[#allocation12 + $0x1c4] ss:$8 sps:$4 sm:$0xff]  }
 0xe50   :  { %13446 = vmatprep.subr.bf16.mxu1 %v18600_v48  ;;  %13904 = vmatpush1.bf16.msra.mxu0 %v18643_v59  ;;  %v18703_v48 = vld [vmem:[#allocation12 + $0x1c0] ss:$8 sps:$4 sm:$0xff]  }
 0xe51   :  { %13905 = vmatprep.subr.bf16.mxu0 %v18648_v60 }
 0xe53   :  { %13447 = vmatpush2.bf16.msra.mxu1 %v18598_v50  ;;  %v18711_v50 = vld [vmem:[#allocation12 + $0x1a4] ss:$8 sps:$4 sm:$0xff]  }
 0xe54   :  { %13448 = vmatprep.subr.bf16.mxu1 %v18603_v51  ;;  %13906 = vmatpush2.bf16.msra.mxu0 %v18646_v12  ;;  %v18709_v51 = vld [vmem:[#allocation12 + $0x1a0] ss:$8 sps:$4 sm:$0xff]  }
 0xe55   :  { %13907 = vmatprep.subr.bf16.mxu0 %v18651_v2 }
 0xe57   :  { %13449 = vmatpush2.bf16.msra.mxu1 %v18601_v46  ;;  %v18717_v46 = vld [vmem:[#allocation12 + $0x184] ss:$8 sps:$4 sm:$0xff]  }
 0xe58   :  { %13450 = vmatprep.subr.bf16.mxu1 %v18606_v57  ;;  %13908 = vmatpush2.bf16.msra.mxu0 %v18649_v4  ;;  %v18715_v57 = vld [vmem:[#allocation12 + $0x180] ss:$8 sps:$4 sm:$0xff]  }
 0xe59   :  { %13909 = vmatprep.subr.bf16.mxu0 %v18654_v58 }
 0xe5b   :  { %13451 = vmatpush2.bf16.msra.mxu1 %v18604_v61  ;;  %v12639_v61 = vld [vmem:[#allocation10 + $0x18] sm:$0xf] }
 0xe5c   :  { %13452 = vmatprep.subr.bf16.mxu1 %v18609_v54  ;;  %13910 = vmatpush2.bf16.msra.mxu0 %v18652_v8  ;;  %v12648_v54 = vrot.slane %v12639_v61, %v19083_v43  ;;  %v12644_v12 = vrot.slane %v12639_v61, %v19079_v41 }
 0xe5d   :  { %13911 = vmatprep.subr.bf16.mxu0 %v18657_v1 }
 0xe5f   :  { %13453 = vmatpush2.bf16.msra.mxu1 %v18607_v3 }
 0xe60   :  { %13454 = vmatprep.subr.bf16.mxu1 %v18612_v55  ;;  %13912 = vmatpush2.bf16.msra.mxu0 %v18655_v11 }
 0xe61   :  { %13913 = vmatprep.subr.bf16.mxu0 %v18660_v62 }
 0xe63   :  { %13455 = vmatpush2.bf16.msra.mxu1 %v18610_v31 }
 0xe64   :  { %13456 = vmatprep.subr.bf16.mxu1 %v18615_v7  ;;  %13914 = vmatpush2.bf16.msra.mxu0 %v18658_v17 }
 0xe65   :  { %13915 = vmatprep.subr.bf16.mxu0 %v18663_v20 }
 0xe67   :  { %13457 = vmatpush2.bf16.msra.mxu1 %v18613_v9 }
 0xe68   :  { %13458 = vmatprep.subr.bf16.mxu1 %v18618_v56  ;;  %13916 = vmatpush2.bf16.msra.mxu0 %v18661_v21 }
 0xe69   :  { %13917 = vmatprep.subr.bf16.mxu0 %v18666_v18 }
 0xe6b   :  { %13459 = vmatpush2.bf16.msra.mxu1 %v18616_v14 }
 0xe6c   :  { %13460 = vmatprep.subr.bf16.mxu1 %v18621_v16  ;;  %13918 = vmatpush2.bf16.msra.mxu0 %v18664_v6 }
 0xe6d   :  { %13919 = vmatprep.subr.bf16.mxu0 %v18669_v26 }
 0xe6f   :  { %13461 = vmatpush2.bf16.msra.mxu1 %v18619_v5 }
 0xe70   :  { %13920 = vmatpush2.bf16.msra.mxu0 %v18667_v25  ;;  %13932 = vmatprep.subr.bf16.mxu1 %v18672_v24 }
 0xe72   :  { %13463 = vmatmul.mubr.bf16.vlgmr.msra.gmra.mxu1 %v19389_v10  ;;  %v18673_v10 = vld [vmem:[#allocation12 + $0x160] ss:$8 sps:$4 sm:$0xff]  }
 0xe73   :  { %13933 = vmatpush1.bf16.msra.mxu1 %v18670_v27 }
 0xe74   :  { %13934 = vmatprep.subr.bf16.mxu1 %v18675_v63 }
 0xe77   :  { %13935 = vmatpush1.bf16.msra.mxu1 %v18673_v10  ;;  %v12656_v10 = vrot.slane %v12639_v61, %v19085_v44 }
 0xe78   :  { %13936 = vmatprep.subr.bf16.mxu1 %v18678_v19  ;;  %v12652_v19 = vrot.slane %v12639_v61, %v19081_v42  ;;  %v18725_v61 = vld [vmem:[#allocation15 + $0x20] sm:$0xff]  }
 0xe7b   :  { %13937 = vmatpush1.bf16.msra.mxu1 %v18676_v28 }
 0xe7c   :  { %13938 = vmatprep.subr.bf16.mxu1 %v18681_v22 }
 0xe7f   :  { %13939 = vmatpush1.bf16.msra.mxu1 %v18679_v29 }
 0xe80   :  { %13940 = vmatprep.subr.bf16.mxu1 %v18684_v15 }
 0xe83   :  { %13941 = vmatpush1.bf16.msra.mxu1 %v18682_v23 }
 0xe84   :  { %13942 = vmatprep.subr.bf16.mxu1 %v18687_v30 }
 0xe87   :  { %13943 = vmatpush1.bf16.msra.mxu1 %v18685_v32 }
 0xe88   :  { %13944 = vmatprep.subr.bf16.mxu1 %v18690_v33 }
 0xe8b   :  { %13945 = vmatpush1.bf16.msra.mxu1 %v18688_v36 }
 0xe8c   :  { %13946 = vmatprep.subr.bf16.mxu1 %v18693_v37 }
 0xe8f   :  { %13947 = vmatpush1.bf16.msra.mxu1 %v18691_v39 }
 0xe90   :  { %13948 = vmatprep.subr.bf16.mxu1 %v18696_v38 }
 0xe93   :  { %13949 = vmatpush2.bf16.msra.mxu1 %v18694_v35 }
 0xe94   :  { %13950 = vmatprep.subr.bf16.mxu1 %v18699_v13 }
 0xe97   :  { %13951 = vmatpush2.bf16.msra.mxu1 %v18697_v45 }
 0xe98   :  { %13952 = vmatprep.subr.bf16.mxu1 %v18702_v40 }
 0xe9b   :  { %13953 = vmatpush2.bf16.msra.mxu1 %v18700_v0 }
 0xe9c   :  { %13954 = vmatprep.subr.bf16.mxu1 %v18705_v47 }
 0xe9f   :  { %13955 = vmatpush2.bf16.msra.mxu1 %v18703_v48 }
 0xea0   :  { %13956 = vmatprep.subr.bf16.mxu1 %v18708_v49 }
 0xea3   :  { %13957 = vmatpush2.bf16.msra.mxu1 %v18706_v34 }
 0xea4   :  { %13958 = vmatprep.subr.bf16.mxu1 %v18711_v50 }
 0xea7   :  { %13959 = vmatpush2.bf16.msra.mxu1 %v18709_v51  ;;  %v18718_v51 = vld [vmem:[#allocation15 + $0x78] sm:$0xff]  }
 0xea8   :  { %13960 = vmatprep.subr.bf16.mxu1 %v18714_v53  ;;  %v18719_v53 = vld [vmem:[#allocation15 + $0x38] sm:$0xff]   ;;  %15991 = vmatprep.subr.bf16.mxu0 %v18718_v51 }
 0xeab   :  { %13961 = vmatpush2.bf16.msra.mxu1 %v18712_v52  ;;  %v18720_v52 = vld [vmem:[#allocation15 + $0x70] sm:$0xff]  }
 0xeac   :  { %13962 = vmatprep.subr.bf16.mxu1 %v18717_v46  ;;  %v18721_v46 = vld [vmem:[#allocation15 + $0x30] sm:$0xff]  }
 0xeaf   :  { %13963 = vmatpush2.bf16.msra.mxu1 %v18715_v57  ;;  %v18722_v57 = vld [vmem:[#allocation15 + $0x68] sm:$0xff]  }
 0xeb2   :  { %v13335_v59 = vpop.f32.mrf.mxu0 }
 0xeb3   :  { %v13336_v4 = vadd.f32 %v13335_v59, %v12644_v12  ;;  %v18723_v59 = vld [vmem:[#allocation15 + $0x28] sm:$0xff]  }
 0xeb4   :  { %v13337_v60 = vpop.f32.mrf.mxu0 }
 0xeb5   :  { %v13338_v55 = vadd.f32 %v13337_v60, %v12648_v54  ;;  %v18724_v60 = vld [vmem:[#allocation15 + $0x60] sm:$0xff]  }
 0xeb6   :  { %v13339_v2 = vpop.f32.mrf.mxu0 }
 0xeb7   :  { %v13340_v7 = vadd.f32 %v13339_v2, %v12644_v12  ;;  %v18727_v12 = vld [vmem:[#allocation15 + $0x18] sm:$0xff]   ;;  %v18728_v2 = vld [vmem:[#allocation15 + $0x50] sm:$0xff]  }
 0xeb8   :  { %v13341_v58 = vpop.f32.mrf.mxu0 }
 0xeb9   :  { %v13342_v56 = vadd.f32 %v13341_v58, %v12648_v54  ;;  %v18726_v54 = vld [vmem:[#allocation15 + $0x58] sm:$0xff]   ;;  %v18732_v58 = vld [vmem:[#allocation15 + $0x40] sm:$0xff]  }
 0xef2   :  { %v13378_v3 = vpop.f32.mrf.mxu1  ;;  %v13421_v27 = vpop.f32.mrf.mxu0 }
 0xef3   :  { %v13379_v1 = vadd.f32 %v13378_v3, %v13336_v4  ;;  %v13422_v15 = vadd.f32 %v13421_v27, %v12652_v19  ;;  %v18729_v3 = vld [vmem:[#allocation15 + $0x10] sm:$0xff]   ;;  %v18731_v4 = vld [vmem:[#allocation15 + $0x8] sm:$0xff]  }
 0xef4   :  { %v13380_v31 = vpop.f32.mrf.mxu1  ;;  %v13423_v63 = vpop.f32.mrf.mxu0 }
 0xef5   :  { %v13381_v8 = vadd.f32 %v13380_v31, %v13338_v55  ;;  %v13473_v17 = vmul.f32 0.01, %v13379_v1  ;;  %v13424_v29 = vadd.f32 %v13423_v63, %v12656_v10  ;;  %v18730_v55 = vld [vmem:[#allocation15 + $0x48] sm:$0xff]   ;;  %v18733_v31 = vld [vmem:[#allocation15] sm:$0xff]  }
 0xef6   :  { %v13382_v9 = vpop.f32.mrf.mxu1  ;;  %v13425_v28 = vpop.f32.mrf.mxu0 }
 0xef7   :  { %v13383_v11 = vadd.f32 %v13382_v9, %v13340_v7  ;;  %v13474_v16 = vmul.f32 0.01, %v13381_v8  ;;  %v13481_v25 = vmax.f32 %v13379_v1, %v13473_v17  ;;  %v13426_v32 = vadd.f32 %v13425_v28, %v12652_v19  ;;  %v13557_v1 = vld [vmem:[#allocation13] sm:$0x3] }
 0xef8   :  { %v13384_v14 = vpop.f32.mrf.mxu1  ;;  %v13427_v23 = vpop.f32.mrf.mxu0  ;;  %v13566_v9 = vrot.slane %v13557_v1, %v19083_v43 }
 0xef9   :  { %v13477_v5 = vmul.f32 0.01, %v13383_v11  ;;  %v13385_v62 = vadd.f32 %v13384_v14, %v13342_v56  ;;  %v13482_v18 = vmax.f32 %v13381_v8, %v13474_v16  ;;  %v13428_v39 = vadd.f32 %v13427_v23, %v12656_v10 }
 0xefa   :  { %v13562_v56 = vrot.slane %v13557_v1, %v19079_v41 }
 0xefb   :  { %v13478_v20 = vmul.f32 0.01, %v13385_v62  ;;  %v13485_v21 = vmax.f32 %v13383_v11, %v13477_v5 }
 0xefd   :  { %v13486_v6 = vmax.f32 %v13385_v62, %v13478_v20  ;;  %v13553_v24 = vpack.c.bf16 %v13485_v21, %v13481_v25 }
 0xeff   :  { %v13554_v26 = vpack.c.bf16 %v13486_v6, %v13482_v18 }
 0xf01   :  { %13921 = vmatprep.mubr.bf16.mxu0 %v13554_v26 }
 0xf02   :  { %13922 = vmatmul.mubr.bf16.vlgmr.msra.gmra.mxu0 %v13553_v24 }
 0xf03   :  { %15992 = vmatpush3.bf16.msra.mxu0 %v18719_v53 }
 0xf04   :  { %15993 = vmatprep.subr.bf16.mxu0 %v18720_v52 }
 0xf07   :  { %15994 = vmatpush3.bf16.msra.mxu0 %v18721_v46 }
 0xf08   :  { %15995 = vmatprep.subr.bf16.mxu0 %v18722_v57 }
 0xf0b   :  { %15996 = vmatpush3.bf16.msra.mxu0 %v18723_v59 }
 0xf0c   :  { %15997 = vmatprep.subr.bf16.mxu0 %v18724_v60 }
 0xf0f   :  { %15998 = vmatpush3.bf16.msra.mxu0 %v18725_v61 }
 0xf10   :  { %15999 = vmatprep.subr.bf16.mxu0 %v18726_v54 }
 0xf13   :  { %16000 = vmatpush3.bf16.msra.mxu0 %v18727_v12 }
 0xf14   :  { %16001 = vmatprep.subr.bf16.mxu0 %v18728_v2 }
 0xf17   :  { %16002 = vmatpush3.bf16.msra.mxu0 %v18729_v3 }
 0xf18   :  { %16003 = vmatprep.subr.bf16.mxu0 %v18730_v55 }
 0xf1b   :  { %16004 = vmatpush3.bf16.msra.mxu0 %v18731_v4 }
 0xf1c   :  { %16005 = vmatprep.subr.bf16.mxu0 %v18732_v58 }
 0xf1f   :  { %16006 = vmatpush3.bf16.msra.mxu0 %v18733_v31 }
 0xf32   :  { %v13464_v22 = vpop.f32.mrf.mxu1 }
 0xf33   :  { %v13465_v36 = vadd.f32 %v13464_v22, %v13422_v15 }
 0xf34   :  { %v13466_v30 = vpop.f32.mrf.mxu1 }
 0xf35   :  { %v13467_v33 = vadd.f32 %v13466_v30, %v13424_v29  ;;  %v13475_v0 = vmul.f32 0.01, %v13465_v36 }
 0xf36   :  { %v13468_v37 = vpop.f32.mrf.mxu1 }
 0xf37   :  { %v13469_v38 = vadd.f32 %v13468_v37, %v13426_v32  ;;  %v13476_v13 = vmul.f32 0.01, %v13467_v33  ;;  %v13483_v49 = vmax.f32 %v13465_v36, %v13475_v0  ;;  %v15974_v32 = vld [vmem:[#allocation16] ss:$0 sm:$0xff] }
 0xf38   :  { %v13470_v35 = vpop.f32.mrf.mxu1 }
 0xf39   :  { %v13479_v45 = vmul.f32 0.01, %v13469_v38  ;;  %v13471_v40 = vadd.f32 %v13470_v35, %v13428_v39  ;;  %v13484_v42 = vmax.f32 %v13467_v33, %v13476_v13 }
 0xf3b   :  { %v13480_v44 = vmul.f32 0.01, %v13471_v40  ;;  %v13487_v47 = vmax.f32 %v13469_v38, %v13479_v45 }
 0xf3d   :  { %v13488_v48 = vmax.f32 %v13471_v40, %v13480_v44  ;;  %v13555_v50 = vpack.c.bf16 %v13487_v47, %v13483_v49 }
 0xf3f   :  { %v13556_v34 = vpack.c.bf16 %v13488_v48, %v13484_v42 }
 0xf41   :  { %13964 = vmatprep.mubr.bf16.mxu1 %v13556_v34 }
 0xf42   :  { %13965 = vmatmul.mubr.bf16.vlgmr.msra.gmra.mxu1 %v13555_v50 }
 0xfc2   :  { %v13923_v7 = vpop.f32.mrf.mxu0 }
 0xfc3   :  { %v13924_v5 = vadd.f32 %v13923_v7, %v13562_v56 }
 0xfc4   :  { %v13925_v8 = vpop.f32.mrf.mxu0 }
 0xfc5   :  { %v13926_v16 = vadd.f32 %v13925_v8, %v13566_v9 }
 0xfc6   :  { %v13927_v11 = vpop.f32.mrf.mxu0 }
 0xfc7   :  { %v13928_v20 = vadd.f32 %v13927_v11, %v13562_v56 }
 0xfc8   :  { %v13929_v62 = vpop.f32.mrf.mxu0 }
 0xfc9   :  { %v13930_v25 = vadd.f32 %v13929_v62, %v13566_v9 }
0x1002   :  { %v13966_v14 = vpop.f32.mrf.mxu1 }
0x1003   :  { %v13967_v18 = vadd.f32 %v13966_v14, %v13924_v5 }
0x1004   :  { %v13968_v17 = vpop.f32.mrf.mxu1 }
0x1005   :  { %v13969_v21 = vadd.f32 %v13968_v17, %v13926_v16  ;;  %v13975_v19 = vmul.f32 0.01, %v13967_v18 }
0x1006   :  { %v13970_v6 = vpop.f32.mrf.mxu1 }
0x1007   :  { %v13971_v26 = vadd.f32 %v13970_v6, %v13928_v20  ;;  %v13976_v27 = vmul.f32 0.01, %v13969_v21  ;;  %v13979_v29 = vmax.f32 %v13967_v18, %v13975_v19 }
0x1008   :  { %v13972_v24 = vpop.f32.mrf.mxu1 }
0x1009   :  { %v13977_v63 = vmul.f32 0.01, %v13971_v26  ;;  %v13973_v10 = vadd.f32 %v13972_v24, %v13930_v25  ;;  %v13980_v41 = vmax.f32 %v13969_v21, %v13976_v27 }
0x100b   :  { %v13978_v43 = vmul.f32 0.01, %v13973_v10  ;;  %v13981_v28 = vmax.f32 %v13971_v26, %v13977_v63 }
0x100d   :  { %v13982_v22 = vmax.f32 %v13973_v10, %v13978_v43  ;;  %v14015_v23 = vpack.c.bf16 %v13981_v28, %v13979_v29 }
0x100f   :  { %v14016_v15 = vpack.c.bf16 %v13982_v22, %v13980_v41 }
0x1011   :  { %14152 = vmatprep.mubr.bf16.mxu0 %v14016_v15 }
0x1012   :  { %14153 = vmatmul.mubr.bf16.vlgmr.msra.gmra.mxu0 %v14015_v23 }
0x10d2   :  { %v16007_v30 = vpop.f32.mrf.mxu0 }
0x10d4   :  { %v16008_v33 = vpop.f32.mrf.mxu0 }
0x10d5   :  { %v16009_v36 = vadd.f32 %v16008_v33, %v16007_v30 }
0x10d6   :  { %v16010_v37 = vpop.f32.mrf.mxu0 }
0x10d7   :  { %v14155_v39 = vadd.f32 %v16009_v36, %v15974_v32 }
0x10d8   :  { %v16011_v38 = vpop.f32.mrf.mxu0 }
0x10d9   :  { %14161 = vst [vmem:[%s19418_s12] sm:$0xff] %v14155_v39  ;;  %v16012_v35 = vadd.f32 %v16011_v38, %v16010_v37 }
0x10db   :  { %v14158_v13 = vadd.f32 %v16012_v35, %v15974_v32 }
0x10dd   :  { %14162 = vst [vmem:[%s19418_s12 + $0x8] sm:$0xff] %v14158_v13 }
0x10de   :  { %14171 = vsyncpa [#allocation3], 1 }
0x10df   :  { %14172 = vsyncpa [#allocation5], 1 }
0x10e0   :  { %14173 = vsyncpa [#allocation8], 1 }
0x10e1   :  { %14174 = vsyncpa [#allocation11], 1 }
0x10e2   :  { %14175 = vsyncpa [#allocation14], 1 }
0x10e3   :  { %14176 = vsyncpa [#allocation17], 1 }

</bundles_post_ra>
